<compile_context>
chip_gen: v6e
topology: v6e:2x2x1
jax: 0.10.0
libtpu: 0.0.40
codegen_flags: <defaults>
</compile_context>

<pallas_src>
import functools

import jax
import jax.numpy as jnp
from jax import lax
from jax.experimental import pallas as pl
from jax.experimental.pallas import tpu as pltpu


VMEM_LIMIT_BYTES = 48 * 1024 * 1024  # explicit scoped-VMEM headroom (fits v7x's 64 MiB)


# ------------------------------ shared helpers ------------------------------

def _ln_f32(x, g, b, eps=1e-5):
    """LayerNorm in f32. x: (T, D), g/b: (1, D)."""
    mu = jnp.mean(x, axis=-1, keepdims=True)
    xc = x - mu
    var = jnp.mean(xc * xc, axis=-1, keepdims=True)
    return xc * lax.rsqrt(var + eps) * g + b


# --------------------------- positional embedding ---------------------------

def _add_pos_kernel(x_ref, p_ref, o_ref):
    o_ref[...] = x_ref[...] + p_ref[...][None]


def add_positions(x, pos):
    """x: (B, T, D); pos: (T, D)."""
    B, T, D = x.shape
    return pl.pallas_call(
        _add_pos_kernel,
        out_shape=jax.ShapeDtypeStruct((B, T, D), x.dtype),
        grid=(B,),
        in_specs=[
            pl.BlockSpec((1, T, D), lambda b: (b, 0, 0)),
            pl.BlockSpec((T, D), lambda b: (0, 0)),
        ],
        out_specs=pl.BlockSpec((1, T, D), lambda b: (b, 0, 0)),
        compiler_params=pltpu.CompilerParams(dimension_semantics=("parallel",)),
    )(x, pos)


# --------------------- fused pre-LN multi-head attention --------------------

def _attn_block_kernel(*refs, num_heads, cross):
    if cross:
        (x_ref, xa_ref, lng_ref, lnb_ref, wq_ref, bq_ref, wk_ref, bk_ref,
         wv_ref, bv_ref, wo_ref, bo_ref, o_ref, ctx_ref) = refs
    else:
        (x_ref, lng_ref, lnb_ref, wq_ref, bq_ref, wk_ref, bk_ref,
         wv_ref, bv_ref, wo_ref, bo_ref, o_ref, ctx_ref) = refs
        xa_ref = None

    x = x_ref[0].astype(jnp.float32)                      # (Tq, D) residual stream
    h = _ln_f32(x, lng_ref[...], lnb_ref[...])            # pre-LN (f32)
    hq = h.astype(jnp.bfloat16)                           # MXU inputs in bf16
    hkv = xa_ref[0].astype(jnp.bfloat16) if cross else hq  # cross uses raw encoder outs

    D = x.shape[-1]
    dh = D // num_heads
    scale = 1.0 / float(dh) ** 0.5

    # Full-width (lane-dense) Q/K/V projections; scale folded into q.
    q = (jnp.dot(hq, wq_ref[...], preferred_element_type=jnp.float32)
         + bq_ref[...]) * scale
    k = jnp.dot(hkv, wk_ref[...], preferred_element_type=jnp.float32) + bk_ref[...]
    v = jnp.dot(hkv, wv_ref[...], preferred_element_type=jnp.float32) + bv_ref[...]
    q = q.astype(jnp.bfloat16)
    k = k.astype(jnp.bfloat16)
    v = v.astype(jnp.bfloat16)

    # All heads of this batch element in one grid step; static lane slices.
    for hd in range(num_heads):
        sl = slice(hd * dh, (hd + 1) * dh)
        qh = q[:, sl]                                     # (Tq, dh)
        kh = k[:, sl]                                     # (Tk, dh)
        vh = v[:, sl]                                     # (Tk, dh)
        # scores = qh @ kh^T without materializing a transpose of kh
        s = lax.dot_general(qh, kh, (((1,), (1,)), ((), ())),
                            preferred_element_type=jnp.float32)     # (Tq, Tk)
        m = jnp.max(s, axis=-1, keepdims=True)
        p = jnp.exp(s - m)
        l = jnp.sum(p, axis=-1, keepdims=True)
        ctx_h = jnp.dot(p.astype(jnp.bfloat16), vh,
                        preferred_element_type=jnp.float32)          # (Tq, dh)
        ctx_ref[:, sl] = ctx_h * pl.reciprocal(l, approx=True)

    # Output projection + residual, single lane-dense store.
    ctx = ctx_ref[...].astype(jnp.bfloat16)
    out = jnp.dot(ctx, wo_ref[...], preferred_element_type=jnp.float32) + bo_ref[...]
    o_ref[0] = (out + x).astype(o_ref.dtype)


def attention_block(x, xa, ln_g, ln_b, ap, num_heads, *, cross):
    """x: (B, Tq, D) decoder stream; xa: (B, Tk, D) encoder outs (cross only)."""
    B, Tq, D = x.shape
    Tkv = xa.shape[1] if cross else Tq

    def full(shape):
        return pl.BlockSpec(shape, lambda b, _s=len(shape): (0,) * _s)

    in_specs = [pl.BlockSpec((1, Tq, D), lambda b: (b, 0, 0))]
    args = [x]
    if cross:
        in_specs.append(pl.BlockSpec((1, Tkv, D), lambda b: (b, 0, 0)))
        args.append(xa)
    in_specs += [full((1, D)), full((1, D)),
                 full((D, D)), full((1, D)),
                 full((D, D)), full((1, D)),
                 full((D, D)), full((1, D)),
                 full((D, D)), full((1, D))]
    args += [ln_g, ln_b, ap["wq"], ap["bq"], ap["wk"], ap["bk"],
             ap["wv"], ap["bv"], ap["wo"], ap["bo"]]

    flops = 2 * B * D * D * (2 * Tq + 2 * Tkv) + 4 * B * Tq * Tkv * D
    bytes_accessed = (4 * B * Tq * D * 2 + (4 * B * Tkv * D if cross else 0)
                      + 2 * 4 * D * D + 8 * 4 * D)

    return pl.pallas_call(
        functools.partial(_attn_block_kernel, num_heads=num_heads, cross=cross),
        out_shape=jax.ShapeDtypeStruct((B, Tq, D), x.dtype),
        grid=(B,),
        in_specs=in_specs,
        out_specs=pl.BlockSpec((1, Tq, D), lambda b: (b, 0, 0)),
        scratch_shapes=[pltpu.VMEM((Tq, D), jnp.float32)],
        input_output_aliases={0: 0},   # residual add in place (x buffer reused)
        cost_estimate=pl.CostEstimate(flops=flops,
                                      transcendentals=B * Tq * Tkv,
                                      bytes_accessed=bytes_accessed),
        compiler_params=pltpu.CompilerParams(
            dimension_semantics=("parallel",),
            vmem_limit_bytes=VMEM_LIMIT_BYTES),
    )(*args)


# ------------------- fused pre-LN Conv1d([k, 1]) feed-forward ----------------

def _conv_ffn_kernel(x_ref, lng_ref, lnb_ref, w1_ref, b1_ref, w2_ref, b2_ref,
                     o_ref, *, k1, pad_l):
    x = x_ref[0].astype(jnp.float32)                      # (T, D) residual stream
    T, D = x.shape
    F = w1_ref.shape[-1]
    h32 = _ln_f32(x, lng_ref[...], lnb_ref[...])          # pre-LN (f32)

    # Conv1d(kernel=k1, 'same' zero padding) as k1 shifted matmuls against the
    # (D, F) weight slices: out[i] += h[i + s] @ w1[j], s = j - pad_l.
    acc = jnp.zeros((T, F), jnp.float32)
    for j in range(k1):
        s = j - pad_l
        if s == 0:
            hj32 = h32
        elif s > 0:
            hj32 = jnp.concatenate(
                [h32[s:], jnp.zeros((s, D), jnp.float32)], axis=0)
        else:
            hj32 = jnp.concatenate(
                [jnp.zeros((-s, D), jnp.float32), h32[:s]], axis=0)
        acc = acc + jnp.dot(hj32.astype(jnp.bfloat16), w1_ref[j],
                            preferred_element_type=jnp.float32)

    f = jnp.maximum(acc + b1_ref[...], 0.0).astype(jnp.bfloat16)     # ReLU
    out = jnp.dot(f, w2_ref[...], preferred_element_type=jnp.float32) + b2_ref[...]
    o_ref[0] = (out + x).astype(o_ref.dtype)                          # Conv1d(kernel=1) + residual


def conv_ffn_block(x, p, kernel_size):
    B, T, D = x.shape
    k1, k2 = kernel_size
    assert k2 == 1, "second conv kernel size assumed to be 1"
    pad_l = (k1 - 1) // 2
    F = p["ffn_w1"].shape[-1]

    def full(shape):
        return pl.BlockSpec(shape, lambda b, _s=len(shape): (0,) * _s)

    flops = 2 * B * T * D * F * k1 + 2 * B * T * F * D
    bytes_accessed = 4 * B * T * D * 2 + 2 * (k1 * D * F + F * D)

    return pl.pallas_call(
        functools.partial(_conv_ffn_kernel, k1=k1, pad_l=pad_l),
        out_shape=jax.ShapeDtypeStruct((B, T, D), x.dtype),
        grid=(B,),
        in_specs=[
            pl.BlockSpec((1, T, D), lambda b: (b, 0, 0)),
            full((1, D)), full((1, D)),
            full((k1, D, F)), full((1, F)),
            full((F, D)), full((1, D)),
        ],
        out_specs=pl.BlockSpec((1, T, D), lambda b: (b, 0, 0)),
        input_output_aliases={0: 0},
        cost_estimate=pl.CostEstimate(flops=flops, transcendentals=0,
                                      bytes_accessed=bytes_accessed),
        compiler_params=pltpu.CompilerParams(
            dimension_semantics=("parallel",),
            vmem_limit_bytes=VMEM_LIMIT_BYTES),
    )(x, p["ln3_g"], p["ln3_b"], p["ffn_w1"], p["ffn_b1"],
      p["ffn_w2"], p["ffn_b2"])


# ------------------------------- decoder glue --------------------------------

def decoder_forward(encoder_outs, decoder_targets, params, num_heads, kernel_size):
    """encoder_outs: (B, T_enc, D); decoder_targets: (B, T_dec, D)."""
    T = decoder_targets.shape[1]
    pos = params["pos_emb"][:T]                    # pos_emb(arange)[:maxlen]
    x = add_positions(decoder_targets, pos)        # x = decoder_targets + positions
    for blk in params["blocks"]:
        x = attention_block(x, None, blk["ln1_g"], blk["ln1_b"],
                            blk["self_attn"], num_heads, cross=False)
        x = attention_block(x, encoder_outs, blk["ln2_g"], blk["ln2_b"],
                            blk["cross_attn"], num_heads, cross=True)
        x = conv_ffn_block(x, blk, kernel_size)
    return x


# ------------------------------ parameter init -------------------------------

def init_params(key, num_layers, maxlen, D, filter_size, kernel_size):
    k1, _ = kernel_size

    def normal(k, shape, dtype=jnp.bfloat16, scale=0.02):
        return (scale * jax.random.normal(k, shape, dtype=jnp.float32)).astype(dtype)

    def attn_params(k):
        ks = jax.random.split(k, 4)
        return {
            "wq": normal(ks[0], (D, D)), "bq": jnp.zeros((1, D), jnp.float32),
            "wk": normal(ks[1], (D, D)), "bk": jnp.zeros((1, D), jnp.float32),
            "wv": normal(ks[2], (D, D)), "bv": jnp.zeros((1, D), jnp.float32),
            "wo": normal(ks[3], (D, D)), "bo": jnp.zeros((1, D), jnp.float32),
        }

    keys = jax.random.split(key, num_layers + 1)
    params = {"pos_emb": normal(keys[0], (maxlen, D), dtype=jnp.float32),
              "blocks": []}
    for li in range(num_layers):
        ks = jax.random.split(keys[li + 1], 4)
        params["blocks"].append({
            "ln1_g": jnp.ones((1, D), jnp.float32), "ln1_b": jnp.zeros((1, D), jnp.float32),
            "ln2_g": jnp.ones((1, D), jnp.float32), "ln2_b": jnp.zeros((1, D), jnp.float32),
            "ln3_g": jnp.ones((1, D), jnp.float32), "ln3_b": jnp.zeros((1, D), jnp.float32),
            "self_attn": attn_params(ks[0]),
            "cross_attn": attn_params(ks[1]),
            "ffn_w1": normal(ks[2], (k1, D, filter_size)),          # (tap, D, F)
            "ffn_b1": jnp.zeros((1, filter_size), jnp.float32),
            "ffn_w2": normal(ks[3], (filter_size, D)),
            "ffn_b2": jnp.zeros((1, D), jnp.float32),
        })
    return params


# ---------------------------------- main --------------------------------------

if __name__ == "__main__":
    # Small configuration consistent with the module (scaled down from defaults:
    # hidden 512 -> 128, filter 2048 -> 256, layers 6 -> 2, maxlen 300 -> 32;
    # heads=4 and kernel_size=[5, 1] kept).
    B, T_DEC, T_ENC = 2, 16, 24
    D, HEADS, LAYERS, FILTER, MAXLEN = 128, 4, 2, 256, 32
    KERNEL_SIZE = (5, 1)

    root = jax.random.PRNGKey(0)
    k_param, k_enc, k_dec = jax.random.split(root, 3)

    params = init_params(k_param, LAYERS, MAXLEN, D, FILTER, KERNEL_SIZE)
    encoder_outs = jax.random.normal(k_enc, (B, T_ENC, D), dtype=jnp.float32)
    decoder_targets = jax.random.normal(k_dec, (B, T_DEC, D), dtype=jnp.float32)

    fwd = jax.jit(functools.partial(decoder_forward,
                                    num_heads=HEADS, kernel_size=KERNEL_SIZE))
    out = fwd(encoder_outs, decoder_targets, params)
    out = jax.block_until_ready(out)
    assert out.shape == (B, T_DEC, D) and out.dtype == jnp.float32
    print("KERNEL_OK")
</pallas_src>

<mosaic_0001>
module attributes {stable_mosaic.version = 11 : i64} {
  func.func @_attn_block_kernel(%arg0: i32, %arg1: memref<1x16x128xf32, #tpu.memory_space<vmem>>, %arg2: memref<1x128xf32, #tpu.memory_space<vmem>>, %arg3: memref<1x128xf32, #tpu.memory_space<vmem>>, %arg4: memref<128x128xbf16, #tpu.memory_space<vmem>>, %arg5: memref<1x128xf32, #tpu.memory_space<vmem>>, %arg6: memref<128x128xbf16, #tpu.memory_space<vmem>>, %arg7: memref<1x128xf32, #tpu.memory_space<vmem>>, %arg8: memref<128x128xbf16, #tpu.memory_space<vmem>>, %arg9: memref<1x128xf32, #tpu.memory_space<vmem>>, %arg10: memref<128x128xbf16, #tpu.memory_space<vmem>>, %arg11: memref<1x128xf32, #tpu.memory_space<vmem>>, %arg12: memref<1x16x128xf32, #tpu.memory_space<vmem>>, %arg13: memref<16x128xf32, #tpu.memory_space<vmem>>) attributes {dimension_semantics = [#tpu.dimension_semantics<parallel>], iteration_bounds = array<i64: 2>, scalar_prefetch = 0 : i64, scratch_operands = 1 : i64, tpu.core_type = #tpu.core_type<tc>, window_params = [{transform_indices = @transform_0, window_bounds = array<i64: 1, 16, 128>}, {pipeline_mode = #tpu.pipeline_mode<synchronous>, transform_indices = @transform_1, window_bounds = array<i64: 1, 128>}, {pipeline_mode = #tpu.pipeline_mode<synchronous>, transform_indices = @transform_2, window_bounds = array<i64: 1, 128>}, {pipeline_mode = #tpu.pipeline_mode<synchronous>, transform_indices = @transform_3, window_bounds = array<i64: 128, 128>}, {pipeline_mode = #tpu.pipeline_mode<synchronous>, transform_indices = @transform_4, window_bounds = array<i64: 1, 128>}, {pipeline_mode = #tpu.pipeline_mode<synchronous>, transform_indices = @transform_5, window_bounds = array<i64: 128, 128>}, {pipeline_mode = #tpu.pipeline_mode<synchronous>, transform_indices = @transform_6, window_bounds = array<i64: 1, 128>}, {pipeline_mode = #tpu.pipeline_mode<synchronous>, transform_indices = @transform_7, window_bounds = array<i64: 128, 128>}, {pipeline_mode = #tpu.pipeline_mode<synchronous>, transform_indices = @transform_8, window_bounds = array<i64: 1, 128>}, {pipeline_mode = #tpu.pipeline_mode<synchronous>, transform_indices = @transform_9, window_bounds = array<i64: 128, 128>}, {pipeline_mode = #tpu.pipeline_mode<synchronous>, transform_indices = @transform_10, window_bounds = array<i64: 1, 128>}, {transform_indices = @transform_11, window_bounds = array<i64: 1, 16, 128>}]} {
    %c0 = arith.constant 0 : index
    %c0_0 = arith.constant 0 : index
    %c0_1 = arith.constant 0 : index
    %0 = vector.load %arg1[%c0, %c0_0, %c0_1] : memref<1x16x128xf32, #tpu.memory_space<vmem>>, vector<1x16x128xf32>
    %1 = vector.shape_cast %0 : vector<1x16x128xf32> to vector<16x128xf32>
    %c0_2 = arith.constant 0 : index
    %c0_3 = arith.constant 0 : index
    %2 = vector.load %arg2[%c0_2, %c0_3] : memref<1x128xf32, #tpu.memory_space<vmem>>, vector<1x128xf32>
    %c0_4 = arith.constant 0 : index
    %c0_5 = arith.constant 0 : index
    %3 = vector.load %arg3[%c0_4, %c0_5] : memref<1x128xf32, #tpu.memory_space<vmem>>, vector<1x128xf32>
    %cst = arith.constant dense<0.000000e+00> : vector<16xf32>
    %4 = vector.multi_reduction <add>, %1, %cst [1] : vector<16x128xf32> to vector<16xf32>
    %5 = vector.shape_cast %4 : vector<16xf32> to vector<16x1xf32>
    %cst_6 = arith.constant 1.280000e+02 : f32
    %6 = vector.broadcast %cst_6 : f32 to vector<16x1xf32>
    %7 = arith.divf %5, %6 : vector<16x1xf32>
    %8 = vector.broadcast %7 : vector<16x1xf32> to vector<16x128xf32>
    %9 = arith.subf %1, %8 : vector<16x128xf32>
    %10 = arith.mulf %9, %9 : vector<16x128xf32>
    %cst_7 = arith.constant dense<0.000000e+00> : vector<16xf32>
    %11 = vector.multi_reduction <add>, %10, %cst_7 [1] : vector<16x128xf32> to vector<16xf32>
    %12 = vector.shape_cast %11 : vector<16xf32> to vector<16x1xf32>
    %cst_8 = arith.constant 1.280000e+02 : f32
    %13 = vector.broadcast %cst_8 : f32 to vector<16x1xf32>
    %14 = arith.divf %12, %13 : vector<16x1xf32>
    %cst_9 = arith.constant 9.99999974E-6 : f32
    %15 = vector.broadcast %cst_9 : f32 to vector<16x1xf32>
    %16 = arith.addf %14, %15 : vector<16x1xf32>
    %17 = math.rsqrt %16 : vector<16x1xf32>
    %18 = vector.broadcast %17 : vector<16x1xf32> to vector<16x128xf32>
    %19 = arith.mulf %9, %18 : vector<16x128xf32>
    %20 = vector.broadcast %2 : vector<1x128xf32> to vector<16x128xf32>
    %21 = arith.mulf %19, %20 : vector<16x128xf32>
    %22 = vector.broadcast %3 : vector<1x128xf32> to vector<16x128xf32>
    %23 = arith.addf %21, %22 : vector<16x128xf32>
    %24 = arith.truncf %23 : vector<16x128xf32> to vector<16x128xbf16>
    %c0_10 = arith.constant 0 : index
    %c0_11 = arith.constant 0 : index
    %25 = vector.load %arg4[%c0_10, %c0_11] : memref<128x128xbf16, #tpu.memory_space<vmem>>, vector<128x128xbf16>
    %cst_12 = arith.constant dense<0.000000e+00> : vector<16x128xf32>
    %26 = tpu.matmul %24, %25, %cst_12 {dimension_numbers = #tpu.dot_dimension_numbers<[1], [0], [0], [1], [0, 0, 1, 1], [], []>} : vector<16x128xbf16>, vector<128x128xbf16>, vector<16x128xf32> -> vector<16x128xf32>
    %c0_13 = arith.constant 0 : index
    %c0_14 = arith.constant 0 : index
    %27 = vector.load %arg5[%c0_13, %c0_14] : memref<1x128xf32, #tpu.memory_space<vmem>>, vector<1x128xf32>
    %28 = vector.broadcast %27 : vector<1x128xf32> to vector<16x128xf32>
    %29 = arith.addf %26, %28 : vector<16x128xf32>
    %cst_15 = arith.constant 0.176776692 : f32
    %30 = vector.broadcast %cst_15 : f32 to vector<16x128xf32>
    %31 = arith.mulf %29, %30 : vector<16x128xf32>
    %c0_16 = arith.constant 0 : index
    %c0_17 = arith.constant 0 : index
    %32 = vector.load %arg6[%c0_16, %c0_17] : memref<128x128xbf16, #tpu.memory_space<vmem>>, vector<128x128xbf16>
    %cst_18 = arith.constant dense<0.000000e+00> : vector<16x128xf32>
    %33 = tpu.matmul %24, %32, %cst_18 {dimension_numbers = #tpu.dot_dimension_numbers<[1], [0], [0], [1], [0, 0, 1, 1], [], []>} : vector<16x128xbf16>, vector<128x128xbf16>, vector<16x128xf32> -> vector<16x128xf32>
    %c0_19 = arith.constant 0 : index
    %c0_20 = arith.constant 0 : index
    %34 = vector.load %arg7[%c0_19, %c0_20] : memref<1x128xf32, #tpu.memory_space<vmem>>, vector<1x128xf32>
    %35 = vector.broadcast %34 : vector<1x128xf32> to vector<16x128xf32>
    %36 = arith.addf %33, %35 : vector<16x128xf32>
    %c0_21 = arith.constant 0 : index
    %c0_22 = arith.constant 0 : index
    %37 = vector.load %arg8[%c0_21, %c0_22] : memref<128x128xbf16, #tpu.memory_space<vmem>>, vector<128x128xbf16>
    %cst_23 = arith.constant dense<0.000000e+00> : vector<16x128xf32>
    %38 = tpu.matmul %24, %37, %cst_23 {dimension_numbers = #tpu.dot_dimension_numbers<[1], [0], [0], [1], [0, 0, 1, 1], [], []>} : vector<16x128xbf16>, vector<128x128xbf16>, vector<16x128xf32> -> vector<16x128xf32>
    %c0_24 = arith.constant 0 : index
    %c0_25 = arith.constant 0 : index
    %39 = vector.load %arg9[%c0_24, %c0_25] : memref<1x128xf32, #tpu.memory_space<vmem>>, vector<1x128xf32>
    %40 = vector.broadcast %39 : vector<1x128xf32> to vector<16x128xf32>
    %41 = arith.addf %38, %40 : vector<16x128xf32>
    %42 = arith.truncf %31 : vector<16x128xf32> to vector<16x128xbf16>
    %43 = arith.truncf %36 : vector<16x128xf32> to vector<16x128xbf16>
    %44 = arith.truncf %41 : vector<16x128xf32> to vector<16x128xbf16>
    %45 = vector.extract_strided_slice %42 {offsets = [0, 0], sizes = [16, 32], strides = [1, 1]} : vector<16x128xbf16> to vector<16x32xbf16>
    %46 = vector.extract_strided_slice %43 {offsets = [0, 0], sizes = [16, 32], strides = [1, 1]} : vector<16x128xbf16> to vector<16x32xbf16>
    %47 = vector.extract_strided_slice %44 {offsets = [0, 0], sizes = [16, 32], strides = [1, 1]} : vector<16x128xbf16> to vector<16x32xbf16>
    %cst_26 = arith.constant dense<0.000000e+00> : vector<16x16xf32>
    %48 = tpu.matmul %45, %46, %cst_26 {dimension_numbers = #tpu.dot_dimension_numbers<[1], [1], [0], [0], [0, 0, 1, 0], [], []>} : vector<16x32xbf16>, vector<16x32xbf16>, vector<16x16xf32> -> vector<16x16xf32>
    %cst_27 = arith.constant dense<0xFF800000> : vector<16xf32>
    %49 = vector.multi_reduction <maximumf>, %48, %cst_27 [1] : vector<16x16xf32> to vector<16xf32>
    %50 = vector.shape_cast %49 : vector<16xf32> to vector<16x1xf32>
    %51 = vector.broadcast %50 : vector<16x1xf32> to vector<16x16xf32>
    %52 = arith.subf %48, %51 : vector<16x16xf32>
    %53 = math.exp %52 : vector<16x16xf32>
    %cst_28 = arith.constant dense<0.000000e+00> : vector<16xf32>
    %54 = vector.multi_reduction <add>, %53, %cst_28 [1] : vector<16x16xf32> to vector<16xf32>
    %55 = vector.shape_cast %54 : vector<16xf32> to vector<16x1xf32>
    %56 = arith.truncf %53 : vector<16x16xf32> to vector<16x16xbf16>
    %cst_29 = arith.constant dense<0.000000e+00> : vector<16x32xf32>
    %57 = tpu.matmul %56, %47, %cst_29 {dimension_numbers = #tpu.dot_dimension_numbers<[1], [0], [0], [1], [0, 0, 1, 1], [], []>} : vector<16x16xbf16>, vector<16x32xbf16>, vector<16x32xf32> -> vector<16x32xf32>
    %58 = tpu.reciprocal %55 {approx = true} : vector<16x1xf32> -> vector<16x1xf32>
    %59 = vector.broadcast %58 : vector<16x1xf32> to vector<16x32xf32>
    %60 = arith.mulf %57, %59 : vector<16x32xf32>
    %c0_30 = arith.constant 0 : index
    %c0_31 = arith.constant 0 : index
    %61 = vector.load %arg13[%c0_30, %c0_31] : memref<16x128xf32, #tpu.memory_space<vmem>>, vector<16x32xf32>
    tpu.vector_store %arg13[%c0_30, %c0_31], %60 {strides = array<i32>} : memref<16x128xf32, #tpu.memory_space<vmem>>, vector<16x32xf32>,
    %62 = vector.extract_strided_slice %42 {offsets = [0, 32], sizes = [16, 32], strides = [1, 1]} : vector<16x128xbf16> to vector<16x32xbf16>
    %63 = vector.extract_strided_slice %43 {offsets = [0, 32], sizes = [16, 32], strides = [1, 1]} : vector<16x128xbf16> to vector<16x32xbf16>
    %64 = vector.extract_strided_slice %44 {offsets = [0, 32], sizes = [16, 32], strides = [1, 1]} : vector<16x128xbf16> to vector<16x32xbf16>
    %cst_32 = arith.constant dense<0.000000e+00> : vector<16x16xf32>
    %65 = tpu.matmul %62, %63, %cst_32 {dimension_numbers = #tpu.dot_dimension_numbers<[1], [1], [0], [0], [0, 0, 1, 0], [], []>} : vector<16x32xbf16>, vector<16x32xbf16>, vector<16x16xf32> -> vector<16x16xf32>
    %cst_33 = arith.constant dense<0xFF800000> : vector<16xf32>
    %66 = vector.multi_reduction <maximumf>, %65, %cst_33 [1] : vector<16x16xf32> to vector<16xf32>
    %67 = vector.shape_cast %66 : vector<16xf32> to vector<16x1xf32>
    %68 = vector.broadcast %67 : vector<16x1xf32> to vector<16x16xf32>
    %69 = arith.subf %65, %68 : vector<16x16xf32>
    %70 = math.exp %69 : vector<16x16xf32>
    %cst_34 = arith.constant dense<0.000000e+00> : vector<16xf32>
    %71 = vector.multi_reduction <add>, %70, %cst_34 [1] : vector<16x16xf32> to vector<16xf32>
    %72 = vector.shape_cast %71 : vector<16xf32> to vector<16x1xf32>
    %73 = arith.truncf %70 : vector<16x16xf32> to vector<16x16xbf16>
    %cst_35 = arith.constant dense<0.000000e+00> : vector<16x32xf32>
    %74 = tpu.matmul %73, %64, %cst_35 {dimension_numbers = #tpu.dot_dimension_numbers<[1], [0], [0], [1], [0, 0, 1, 1], [], []>} : vector<16x16xbf16>, vector<16x32xbf16>, vector<16x32xf32> -> vector<16x32xf32>
    %75 = tpu.reciprocal %72 {approx = true} : vector<16x1xf32> -> vector<16x1xf32>
    %76 = vector.broadcast %75 : vector<16x1xf32> to vector<16x32xf32>
    %77 = arith.mulf %74, %76 : vector<16x32xf32>
    %c0_36 = arith.constant 0 : index
    %c32 = arith.constant 32 : index
    %78 = vector.load %arg13[%c0_36, %c32] : memref<16x128xf32, #tpu.memory_space<vmem>>, vector<16x32xf32>
    tpu.vector_store %arg13[%c0_36, %c32], %77 {strides = array<i32>} : memref<16x128xf32, #tpu.memory_space<vmem>>, vector<16x32xf32>,
    %79 = vector.extract_strided_slice %42 {offsets = [0, 64], sizes = [16, 32], strides = [1, 1]} : vector<16x128xbf16> to vector<16x32xbf16>
    %80 = vector.extract_strided_slice %43 {offsets = [0, 64], sizes = [16, 32], strides = [1, 1]} : vector<16x128xbf16> to vector<16x32xbf16>
    %81 = vector.extract_strided_slice %44 {offsets = [0, 64], sizes = [16, 32], strides = [1, 1]} : vector<16x128xbf16> to vector<16x32xbf16>
    %cst_37 = arith.constant dense<0.000000e+00> : vector<16x16xf32>
    %82 = tpu.matmul %79, %80, %cst_37 {dimension_numbers = #tpu.dot_dimension_numbers<[1], [1], [0], [0], [0, 0, 1, 0], [], []>} : vector<16x32xbf16>, vector<16x32xbf16>, vector<16x16xf32> -> vector<16x16xf32>
    %cst_38 = arith.constant dense<0xFF800000> : vector<16xf32>
    %83 = vector.multi_reduction <maximumf>, %82, %cst_38 [1] : vector<16x16xf32> to vector<16xf32>
    %84 = vector.shape_cast %83 : vector<16xf32> to vector<16x1xf32>
    %85 = vector.broadcast %84 : vector<16x1xf32> to vector<16x16xf32>
    %86 = arith.subf %82, %85 : vector<16x16xf32>
    %87 = math.exp %86 : vector<16x16xf32>
    %cst_39 = arith.constant dense<0.000000e+00> : vector<16xf32>
    %88 = vector.multi_reduction <add>, %87, %cst_39 [1] : vector<16x16xf32> to vector<16xf32>
    %89 = vector.shape_cast %88 : vector<16xf32> to vector<16x1xf32>
    %90 = arith.truncf %87 : vector<16x16xf32> to vector<16x16xbf16>
    %cst_40 = arith.constant dense<0.000000e+00> : vector<16x32xf32>
    %91 = tpu.matmul %90, %81, %cst_40 {dimension_numbers = #tpu.dot_dimension_numbers<[1], [0], [0], [1], [0, 0, 1, 1], [], []>} : vector<16x16xbf16>, vector<16x32xbf16>, vector<16x32xf32> -> vector<16x32xf32>
    %92 = tpu.reciprocal %89 {approx = true} : vector<16x1xf32> -> vector<16x1xf32>
    %93 = vector.broadcast %92 : vector<16x1xf32> to vector<16x32xf32>
    %94 = arith.mulf %91, %93 : vector<16x32xf32>
    %c0_41 = arith.constant 0 : index
    %c64 = arith.constant 64 : index
    %95 = vector.load %arg13[%c0_41, %c64] : memref<16x128xf32, #tpu.memory_space<vmem>>, vector<16x32xf32>
    tpu.vector_store %arg13[%c0_41, %c64], %94 {strides = array<i32>} : memref<16x128xf32, #tpu.memory_space<vmem>>, vector<16x32xf32>,
    %96 = vector.extract_strided_slice %42 {offsets = [0, 96], sizes = [16, 32], strides = [1, 1]} : vector<16x128xbf16> to vector<16x32xbf16>
    %97 = vector.extract_strided_slice %43 {offsets = [0, 96], sizes = [16, 32], strides = [1, 1]} : vector<16x128xbf16> to vector<16x32xbf16>
    %98 = vector.extract_strided_slice %44 {offsets = [0, 96], sizes = [16, 32], strides = [1, 1]} : vector<16x128xbf16> to vector<16x32xbf16>
    %cst_42 = arith.constant dense<0.000000e+00> : vector<16x16xf32>
    %99 = tpu.matmul %96, %97, %cst_42 {dimension_numbers = #tpu.dot_dimension_numbers<[1], [1], [0], [0], [0, 0, 1, 0], [], []>} : vector<16x32xbf16>, vector<16x32xbf16>, vector<16x16xf32> -> vector<16x16xf32>
    %cst_43 = arith.constant dense<0xFF800000> : vector<16xf32>
    %100 = vector.multi_reduction <maximumf>, %99, %cst_43 [1] : vector<16x16xf32> to vector<16xf32>
    %101 = vector.shape_cast %100 : vector<16xf32> to vector<16x1xf32>
    %102 = vector.broadcast %101 : vector<16x1xf32> to vector<16x16xf32>
    %103 = arith.subf %99, %102 : vector<16x16xf32>
    %104 = math.exp %103 : vector<16x16xf32>
    %cst_44 = arith.constant dense<0.000000e+00> : vector<16xf32>
    %105 = vector.multi_reduction <add>, %104, %cst_44 [1] : vector<16x16xf32> to vector<16xf32>
    %106 = vector.shape_cast %105 : vector<16xf32> to vector<16x1xf32>
    %107 = arith.truncf %104 : vector<16x16xf32> to vector<16x16xbf16>
    %cst_45 = arith.constant dense<0.000000e+00> : vector<16x32xf32>
    %108 = tpu.matmul %107, %98, %cst_45 {dimension_numbers = #tpu.dot_dimension_numbers<[1], [0], [0], [1], [0, 0, 1, 1], [], []>} : vector<16x16xbf16>, vector<16x32xbf16>, vector<16x32xf32> -> vector<16x32xf32>
    %109 = tpu.reciprocal %106 {approx = true} : vector<16x1xf32> -> vector<16x1xf32>
    %110 = vector.broadcast %109 : vector<16x1xf32> to vector<16x32xf32>
    %111 = arith.mulf %108, %110 : vector<16x32xf32>
    %c0_46 = arith.constant 0 : index
    %c96 = arith.constant 96 : index
    %112 = vector.load %arg13[%c0_46, %c96] : memref<16x128xf32, #tpu.memory_space<vmem>>, vector<16x32xf32>
    tpu.vector_store %arg13[%c0_46, %c96], %111 {strides = array<i32>} : memref<16x128xf32, #tpu.memory_space<vmem>>, vector<16x32xf32>,
    %c0_47 = arith.constant 0 : index
    %c0_48 = arith.constant 0 : index
    %113 = vector.load %arg13[%c0_47, %c0_48] : memref<16x128xf32, #tpu.memory_space<vmem>>, vector<16x128xf32>
    %114 = arith.truncf %113 : vector<16x128xf32> to vector<16x128xbf16>
    %c0_49 = arith.constant 0 : index
    %c0_50 = arith.constant 0 : index
    %115 = vector.load %arg10[%c0_49, %c0_50] : memref<128x128xbf16, #tpu.memory_space<vmem>>, vector<128x128xbf16>
    %cst_51 = arith.constant dense<0.000000e+00> : vector<16x128xf32>
    %116 = tpu.matmul %114, %115, %cst_51 {dimension_numbers = #tpu.dot_dimension_numbers<[1], [0], [0], [1], [0, 0, 1, 1], [], []>} : vector<16x128xbf16>, vector<128x128xbf16>, vector<16x128xf32> -> vector<16x128xf32>
    %c0_52 = arith.constant 0 : index
    %c0_53 = arith.constant 0 : index
    %117 = vector.load %arg11[%c0_52, %c0_53] : memref<1x128xf32, #tpu.memory_space<vmem>>, vector<1x128xf32>
    %118 = vector.broadcast %117 : vector<1x128xf32> to vector<16x128xf32>
    %119 = arith.addf %116, %118 : vector<16x128xf32>
    %120 = arith.addf %119, %1 : vector<16x128xf32>
    %c0_54 = arith.constant 0 : index
    %c0_55 = arith.constant 0 : index
    %c0_56 = arith.constant 0 : index
    %121 = vector.load %arg12[%c0_54, %c0_55, %c0_56] : memref<1x16x128xf32, #tpu.memory_space<vmem>>, vector<1x16x128xf32>
    %122 = vector.shape_cast %121 : vector<1x16x128xf32> to vector<16x128xf32>
    %123 = vector.shape_cast %120 : vector<16x128xf32> to vector<1x16x128xf32>
    tpu.vector_store %arg12[%c0_54, %c0_55, %c0_56], %123 {strides = array<i32>} : memref<1x16x128xf32, #tpu.memory_space<vmem>>, vector<1x16x128xf32>,
    return
  }
  func.func @transform_0(%arg0: i32) -> (i32, i32, i32) {
    %c0_i32 = arith.constant 0 : i32
    %c0_i32_0 = arith.constant 0 : i32
    %c0_i32_1 = arith.constant 0 : i32
    return %arg0, %c0_i32, %c0_i32_0 : i32, i32, i32
  }
  func.func @transform_1(%arg0: i32) -> (i32, i32) {
    %c0_i32 = arith.constant 0 : i32
    %c0_i32_0 = arith.constant 0 : i32
    %c0_i32_1 = arith.constant 0 : i32
    return %c0_i32, %c0_i32_0 : i32, i32
  }
  func.func @transform_2(%arg0: i32) -> (i32, i32) {
    %c0_i32 = arith.constant 0 : i32
    %c0_i32_0 = arith.constant 0 : i32
    %c0_i32_1 = arith.constant 0 : i32
    return %c0_i32, %c0_i32_0 : i32, i32
  }
  func.func @transform_3(%arg0: i32) -> (i32, i32) {
    %c0_i32 = arith.constant 0 : i32
    %c0_i32_0 = arith.constant 0 : i32
    %c0_i32_1 = arith.constant 0 : i32
    return %c0_i32, %c0_i32_0 : i32, i32
  }
  func.func @transform_4(%arg0: i32) -> (i32, i32) {
    %c0_i32 = arith.constant 0 : i32
    %c0_i32_0 = arith.constant 0 : i32
    %c0_i32_1 = arith.constant 0 : i32
    return %c0_i32, %c0_i32_0 : i32, i32
  }
  func.func @transform_5(%arg0: i32) -> (i32, i32) {
    %c0_i32 = arith.constant 0 : i32
    %c0_i32_0 = arith.constant 0 : i32
    %c0_i32_1 = arith.constant 0 : i32
    return %c0_i32, %c0_i32_0 : i32, i32
  }
  func.func @transform_6(%arg0: i32) -> (i32, i32) {
    %c0_i32 = arith.constant 0 : i32
    %c0_i32_0 = arith.constant 0 : i32
    %c0_i32_1 = arith.constant 0 : i32
    return %c0_i32, %c0_i32_0 : i32, i32
  }
  func.func @transform_7(%arg0: i32) -> (i32, i32) {
    %c0_i32 = arith.constant 0 : i32
    %c0_i32_0 = arith.constant 0 : i32
    %c0_i32_1 = arith.constant 0 : i32
    return %c0_i32, %c0_i32_0 : i32, i32
  }
  func.func @transform_8(%arg0: i32) -> (i32, i32) {
    %c0_i32 = arith.constant 0 : i32
    %c0_i32_0 = arith.constant 0 : i32
    %c0_i32_1 = arith.constant 0 : i32
    return %c0_i32, %c0_i32_0 : i32, i32
  }
  func.func @transform_9(%arg0: i32) -> (i32, i32) {
    %c0_i32 = arith.constant 0 : i32
    %c0_i32_0 = arith.constant 0 : i32
    %c0_i32_1 = arith.constant 0 : i32
    return %c0_i32, %c0_i32_0 : i32, i32
  }
  func.func @transform_10(%arg0: i32) -> (i32, i32) {
    %c0_i32 = arith.constant 0 : i32
    %c0_i32_0 = arith.constant 0 : i32
    %c0_i32_1 = arith.constant 0 : i32
    return %c0_i32, %c0_i32_0 : i32, i32
  }
  func.func @transform_11(%arg0: i32) -> (i32, i32, i32) {
    %c0_i32 = arith.constant 0 : i32
    %c0_i32_0 = arith.constant 0 : i32
    %c0_i32_1 = arith.constant 0 : i32
    return %arg0, %c0_i32, %c0_i32_0 : i32, i32, i32
  }
}

module attributes {stable_mosaic.version = 11 : i64} {
  func.func @_conv_ffn_kernel(%arg0: i32, %arg1: memref<1x16x128xf32, #tpu.memory_space<vmem>>, %arg2: memref<1x128xf32, #tpu.memory_space<vmem>>, %arg3: memref<1x128xf32, #tpu.memory_space<vmem>>, %arg4: memref<5x128x256xbf16, #tpu.memory_space<vmem>>, %arg5: memref<1x256xf32, #tpu.memory_space<vmem>>, %arg6: memref<256x128xbf16, #tpu.memory_space<vmem>>, %arg7: memref<1x128xf32, #tpu.memory_space<vmem>>, %arg8: memref<1x16x128xf32, #tpu.memory_space<vmem>>) attributes {dimension_semantics = [#tpu.dimension_semantics<parallel>], iteration_bounds = array<i64: 2>, scalar_prefetch = 0 : i64, scratch_operands = 0 : i64, tpu.core_type = #tpu.core_type<tc>, window_params = [{transform_indices = @transform_0, window_bounds = array<i64: 1, 16, 128>}, {pipeline_mode = #tpu.pipeline_mode<synchronous>, transform_indices = @transform_1, window_bounds = array<i64: 1, 128>}, {pipeline_mode = #tpu.pipeline_mode<synchronous>, transform_indices = @transform_2, window_bounds = array<i64: 1, 128>}, {pipeline_mode = #tpu.pipeline_mode<synchronous>, transform_indices = @transform_3, window_bounds = array<i64: 5, 128, 256>}, {pipeline_mode = #tpu.pipeline_mode<synchronous>, transform_indices = @transform_4, window_bounds = array<i64: 1, 256>}, {pipeline_mode = #tpu.pipeline_mode<synchronous>, transform_indices = @transform_5, window_bounds = array<i64: 256, 128>}, {pipeline_mode = #tpu.pipeline_mode<synchronous>, transform_indices = @transform_6, window_bounds = array<i64: 1, 128>}, {transform_indices = @transform_7, window_bounds = array<i64: 1, 16, 128>}]} {
    %c0 = arith.constant 0 : index
    %c0_0 = arith.constant 0 : index
    %c0_1 = arith.constant 0 : index
    %0 = vector.load %arg1[%c0, %c0_0, %c0_1] : memref<1x16x128xf32, #tpu.memory_space<vmem>>, vector<1x16x128xf32>
    %1 = vector.shape_cast %0 : vector<1x16x128xf32> to vector<16x128xf32>
    %c0_2 = arith.constant 0 : index
    %c0_3 = arith.constant 0 : index
    %2 = vector.load %arg2[%c0_2, %c0_3] : memref<1x128xf32, #tpu.memory_space<vmem>>, vector<1x128xf32>
    %c0_4 = arith.constant 0 : index
    %c0_5 = arith.constant 0 : index
    %3 = vector.load %arg3[%c0_4, %c0_5] : memref<1x128xf32, #tpu.memory_space<vmem>>, vector<1x128xf32>
    %cst = arith.constant dense<0.000000e+00> : vector<16xf32>
    %4 = vector.multi_reduction <add>, %1, %cst [1] : vector<16x128xf32> to vector<16xf32>
    %5 = vector.shape_cast %4 : vector<16xf32> to vector<16x1xf32>
    %cst_6 = arith.constant 1.280000e+02 : f32
    %6 = vector.broadcast %cst_6 : f32 to vector<16x1xf32>
    %7 = arith.divf %5, %6 : vector<16x1xf32>
    %8 = vector.broadcast %7 : vector<16x1xf32> to vector<16x128xf32>
    %9 = arith.subf %1, %8 : vector<16x128xf32>
    %10 = arith.mulf %9, %9 : vector<16x128xf32>
    %cst_7 = arith.constant dense<0.000000e+00> : vector<16xf32>
    %11 = vector.multi_reduction <add>, %10, %cst_7 [1] : vector<16x128xf32> to vector<16xf32>
    %12 = vector.shape_cast %11 : vector<16xf32> to vector<16x1xf32>
    %cst_8 = arith.constant 1.280000e+02 : f32
    %13 = vector.broadcast %cst_8 : f32 to vector<16x1xf32>
    %14 = arith.divf %12, %13 : vector<16x1xf32>
    %cst_9 = arith.constant 9.99999974E-6 : f32
    %15 = vector.broadcast %cst_9 : f32 to vector<16x1xf32>
    %16 = arith.addf %14, %15 : vector<16x1xf32>
    %17 = math.rsqrt %16 : vector<16x1xf32>
    %18 = vector.broadcast %17 : vector<16x1xf32> to vector<16x128xf32>
    %19 = arith.mulf %9, %18 : vector<16x128xf32>
    %20 = vector.broadcast %2 : vector<1x128xf32> to vector<16x128xf32>
    %21 = arith.mulf %19, %20 : vector<16x128xf32>
    %22 = vector.broadcast %3 : vector<1x128xf32> to vector<16x128xf32>
    %23 = arith.addf %21, %22 : vector<16x128xf32>
    %cst_10 = arith.constant 0.000000e+00 : f32
    %24 = vector.broadcast %cst_10 : f32 to vector<16x256xf32>
    %cst_11 = arith.constant 0.000000e+00 : f32
    %25 = vector.broadcast %cst_11 : f32 to vector<2x128xf32>
    %26 = vector.extract_strided_slice %23 {offsets = [0, 0], sizes = [14, 128], strides = [1, 1]} : vector<16x128xf32> to vector<14x128xf32>
    %27 = tpu.concatenate %25, %26 in 0 : vector<2x128xf32>, vector<14x128xf32> -> vector<16x128xf32>
    %28 = arith.truncf %27 : vector<16x128xf32> to vector<16x128xbf16>
    %c0_12 = arith.constant 0 : index
    %c0_13 = arith.constant 0 : index
    %c0_14 = arith.constant 0 : index
    %29 = vector.load %arg4[%c0_12, %c0_13, %c0_14] : memref<5x128x256xbf16, #tpu.memory_space<vmem>>, vector<1x128x256xbf16>
    %30 = vector.shape_cast %29 : vector<1x128x256xbf16> to vector<128x256xbf16>
    %cst_15 = arith.constant dense<0.000000e+00> : vector<16x256xf32>
    %31 = tpu.matmul %28, %30, %cst_15 {dimension_numbers = #tpu.dot_dimension_numbers<[1], [0], [0], [1], [0, 0, 1, 1], [], []>} : vector<16x128xbf16>, vector<128x256xbf16>, vector<16x256xf32> -> vector<16x256xf32>
    %32 = arith.addf %24, %31 : vector<16x256xf32>
    %cst_16 = arith.constant 0.000000e+00 : f32
    %33 = vector.broadcast %cst_16 : f32 to vector<1x128xf32>
    %34 = vector.extract_strided_slice %23 {offsets = [0, 0], sizes = [15, 128], strides = [1, 1]} : vector<16x128xf32> to vector<15x128xf32>
    %35 = tpu.concatenate %33, %34 in 0 : vector<1x128xf32>, vector<15x128xf32> -> vector<16x128xf32>
    %36 = arith.truncf %35 : vector<16x128xf32> to vector<16x128xbf16>
    %c1 = arith.constant 1 : index
    %c0_17 = arith.constant 0 : index
    %c0_18 = arith.constant 0 : index
    %37 = vector.load %arg4[%c1, %c0_17, %c0_18] : memref<5x128x256xbf16, #tpu.memory_space<vmem>>, vector<1x128x256xbf16>
    %38 = vector.shape_cast %37 : vector<1x128x256xbf16> to vector<128x256xbf16>
    %cst_19 = arith.constant dense<0.000000e+00> : vector<16x256xf32>
    %39 = tpu.matmul %36, %38, %cst_19 {dimension_numbers = #tpu.dot_dimension_numbers<[1], [0], [0], [1], [0, 0, 1, 1], [], []>} : vector<16x128xbf16>, vector<128x256xbf16>, vector<16x256xf32> -> vector<16x256xf32>
    %40 = arith.addf %32, %39 : vector<16x256xf32>
    %41 = arith.truncf %23 : vector<16x128xf32> to vector<16x128xbf16>
    %c2 = arith.constant 2 : index
    %c0_20 = arith.constant 0 : index
    %c0_21 = arith.constant 0 : index
    %42 = vector.load %arg4[%c2, %c0_20, %c0_21] : memref<5x128x256xbf16, #tpu.memory_space<vmem>>, vector<1x128x256xbf16>
    %43 = vector.shape_cast %42 : vector<1x128x256xbf16> to vector<128x256xbf16>
    %cst_22 = arith.constant dense<0.000000e+00> : vector<16x256xf32>
    %44 = tpu.matmul %41, %43, %cst_22 {dimension_numbers = #tpu.dot_dimension_numbers<[1], [0], [0], [1], [0, 0, 1, 1], [], []>} : vector<16x128xbf16>, vector<128x256xbf16>, vector<16x256xf32> -> vector<16x256xf32>
    %45 = arith.addf %40, %44 : vector<16x256xf32>
    %46 = vector.extract_strided_slice %23 {offsets = [1, 0], sizes = [15, 128], strides = [1, 1]} : vector<16x128xf32> to vector<15x128xf32>
    %cst_23 = arith.constant 0.000000e+00 : f32
    %47 = vector.broadcast %cst_23 : f32 to vector<1x128xf32>
    %48 = tpu.concatenate %46, %47 in 0 : vector<15x128xf32>, vector<1x128xf32> -> vector<16x128xf32>
    %49 = arith.truncf %48 : vector<16x128xf32> to vector<16x128xbf16>
    %c3 = arith.constant 3 : index
    %c0_24 = arith.constant 0 : index
    %c0_25 = arith.constant 0 : index
    %50 = vector.load %arg4[%c3, %c0_24, %c0_25] : memref<5x128x256xbf16, #tpu.memory_space<vmem>>, vector<1x128x256xbf16>
    %51 = vector.shape_cast %50 : vector<1x128x256xbf16> to vector<128x256xbf16>
    %cst_26 = arith.constant dense<0.000000e+00> : vector<16x256xf32>
    %52 = tpu.matmul %49, %51, %cst_26 {dimension_numbers = #tpu.dot_dimension_numbers<[1], [0], [0], [1], [0, 0, 1, 1], [], []>} : vector<16x128xbf16>, vector<128x256xbf16>, vector<16x256xf32> -> vector<16x256xf32>
    %53 = arith.addf %45, %52 : vector<16x256xf32>
    %54 = vector.extract_strided_slice %23 {offsets = [2, 0], sizes = [14, 128], strides = [1, 1]} : vector<16x128xf32> to vector<14x128xf32>
    %cst_27 = arith.constant 0.000000e+00 : f32
    %55 = vector.broadcast %cst_27 : f32 to vector<2x128xf32>
    %56 = tpu.concatenate %54, %55 in 0 : vector<14x128xf32>, vector<2x128xf32> -> vector<16x128xf32>
    %57 = arith.truncf %56 : vector<16x128xf32> to vector<16x128xbf16>
    %c4 = arith.constant 4 : index
    %c0_28 = arith.constant 0 : index
    %c0_29 = arith.constant 0 : index
    %58 = vector.load %arg4[%c4, %c0_28, %c0_29] : memref<5x128x256xbf16, #tpu.memory_space<vmem>>, vector<1x128x256xbf16>
    %59 = vector.shape_cast %58 : vector<1x128x256xbf16> to vector<128x256xbf16>
    %cst_30 = arith.constant dense<0.000000e+00> : vector<16x256xf32>
    %60 = tpu.matmul %57, %59, %cst_30 {dimension_numbers = #tpu.dot_dimension_numbers<[1], [0], [0], [1], [0, 0, 1, 1], [], []>} : vector<16x128xbf16>, vector<128x256xbf16>, vector<16x256xf32> -> vector<16x256xf32>
    %61 = arith.addf %53, %60 : vector<16x256xf32>
    %c0_31 = arith.constant 0 : index
    %c0_32 = arith.constant 0 : index
    %62 = vector.load %arg5[%c0_31, %c0_32] : memref<1x256xf32, #tpu.memory_space<vmem>>, vector<1x256xf32>
    %63 = vector.broadcast %62 : vector<1x256xf32> to vector<16x256xf32>
    %64 = arith.addf %61, %63 : vector<16x256xf32>
    %cst_33 = arith.constant 0.000000e+00 : f32
    %65 = vector.broadcast %cst_33 : f32 to vector<16x256xf32>
    %66 = arith.maximumf %64, %65 : vector<16x256xf32>
    %67 = arith.truncf %66 : vector<16x256xf32> to vector<16x256xbf16>
    %c0_34 = arith.constant 0 : index
    %c0_35 = arith.constant 0 : index
    %68 = vector.load %arg6[%c0_34, %c0_35] : memref<256x128xbf16, #tpu.memory_space<vmem>>, vector<256x128xbf16>
    %cst_36 = arith.constant dense<0.000000e+00> : vector<16x128xf32>
    %69 = tpu.matmul %67, %68, %cst_36 {dimension_numbers = #tpu.dot_dimension_numbers<[1], [0], [0], [1], [0, 0, 1, 1], [], []>} : vector<16x256xbf16>, vector<256x128xbf16>, vector<16x128xf32> -> vector<16x128xf32>
    %c0_37 = arith.constant 0 : index
    %c0_38 = arith.constant 0 : index
    %70 = vector.load %arg7[%c0_37, %c0_38] : memref<1x128xf32, #tpu.memory_space<vmem>>, vector<1x128xf32>
    %71 = vector.broadcast %70 : vector<1x128xf32> to vector<16x128xf32>
    %72 = arith.addf %69, %71 : vector<16x128xf32>
    %73 = arith.addf %72, %1 : vector<16x128xf32>
    %c0_39 = arith.constant 0 : index
    %c0_40 = arith.constant 0 : index
    %c0_41 = arith.constant 0 : index
    %74 = vector.load %arg8[%c0_39, %c0_40, %c0_41] : memref<1x16x128xf32, #tpu.memory_space<vmem>>, vector<1x16x128xf32>
    %75 = vector.shape_cast %74 : vector<1x16x128xf32> to vector<16x128xf32>
    %76 = vector.shape_cast %73 : vector<16x128xf32> to vector<1x16x128xf32>
    tpu.vector_store %arg8[%c0_39, %c0_40, %c0_41], %76 {strides = array<i32>} : memref<1x16x128xf32, #tpu.memory_space<vmem>>, vector<1x16x128xf32>,
    return
  }
  func.func @transform_0(%arg0: i32) -> (i32, i32, i32) {
    %c0_i32 = arith.constant 0 : i32
    %c0_i32_0 = arith.constant 0 : i32
    %c0_i32_1 = arith.constant 0 : i32
    return %arg0, %c0_i32, %c0_i32_0 : i32, i32, i32
  }
  func.func @transform_1(%arg0: i32) -> (i32, i32) {
    %c0_i32 = arith.constant 0 : i32
    %c0_i32_0 = arith.constant 0 : i32
    %c0_i32_1 = arith.constant 0 : i32
    return %c0_i32, %c0_i32_0 : i32, i32
  }
  func.func @transform_2(%arg0: i32) -> (i32, i32) {
    %c0_i32 = arith.constant 0 : i32
    %c0_i32_0 = arith.constant 0 : i32
    %c0_i32_1 = arith.constant 0 : i32
    return %c0_i32, %c0_i32_0 : i32, i32
  }
  func.func @transform_3(%arg0: i32) -> (i32, i32, i32) {
    %c0_i32 = arith.constant 0 : i32
    %c0_i32_0 = arith.constant 0 : i32
    %c0_i32_1 = arith.constant 0 : i32
    %c0_i32_2 = arith.constant 0 : i32
    return %c0_i32, %c0_i32_0, %c0_i32_1 : i32, i32, i32
  }
  func.func @transform_4(%arg0: i32) -> (i32, i32) {
    %c0_i32 = arith.constant 0 : i32
    %c0_i32_0 = arith.constant 0 : i32
    %c0_i32_1 = arith.constant 0 : i32
    return %c0_i32, %c0_i32_0 : i32, i32
  }
  func.func @transform_5(%arg0: i32) -> (i32, i32) {
    %c0_i32 = arith.constant 0 : i32
    %c0_i32_0 = arith.constant 0 : i32
    %c0_i32_1 = arith.constant 0 : i32
    return %c0_i32, %c0_i32_0 : i32, i32
  }
  func.func @transform_6(%arg0: i32) -> (i32, i32) {
    %c0_i32 = arith.constant 0 : i32
    %c0_i32_0 = arith.constant 0 : i32
    %c0_i32_1 = arith.constant 0 : i32
    return %c0_i32, %c0_i32_0 : i32, i32
  }
  func.func @transform_7(%arg0: i32) -> (i32, i32, i32) {
    %c0_i32 = arith.constant 0 : i32
    %c0_i32_0 = arith.constant 0 : i32
    %c0_i32_1 = arith.constant 0 : i32
    return %arg0, %c0_i32, %c0_i32_0 : i32, i32, i32
  }
}

module attributes {stable_mosaic.version = 11 : i64} {
  func.func @_add_pos_kernel(%arg0: i32, %arg1: memref<1x16x128xf32, #tpu.memory_space<vmem>>, %arg2: memref<16x128xf32, #tpu.memory_space<vmem>>, %arg3: memref<1x16x128xf32, #tpu.memory_space<vmem>>) attributes {dimension_semantics = [#tpu.dimension_semantics<parallel>], iteration_bounds = array<i64: 2>, scalar_prefetch = 0 : i64, scratch_operands = 0 : i64, tpu.core_type = #tpu.core_type<tc>, window_params = [{transform_indices = @transform_0, window_bounds = array<i64: 1, 16, 128>}, {pipeline_mode = #tpu.pipeline_mode<synchronous>, transform_indices = @transform_1, window_bounds = array<i64: 16, 128>}, {transform_indices = @transform_2, window_bounds = array<i64: 1, 16, 128>}]} {
    %c0 = arith.constant 0 : index
    %c0_0 = arith.constant 0 : index
    %c0_1 = arith.constant 0 : index
    %0 = vector.load %arg1[%c0, %c0_0, %c0_1] : memref<1x16x128xf32, #tpu.memory_space<vmem>>, vector<1x16x128xf32>
    %c0_2 = arith.constant 0 : index
    %c0_3 = arith.constant 0 : index
    %1 = vector.load %arg2[%c0_2, %c0_3] : memref<16x128xf32, #tpu.memory_space<vmem>>, vector<16x128xf32>
    %2 = vector.shape_cast %1 : vector<16x128xf32> to vector<1x16x128xf32>
    %3 = arith.addf %0, %2 : vector<1x16x128xf32>
    %c0_4 = arith.constant 0 : index
    %c0_5 = arith.constant 0 : index
    %c0_6 = arith.constant 0 : index
    %4 = vector.load %arg3[%c0_4, %c0_5, %c0_6] : memref<1x16x128xf32, #tpu.memory_space<vmem>>, vector<1x16x128xf32>
    tpu.vector_store %arg3[%c0_4, %c0_5, %c0_6], %3 {strides = array<i32>} : memref<1x16x128xf32, #tpu.memory_space<vmem>>, vector<1x16x128xf32>,
    return
  }
  func.func @transform_0(%arg0: i32) -> (i32, i32, i32) {
    %c0_i32 = arith.constant 0 : i32
    %c0_i32_0 = arith.constant 0 : i32
    %c0_i32_1 = arith.constant 0 : i32
    return %arg0, %c0_i32, %c0_i32_0 : i32, i32, i32
  }
  func.func @transform_1(%arg0: i32) -> (i32, i32) {
    %c0_i32 = arith.constant 0 : i32
    %c0_i32_0 = arith.constant 0 : i32
    %c0_i32_1 = arith.constant 0 : i32
    return %c0_i32, %c0_i32_0 : i32, i32
  }
  func.func @transform_2(%arg0: i32) -> (i32, i32, i32) {
    %c0_i32 = arith.constant 0 : i32
    %c0_i32_0 = arith.constant 0 : i32
    %c0_i32_1 = arith.constant 0 : i32
    return %arg0, %c0_i32, %c0_i32_0 : i32, i32, i32
  }
}

module attributes {stable_mosaic.version = 11 : i64} {
  func.func @_attn_block_kernel(%arg0: i32, %arg1: memref<1x16x128xf32, #tpu.memory_space<vmem>>, %arg2: memref<1x24x128xf32, #tpu.memory_space<vmem>>, %arg3: memref<1x128xf32, #tpu.memory_space<vmem>>, %arg4: memref<1x128xf32, #tpu.memory_space<vmem>>, %arg5: memref<128x128xbf16, #tpu.memory_space<vmem>>, %arg6: memref<1x128xf32, #tpu.memory_space<vmem>>, %arg7: memref<128x128xbf16, #tpu.memory_space<vmem>>, %arg8: memref<1x128xf32, #tpu.memory_space<vmem>>, %arg9: memref<128x128xbf16, #tpu.memory_space<vmem>>, %arg10: memref<1x128xf32, #tpu.memory_space<vmem>>, %arg11: memref<128x128xbf16, #tpu.memory_space<vmem>>, %arg12: memref<1x128xf32, #tpu.memory_space<vmem>>, %arg13: memref<1x16x128xf32, #tpu.memory_space<vmem>>, %arg14: memref<16x128xf32, #tpu.memory_space<vmem>>) attributes {dimension_semantics = [#tpu.dimension_semantics<parallel>], iteration_bounds = array<i64: 2>, scalar_prefetch = 0 : i64, scratch_operands = 1 : i64, tpu.core_type = #tpu.core_type<tc>, window_params = [{transform_indices = @transform_0, window_bounds = array<i64: 1, 16, 128>}, {transform_indices = @transform_1, window_bounds = array<i64: 1, 24, 128>}, {pipeline_mode = #tpu.pipeline_mode<synchronous>, transform_indices = @transform_2, window_bounds = array<i64: 1, 128>}, {pipeline_mode = #tpu.pipeline_mode<synchronous>, transform_indices = @transform_3, window_bounds = array<i64: 1, 128>}, {pipeline_mode = #tpu.pipeline_mode<synchronous>, transform_indices = @transform_4, window_bounds = array<i64: 128, 128>}, {pipeline_mode = #tpu.pipeline_mode<synchronous>, transform_indices = @transform_5, window_bounds = array<i64: 1, 128>}, {pipeline_mode = #tpu.pipeline_mode<synchronous>, transform_indices = @transform_6, window_bounds = array<i64: 128, 128>}, {pipeline_mode = #tpu.pipeline_mode<synchronous>, transform_indices = @transform_7, window_bounds = array<i64: 1, 128>}, {pipeline_mode = #tpu.pipeline_mode<synchronous>, transform_indices = @transform_8, window_bounds = array<i64: 128, 128>}, {pipeline_mode = #tpu.pipeline_mode<synchronous>, transform_indices = @transform_9, window_bounds = array<i64: 1, 128>}, {pipeline_mode = #tpu.pipeline_mode<synchronous>, transform_indices = @transform_10, window_bounds = array<i64: 128, 128>}, {pipeline_mode = #tpu.pipeline_mode<synchronous>, transform_indices = @transform_11, window_bounds = array<i64: 1, 128>}, {transform_indices = @transform_12, window_bounds = array<i64: 1, 16, 128>}]} {
    %c0 = arith.constant 0 : index
    %c0_0 = arith.constant 0 : index
    %c0_1 = arith.constant 0 : index
    %0 = vector.load %arg1[%c0, %c0_0, %c0_1] : memref<1x16x128xf32, #tpu.memory_space<vmem>>, vector<1x16x128xf32>
    %1 = vector.shape_cast %0 : vector<1x16x128xf32> to vector<16x128xf32>
    %c0_2 = arith.constant 0 : index
    %c0_3 = arith.constant 0 : index
    %2 = vector.load %arg3[%c0_2, %c0_3] : memref<1x128xf32, #tpu.memory_space<vmem>>, vector<1x128xf32>
    %c0_4 = arith.constant 0 : index
    %c0_5 = arith.constant 0 : index
    %3 = vector.load %arg4[%c0_4, %c0_5] : memref<1x128xf32, #tpu.memory_space<vmem>>, vector<1x128xf32>
    %cst = arith.constant dense<0.000000e+00> : vector<16xf32>
    %4 = vector.multi_reduction <add>, %1, %cst [1] : vector<16x128xf32> to vector<16xf32>
    %5 = vector.shape_cast %4 : vector<16xf32> to vector<16x1xf32>
    %cst_6 = arith.constant 1.280000e+02 : f32
    %6 = vector.broadcast %cst_6 : f32 to vector<16x1xf32>
    %7 = arith.divf %5, %6 : vector<16x1xf32>
    %8 = vector.broadcast %7 : vector<16x1xf32> to vector<16x128xf32>
    %9 = arith.subf %1, %8 : vector<16x128xf32>
    %10 = arith.mulf %9, %9 : vector<16x128xf32>
    %cst_7 = arith.constant dense<0.000000e+00> : vector<16xf32>
    %11 = vector.multi_reduction <add>, %10, %cst_7 [1] : vector<16x128xf32> to vector<16xf32>
    %12 = vector.shape_cast %11 : vector<16xf32> to vector<16x1xf32>
    %cst_8 = arith.constant 1.280000e+02 : f32
    %13 = vector.broadcast %cst_8 : f32 to vector<16x1xf32>
    %14 = arith.divf %12, %13 : vector<16x1xf32>
    %cst_9 = arith.constant 9.99999974E-6 : f32
    %15 = vector.broadcast %cst_9 : f32 to vector<16x1xf32>
    %16 = arith.addf %14, %15 : vector<16x1xf32>
    %17 = math.rsqrt %16 : vector<16x1xf32>
    %18 = vector.broadcast %17 : vector<16x1xf32> to vector<16x128xf32>
    %19 = arith.mulf %9, %18 : vector<16x128xf32>
    %20 = vector.broadcast %2 : vector<1x128xf32> to vector<16x128xf32>
    %21 = arith.mulf %19, %20 : vector<16x128xf32>
    %22 = vector.broadcast %3 : vector<1x128xf32> to vector<16x128xf32>
    %23 = arith.addf %21, %22 : vector<16x128xf32>
    %24 = arith.truncf %23 : vector<16x128xf32> to vector<16x128xbf16>
    %c0_10 = arith.constant 0 : index
    %c0_11 = arith.constant 0 : index
    %c0_12 = arith.constant 0 : index
    %25 = vector.load %arg2[%c0_10, %c0_11, %c0_12] : memref<1x24x128xf32, #tpu.memory_space<vmem>>, vector<1x24x128xf32>
    %26 = vector.shape_cast %25 : vector<1x24x128xf32> to vector<24x128xf32>
    %27 = arith.truncf %26 : vector<24x128xf32> to vector<24x128xbf16>
    %c0_13 = arith.constant 0 : index
    %c0_14 = arith.constant 0 : index
    %28 = vector.load %arg5[%c0_13, %c0_14] : memref<128x128xbf16, #tpu.memory_space<vmem>>, vector<128x128xbf16>
    %cst_15 = arith.constant dense<0.000000e+00> : vector<16x128xf32>
    %29 = tpu.matmul %24, %28, %cst_15 {dimension_numbers = #tpu.dot_dimension_numbers<[1], [0], [0], [1], [0, 0, 1, 1], [], []>} : vector<16x128xbf16>, vector<128x128xbf16>, vector<16x128xf32> -> vector<16x128xf32>
    %c0_16 = arith.constant 0 : index
    %c0_17 = arith.constant 0 : index
    %30 = vector.load %arg6[%c0_16, %c0_17] : memref<1x128xf32, #tpu.memory_space<vmem>>, vector<1x128xf32>
    %31 = vector.broadcast %30 : vector<1x128xf32> to vector<16x128xf32>
    %32 = arith.addf %29, %31 : vector<16x128xf32>
    %cst_18 = arith.constant 0.176776692 : f32
    %33 = vector.broadcast %cst_18 : f32 to vector<16x128xf32>
    %34 = arith.mulf %32, %33 : vector<16x128xf32>
    %c0_19 = arith.constant 0 : index
    %c0_20 = arith.constant 0 : index
    %35 = vector.load %arg7[%c0_19, %c0_20] : memref<128x128xbf16, #tpu.memory_space<vmem>>, vector<128x128xbf16>
    %cst_21 = arith.constant dense<0.000000e+00> : vector<24x128xf32>
    %36 = tpu.matmul %27, %35, %cst_21 {dimension_numbers = #tpu.dot_dimension_numbers<[1], [0], [0], [1], [0, 0, 1, 1], [], []>} : vector<24x128xbf16>, vector<128x128xbf16>, vector<24x128xf32> -> vector<24x128xf32>
    %c0_22 = arith.constant 0 : index
    %c0_23 = arith.constant 0 : index
    %37 = vector.load %arg8[%c0_22, %c0_23] : memref<1x128xf32, #tpu.memory_space<vmem>>, vector<1x128xf32>
    %38 = vector.broadcast %37 : vector<1x128xf32> to vector<24x128xf32>
    %39 = arith.addf %36, %38 : vector<24x128xf32>
    %c0_24 = arith.constant 0 : index
    %c0_25 = arith.constant 0 : index
    %40 = vector.load %arg9[%c0_24, %c0_25] : memref<128x128xbf16, #tpu.memory_space<vmem>>, vector<128x128xbf16>
    %cst_26 = arith.constant dense<0.000000e+00> : vector<24x128xf32>
    %41 = tpu.matmul %27, %40, %cst_26 {dimension_numbers = #tpu.dot_dimension_numbers<[1], [0], [0], [1], [0, 0, 1, 1], [], []>} : vector<24x128xbf16>, vector<128x128xbf16>, vector<24x128xf32> -> vector<24x128xf32>
    %c0_27 = arith.constant 0 : index
    %c0_28 = arith.constant 0 : index
    %42 = vector.load %arg10[%c0_27, %c0_28] : memref<1x128xf32, #tpu.memory_space<vmem>>, vector<1x128xf32>
    %43 = vector.broadcast %42 : vector<1x128xf32> to vector<24x128xf32>
    %44 = arith.addf %41, %43 : vector<24x128xf32>
    %45 = arith.truncf %34 : vector<16x128xf32> to vector<16x128xbf16>
    %46 = arith.truncf %39 : vector<24x128xf32> to vector<24x128xbf16>
    %47 = arith.truncf %44 : vector<24x128xf32> to vector<24x128xbf16>
    %48 = vector.extract_strided_slice %45 {offsets = [0, 0], sizes = [16, 32], strides = [1, 1]} : vector<16x128xbf16> to vector<16x32xbf16>
    %49 = vector.extract_strided_slice %46 {offsets = [0, 0], sizes = [24, 32], strides = [1, 1]} : vector<24x128xbf16> to vector<24x32xbf16>
    %50 = vector.extract_strided_slice %47 {offsets = [0, 0], sizes = [24, 32], strides = [1, 1]} : vector<24x128xbf16> to vector<24x32xbf16>
    %cst_29 = arith.constant dense<0.000000e+00> : vector<16x24xf32>
    %51 = tpu.matmul %48, %49, %cst_29 {dimension_numbers = #tpu.dot_dimension_numbers<[1], [1], [0], [0], [0, 0, 1, 0], [], []>} : vector<16x32xbf16>, vector<24x32xbf16>, vector<16x24xf32> -> vector<16x24xf32>
    %cst_30 = arith.constant dense<0xFF800000> : vector<16xf32>
    %52 = vector.multi_reduction <maximumf>, %51, %cst_30 [1] : vector<16x24xf32> to vector<16xf32>
    %53 = vector.shape_cast %52 : vector<16xf32> to vector<16x1xf32>
    %54 = vector.broadcast %53 : vector<16x1xf32> to vector<16x24xf32>
    %55 = arith.subf %51, %54 : vector<16x24xf32>
    %56 = math.exp %55 : vector<16x24xf32>
    %cst_31 = arith.constant dense<0.000000e+00> : vector<16xf32>
    %57 = vector.multi_reduction <add>, %56, %cst_31 [1] : vector<16x24xf32> to vector<16xf32>
    %58 = vector.shape_cast %57 : vector<16xf32> to vector<16x1xf32>
    %59 = arith.truncf %56 : vector<16x24xf32> to vector<16x24xbf16>
    %cst_32 = arith.constant dense<0.000000e+00> : vector<16x32xf32>
    %60 = tpu.matmul %59, %50, %cst_32 {dimension_numbers = #tpu.dot_dimension_numbers<[1], [0], [0], [1], [0, 0, 1, 1], [], []>} : vector<16x24xbf16>, vector<24x32xbf16>, vector<16x32xf32> -> vector<16x32xf32>
    %61 = tpu.reciprocal %58 {approx = true} : vector<16x1xf32> -> vector<16x1xf32>
    %62 = vector.broadcast %61 : vector<16x1xf32> to vector<16x32xf32>
    %63 = arith.mulf %60, %62 : vector<16x32xf32>
    %c0_33 = arith.constant 0 : index
    %c0_34 = arith.constant 0 : index
    %64 = vector.load %arg14[%c0_33, %c0_34] : memref<16x128xf32, #tpu.memory_space<vmem>>, vector<16x32xf32>
    tpu.vector_store %arg14[%c0_33, %c0_34], %63 {strides = array<i32>} : memref<16x128xf32, #tpu.memory_space<vmem>>, vector<16x32xf32>,
    %65 = vector.extract_strided_slice %45 {offsets = [0, 32], sizes = [16, 32], strides = [1, 1]} : vector<16x128xbf16> to vector<16x32xbf16>
    %66 = vector.extract_strided_slice %46 {offsets = [0, 32], sizes = [24, 32], strides = [1, 1]} : vector<24x128xbf16> to vector<24x32xbf16>
    %67 = vector.extract_strided_slice %47 {offsets = [0, 32], sizes = [24, 32], strides = [1, 1]} : vector<24x128xbf16> to vector<24x32xbf16>
    %cst_35 = arith.constant dense<0.000000e+00> : vector<16x24xf32>
    %68 = tpu.matmul %65, %66, %cst_35 {dimension_numbers = #tpu.dot_dimension_numbers<[1], [1], [0], [0], [0, 0, 1, 0], [], []>} : vector<16x32xbf16>, vector<24x32xbf16>, vector<16x24xf32> -> vector<16x24xf32>
    %cst_36 = arith.constant dense<0xFF800000> : vector<16xf32>
    %69 = vector.multi_reduction <maximumf>, %68, %cst_36 [1] : vector<16x24xf32> to vector<16xf32>
    %70 = vector.shape_cast %69 : vector<16xf32> to vector<16x1xf32>
    %71 = vector.broadcast %70 : vector<16x1xf32> to vector<16x24xf32>
    %72 = arith.subf %68, %71 : vector<16x24xf32>
    %73 = math.exp %72 : vector<16x24xf32>
    %cst_37 = arith.constant dense<0.000000e+00> : vector<16xf32>
    %74 = vector.multi_reduction <add>, %73, %cst_37 [1] : vector<16x24xf32> to vector<16xf32>
    %75 = vector.shape_cast %74 : vector<16xf32> to vector<16x1xf32>
    %76 = arith.truncf %73 : vector<16x24xf32> to vector<16x24xbf16>
    %cst_38 = arith.constant dense<0.000000e+00> : vector<16x32xf32>
    %77 = tpu.matmul %76, %67, %cst_38 {dimension_numbers = #tpu.dot_dimension_numbers<[1], [0], [0], [1], [0, 0, 1, 1], [], []>} : vector<16x24xbf16>, vector<24x32xbf16>, vector<16x32xf32> -> vector<16x32xf32>
    %78 = tpu.reciprocal %75 {approx = true} : vector<16x1xf32> -> vector<16x1xf32>
    %79 = vector.broadcast %78 : vector<16x1xf32> to vector<16x32xf32>
    %80 = arith.mulf %77, %79 : vector<16x32xf32>
    %c0_39 = arith.constant 0 : index
    %c32 = arith.constant 32 : index
    %81 = vector.load %arg14[%c0_39, %c32] : memref<16x128xf32, #tpu.memory_space<vmem>>, vector<16x32xf32>
    tpu.vector_store %arg14[%c0_39, %c32], %80 {strides = array<i32>} : memref<16x128xf32, #tpu.memory_space<vmem>>, vector<16x32xf32>,
    %82 = vector.extract_strided_slice %45 {offsets = [0, 64], sizes = [16, 32], strides = [1, 1]} : vector<16x128xbf16> to vector<16x32xbf16>
    %83 = vector.extract_strided_slice %46 {offsets = [0, 64], sizes = [24, 32], strides = [1, 1]} : vector<24x128xbf16> to vector<24x32xbf16>
    %84 = vector.extract_strided_slice %47 {offsets = [0, 64], sizes = [24, 32], strides = [1, 1]} : vector<24x128xbf16> to vector<24x32xbf16>
    %cst_40 = arith.constant dense<0.000000e+00> : vector<16x24xf32>
    %85 = tpu.matmul %82, %83, %cst_40 {dimension_numbers = #tpu.dot_dimension_numbers<[1], [1], [0], [0], [0, 0, 1, 0], [], []>} : vector<16x32xbf16>, vector<24x32xbf16>, vector<16x24xf32> -> vector<16x24xf32>
    %cst_41 = arith.constant dense<0xFF800000> : vector<16xf32>
    %86 = vector.multi_reduction <maximumf>, %85, %cst_41 [1] : vector<16x24xf32> to vector<16xf32>
    %87 = vector.shape_cast %86 : vector<16xf32> to vector<16x1xf32>
    %88 = vector.broadcast %87 : vector<16x1xf32> to vector<16x24xf32>
    %89 = arith.subf %85, %88 : vector<16x24xf32>
    %90 = math.exp %89 : vector<16x24xf32>
    %cst_42 = arith.constant dense<0.000000e+00> : vector<16xf32>
    %91 = vector.multi_reduction <add>, %90, %cst_42 [1] : vector<16x24xf32> to vector<16xf32>
    %92 = vector.shape_cast %91 : vector<16xf32> to vector<16x1xf32>
    %93 = arith.truncf %90 : vector<16x24xf32> to vector<16x24xbf16>
    %cst_43 = arith.constant dense<0.000000e+00> : vector<16x32xf32>
    %94 = tpu.matmul %93, %84, %cst_43 {dimension_numbers = #tpu.dot_dimension_numbers<[1], [0], [0], [1], [0, 0, 1, 1], [], []>} : vector<16x24xbf16>, vector<24x32xbf16>, vector<16x32xf32> -> vector<16x32xf32>
    %95 = tpu.reciprocal %92 {approx = true} : vector<16x1xf32> -> vector<16x1xf32>
    %96 = vector.broadcast %95 : vector<16x1xf32> to vector<16x32xf32>
    %97 = arith.mulf %94, %96 : vector<16x32xf32>
    %c0_44 = arith.constant 0 : index
    %c64 = arith.constant 64 : index
    %98 = vector.load %arg14[%c0_44, %c64] : memref<16x128xf32, #tpu.memory_space<vmem>>, vector<16x32xf32>
    tpu.vector_store %arg14[%c0_44, %c64], %97 {strides = array<i32>} : memref<16x128xf32, #tpu.memory_space<vmem>>, vector<16x32xf32>,
    %99 = vector.extract_strided_slice %45 {offsets = [0, 96], sizes = [16, 32], strides = [1, 1]} : vector<16x128xbf16> to vector<16x32xbf16>
    %100 = vector.extract_strided_slice %46 {offsets = [0, 96], sizes = [24, 32], strides = [1, 1]} : vector<24x128xbf16> to vector<24x32xbf16>
    %101 = vector.extract_strided_slice %47 {offsets = [0, 96], sizes = [24, 32], strides = [1, 1]} : vector<24x128xbf16> to vector<24x32xbf16>
    %cst_45 = arith.constant dense<0.000000e+00> : vector<16x24xf32>
    %102 = tpu.matmul %99, %100, %cst_45 {dimension_numbers = #tpu.dot_dimension_numbers<[1], [1], [0], [0], [0, 0, 1, 0], [], []>} : vector<16x32xbf16>, vector<24x32xbf16>, vector<16x24xf32> -> vector<16x24xf32>
    %cst_46 = arith.constant dense<0xFF800000> : vector<16xf32>
    %103 = vector.multi_reduction <maximumf>, %102, %cst_46 [1] : vector<16x24xf32> to vector<16xf32>
    %104 = vector.shape_cast %103 : vector<16xf32> to vector<16x1xf32>
    %105 = vector.broadcast %104 : vector<16x1xf32> to vector<16x24xf32>
    %106 = arith.subf %102, %105 : vector<16x24xf32>
    %107 = math.exp %106 : vector<16x24xf32>
    %cst_47 = arith.constant dense<0.000000e+00> : vector<16xf32>
    %108 = vector.multi_reduction <add>, %107, %cst_47 [1] : vector<16x24xf32> to vector<16xf32>
    %109 = vector.shape_cast %108 : vector<16xf32> to vector<16x1xf32>
    %110 = arith.truncf %107 : vector<16x24xf32> to vector<16x24xbf16>
    %cst_48 = arith.constant dense<0.000000e+00> : vector<16x32xf32>
    %111 = tpu.matmul %110, %101, %cst_48 {dimension_numbers = #tpu.dot_dimension_numbers<[1], [0], [0], [1], [0, 0, 1, 1], [], []>} : vector<16x24xbf16>, vector<24x32xbf16>, vector<16x32xf32> -> vector<16x32xf32>
    %112 = tpu.reciprocal %109 {approx = true} : vector<16x1xf32> -> vector<16x1xf32>
    %113 = vector.broadcast %112 : vector<16x1xf32> to vector<16x32xf32>
    %114 = arith.mulf %111, %113 : vector<16x32xf32>
    %c0_49 = arith.constant 0 : index
    %c96 = arith.constant 96 : index
    %115 = vector.load %arg14[%c0_49, %c96] : memref<16x128xf32, #tpu.memory_space<vmem>>, vector<16x32xf32>
    tpu.vector_store %arg14[%c0_49, %c96], %114 {strides = array<i32>} : memref<16x128xf32, #tpu.memory_space<vmem>>, vector<16x32xf32>,
    %c0_50 = arith.constant 0 : index
    %c0_51 = arith.constant 0 : index
    %116 = vector.load %arg14[%c0_50, %c0_51] : memref<16x128xf32, #tpu.memory_space<vmem>>, vector<16x128xf32>
    %117 = arith.truncf %116 : vector<16x128xf32> to vector<16x128xbf16>
    %c0_52 = arith.constant 0 : index
    %c0_53 = arith.constant 0 : index
    %118 = vector.load %arg11[%c0_52, %c0_53] : memref<128x128xbf16, #tpu.memory_space<vmem>>, vector<128x128xbf16>
    %cst_54 = arith.constant dense<0.000000e+00> : vector<16x128xf32>
    %119 = tpu.matmul %117, %118, %cst_54 {dimension_numbers = #tpu.dot_dimension_numbers<[1], [0], [0], [1], [0, 0, 1, 1], [], []>} : vector<16x128xbf16>, vector<128x128xbf16>, vector<16x128xf32> -> vector<16x128xf32>
    %c0_55 = arith.constant 0 : index
    %c0_56 = arith.constant 0 : index
    %120 = vector.load %arg12[%c0_55, %c0_56] : memref<1x128xf32, #tpu.memory_space<vmem>>, vector<1x128xf32>
    %121 = vector.broadcast %120 : vector<1x128xf32> to vector<16x128xf32>
    %122 = arith.addf %119, %121 : vector<16x128xf32>
    %123 = arith.addf %122, %1 : vector<16x128xf32>
    %c0_57 = arith.constant 0 : index
    %c0_58 = arith.constant 0 : index
    %c0_59 = arith.constant 0 : index
    %124 = vector.load %arg13[%c0_57, %c0_58, %c0_59] : memref<1x16x128xf32, #tpu.memory_space<vmem>>, vector<1x16x128xf32>
    %125 = vector.shape_cast %124 : vector<1x16x128xf32> to vector<16x128xf32>
    %126 = vector.shape_cast %123 : vector<16x128xf32> to vector<1x16x128xf32>
    tpu.vector_store %arg13[%c0_57, %c0_58, %c0_59], %126 {strides = array<i32>} : memref<1x16x128xf32, #tpu.memory_space<vmem>>, vector<1x16x128xf32>,
    return
  }
  func.func @transform_0(%arg0: i32) -> (i32, i32, i32) {
    %c0_i32 = arith.constant 0 : i32
    %c0_i32_0 = arith.constant 0 : i32
    %c0_i32_1 = arith.constant 0 : i32
    return %arg0, %c0_i32, %c0_i32_0 : i32, i32, i32
  }
  func.func @transform_1(%arg0: i32) -> (i32, i32, i32) {
    %c0_i32 = arith.constant 0 : i32
    %c0_i32_0 = arith.constant 0 : i32
    %c0_i32_1 = arith.constant 0 : i32
    return %arg0, %c0_i32, %c0_i32_0 : i32, i32, i32
  }
  func.func @transform_2(%arg0: i32) -> (i32, i32) {
    %c0_i32 = arith.constant 0 : i32
    %c0_i32_0 = arith.constant 0 : i32
    %c0_i32_1 = arith.constant 0 : i32
    return %c0_i32, %c0_i32_0 : i32, i32
  }
  func.func @transform_3(%arg0: i32) -> (i32, i32) {
    %c0_i32 = arith.constant 0 : i32
    %c0_i32_0 = arith.constant 0 : i32
    %c0_i32_1 = arith.constant 0 : i32
    return %c0_i32, %c0_i32_0 : i32, i32
  }
  func.func @transform_4(%arg0: i32) -> (i32, i32) {
    %c0_i32 = arith.constant 0 : i32
    %c0_i32_0 = arith.constant 0 : i32
    %c0_i32_1 = arith.constant 0 : i32
    return %c0_i32, %c0_i32_0 : i32, i32
  }
  func.func @transform_5(%arg0: i32) -> (i32, i32) {
    %c0_i32 = arith.constant 0 : i32
    %c0_i32_0 = arith.constant 0 : i32
    %c0_i32_1 = arith.constant 0 : i32
    return %c0_i32, %c0_i32_0 : i32, i32
  }
  func.func @transform_6(%arg0: i32) -> (i32, i32) {
    %c0_i32 = arith.constant 0 : i32
    %c0_i32_0 = arith.constant 0 : i32
    %c0_i32_1 = arith.constant 0 : i32
    return %c0_i32, %c0_i32_0 : i32, i32
  }
  func.func @transform_7(%arg0: i32) -> (i32, i32) {
    %c0_i32 = arith.constant 0 : i32
    %c0_i32_0 = arith.constant 0 : i32
    %c0_i32_1 = arith.constant 0 : i32
    return %c0_i32, %c0_i32_0 : i32, i32
  }
  func.func @transform_8(%arg0: i32) -> (i32, i32) {
    %c0_i32 = arith.constant 0 : i32
    %c0_i32_0 = arith.constant 0 : i32
    %c0_i32_1 = arith.constant 0 : i32
    return %c0_i32, %c0_i32_0 : i32, i32
  }
  func.func @transform_9(%arg0: i32) -> (i32, i32) {
    %c0_i32 = arith.constant 0 : i32
    %c0_i32_0 = arith.constant 0 : i32
    %c0_i32_1 = arith.constant 0 : i32
    return %c0_i32, %c0_i32_0 : i32, i32
  }
  func.func @transform_10(%arg0: i32) -> (i32, i32) {
    %c0_i32 = arith.constant 0 : i32
    %c0_i32_0 = arith.constant 0 : i32
    %c0_i32_1 = arith.constant 0 : i32
    return %c0_i32, %c0_i32_0 : i32, i32
  }
  func.func @transform_11(%arg0: i32) -> (i32, i32) {
    %c0_i32 = arith.constant 0 : i32
    %c0_i32_0 = arith.constant 0 : i32
    %c0_i32_1 = arith.constant 0 : i32
    return %c0_i32, %c0_i32_0 : i32, i32
  }
  func.func @transform_12(%arg0: i32) -> (i32, i32, i32) {
    %c0_i32 = arith.constant 0 : i32
    %c0_i32_0 = arith.constant 0 : i32
    %c0_i32_1 = arith.constant 0 : i32
    return %arg0, %c0_i32, %c0_i32_0 : i32, i32, i32
  }
}

module attributes {stable_mosaic.version = 11 : i64} {
  func.func @_attn_block_kernel(%arg0: i32, %arg1: memref<1x16x128xf32, #tpu.memory_space<vmem>>, %arg2: memref<1x128xf32, #tpu.memory_space<vmem>>, %arg3: memref<1x128xf32, #tpu.memory_space<vmem>>, %arg4: memref<128x128xbf16, #tpu.memory_space<vmem>>, %arg5: memref<1x128xf32, #tpu.memory_space<vmem>>, %arg6: memref<128x128xbf16, #tpu.memory_space<vmem>>, %arg7: memref<1x128xf32, #tpu.memory_space<vmem>>, %arg8: memref<128x128xbf16, #tpu.memory_space<vmem>>, %arg9: memref<1x128xf32, #tpu.memory_space<vmem>>, %arg10: memref<128x128xbf16, #tpu.memory_space<vmem>>, %arg11: memref<1x128xf32, #tpu.memory_space<vmem>>, %arg12: memref<1x16x128xf32, #tpu.memory_space<vmem>>, %arg13: memref<16x128xf32, #tpu.memory_space<vmem>>) attributes {dimension_semantics = [#tpu.dimension_semantics<parallel>], iteration_bounds = array<i64: 2>, scalar_prefetch = 0 : i64, scratch_operands = 1 : i64, tpu.core_type = #tpu.core_type<tc>, window_params = [{transform_indices = @transform_0, window_bounds = array<i64: 1, 16, 128>}, {pipeline_mode = #tpu.pipeline_mode<synchronous>, transform_indices = @transform_1, window_bounds = array<i64: 1, 128>}, {pipeline_mode = #tpu.pipeline_mode<synchronous>, transform_indices = @transform_2, window_bounds = array<i64: 1, 128>}, {pipeline_mode = #tpu.pipeline_mode<synchronous>, transform_indices = @transform_3, window_bounds = array<i64: 128, 128>}, {pipeline_mode = #tpu.pipeline_mode<synchronous>, transform_indices = @transform_4, window_bounds = array<i64: 1, 128>}, {pipeline_mode = #tpu.pipeline_mode<synchronous>, transform_indices = @transform_5, window_bounds = array<i64: 128, 128>}, {pipeline_mode = #tpu.pipeline_mode<synchronous>, transform_indices = @transform_6, window_bounds = array<i64: 1, 128>}, {pipeline_mode = #tpu.pipeline_mode<synchronous>, transform_indices = @transform_7, window_bounds = array<i64: 128, 128>}, {pipeline_mode = #tpu.pipeline_mode<synchronous>, transform_indices = @transform_8, window_bounds = array<i64: 1, 128>}, {pipeline_mode = #tpu.pipeline_mode<synchronous>, transform_indices = @transform_9, window_bounds = array<i64: 128, 128>}, {pipeline_mode = #tpu.pipeline_mode<synchronous>, transform_indices = @transform_10, window_bounds = array<i64: 1, 128>}, {transform_indices = @transform_11, window_bounds = array<i64: 1, 16, 128>}]} {
    %c0 = arith.constant 0 : index
    %c0_0 = arith.constant 0 : index
    %c0_1 = arith.constant 0 : index
    %0 = vector.load %arg1[%c0, %c0_0, %c0_1] : memref<1x16x128xf32, #tpu.memory_space<vmem>>, vector<1x16x128xf32>
    %1 = vector.shape_cast %0 : vector<1x16x128xf32> to vector<16x128xf32>
    %c0_2 = arith.constant 0 : index
    %c0_3 = arith.constant 0 : index
    %2 = vector.load %arg2[%c0_2, %c0_3] : memref<1x128xf32, #tpu.memory_space<vmem>>, vector<1x128xf32>
    %c0_4 = arith.constant 0 : index
    %c0_5 = arith.constant 0 : index
    %3 = vector.load %arg3[%c0_4, %c0_5] : memref<1x128xf32, #tpu.memory_space<vmem>>, vector<1x128xf32>
    %cst = arith.constant dense<0.000000e+00> : vector<16xf32>
    %4 = vector.multi_reduction <add>, %1, %cst [1] : vector<16x128xf32> to vector<16xf32>
    %5 = vector.shape_cast %4 : vector<16xf32> to vector<16x1xf32>
    %cst_6 = arith.constant 1.280000e+02 : f32
    %6 = vector.broadcast %cst_6 : f32 to vector<16x1xf32>
    %7 = arith.divf %5, %6 : vector<16x1xf32>
    %8 = vector.broadcast %7 : vector<16x1xf32> to vector<16x128xf32>
    %9 = arith.subf %1, %8 : vector<16x128xf32>
    %10 = arith.mulf %9, %9 : vector<16x128xf32>
    %cst_7 = arith.constant dense<0.000000e+00> : vector<16xf32>
    %11 = vector.multi_reduction <add>, %10, %cst_7 [1] : vector<16x128xf32> to vector<16xf32>
    %12 = vector.shape_cast %11 : vector<16xf32> to vector<16x1xf32>
    %cst_8 = arith.constant 1.280000e+02 : f32
    %13 = vector.broadcast %cst_8 : f32 to vector<16x1xf32>
    %14 = arith.divf %12, %13 : vector<16x1xf32>
    %cst_9 = arith.constant 9.99999974E-6 : f32
    %15 = vector.broadcast %cst_9 : f32 to vector<16x1xf32>
    %16 = arith.addf %14, %15 : vector<16x1xf32>
    %17 = math.rsqrt %16 : vector<16x1xf32>
    %18 = vector.broadcast %17 : vector<16x1xf32> to vector<16x128xf32>
    %19 = arith.mulf %9, %18 : vector<16x128xf32>
    %20 = vector.broadcast %2 : vector<1x128xf32> to vector<16x128xf32>
    %21 = arith.mulf %19, %20 : vector<16x128xf32>
    %22 = vector.broadcast %3 : vector<1x128xf32> to vector<16x128xf32>
    %23 = arith.addf %21, %22 : vector<16x128xf32>
    %24 = arith.truncf %23 : vector<16x128xf32> to vector<16x128xbf16>
    %c0_10 = arith.constant 0 : index
    %c0_11 = arith.constant 0 : index
    %25 = vector.load %arg4[%c0_10, %c0_11] : memref<128x128xbf16, #tpu.memory_space<vmem>>, vector<128x128xbf16>
    %cst_12 = arith.constant dense<0.000000e+00> : vector<16x128xf32>
    %26 = tpu.matmul %24, %25, %cst_12 {dimension_numbers = #tpu.dot_dimension_numbers<[1], [0], [0], [1], [0, 0, 1, 1], [], []>} : vector<16x128xbf16>, vector<128x128xbf16>, vector<16x128xf32> -> vector<16x128xf32>
    %c0_13 = arith.constant 0 : index
    %c0_14 = arith.constant 0 : index
    %27 = vector.load %arg5[%c0_13, %c0_14] : memref<1x128xf32, #tpu.memory_space<vmem>>, vector<1x128xf32>
    %28 = vector.broadcast %27 : vector<1x128xf32> to vector<16x128xf32>
    %29 = arith.addf %26, %28 : vector<16x128xf32>
    %cst_15 = arith.constant 0.176776692 : f32
    %30 = vector.broadcast %cst_15 : f32 to vector<16x128xf32>
    %31 = arith.mulf %29, %30 : vector<16x128xf32>
    %c0_16 = arith.constant 0 : index
    %c0_17 = arith.constant 0 : index
    %32 = vector.load %arg6[%c0_16, %c0_17] : memref<128x128xbf16, #tpu.memory_space<vmem>>, vector<128x128xbf16>
    %cst_18 = arith.constant dense<0.000000e+00> : vector<16x128xf32>
    %33 = tpu.matmul %24, %32, %cst_18 {dimension_numbers = #tpu.dot_dimension_numbers<[1], [0], [0], [1], [0, 0, 1, 1], [], []>} : vector<16x128xbf16>, vector<128x128xbf16>, vector<16x128xf32> -> vector<16x128xf32>
    %c0_19 = arith.constant 0 : index
    %c0_20 = arith.constant 0 : index
    %34 = vector.load %arg7[%c0_19, %c0_20] : memref<1x128xf32, #tpu.memory_space<vmem>>, vector<1x128xf32>
    %35 = vector.broadcast %34 : vector<1x128xf32> to vector<16x128xf32>
    %36 = arith.addf %33, %35 : vector<16x128xf32>
    %c0_21 = arith.constant 0 : index
    %c0_22 = arith.constant 0 : index
    %37 = vector.load %arg8[%c0_21, %c0_22] : memref<128x128xbf16, #tpu.memory_space<vmem>>, vector<128x128xbf16>
    %cst_23 = arith.constant dense<0.000000e+00> : vector<16x128xf32>
    %38 = tpu.matmul %24, %37, %cst_23 {dimension_numbers = #tpu.dot_dimension_numbers<[1], [0], [0], [1], [0, 0, 1, 1], [], []>} : vector<16x128xbf16>, vector<128x128xbf16>, vector<16x128xf32> -> vector<16x128xf32>
    %c0_24 = arith.constant 0 : index
    %c0_25 = arith.constant 0 : index
    %39 = vector.load %arg9[%c0_24, %c0_25] : memref<1x128xf32, #tpu.memory_space<vmem>>, vector<1x128xf32>
    %40 = vector.broadcast %39 : vector<1x128xf32> to vector<16x128xf32>
    %41 = arith.addf %38, %40 : vector<16x128xf32>
    %42 = arith.truncf %31 : vector<16x128xf32> to vector<16x128xbf16>
    %43 = arith.truncf %36 : vector<16x128xf32> to vector<16x128xbf16>
    %44 = arith.truncf %41 : vector<16x128xf32> to vector<16x128xbf16>
    %45 = vector.extract_strided_slice %42 {offsets = [0, 0], sizes = [16, 32], strides = [1, 1]} : vector<16x128xbf16> to vector<16x32xbf16>
    %46 = vector.extract_strided_slice %43 {offsets = [0, 0], sizes = [16, 32], strides = [1, 1]} : vector<16x128xbf16> to vector<16x32xbf16>
    %47 = vector.extract_strided_slice %44 {offsets = [0, 0], sizes = [16, 32], strides = [1, 1]} : vector<16x128xbf16> to vector<16x32xbf16>
    %cst_26 = arith.constant dense<0.000000e+00> : vector<16x16xf32>
    %48 = tpu.matmul %45, %46, %cst_26 {dimension_numbers = #tpu.dot_dimension_numbers<[1], [1], [0], [0], [0, 0, 1, 0], [], []>} : vector<16x32xbf16>, vector<16x32xbf16>, vector<16x16xf32> -> vector<16x16xf32>
    %cst_27 = arith.constant dense<0xFF800000> : vector<16xf32>
    %49 = vector.multi_reduction <maximumf>, %48, %cst_27 [1] : vector<16x16xf32> to vector<16xf32>
    %50 = vector.shape_cast %49 : vector<16xf32> to vector<16x1xf32>
    %51 = vector.broadcast %50 : vector<16x1xf32> to vector<16x16xf32>
    %52 = arith.subf %48, %51 : vector<16x16xf32>
    %53 = math.exp %52 : vector<16x16xf32>
    %cst_28 = arith.constant dense<0.000000e+00> : vector<16xf32>
    %54 = vector.multi_reduction <add>, %53, %cst_28 [1] : vector<16x16xf32> to vector<16xf32>
    %55 = vector.shape_cast %54 : vector<16xf32> to vector<16x1xf32>
    %56 = arith.truncf %53 : vector<16x16xf32> to vector<16x16xbf16>
    %cst_29 = arith.constant dense<0.000000e+00> : vector<16x32xf32>
    %57 = tpu.matmul %56, %47, %cst_29 {dimension_numbers = #tpu.dot_dimension_numbers<[1], [0], [0], [1], [0, 0, 1, 1], [], []>} : vector<16x16xbf16>, vector<16x32xbf16>, vector<16x32xf32> -> vector<16x32xf32>
    %58 = tpu.reciprocal %55 {approx = true} : vector<16x1xf32> -> vector<16x1xf32>
    %59 = vector.broadcast %58 : vector<16x1xf32> to vector<16x32xf32>
    %60 = arith.mulf %57, %59 : vector<16x32xf32>
    %c0_30 = arith.constant 0 : index
    %c0_31 = arith.constant 0 : index
    %61 = vector.load %arg13[%c0_30, %c0_31] : memref<16x128xf32, #tpu.memory_space<vmem>>, vector<16x32xf32>
    tpu.vector_store %arg13[%c0_30, %c0_31], %60 {strides = array<i32>} : memref<16x128xf32, #tpu.memory_space<vmem>>, vector<16x32xf32>,
    %62 = vector.extract_strided_slice %42 {offsets = [0, 32], sizes = [16, 32], strides = [1, 1]} : vector<16x128xbf16> to vector<16x32xbf16>
    %63 = vector.extract_strided_slice %43 {offsets = [0, 32], sizes = [16, 32], strides = [1, 1]} : vector<16x128xbf16> to vector<16x32xbf16>
    %64 = vector.extract_strided_slice %44 {offsets = [0, 32], sizes = [16, 32], strides = [1, 1]} : vector<16x128xbf16> to vector<16x32xbf16>
    %cst_32 = arith.constant dense<0.000000e+00> : vector<16x16xf32>
    %65 = tpu.matmul %62, %63, %cst_32 {dimension_numbers = #tpu.dot_dimension_numbers<[1], [1], [0], [0], [0, 0, 1, 0], [], []>} : vector<16x32xbf16>, vector<16x32xbf16>, vector<16x16xf32> -> vector<16x16xf32>
    %cst_33 = arith.constant dense<0xFF800000> : vector<16xf32>
    %66 = vector.multi_reduction <maximumf>, %65, %cst_33 [1] : vector<16x16xf32> to vector<16xf32>
    %67 = vector.shape_cast %66 : vector<16xf32> to vector<16x1xf32>
    %68 = vector.broadcast %67 : vector<16x1xf32> to vector<16x16xf32>
    %69 = arith.subf %65, %68 : vector<16x16xf32>
    %70 = math.exp %69 : vector<16x16xf32>
    %cst_34 = arith.constant dense<0.000000e+00> : vector<16xf32>
    %71 = vector.multi_reduction <add>, %70, %cst_34 [1] : vector<16x16xf32> to vector<16xf32>
    %72 = vector.shape_cast %71 : vector<16xf32> to vector<16x1xf32>
    %73 = arith.truncf %70 : vector<16x16xf32> to vector<16x16xbf16>
    %cst_35 = arith.constant dense<0.000000e+00> : vector<16x32xf32>
    %74 = tpu.matmul %73, %64, %cst_35 {dimension_numbers = #tpu.dot_dimension_numbers<[1], [0], [0], [1], [0, 0, 1, 1], [], []>} : vector<16x16xbf16>, vector<16x32xbf16>, vector<16x32xf32> -> vector<16x32xf32>
    %75 = tpu.reciprocal %72 {approx = true} : vector<16x1xf32> -> vector<16x1xf32>
    %76 = vector.broadcast %75 : vector<16x1xf32> to vector<16x32xf32>
    %77 = arith.mulf %74, %76 : vector<16x32xf32>
    %c0_36 = arith.constant 0 : index
    %c32 = arith.constant 32 : index
    %78 = vector.load %arg13[%c0_36, %c32] : memref<16x128xf32, #tpu.memory_space<vmem>>, vector<16x32xf32>
    tpu.vector_store %arg13[%c0_36, %c32], %77 {strides = array<i32>} : memref<16x128xf32, #tpu.memory_space<vmem>>, vector<16x32xf32>,
    %79 = vector.extract_strided_slice %42 {offsets = [0, 64], sizes = [16, 32], strides = [1, 1]} : vector<16x128xbf16> to vector<16x32xbf16>
    %80 = vector.extract_strided_slice %43 {offsets = [0, 64], sizes = [16, 32], strides = [1, 1]} : vector<16x128xbf16> to vector<16x32xbf16>
    %81 = vector.extract_strided_slice %44 {offsets = [0, 64], sizes = [16, 32], strides = [1, 1]} : vector<16x128xbf16> to vector<16x32xbf16>
    %cst_37 = arith.constant dense<0.000000e+00> : vector<16x16xf32>
    %82 = tpu.matmul %79, %80, %cst_37 {dimension_numbers = #tpu.dot_dimension_numbers<[1], [1], [0], [0], [0, 0, 1, 0], [], []>} : vector<16x32xbf16>, vector<16x32xbf16>, vector<16x16xf32> -> vector<16x16xf32>
    %cst_38 = arith.constant dense<0xFF800000> : vector<16xf32>
    %83 = vector.multi_reduction <maximumf>, %82, %cst_38 [1] : vector<16x16xf32> to vector<16xf32>
    %84 = vector.shape_cast %83 : vector<16xf32> to vector<16x1xf32>
    %85 = vector.broadcast %84 : vector<16x1xf32> to vector<16x16xf32>
    %86 = arith.subf %82, %85 : vector<16x16xf32>
    %87 = math.exp %86 : vector<16x16xf32>
    %cst_39 = arith.constant dense<0.000000e+00> : vector<16xf32>
    %88 = vector.multi_reduction <add>, %87, %cst_39 [1] : vector<16x16xf32> to vector<16xf32>
    %89 = vector.shape_cast %88 : vector<16xf32> to vector<16x1xf32>
    %90 = arith.truncf %87 : vector<16x16xf32> to vector<16x16xbf16>
    %cst_40 = arith.constant dense<0.000000e+00> : vector<16x32xf32>
    %91 = tpu.matmul %90, %81, %cst_40 {dimension_numbers = #tpu.dot_dimension_numbers<[1], [0], [0], [1], [0, 0, 1, 1], [], []>} : vector<16x16xbf16>, vector<16x32xbf16>, vector<16x32xf32> -> vector<16x32xf32>
    %92 = tpu.reciprocal %89 {approx = true} : vector<16x1xf32> -> vector<16x1xf32>
    %93 = vector.broadcast %92 : vector<16x1xf32> to vector<16x32xf32>
    %94 = arith.mulf %91, %93 : vector<16x32xf32>
    %c0_41 = arith.constant 0 : index
    %c64 = arith.constant 64 : index
    %95 = vector.load %arg13[%c0_41, %c64] : memref<16x128xf32, #tpu.memory_space<vmem>>, vector<16x32xf32>
    tpu.vector_store %arg13[%c0_41, %c64], %94 {strides = array<i32>} : memref<16x128xf32, #tpu.memory_space<vmem>>, vector<16x32xf32>,
    %96 = vector.extract_strided_slice %42 {offsets = [0, 96], sizes = [16, 32], strides = [1, 1]} : vector<16x128xbf16> to vector<16x32xbf16>
    %97 = vector.extract_strided_slice %43 {offsets = [0, 96], sizes = [16, 32], strides = [1, 1]} : vector<16x128xbf16> to vector<16x32xbf16>
    %98 = vector.extract_strided_slice %44 {offsets = [0, 96], sizes = [16, 32], strides = [1, 1]} : vector<16x128xbf16> to vector<16x32xbf16>
    %cst_42 = arith.constant dense<0.000000e+00> : vector<16x16xf32>
    %99 = tpu.matmul %96, %97, %cst_42 {dimension_numbers = #tpu.dot_dimension_numbers<[1], [1], [0], [0], [0, 0, 1, 0], [], []>} : vector<16x32xbf16>, vector<16x32xbf16>, vector<16x16xf32> -> vector<16x16xf32>
    %cst_43 = arith.constant dense<0xFF800000> : vector<16xf32>
    %100 = vector.multi_reduction <maximumf>, %99, %cst_43 [1] : vector<16x16xf32> to vector<16xf32>
    %101 = vector.shape_cast %100 : vector<16xf32> to vector<16x1xf32>
    %102 = vector.broadcast %101 : vector<16x1xf32> to vector<16x16xf32>
    %103 = arith.subf %99, %102 : vector<16x16xf32>
    %104 = math.exp %103 : vector<16x16xf32>
    %cst_44 = arith.constant dense<0.000000e+00> : vector<16xf32>
    %105 = vector.multi_reduction <add>, %104, %cst_44 [1] : vector<16x16xf32> to vector<16xf32>
    %106 = vector.shape_cast %105 : vector<16xf32> to vector<16x1xf32>
    %107 = arith.truncf %104 : vector<16x16xf32> to vector<16x16xbf16>
    %cst_45 = arith.constant dense<0.000000e+00> : vector<16x32xf32>
    %108 = tpu.matmul %107, %98, %cst_45 {dimension_numbers = #tpu.dot_dimension_numbers<[1], [0], [0], [1], [0, 0, 1, 1], [], []>} : vector<16x16xbf16>, vector<16x32xbf16>, vector<16x32xf32> -> vector<16x32xf32>
    %109 = tpu.reciprocal %106 {approx = true} : vector<16x1xf32> -> vector<16x1xf32>
    %110 = vector.broadcast %109 : vector<16x1xf32> to vector<16x32xf32>
    %111 = arith.mulf %108, %110 : vector<16x32xf32>
    %c0_46 = arith.constant 0 : index
    %c96 = arith.constant 96 : index
    %112 = vector.load %arg13[%c0_46, %c96] : memref<16x128xf32, #tpu.memory_space<vmem>>, vector<16x32xf32>
    tpu.vector_store %arg13[%c0_46, %c96], %111 {strides = array<i32>} : memref<16x128xf32, #tpu.memory_space<vmem>>, vector<16x32xf32>,
    %c0_47 = arith.constant 0 : index
    %c0_48 = arith.constant 0 : index
    %113 = vector.load %arg13[%c0_47, %c0_48] : memref<16x128xf32, #tpu.memory_space<vmem>>, vector<16x128xf32>
    %114 = arith.truncf %113 : vector<16x128xf32> to vector<16x128xbf16>
    %c0_49 = arith.constant 0 : index
    %c0_50 = arith.constant 0 : index
    %115 = vector.load %arg10[%c0_49, %c0_50] : memref<128x128xbf16, #tpu.memory_space<vmem>>, vector<128x128xbf16>
    %cst_51 = arith.constant dense<0.000000e+00> : vector<16x128xf32>
    %116 = tpu.matmul %114, %115, %cst_51 {dimension_numbers = #tpu.dot_dimension_numbers<[1], [0], [0], [1], [0, 0, 1, 1], [], []>} : vector<16x128xbf16>, vector<128x128xbf16>, vector<16x128xf32> -> vector<16x128xf32>
    %c0_52 = arith.constant 0 : index
    %c0_53 = arith.constant 0 : index
    %117 = vector.load %arg11[%c0_52, %c0_53] : memref<1x128xf32, #tpu.memory_space<vmem>>, vector<1x128xf32>
    %118 = vector.broadcast %117 : vector<1x128xf32> to vector<16x128xf32>
    %119 = arith.addf %116, %118 : vector<16x128xf32>
    %120 = arith.addf %119, %1 : vector<16x128xf32>
    %c0_54 = arith.constant 0 : index
    %c0_55 = arith.constant 0 : index
    %c0_56 = arith.constant 0 : index
    %121 = vector.load %arg12[%c0_54, %c0_55, %c0_56] : memref<1x16x128xf32, #tpu.memory_space<vmem>>, vector<1x16x128xf32>
    %122 = vector.shape_cast %121 : vector<1x16x128xf32> to vector<16x128xf32>
    %123 = vector.shape_cast %120 : vector<16x128xf32> to vector<1x16x128xf32>
    tpu.vector_store %arg12[%c0_54, %c0_55, %c0_56], %123 {strides = array<i32>} : memref<1x16x128xf32, #tpu.memory_space<vmem>>, vector<1x16x128xf32>,
    return
  }
  func.func @transform_0(%arg0: i32) -> (i32, i32, i32) {
    %c0_i32 = arith.constant 0 : i32
    %c0_i32_0 = arith.constant 0 : i32
    %c0_i32_1 = arith.constant 0 : i32
    return %arg0, %c0_i32, %c0_i32_0 : i32, i32, i32
  }
  func.func @transform_1(%arg0: i32) -> (i32, i32) {
    %c0_i32 = arith.constant 0 : i32
    %c0_i32_0 = arith.constant 0 : i32
    %c0_i32_1 = arith.constant 0 : i32
    return %c0_i32, %c0_i32_0 : i32, i32
  }
  func.func @transform_2(%arg0: i32) -> (i32, i32) {
    %c0_i32 = arith.constant 0 : i32
    %c0_i32_0 = arith.constant 0 : i32
    %c0_i32_1 = arith.constant 0 : i32
    return %c0_i32, %c0_i32_0 : i32, i32
  }
  func.func @transform_3(%arg0: i32) -> (i32, i32) {
    %c0_i32 = arith.constant 0 : i32
    %c0_i32_0 = arith.constant 0 : i32
    %c0_i32_1 = arith.constant 0 : i32
    return %c0_i32, %c0_i32_0 : i32, i32
  }
  func.func @transform_4(%arg0: i32) -> (i32, i32) {
    %c0_i32 = arith.constant 0 : i32
    %c0_i32_0 = arith.constant 0 : i32
    %c0_i32_1 = arith.constant 0 : i32
    return %c0_i32, %c0_i32_0 : i32, i32
  }
  func.func @transform_5(%arg0: i32) -> (i32, i32) {
    %c0_i32 = arith.constant 0 : i32
    %c0_i32_0 = arith.constant 0 : i32
    %c0_i32_1 = arith.constant 0 : i32
    return %c0_i32, %c0_i32_0 : i32, i32
  }
  func.func @transform_6(%arg0: i32) -> (i32, i32) {
    %c0_i32 = arith.constant 0 : i32
    %c0_i32_0 = arith.constant 0 : i32
    %c0_i32_1 = arith.constant 0 : i32
    return %c0_i32, %c0_i32_0 : i32, i32
  }
  func.func @transform_7(%arg0: i32) -> (i32, i32) {
    %c0_i32 = arith.constant 0 : i32
    %c0_i32_0 = arith.constant 0 : i32
    %c0_i32_1 = arith.constant 0 : i32
    return %c0_i32, %c0_i32_0 : i32, i32
  }
  func.func @transform_8(%arg0: i32) -> (i32, i32) {
    %c0_i32 = arith.constant 0 : i32
    %c0_i32_0 = arith.constant 0 : i32
    %c0_i32_1 = arith.constant 0 : i32
    return %c0_i32, %c0_i32_0 : i32, i32
  }
  func.func @transform_9(%arg0: i32) -> (i32, i32) {
    %c0_i32 = arith.constant 0 : i32
    %c0_i32_0 = arith.constant 0 : i32
    %c0_i32_1 = arith.constant 0 : i32
    return %c0_i32, %c0_i32_0 : i32, i32
  }
  func.func @transform_10(%arg0: i32) -> (i32, i32) {
    %c0_i32 = arith.constant 0 : i32
    %c0_i32_0 = arith.constant 0 : i32
    %c0_i32_1 = arith.constant 0 : i32
    return %c0_i32, %c0_i32_0 : i32, i32
  }
  func.func @transform_11(%arg0: i32) -> (i32, i32, i32) {
    %c0_i32 = arith.constant 0 : i32
    %c0_i32_0 = arith.constant 0 : i32
    %c0_i32_1 = arith.constant 0 : i32
    return %arg0, %c0_i32, %c0_i32_0 : i32, i32, i32
  }
}

module attributes {stable_mosaic.version = 11 : i64} {
  func.func @_attn_block_kernel(%arg0: i32, %arg1: memref<1x16x128xf32, #tpu.memory_space<vmem>>, %arg2: memref<1x24x128xf32, #tpu.memory_space<vmem>>, %arg3: memref<1x128xf32, #tpu.memory_space<vmem>>, %arg4: memref<1x128xf32, #tpu.memory_space<vmem>>, %arg5: memref<128x128xbf16, #tpu.memory_space<vmem>>, %arg6: memref<1x128xf32, #tpu.memory_space<vmem>>, %arg7: memref<128x128xbf16, #tpu.memory_space<vmem>>, %arg8: memref<1x128xf32, #tpu.memory_space<vmem>>, %arg9: memref<128x128xbf16, #tpu.memory_space<vmem>>, %arg10: memref<1x128xf32, #tpu.memory_space<vmem>>, %arg11: memref<128x128xbf16, #tpu.memory_space<vmem>>, %arg12: memref<1x128xf32, #tpu.memory_space<vmem>>, %arg13: memref<1x16x128xf32, #tpu.memory_space<vmem>>, %arg14: memref<16x128xf32, #tpu.memory_space<vmem>>) attributes {dimension_semantics = [#tpu.dimension_semantics<parallel>], iteration_bounds = array<i64: 2>, scalar_prefetch = 0 : i64, scratch_operands = 1 : i64, tpu.core_type = #tpu.core_type<tc>, window_params = [{transform_indices = @transform_0, window_bounds = array<i64: 1, 16, 128>}, {transform_indices = @transform_1, window_bounds = array<i64: 1, 24, 128>}, {pipeline_mode = #tpu.pipeline_mode<synchronous>, transform_indices = @transform_2, window_bounds = array<i64: 1, 128>}, {pipeline_mode = #tpu.pipeline_mode<synchronous>, transform_indices = @transform_3, window_bounds = array<i64: 1, 128>}, {pipeline_mode = #tpu.pipeline_mode<synchronous>, transform_indices = @transform_4, window_bounds = array<i64: 128, 128>}, {pipeline_mode = #tpu.pipeline_mode<synchronous>, transform_indices = @transform_5, window_bounds = array<i64: 1, 128>}, {pipeline_mode = #tpu.pipeline_mode<synchronous>, transform_indices = @transform_6, window_bounds = array<i64: 128, 128>}, {pipeline_mode = #tpu.pipeline_mode<synchronous>, transform_indices = @transform_7, window_bounds = array<i64: 1, 128>}, {pipeline_mode = #tpu.pipeline_mode<synchronous>, transform_indices = @transform_8, window_bounds = array<i64: 128, 128>}, {pipeline_mode = #tpu.pipeline_mode<synchronous>, transform_indices = @transform_9, window_bounds = array<i64: 1, 128>}, {pipeline_mode = #tpu.pipeline_mode<synchronous>, transform_indices = @transform_10, window_bounds = array<i64: 128, 128>}, {pipeline_mode = #tpu.pipeline_mode<synchronous>, transform_indices = @transform_11, window_bounds = array<i64: 1, 128>}, {transform_indices = @transform_12, window_bounds = array<i64: 1, 16, 128>}]} {
    %c0 = arith.constant 0 : index
    %c0_0 = arith.constant 0 : index
    %c0_1 = arith.constant 0 : index
    %0 = vector.load %arg1[%c0, %c0_0, %c0_1] : memref<1x16x128xf32, #tpu.memory_space<vmem>>, vector<1x16x128xf32>
    %1 = vector.shape_cast %0 : vector<1x16x128xf32> to vector<16x128xf32>
    %c0_2 = arith.constant 0 : index
    %c0_3 = arith.constant 0 : index
    %2 = vector.load %arg3[%c0_2, %c0_3] : memref<1x128xf32, #tpu.memory_space<vmem>>, vector<1x128xf32>
    %c0_4 = arith.constant 0 : index
    %c0_5 = arith.constant 0 : index
    %3 = vector.load %arg4[%c0_4, %c0_5] : memref<1x128xf32, #tpu.memory_space<vmem>>, vector<1x128xf32>
    %cst = arith.constant dense<0.000000e+00> : vector<16xf32>
    %4 = vector.multi_reduction <add>, %1, %cst [1] : vector<16x128xf32> to vector<16xf32>
    %5 = vector.shape_cast %4 : vector<16xf32> to vector<16x1xf32>
    %cst_6 = arith.constant 1.280000e+02 : f32
    %6 = vector.broadcast %cst_6 : f32 to vector<16x1xf32>
    %7 = arith.divf %5, %6 : vector<16x1xf32>
    %8 = vector.broadcast %7 : vector<16x1xf32> to vector<16x128xf32>
    %9 = arith.subf %1, %8 : vector<16x128xf32>
    %10 = arith.mulf %9, %9 : vector<16x128xf32>
    %cst_7 = arith.constant dense<0.000000e+00> : vector<16xf32>
    %11 = vector.multi_reduction <add>, %10, %cst_7 [1] : vector<16x128xf32> to vector<16xf32>
    %12 = vector.shape_cast %11 : vector<16xf32> to vector<16x1xf32>
    %cst_8 = arith.constant 1.280000e+02 : f32
    %13 = vector.broadcast %cst_8 : f32 to vector<16x1xf32>
    %14 = arith.divf %12, %13 : vector<16x1xf32>
    %cst_9 = arith.constant 9.99999974E-6 : f32
    %15 = vector.broadcast %cst_9 : f32 to vector<16x1xf32>
    %16 = arith.addf %14, %15 : vector<16x1xf32>
    %17 = math.rsqrt %16 : vector<16x1xf32>
    %18 = vector.broadcast %17 : vector<16x1xf32> to vector<16x128xf32>
    %19 = arith.mulf %9, %18 : vector<16x128xf32>
    %20 = vector.broadcast %2 : vector<1x128xf32> to vector<16x128xf32>
    %21 = arith.mulf %19, %20 : vector<16x128xf32>
    %22 = vector.broadcast %3 : vector<1x128xf32> to vector<16x128xf32>
    %23 = arith.addf %21, %22 : vector<16x128xf32>
    %24 = arith.truncf %23 : vector<16x128xf32> to vector<16x128xbf16>
    %c0_10 = arith.constant 0 : index
    %c0_11 = arith.constant 0 : index
    %c0_12 = arith.constant 0 : index
    %25 = vector.load %arg2[%c0_10, %c0_11, %c0_12] : memref<1x24x128xf32, #tpu.memory_space<vmem>>, vector<1x24x128xf32>
    %26 = vector.shape_cast %25 : vector<1x24x128xf32> to vector<24x128xf32>
    %27 = arith.truncf %26 : vector<24x128xf32> to vector<24x128xbf16>
    %c0_13 = arith.constant 0 : index
    %c0_14 = arith.constant 0 : index
    %28 = vector.load %arg5[%c0_13, %c0_14] : memref<128x128xbf16, #tpu.memory_space<vmem>>, vector<128x128xbf16>
    %cst_15 = arith.constant dense<0.000000e+00> : vector<16x128xf32>
    %29 = tpu.matmul %24, %28, %cst_15 {dimension_numbers = #tpu.dot_dimension_numbers<[1], [0], [0], [1], [0, 0, 1, 1], [], []>} : vector<16x128xbf16>, vector<128x128xbf16>, vector<16x128xf32> -> vector<16x128xf32>
    %c0_16 = arith.constant 0 : index
    %c0_17 = arith.constant 0 : index
    %30 = vector.load %arg6[%c0_16, %c0_17] : memref<1x128xf32, #tpu.memory_space<vmem>>, vector<1x128xf32>
    %31 = vector.broadcast %30 : vector<1x128xf32> to vector<16x128xf32>
    %32 = arith.addf %29, %31 : vector<16x128xf32>
    %cst_18 = arith.constant 0.176776692 : f32
    %33 = vector.broadcast %cst_18 : f32 to vector<16x128xf32>
    %34 = arith.mulf %32, %33 : vector<16x128xf32>
    %c0_19 = arith.constant 0 : index
    %c0_20 = arith.constant 0 : index
    %35 = vector.load %arg7[%c0_19, %c0_20] : memref<128x128xbf16, #tpu.memory_space<vmem>>, vector<128x128xbf16>
    %cst_21 = arith.constant dense<0.000000e+00> : vector<24x128xf32>
    %36 = tpu.matmul %27, %35, %cst_21 {dimension_numbers = #tpu.dot_dimension_numbers<[1], [0], [0], [1], [0, 0, 1, 1], [], []>} : vector<24x128xbf16>, vector<128x128xbf16>, vector<24x128xf32> -> vector<24x128xf32>
    %c0_22 = arith.constant 0 : index
    %c0_23 = arith.constant 0 : index
    %37 = vector.load %arg8[%c0_22, %c0_23] : memref<1x128xf32, #tpu.memory_space<vmem>>, vector<1x128xf32>
    %38 = vector.broadcast %37 : vector<1x128xf32> to vector<24x128xf32>
    %39 = arith.addf %36, %38 : vector<24x128xf32>
    %c0_24 = arith.constant 0 : index
    %c0_25 = arith.constant 0 : index
    %40 = vector.load %arg9[%c0_24, %c0_25] : memref<128x128xbf16, #tpu.memory_space<vmem>>, vector<128x128xbf16>
    %cst_26 = arith.constant dense<0.000000e+00> : vector<24x128xf32>
    %41 = tpu.matmul %27, %40, %cst_26 {dimension_numbers = #tpu.dot_dimension_numbers<[1], [0], [0], [1], [0, 0, 1, 1], [], []>} : vector<24x128xbf16>, vector<128x128xbf16>, vector<24x128xf32> -> vector<24x128xf32>
    %c0_27 = arith.constant 0 : index
    %c0_28 = arith.constant 0 : index
    %42 = vector.load %arg10[%c0_27, %c0_28] : memref<1x128xf32, #tpu.memory_space<vmem>>, vector<1x128xf32>
    %43 = vector.broadcast %42 : vector<1x128xf32> to vector<24x128xf32>
    %44 = arith.addf %41, %43 : vector<24x128xf32>
    %45 = arith.truncf %34 : vector<16x128xf32> to vector<16x128xbf16>
    %46 = arith.truncf %39 : vector<24x128xf32> to vector<24x128xbf16>
    %47 = arith.truncf %44 : vector<24x128xf32> to vector<24x128xbf16>
    %48 = vector.extract_strided_slice %45 {offsets = [0, 0], sizes = [16, 32], strides = [1, 1]} : vector<16x128xbf16> to vector<16x32xbf16>
    %49 = vector.extract_strided_slice %46 {offsets = [0, 0], sizes = [24, 32], strides = [1, 1]} : vector<24x128xbf16> to vector<24x32xbf16>
    %50 = vector.extract_strided_slice %47 {offsets = [0, 0], sizes = [24, 32], strides = [1, 1]} : vector<24x128xbf16> to vector<24x32xbf16>
    %cst_29 = arith.constant dense<0.000000e+00> : vector<16x24xf32>
    %51 = tpu.matmul %48, %49, %cst_29 {dimension_numbers = #tpu.dot_dimension_numbers<[1], [1], [0], [0], [0, 0, 1, 0], [], []>} : vector<16x32xbf16>, vector<24x32xbf16>, vector<16x24xf32> -> vector<16x24xf32>
    %cst_30 = arith.constant dense<0xFF800000> : vector<16xf32>
    %52 = vector.multi_reduction <maximumf>, %51, %cst_30 [1] : vector<16x24xf32> to vector<16xf32>
    %53 = vector.shape_cast %52 : vector<16xf32> to vector<16x1xf32>
    %54 = vector.broadcast %53 : vector<16x1xf32> to vector<16x24xf32>
    %55 = arith.subf %51, %54 : vector<16x24xf32>
    %56 = math.exp %55 : vector<16x24xf32>
    %cst_31 = arith.constant dense<0.000000e+00> : vector<16xf32>
    %57 = vector.multi_reduction <add>, %56, %cst_31 [1] : vector<16x24xf32> to vector<16xf32>
    %58 = vector.shape_cast %57 : vector<16xf32> to vector<16x1xf32>
    %59 = arith.truncf %56 : vector<16x24xf32> to vector<16x24xbf16>
    %cst_32 = arith.constant dense<0.000000e+00> : vector<16x32xf32>
    %60 = tpu.matmul %59, %50, %cst_32 {dimension_numbers = #tpu.dot_dimension_numbers<[1], [0], [0], [1], [0, 0, 1, 1], [], []>} : vector<16x24xbf16>, vector<24x32xbf16>, vector<16x32xf32> -> vector<16x32xf32>
    %61 = tpu.reciprocal %58 {approx = true} : vector<16x1xf32> -> vector<16x1xf32>
    %62 = vector.broadcast %61 : vector<16x1xf32> to vector<16x32xf32>
    %63 = arith.mulf %60, %62 : vector<16x32xf32>
    %c0_33 = arith.constant 0 : index
    %c0_34 = arith.constant 0 : index
    %64 = vector.load %arg14[%c0_33, %c0_34] : memref<16x128xf32, #tpu.memory_space<vmem>>, vector<16x32xf32>
    tpu.vector_store %arg14[%c0_33, %c0_34], %63 {strides = array<i32>} : memref<16x128xf32, #tpu.memory_space<vmem>>, vector<16x32xf32>,
    %65 = vector.extract_strided_slice %45 {offsets = [0, 32], sizes = [16, 32], strides = [1, 1]} : vector<16x128xbf16> to vector<16x32xbf16>
    %66 = vector.extract_strided_slice %46 {offsets = [0, 32], sizes = [24, 32], strides = [1, 1]} : vector<24x128xbf16> to vector<24x32xbf16>
    %67 = vector.extract_strided_slice %47 {offsets = [0, 32], sizes = [24, 32], strides = [1, 1]} : vector<24x128xbf16> to vector<24x32xbf16>
    %cst_35 = arith.constant dense<0.000000e+00> : vector<16x24xf32>
    %68 = tpu.matmul %65, %66, %cst_35 {dimension_numbers = #tpu.dot_dimension_numbers<[1], [1], [0], [0], [0, 0, 1, 0], [], []>} : vector<16x32xbf16>, vector<24x32xbf16>, vector<16x24xf32> -> vector<16x24xf32>
    %cst_36 = arith.constant dense<0xFF800000> : vector<16xf32>
    %69 = vector.multi_reduction <maximumf>, %68, %cst_36 [1] : vector<16x24xf32> to vector<16xf32>
    %70 = vector.shape_cast %69 : vector<16xf32> to vector<16x1xf32>
    %71 = vector.broadcast %70 : vector<16x1xf32> to vector<16x24xf32>
    %72 = arith.subf %68, %71 : vector<16x24xf32>
    %73 = math.exp %72 : vector<16x24xf32>
    %cst_37 = arith.constant dense<0.000000e+00> : vector<16xf32>
    %74 = vector.multi_reduction <add>, %73, %cst_37 [1] : vector<16x24xf32> to vector<16xf32>
    %75 = vector.shape_cast %74 : vector<16xf32> to vector<16x1xf32>
    %76 = arith.truncf %73 : vector<16x24xf32> to vector<16x24xbf16>
    %cst_38 = arith.constant dense<0.000000e+00> : vector<16x32xf32>
    %77 = tpu.matmul %76, %67, %cst_38 {dimension_numbers = #tpu.dot_dimension_numbers<[1], [0], [0], [1], [0, 0, 1, 1], [], []>} : vector<16x24xbf16>, vector<24x32xbf16>, vector<16x32xf32> -> vector<16x32xf32>
    %78 = tpu.reciprocal %75 {approx = true} : vector<16x1xf32> -> vector<16x1xf32>
    %79 = vector.broadcast %78 : vector<16x1xf32> to vector<16x32xf32>
    %80 = arith.mulf %77, %79 : vector<16x32xf32>
    %c0_39 = arith.constant 0 : index
    %c32 = arith.constant 32 : index
    %81 = vector.load %arg14[%c0_39, %c32] : memref<16x128xf32, #tpu.memory_space<vmem>>, vector<16x32xf32>
    tpu.vector_store %arg14[%c0_39, %c32], %80 {strides = array<i32>} : memref<16x128xf32, #tpu.memory_space<vmem>>, vector<16x32xf32>,
    %82 = vector.extract_strided_slice %45 {offsets = [0, 64], sizes = [16, 32], strides = [1, 1]} : vector<16x128xbf16> to vector<16x32xbf16>
    %83 = vector.extract_strided_slice %46 {offsets = [0, 64], sizes = [24, 32], strides = [1, 1]} : vector<24x128xbf16> to vector<24x32xbf16>
    %84 = vector.extract_strided_slice %47 {offsets = [0, 64], sizes = [24, 32], strides = [1, 1]} : vector<24x128xbf16> to vector<24x32xbf16>
    %cst_40 = arith.constant dense<0.000000e+00> : vector<16x24xf32>
    %85 = tpu.matmul %82, %83, %cst_40 {dimension_numbers = #tpu.dot_dimension_numbers<[1], [1], [0], [0], [0, 0, 1, 0], [], []>} : vector<16x32xbf16>, vector<24x32xbf16>, vector<16x24xf32> -> vector<16x24xf32>
    %cst_41 = arith.constant dense<0xFF800000> : vector<16xf32>
    %86 = vector.multi_reduction <maximumf>, %85, %cst_41 [1] : vector<16x24xf32> to vector<16xf32>
    %87 = vector.shape_cast %86 : vector<16xf32> to vector<16x1xf32>
    %88 = vector.broadcast %87 : vector<16x1xf32> to vector<16x24xf32>
    %89 = arith.subf %85, %88 : vector<16x24xf32>
    %90 = math.exp %89 : vector<16x24xf32>
    %cst_42 = arith.constant dense<0.000000e+00> : vector<16xf32>
    %91 = vector.multi_reduction <add>, %90, %cst_42 [1] : vector<16x24xf32> to vector<16xf32>
    %92 = vector.shape_cast %91 : vector<16xf32> to vector<16x1xf32>
    %93 = arith.truncf %90 : vector<16x24xf32> to vector<16x24xbf16>
    %cst_43 = arith.constant dense<0.000000e+00> : vector<16x32xf32>
    %94 = tpu.matmul %93, %84, %cst_43 {dimension_numbers = #tpu.dot_dimension_numbers<[1], [0], [0], [1], [0, 0, 1, 1], [], []>} : vector<16x24xbf16>, vector<24x32xbf16>, vector<16x32xf32> -> vector<16x32xf32>
    %95 = tpu.reciprocal %92 {approx = true} : vector<16x1xf32> -> vector<16x1xf32>
    %96 = vector.broadcast %95 : vector<16x1xf32> to vector<16x32xf32>
    %97 = arith.mulf %94, %96 : vector<16x32xf32>
    %c0_44 = arith.constant 0 : index
    %c64 = arith.constant 64 : index
    %98 = vector.load %arg14[%c0_44, %c64] : memref<16x128xf32, #tpu.memory_space<vmem>>, vector<16x32xf32>
    tpu.vector_store %arg14[%c0_44, %c64], %97 {strides = array<i32>} : memref<16x128xf32, #tpu.memory_space<vmem>>, vector<16x32xf32>,
    %99 = vector.extract_strided_slice %45 {offsets = [0, 96], sizes = [16, 32], strides = [1, 1]} : vector<16x128xbf16> to vector<16x32xbf16>
    %100 = vector.extract_strided_slice %46 {offsets = [0, 96], sizes = [24, 32], strides = [1, 1]} : vector<24x128xbf16> to vector<24x32xbf16>
    %101 = vector.extract_strided_slice %47 {offsets = [0, 96], sizes = [24, 32], strides = [1, 1]} : vector<24x128xbf16> to vector<24x32xbf16>
    %cst_45 = arith.constant dense<0.000000e+00> : vector<16x24xf32>
    %102 = tpu.matmul %99, %100, %cst_45 {dimension_numbers = #tpu.dot_dimension_numbers<[1], [1], [0], [0], [0, 0, 1, 0], [], []>} : vector<16x32xbf16>, vector<24x32xbf16>, vector<16x24xf32> -> vector<16x24xf32>
    %cst_46 = arith.constant dense<0xFF800000> : vector<16xf32>
    %103 = vector.multi_reduction <maximumf>, %102, %cst_46 [1] : vector<16x24xf32> to vector<16xf32>
    %104 = vector.shape_cast %103 : vector<16xf32> to vector<16x1xf32>
    %105 = vector.broadcast %104 : vector<16x1xf32> to vector<16x24xf32>
    %106 = arith.subf %102, %105 : vector<16x24xf32>
    %107 = math.exp %106 : vector<16x24xf32>
    %cst_47 = arith.constant dense<0.000000e+00> : vector<16xf32>
    %108 = vector.multi_reduction <add>, %107, %cst_47 [1] : vector<16x24xf32> to vector<16xf32>
    %109 = vector.shape_cast %108 : vector<16xf32> to vector<16x1xf32>
    %110 = arith.truncf %107 : vector<16x24xf32> to vector<16x24xbf16>
    %cst_48 = arith.constant dense<0.000000e+00> : vector<16x32xf32>
    %111 = tpu.matmul %110, %101, %cst_48 {dimension_numbers = #tpu.dot_dimension_numbers<[1], [0], [0], [1], [0, 0, 1, 1], [], []>} : vector<16x24xbf16>, vector<24x32xbf16>, vector<16x32xf32> -> vector<16x32xf32>
    %112 = tpu.reciprocal %109 {approx = true} : vector<16x1xf32> -> vector<16x1xf32>
    %113 = vector.broadcast %112 : vector<16x1xf32> to vector<16x32xf32>
    %114 = arith.mulf %111, %113 : vector<16x32xf32>
    %c0_49 = arith.constant 0 : index
    %c96 = arith.constant 96 : index
    %115 = vector.load %arg14[%c0_49, %c96] : memref<16x128xf32, #tpu.memory_space<vmem>>, vector<16x32xf32>
    tpu.vector_store %arg14[%c0_49, %c96], %114 {strides = array<i32>} : memref<16x128xf32, #tpu.memory_space<vmem>>, vector<16x32xf32>,
    %c0_50 = arith.constant 0 : index
    %c0_51 = arith.constant 0 : index
    %116 = vector.load %arg14[%c0_50, %c0_51] : memref<16x128xf32, #tpu.memory_space<vmem>>, vector<16x128xf32>
    %117 = arith.truncf %116 : vector<16x128xf32> to vector<16x128xbf16>
    %c0_52 = arith.constant 0 : index
    %c0_53 = arith.constant 0 : index
    %118 = vector.load %arg11[%c0_52, %c0_53] : memref<128x128xbf16, #tpu.memory_space<vmem>>, vector<128x128xbf16>
    %cst_54 = arith.constant dense<0.000000e+00> : vector<16x128xf32>
    %119 = tpu.matmul %117, %118, %cst_54 {dimension_numbers = #tpu.dot_dimension_numbers<[1], [0], [0], [1], [0, 0, 1, 1], [], []>} : vector<16x128xbf16>, vector<128x128xbf16>, vector<16x128xf32> -> vector<16x128xf32>
    %c0_55 = arith.constant 0 : index
    %c0_56 = arith.constant 0 : index
    %120 = vector.load %arg12[%c0_55, %c0_56] : memref<1x128xf32, #tpu.memory_space<vmem>>, vector<1x128xf32>
    %121 = vector.broadcast %120 : vector<1x128xf32> to vector<16x128xf32>
    %122 = arith.addf %119, %121 : vector<16x128xf32>
    %123 = arith.addf %122, %1 : vector<16x128xf32>
    %c0_57 = arith.constant 0 : index
    %c0_58 = arith.constant 0 : index
    %c0_59 = arith.constant 0 : index
    %124 = vector.load %arg13[%c0_57, %c0_58, %c0_59] : memref<1x16x128xf32, #tpu.memory_space<vmem>>, vector<1x16x128xf32>
    %125 = vector.shape_cast %124 : vector<1x16x128xf32> to vector<16x128xf32>
    %126 = vector.shape_cast %123 : vector<16x128xf32> to vector<1x16x128xf32>
    tpu.vector_store %arg13[%c0_57, %c0_58, %c0_59], %126 {strides = array<i32>} : memref<1x16x128xf32, #tpu.memory_space<vmem>>, vector<1x16x128xf32>,
    return
  }
  func.func @transform_0(%arg0: i32) -> (i32, i32, i32) {
    %c0_i32 = arith.constant 0 : i32
    %c0_i32_0 = arith.constant 0 : i32
    %c0_i32_1 = arith.constant 0 : i32
    return %arg0, %c0_i32, %c0_i32_0 : i32, i32, i32
  }
  func.func @transform_1(%arg0: i32) -> (i32, i32, i32) {
    %c0_i32 = arith.constant 0 : i32
    %c0_i32_0 = arith.constant 0 : i32
    %c0_i32_1 = arith.constant 0 : i32
    return %arg0, %c0_i32, %c0_i32_0 : i32, i32, i32
  }
  func.func @transform_2(%arg0: i32) -> (i32, i32) {
    %c0_i32 = arith.constant 0 : i32
    %c0_i32_0 = arith.constant 0 : i32
    %c0_i32_1 = arith.constant 0 : i32
    return %c0_i32, %c0_i32_0 : i32, i32
  }
  func.func @transform_3(%arg0: i32) -> (i32, i32) {
    %c0_i32 = arith.constant 0 : i32
    %c0_i32_0 = arith.constant 0 : i32
    %c0_i32_1 = arith.constant 0 : i32
    return %c0_i32, %c0_i32_0 : i32, i32
  }
  func.func @transform_4(%arg0: i32) -> (i32, i32) {
    %c0_i32 = arith.constant 0 : i32
    %c0_i32_0 = arith.constant 0 : i32
    %c0_i32_1 = arith.constant 0 : i32
    return %c0_i32, %c0_i32_0 : i32, i32
  }
  func.func @transform_5(%arg0: i32) -> (i32, i32) {
    %c0_i32 = arith.constant 0 : i32
    %c0_i32_0 = arith.constant 0 : i32
    %c0_i32_1 = arith.constant 0 : i32
    return %c0_i32, %c0_i32_0 : i32, i32
  }
  func.func @transform_6(%arg0: i32) -> (i32, i32) {
    %c0_i32 = arith.constant 0 : i32
    %c0_i32_0 = arith.constant 0 : i32
    %c0_i32_1 = arith.constant 0 : i32
    return %c0_i32, %c0_i32_0 : i32, i32
  }
  func.func @transform_7(%arg0: i32) -> (i32, i32) {
    %c0_i32 = arith.constant 0 : i32
    %c0_i32_0 = arith.constant 0 : i32
    %c0_i32_1 = arith.constant 0 : i32
    return %c0_i32, %c0_i32_0 : i32, i32
  }
  func.func @transform_8(%arg0: i32) -> (i32, i32) {
    %c0_i32 = arith.constant 0 : i32
    %c0_i32_0 = arith.constant 0 : i32
    %c0_i32_1 = arith.constant 0 : i32
    return %c0_i32, %c0_i32_0 : i32, i32
  }
  func.func @transform_9(%arg0: i32) -> (i32, i32) {
    %c0_i32 = arith.constant 0 : i32
    %c0_i32_0 = arith.constant 0 : i32
    %c0_i32_1 = arith.constant 0 : i32
    return %c0_i32, %c0_i32_0 : i32, i32
  }
  func.func @transform_10(%arg0: i32) -> (i32, i32) {
    %c0_i32 = arith.constant 0 : i32
    %c0_i32_0 = arith.constant 0 : i32
    %c0_i32_1 = arith.constant 0 : i32
    return %c0_i32, %c0_i32_0 : i32, i32
  }
  func.func @transform_11(%arg0: i32) -> (i32, i32) {
    %c0_i32 = arith.constant 0 : i32
    %c0_i32_0 = arith.constant 0 : i32
    %c0_i32_1 = arith.constant 0 : i32
    return %c0_i32, %c0_i32_0 : i32, i32
  }
  func.func @transform_12(%arg0: i32) -> (i32, i32, i32) {
    %c0_i32 = arith.constant 0 : i32
    %c0_i32_0 = arith.constant 0 : i32
    %c0_i32_1 = arith.constant 0 : i32
    return %arg0, %c0_i32, %c0_i32_0 : i32, i32, i32
  }
}

module attributes {stable_mosaic.version = 11 : i64} {
  func.func @_conv_ffn_kernel(%arg0: i32, %arg1: memref<1x16x128xf32, #tpu.memory_space<vmem>>, %arg2: memref<1x128xf32, #tpu.memory_space<vmem>>, %arg3: memref<1x128xf32, #tpu.memory_space<vmem>>, %arg4: memref<5x128x256xbf16, #tpu.memory_space<vmem>>, %arg5: memref<1x256xf32, #tpu.memory_space<vmem>>, %arg6: memref<256x128xbf16, #tpu.memory_space<vmem>>, %arg7: memref<1x128xf32, #tpu.memory_space<vmem>>, %arg8: memref<1x16x128xf32, #tpu.memory_space<vmem>>) attributes {dimension_semantics = [#tpu.dimension_semantics<parallel>], iteration_bounds = array<i64: 2>, scalar_prefetch = 0 : i64, scratch_operands = 0 : i64, tpu.core_type = #tpu.core_type<tc>, window_params = [{transform_indices = @transform_0, window_bounds = array<i64: 1, 16, 128>}, {pipeline_mode = #tpu.pipeline_mode<synchronous>, transform_indices = @transform_1, window_bounds = array<i64: 1, 128>}, {pipeline_mode = #tpu.pipeline_mode<synchronous>, transform_indices = @transform_2, window_bounds = array<i64: 1, 128>}, {pipeline_mode = #tpu.pipeline_mode<synchronous>, transform_indices = @transform_3, window_bounds = array<i64: 5, 128, 256>}, {pipeline_mode = #tpu.pipeline_mode<synchronous>, transform_indices = @transform_4, window_bounds = array<i64: 1, 256>}, {pipeline_mode = #tpu.pipeline_mode<synchronous>, transform_indices = @transform_5, window_bounds = array<i64: 256, 128>}, {pipeline_mode = #tpu.pipeline_mode<synchronous>, transform_indices = @transform_6, window_bounds = array<i64: 1, 128>}, {transform_indices = @transform_7, window_bounds = array<i64: 1, 16, 128>}]} {
    %c0 = arith.constant 0 : index
    %c0_0 = arith.constant 0 : index
    %c0_1 = arith.constant 0 : index
    %0 = vector.load %arg1[%c0, %c0_0, %c0_1] : memref<1x16x128xf32, #tpu.memory_space<vmem>>, vector<1x16x128xf32>
    %1 = vector.shape_cast %0 : vector<1x16x128xf32> to vector<16x128xf32>
    %c0_2 = arith.constant 0 : index
    %c0_3 = arith.constant 0 : index
    %2 = vector.load %arg2[%c0_2, %c0_3] : memref<1x128xf32, #tpu.memory_space<vmem>>, vector<1x128xf32>
    %c0_4 = arith.constant 0 : index
    %c0_5 = arith.constant 0 : index
    %3 = vector.load %arg3[%c0_4, %c0_5] : memref<1x128xf32, #tpu.memory_space<vmem>>, vector<1x128xf32>
    %cst = arith.constant dense<0.000000e+00> : vector<16xf32>
    %4 = vector.multi_reduction <add>, %1, %cst [1] : vector<16x128xf32> to vector<16xf32>
    %5 = vector.shape_cast %4 : vector<16xf32> to vector<16x1xf32>
    %cst_6 = arith.constant 1.280000e+02 : f32
    %6 = vector.broadcast %cst_6 : f32 to vector<16x1xf32>
    %7 = arith.divf %5, %6 : vector<16x1xf32>
    %8 = vector.broadcast %7 : vector<16x1xf32> to vector<16x128xf32>
    %9 = arith.subf %1, %8 : vector<16x128xf32>
    %10 = arith.mulf %9, %9 : vector<16x128xf32>
    %cst_7 = arith.constant dense<0.000000e+00> : vector<16xf32>
    %11 = vector.multi_reduction <add>, %10, %cst_7 [1] : vector<16x128xf32> to vector<16xf32>
    %12 = vector.shape_cast %11 : vector<16xf32> to vector<16x1xf32>
    %cst_8 = arith.constant 1.280000e+02 : f32
    %13 = vector.broadcast %cst_8 : f32 to vector<16x1xf32>
    %14 = arith.divf %12, %13 : vector<16x1xf32>
    %cst_9 = arith.constant 9.99999974E-6 : f32
    %15 = vector.broadcast %cst_9 : f32 to vector<16x1xf32>
    %16 = arith.addf %14, %15 : vector<16x1xf32>
    %17 = math.rsqrt %16 : vector<16x1xf32>
    %18 = vector.broadcast %17 : vector<16x1xf32> to vector<16x128xf32>
    %19 = arith.mulf %9, %18 : vector<16x128xf32>
    %20 = vector.broadcast %2 : vector<1x128xf32> to vector<16x128xf32>
    %21 = arith.mulf %19, %20 : vector<16x128xf32>
    %22 = vector.broadcast %3 : vector<1x128xf32> to vector<16x128xf32>
    %23 = arith.addf %21, %22 : vector<16x128xf32>
    %cst_10 = arith.constant 0.000000e+00 : f32
    %24 = vector.broadcast %cst_10 : f32 to vector<16x256xf32>
    %cst_11 = arith.constant 0.000000e+00 : f32
    %25 = vector.broadcast %cst_11 : f32 to vector<2x128xf32>
    %26 = vector.extract_strided_slice %23 {offsets = [0, 0], sizes = [14, 128], strides = [1, 1]} : vector<16x128xf32> to vector<14x128xf32>
    %27 = tpu.concatenate %25, %26 in 0 : vector<2x128xf32>, vector<14x128xf32> -> vector<16x128xf32>
    %28 = arith.truncf %27 : vector<16x128xf32> to vector<16x128xbf16>
    %c0_12 = arith.constant 0 : index
    %c0_13 = arith.constant 0 : index
    %c0_14 = arith.constant 0 : index
    %29 = vector.load %arg4[%c0_12, %c0_13, %c0_14] : memref<5x128x256xbf16, #tpu.memory_space<vmem>>, vector<1x128x256xbf16>
    %30 = vector.shape_cast %29 : vector<1x128x256xbf16> to vector<128x256xbf16>
    %cst_15 = arith.constant dense<0.000000e+00> : vector<16x256xf32>
    %31 = tpu.matmul %28, %30, %cst_15 {dimension_numbers = #tpu.dot_dimension_numbers<[1], [0], [0], [1], [0, 0, 1, 1], [], []>} : vector<16x128xbf16>, vector<128x256xbf16>, vector<16x256xf32> -> vector<16x256xf32>
    %32 = arith.addf %24, %31 : vector<16x256xf32>
    %cst_16 = arith.constant 0.000000e+00 : f32
    %33 = vector.broadcast %cst_16 : f32 to vector<1x128xf32>
    %34 = vector.extract_strided_slice %23 {offsets = [0, 0], sizes = [15, 128], strides = [1, 1]} : vector<16x128xf32> to vector<15x128xf32>
    %35 = tpu.concatenate %33, %34 in 0 : vector<1x128xf32>, vector<15x128xf32> -> vector<16x128xf32>
    %36 = arith.truncf %35 : vector<16x128xf32> to vector<16x128xbf16>
    %c1 = arith.constant 1 : index
    %c0_17 = arith.constant 0 : index
    %c0_18 = arith.constant 0 : index
    %37 = vector.load %arg4[%c1, %c0_17, %c0_18] : memref<5x128x256xbf16, #tpu.memory_space<vmem>>, vector<1x128x256xbf16>
    %38 = vector.shape_cast %37 : vector<1x128x256xbf16> to vector<128x256xbf16>
    %cst_19 = arith.constant dense<0.000000e+00> : vector<16x256xf32>
    %39 = tpu.matmul %36, %38, %cst_19 {dimension_numbers = #tpu.dot_dimension_numbers<[1], [0], [0], [1], [0, 0, 1, 1], [], []>} : vector<16x128xbf16>, vector<128x256xbf16>, vector<16x256xf32> -> vector<16x256xf32>
    %40 = arith.addf %32, %39 : vector<16x256xf32>
    %41 = arith.truncf %23 : vector<16x128xf32> to vector<16x128xbf16>
    %c2 = arith.constant 2 : index
    %c0_20 = arith.constant 0 : index
    %c0_21 = arith.constant 0 : index
    %42 = vector.load %arg4[%c2, %c0_20, %c0_21] : memref<5x128x256xbf16, #tpu.memory_space<vmem>>, vector<1x128x256xbf16>
    %43 = vector.shape_cast %42 : vector<1x128x256xbf16> to vector<128x256xbf16>
    %cst_22 = arith.constant dense<0.000000e+00> : vector<16x256xf32>
    %44 = tpu.matmul %41, %43, %cst_22 {dimension_numbers = #tpu.dot_dimension_numbers<[1], [0], [0], [1], [0, 0, 1, 1], [], []>} : vector<16x128xbf16>, vector<128x256xbf16>, vector<16x256xf32> -> vector<16x256xf32>
    %45 = arith.addf %40, %44 : vector<16x256xf32>
    %46 = vector.extract_strided_slice %23 {offsets = [1, 0], sizes = [15, 128], strides = [1, 1]} : vector<16x128xf32> to vector<15x128xf32>
    %cst_23 = arith.constant 0.000000e+00 : f32
    %47 = vector.broadcast %cst_23 : f32 to vector<1x128xf32>
    %48 = tpu.concatenate %46, %47 in 0 : vector<15x128xf32>, vector<1x128xf32> -> vector<16x128xf32>
    %49 = arith.truncf %48 : vector<16x128xf32> to vector<16x128xbf16>
    %c3 = arith.constant 3 : index
    %c0_24 = arith.constant 0 : index
    %c0_25 = arith.constant 0 : index
    %50 = vector.load %arg4[%c3, %c0_24, %c0_25] : memref<5x128x256xbf16, #tpu.memory_space<vmem>>, vector<1x128x256xbf16>
    %51 = vector.shape_cast %50 : vector<1x128x256xbf16> to vector<128x256xbf16>
    %cst_26 = arith.constant dense<0.000000e+00> : vector<16x256xf32>
    %52 = tpu.matmul %49, %51, %cst_26 {dimension_numbers = #tpu.dot_dimension_numbers<[1], [0], [0], [1], [0, 0, 1, 1], [], []>} : vector<16x128xbf16>, vector<128x256xbf16>, vector<16x256xf32> -> vector<16x256xf32>
    %53 = arith.addf %45, %52 : vector<16x256xf32>
    %54 = vector.extract_strided_slice %23 {offsets = [2, 0], sizes = [14, 128], strides = [1, 1]} : vector<16x128xf32> to vector<14x128xf32>
    %cst_27 = arith.constant 0.000000e+00 : f32
    %55 = vector.broadcast %cst_27 : f32 to vector<2x128xf32>
    %56 = tpu.concatenate %54, %55 in 0 : vector<14x128xf32>, vector<2x128xf32> -> vector<16x128xf32>
    %57 = arith.truncf %56 : vector<16x128xf32> to vector<16x128xbf16>
    %c4 = arith.constant 4 : index
    %c0_28 = arith.constant 0 : index
    %c0_29 = arith.constant 0 : index
    %58 = vector.load %arg4[%c4, %c0_28, %c0_29] : memref<5x128x256xbf16, #tpu.memory_space<vmem>>, vector<1x128x256xbf16>
    %59 = vector.shape_cast %58 : vector<1x128x256xbf16> to vector<128x256xbf16>
    %cst_30 = arith.constant dense<0.000000e+00> : vector<16x256xf32>
    %60 = tpu.matmul %57, %59, %cst_30 {dimension_numbers = #tpu.dot_dimension_numbers<[1], [0], [0], [1], [0, 0, 1, 1], [], []>} : vector<16x128xbf16>, vector<128x256xbf16>, vector<16x256xf32> -> vector<16x256xf32>
    %61 = arith.addf %53, %60 : vector<16x256xf32>
    %c0_31 = arith.constant 0 : index
    %c0_32 = arith.constant 0 : index
    %62 = vector.load %arg5[%c0_31, %c0_32] : memref<1x256xf32, #tpu.memory_space<vmem>>, vector<1x256xf32>
    %63 = vector.broadcast %62 : vector<1x256xf32> to vector<16x256xf32>
    %64 = arith.addf %61, %63 : vector<16x256xf32>
    %cst_33 = arith.constant 0.000000e+00 : f32
    %65 = vector.broadcast %cst_33 : f32 to vector<16x256xf32>
    %66 = arith.maximumf %64, %65 : vector<16x256xf32>
    %67 = arith.truncf %66 : vector<16x256xf32> to vector<16x256xbf16>
    %c0_34 = arith.constant 0 : index
    %c0_35 = arith.constant 0 : index
    %68 = vector.load %arg6[%c0_34, %c0_35] : memref<256x128xbf16, #tpu.memory_space<vmem>>, vector<256x128xbf16>
    %cst_36 = arith.constant dense<0.000000e+00> : vector<16x128xf32>
    %69 = tpu.matmul %67, %68, %cst_36 {dimension_numbers = #tpu.dot_dimension_numbers<[1], [0], [0], [1], [0, 0, 1, 1], [], []>} : vector<16x256xbf16>, vector<256x128xbf16>, vector<16x128xf32> -> vector<16x128xf32>
    %c0_37 = arith.constant 0 : index
    %c0_38 = arith.constant 0 : index
    %70 = vector.load %arg7[%c0_37, %c0_38] : memref<1x128xf32, #tpu.memory_space<vmem>>, vector<1x128xf32>
    %71 = vector.broadcast %70 : vector<1x128xf32> to vector<16x128xf32>
    %72 = arith.addf %69, %71 : vector<16x128xf32>
    %73 = arith.addf %72, %1 : vector<16x128xf32>
    %c0_39 = arith.constant 0 : index
    %c0_40 = arith.constant 0 : index
    %c0_41 = arith.constant 0 : index
    %74 = vector.load %arg8[%c0_39, %c0_40, %c0_41] : memref<1x16x128xf32, #tpu.memory_space<vmem>>, vector<1x16x128xf32>
    %75 = vector.shape_cast %74 : vector<1x16x128xf32> to vector<16x128xf32>
    %76 = vector.shape_cast %73 : vector<16x128xf32> to vector<1x16x128xf32>
    tpu.vector_store %arg8[%c0_39, %c0_40, %c0_41], %76 {strides = array<i32>} : memref<1x16x128xf32, #tpu.memory_space<vmem>>, vector<1x16x128xf32>,
    return
  }
  func.func @transform_0(%arg0: i32) -> (i32, i32, i32) {
    %c0_i32 = arith.constant 0 : i32
    %c0_i32_0 = arith.constant 0 : i32
    %c0_i32_1 = arith.constant 0 : i32
    return %arg0, %c0_i32, %c0_i32_0 : i32, i32, i32
  }
  func.func @transform_1(%arg0: i32) -> (i32, i32) {
    %c0_i32 = arith.constant 0 : i32
    %c0_i32_0 = arith.constant 0 : i32
    %c0_i32_1 = arith.constant 0 : i32
    return %c0_i32, %c0_i32_0 : i32, i32
  }
  func.func @transform_2(%arg0: i32) -> (i32, i32) {
    %c0_i32 = arith.constant 0 : i32
    %c0_i32_0 = arith.constant 0 : i32
    %c0_i32_1 = arith.constant 0 : i32
    return %c0_i32, %c0_i32_0 : i32, i32
  }
  func.func @transform_3(%arg0: i32) -> (i32, i32, i32) {
    %c0_i32 = arith.constant 0 : i32
    %c0_i32_0 = arith.constant 0 : i32
    %c0_i32_1 = arith.constant 0 : i32
    %c0_i32_2 = arith.constant 0 : i32
    return %c0_i32, %c0_i32_0, %c0_i32_1 : i32, i32, i32
  }
  func.func @transform_4(%arg0: i32) -> (i32, i32) {
    %c0_i32 = arith.constant 0 : i32
    %c0_i32_0 = arith.constant 0 : i32
    %c0_i32_1 = arith.constant 0 : i32
    return %c0_i32, %c0_i32_0 : i32, i32
  }
  func.func @transform_5(%arg0: i32) -> (i32, i32) {
    %c0_i32 = arith.constant 0 : i32
    %c0_i32_0 = arith.constant 0 : i32
    %c0_i32_1 = arith.constant 0 : i32
    return %c0_i32, %c0_i32_0 : i32, i32
  }
  func.func @transform_6(%arg0: i32) -> (i32, i32) {
    %c0_i32 = arith.constant 0 : i32
    %c0_i32_0 = arith.constant 0 : i32
    %c0_i32_1 = arith.constant 0 : i32
    return %c0_i32, %c0_i32_0 : i32, i32
  }
  func.func @transform_7(%arg0: i32) -> (i32, i32, i32) {
    %c0_i32 = arith.constant 0 : i32
    %c0_i32_0 = arith.constant 0 : i32
    %c0_i32_1 = arith.constant 0 : i32
    return %arg0, %c0_i32, %c0_i32_0 : i32, i32, i32
  }
}

</mosaic_0001>

<bundles_post_ra>
// kernel: decoder_forward.7
= control target key start
LH: loop header
LB: loop body
LE: loop exit
PB: predicated region body
PF: predicated region fallthrough
CT: control target
= control target key end

     0   :  { %7 = vsyncpa [#allocation3], 0  ;;  %s483_s0 = inlined_call_operand.hbm [shape: f32[2,16,128], index: 0, kind: input, shape index: {}]   ;;  %s484_s1 = inlined_call_operand.vmem [shape: f32[16,128], index: 1, kind: input, shape index: {}]   ;;  %s485_s2 = inlined_call_operand.vmem [shape: f32[2,16,128], index: 2, kind: output, shape index: {}]  }
   0x1   :  { %9 = vsyncpa [#allocation3 + $0x1], 0  ;;  %s376_s9 = smov 0   ;;  %s378_s10 = smov 0  }
   0x2   :  { %s380_s11 = smov 0   ;;  %s382_s12 = smov 0  }
   0x3 LB: > { %s395_s13 = sadd.s32 4294967295, %s356_s12   ;;  %s398_s14 = sadd.s32 1, %s356_s12   ;;  %s356_s12 = sphi %s382_s12, %s494_s12   ;;  %s352_s11 = sphi %s380_s11, %s493_s11   ;;  %s348_s10 = sphi %s378_s10, %s492_s10   ;;  %s344_s9 = sphi %s376_s9, %s491_s9  }
   0x4   : > { %s19_s15 = ssub.s32 %s356_s12, %s398_s14  ;;  %s22_s16 = sadd.s32 1, %s352_s11 }
   0x5   : > { %p20_p0 = scmp.eq.s32.totalorder %s19_s15, 0  ;;  %p29_p1 = scmp.ne.s32.totalorder %s352_s11, %s348_s10 }
   0x6   : > { %p30_p2 = scmp.eq.s32.totalorder %s356_s12, 0  ;;  %p35_p3 = scmp.ne.s32.totalorder %s348_s10, %s344_s9 }
   0x7   : > { %s408_s17 = scalar_select %p20_p0, %s352_s11, %s22_s16  }
   0x8   : > { %p31_p4 = por %p30_p2, %p29_p1  ;;  %p36_p5 = scmp.eq.s32.totalorder %s395_s13, 0 }
   0x9   : > { %p259_p6 = scmp.lt.s32.totalorder %s356_s12, 2  ;;  %s109_s19 = sand.u32 1, %s352_s11  }
   0xa   : > { %p412_p7 = por %p36_p5, %p35_p3  ;;  %s242_s20 = sshll.u32 %s109_s19, 4 }
   0xb   : > { %s251_s21 = sshll.u32 %s356_s12, 8  ;;  %s113_s25 = scalar_lea.vmem [#allocation2], %s242_s20 }
   0xc   : > { %s487_s18 = scalar_select %p412_p7, 1, 0 }
   0xd   : > { %s421_s24 = scalar_lea.hbm %s483_s0, %s251_s21  ;;  %s120_s26 = sshll.u32 %s113_s25, 4  ;;  %s423_s26 = int_to_ptr.vmem [resolvable:$true] %s120_s26 }
   0xe   : > { %p425_p8 = pnand %p259_p6, %p31_p4  ;;  %s430_s28 = scalar_lea.sflag [#allocation3], %s109_s19 }
   0xf   : > { %s294_s29 = scalar_lea.hbm %s421_s24, 256  ;;  %s299_s4 = scalar_lea.hbm %s483_s0, 512 }
  0x10   : > { %p295_p10 = scmp.ne.s32.totalorder %s421_s24, %s294_s29  ;;  %p296_p11 = pneg %p425_p8 }
  0x11   : > { %p300_p0 = scmp.lt.s32.totalorder %s421_s24, %s483_s0  ;;  %p301_p1 = scmp.lt.s32.totalorder %s299_s4, %s294_s29 }
  0x12   : > { %p297_p12 = pnand %p296_p11, %p295_p10 }
  0x13   : > { %p302_p2 = por %p301_p1, %p300_p0 }
  0x14   : > { %p298_p13 = pneg %p297_p12 }
  0x16   : > { %p303_p3 = pnand %p302_p2, %p298_p13 }
  0x18   : > { %306 = shalt.err (!%p303_p3)
}
  0x19   : > { %s307_s7 = scalar_lea.vmem %s423_s26, 256  ;;  %s358_s8 = smov [#allocation2]  }
  0x1a   : > { %p308_p4 = scmp.ne.s32.totalorder %s423_s26, %s307_s7  ;;  %s312_s9 = sshll.u32 %s358_s8, 4  ;;  %s313_s9 = int_to_ptr.vmem [resolvable:$false] %s312_s9 }
  0x1b   : > { %s314_s15 = scalar_lea.vmem %s313_s9, 512  ;;  %p315_p10 = scmp.lt.s32.totalorder %s423_s26, %s313_s9 }
  0x1c   : > { %p310_p5 = pnand %p308_p4, %p296_p11  ;;  %p316_p12 = scmp.lt.s32.totalorder %s314_s15, %s307_s7 }
  0x1e   : > { %p311_p6 = pneg %p310_p5  ;;  %p317_p9 = por %p316_p12, %p315_p10 }
  0x20   : > { %p318_p7 = pnand %p317_p9, %p311_p6 }
  0x22   : > { %321 = shalt.err (!%p318_p7)
}
  0x23   : > { %s359_s16 = smov 128   ;;  %s360_s19 = smov 8  }
  0x24   : > { %258 = dma.hbm_to_vmem [thread:$0]  (!%p425_p8), %s421_s24, 256, %s423_s26, %s430_s28, %s359_s16, %s359_s16, %s360_s19  }
  0x25   : > { %p128_p11 = scmp.lt.s32.totalorder %s356_s12, 3  ;;  %p489_p13 = scmp.ge.s32.totalorder %s356_s12, 1 }
  0x27   : > { %p129_p0 = pnand %p489_p13, %p128_p11 }
  0x28   : > { %s134_s20 = sand.u32 (!%p129_p0), 1, %s348_s10   ;;  %p490_p7 = scmp.ne.s32.totalorder (!%p129_p0), %s487_s18, 0 }
  0x29   : > { %132 = sbr.rel (%p129_p0) target bundleno = 53 (0x35), region = 28  ;;  %s246_s21 = sshll.u32 (!%p129_p0), %s134_s20, 4 }
  0x2a   : > { %s135_s22 = scalar_lea.sflag (!%p129_p0), [#allocation3], %s134_s20  ;;  %s138_s23 = scalar_lea.vmem (!%p129_p0), [#allocation2], %s246_s21 }
  0x2e   : > { %339 = dma.done.wait (%p490_p7), %s135_s22, 256  }
  0x2f   : > { %341 = vsyncadd (%p490_p7), %s135_s22, 4294967040  ;;  %p159_p9 = scmp.lt.s32.totalorder %s395_s13, 1  ;;  %v164_v0 = vld [vmem:[%s138_s23] sm:$0xff]  ;;  %v165_v2 = vld [vmem:[%s138_s23 + $0x8] sm:$0xff] }
  0x30   : > { %v166_v1 = vld [vmem:[%s484_s1] sm:$0xff]  ;;  %v167_v4 = vld [vmem:[%s484_s1 + $0x8] sm:$0xff] }
  0x31   : > { %s496_s13 = smov (!%p159_p9, %s395_s13), 1  ;;  %v168_v3 = vadd.f32 %v166_v1, %v164_v0  ;;  %v169_v5 = vadd.f32 %v167_v4, %v165_v2 }
  0x32   : > { %s252_s24 = sshll.u32 %s496_s13, 4 }
  0x33   : > { %s163_s26 = scalar_lea.vmem %s485_s2, %s252_s24 }
  0x34   : > { %170 = vst [vmem:[%s163_s26] sm:$0xff] %v168_v3  ;;  %171 = vst [vmem:[%s163_s26 + $0x8] sm:$0xff] %v169_v5 }
  0x35 PF: > { %p12_p8 = scmp.ge.s32.totalorder %s398_s14, 4   ;;  %s491_s9 = smov %s348_s10 }
  0x36   : > { %s492_s10 = smov %s352_s11  ;;  %s493_s11 = smov %s408_s17 }
  0x37   : > { %s494_s12 = smov %s398_s14  ;;  %14 = sbr.rel (!%p12_p8) target bundleno = 3 (0x3), region = 68 }
  0x3c   :  { %193 = vsyncpa [#allocation3], 1 }
  0x3d   :  { %195 = vsyncpa [#allocation3 + $0x1], 1 }

// kernel: decoder_forward.10
= control target key start
LH: loop header
LB: loop body
LE: loop exit
PB: predicated region body
PF: predicated region fallthrough
CT: control target
= control target key end

     0   :  { %12 = vsyncpa [#allocation3], 0  ;;  %s2443_s0 = inlined_call_operand.vmem [shape: f32[2,16,128], index: 0, kind: input, shape index: {}, may-alias: {0,7}]   ;;  %s2444_s1 = inlined_call_operand.hbm [shape: f32[1,128], index: 1, kind: input, shape index: {}]   ;;  %s2445_s2 = inlined_call_operand.hbm [shape: f32[1,128], index: 2, kind: input, shape index: {}]   ;;  %s2446_s3 = inlined_call_operand.vmem [shape: bf16[5,128,256], index: 3, kind: input, shape index: {}]   ;;  %s2447_s4 = inlined_call_operand.hbm [shape: f32[1,256], index: 4, kind: input, shape index: {}]   ;;  %s2448_s5 = inlined_call_operand.vmem [shape: bf16[256,128], index: 5, kind: input, shape index: {}]   ;;  %s2449_s6 = inlined_call_operand.hbm [shape: f32[1,128], index: 6, kind: input, shape index: {}]   ;;  %s2450_s7 = inlined_call_operand.vmem [shape: f32[2,16,128], index: 7, kind: output, shape index: {}, may-alias: {0,7}]  }
   0x1   :  { %13 = vsyncpa [#allocation5], 0 }
   0x2   :  { %14 = vsyncpa [#allocation8], 0  ;;  %s1999_s24 = smov 0  }
   0x3 LB: > { %s2005_s25 = sadd.s32 4294967295, %s1951_s24   ;;  %p1420_p0 = scmp.ge.s32.totalorder %s1951_s24, 1  ;;  %s1951_s24 = sphi %s1999_s24, %s20_s24  }
   0x4   : > { %p203_p1 = scmp.lt.s32.totalorder %s1951_s24, 3  ;;  %p2451_p2 = scmp.eq.s32.totalorder %s2005_s25, 0 }
   0x5   : > { %s1953_s26 = smov [#allocation4]   ;;  %s1954_s29 = smov [#allocation2]  }
   0x6   : > { %s227_s27 = sshll.u32 %s1953_s26, 4  ;;  %p2010_p3 = pnand %p1420_p0, %p203_p1  ;;  %s228_s27 = int_to_ptr.vmem [resolvable:$true] %s227_s27 }
   0x7   : > { %s216_s30 = sshll.u32 %s1954_s29, 4  ;;  %s1955_s8 = smov [#allocation6]   ;;  %s217_s30 = int_to_ptr.vmem [resolvable:$true] %s216_s30 }
   0x8   : > { %p1654_p4 = pneg %p2010_p3  ;;  %s241_s9 = sshll.u32 %s1955_s8, 4  ;;  %s2022_s9 = int_to_ptr.vmem [resolvable:$true] %s241_s9 }
   0x9   : > { %s1956_s11 = smov [#allocation7]   ;;  %s1840_s13 = scalar_lea.vmem %s228_s27, 16 }
   0xa   : > { %p2018_p5 = pnand %p2451_p2, %p1654_p4  ;;  %s255_s12 = sshll.u32 %s1956_s11, 4  ;;  %s2024_s12 = int_to_ptr.vmem [resolvable:$true] %s255_s12 }
   0xb   : > { %p1841_p7 = scmp.ne.s32.totalorder %s228_s27, %s1840_s13  ;;  %s1847_s14 = scalar_lea.vmem %s228_s27, 32 }
   0xc   : > { %p1831_p6 = pneg %p2018_p5  ;;  %p1848_p10 = scmp.lt.s32.totalorder %s228_s27, %s228_s27 }
   0xd   : > { %p1849_p11 = scmp.lt.s32.totalorder %s1847_s14, %s1840_s13 }
   0xe   : > { %p1843_p8 = pnand %p1841_p7, %p1831_p6 }
   0xf   : > { %p1850_p12 = por %p1849_p11, %p1848_p10 }
  0x10   : > { %p1844_p9 = pneg %p1843_p8 }
  0x12   : > { %p1851_p13 = pnand %p1850_p12, %p1844_p9 }
  0x14   : > { %1854 = shalt.err (!%p1851_p13)
}
  0x15   : > { %1660 = dma.hbm_to_vmem [thread:$0]  (!%p2018_p5), %s2445_s2, 16, %s228_s27, [#allocation5]  }
  0x16   : > { %s1866_s17 = scalar_lea.vmem %s217_s30, 16  ;;  %s1873_s18 = scalar_lea.vmem %s217_s30, 32 }
  0x17   : > { %p1867_p0 = scmp.ne.s32.totalorder %s217_s30, %s1866_s17  ;;  %p1874_p7 = scmp.lt.s32.totalorder %s217_s30, %s217_s30 }
  0x18   : > { %p1875_p8 = scmp.lt.s32.totalorder %s1873_s18, %s1866_s17 }
  0x19   : > { %p1869_p1 = pnand %p1867_p0, %p1831_p6 }
  0x1a   : > { %p1876_p2 = por %p1875_p8, %p1874_p7 }
  0x1b   : > { %p1870_p4 = pneg %p1869_p1 }
  0x1d   : > { %p1877_p10 = pnand %p1876_p2, %p1870_p4 }
  0x1f   : > { %1880 = shalt.err (!%p1877_p10)
}
  0x20   : > { %1657 = dma.hbm_to_vmem [thread:$0]  (!%p2018_p5), %s2444_s1, 16, %s217_s30, [#allocation3]  }
  0x21   : > { %s1892_s21 = scalar_lea.vmem %s2022_s9, 32  ;;  %p1900_p13 = scmp.lt.s32.totalorder %s2022_s9, %s2022_s9 }
  0x22   : > { %p1893_p9 = scmp.ne.s32.totalorder %s2022_s9, %s1892_s21  ;;  %p1901_p2 = scmp.lt.s32.totalorder %s1892_s21, %s1892_s21 }
  0x24   : > { %p1895_p11 = pnand %p1893_p9, %p1831_p6  ;;  %p1902_p0 = por %p1901_p2, %p1900_p13 }
  0x26   : > { %p1896_p12 = pneg %p1895_p11 }
  0x28   : > { %p1903_p1 = pnand %p1902_p0, %p1896_p12 }
  0x2a   : > { %1906 = shalt.err (!%p1903_p1)
}
  0x2b   : > { %1663 = dma.hbm_to_vmem [thread:$0]  (!%p2018_p5), %s2447_s4, 32, %s2022_s9, [#allocation5]  }
  0x2c   : > { %s1918_s26 = scalar_lea.vmem %s2024_s12, 16  ;;  %s1925_s27 = scalar_lea.vmem %s2024_s12, 32 }
  0x2d   : > { %p1919_p4 = scmp.ne.s32.totalorder %s2024_s12, %s1918_s26  ;;  %p1926_p10 = scmp.lt.s32.totalorder %s2024_s12, %s2024_s12 }
  0x2e   : > { %p1927_p9 = scmp.lt.s32.totalorder %s1925_s27, %s1918_s26 }
  0x2f   : > { %p1921_p7 = pnand %p1919_p4, %p1831_p6 }
  0x30   : > { %p1928_p11 = por %p1927_p9, %p1926_p10 }
  0x31   : > { %p1922_p8 = pneg %p1921_p7 }
  0x33   : > { %p1929_p12 = pnand %p1928_p11, %p1922_p8 }
  0x35   : > { %1932 = shalt.err (!%p1929_p12)
}
  0x36   : > { %1666 = dma.hbm_to_vmem [thread:$0]  (!%p2018_p5), %s2449_s6, 16, %s2024_s12, [#allocation8]  }
  0x37   : > { %276 = sbr.rel (%p2010_p3) target bundleno = 867 (0x363), region = 48  ;;  %p2454_p6 = scmp.eq.s32.totalorder (!%p2010_p3), %s2005_s25, 0 }
  0x3c   : > { %1938 = dma.done.wait (%p2454_p6), [#allocation3], 16   ;;  %p2455_p13 = pmov %p2454_p6 }
  0x3d   : > { %p2456_p2 = pmov %p2454_p6 }
  0x3e   : > { %1940 = vsyncadd (%p2455_p13), [#allocation3], 4294967280 }
  0x3f   : > { %1942 = dma.done.wait (%p2456_p2), [#allocation5], 48   ;;  %p2457_p0 = pmov %p2456_p2 }
  0x41   : > { %1944 = vsyncadd (%p2457_p0), [#allocation5], 4294967248  ;;  %p2458_p1 = pmov %p2457_p0 }
  0x42   : > { %p2459_p5 = pmov %p2457_p0 }
  0x43   : > { %1946 = dma.done.wait (%p2458_p1), [#allocation8], 16  }
  0x44   : > { %1948 = vsyncadd (%p2459_p5), [#allocation8], 4294967280  ;;  %p320_p3 = scmp.lt.s32.totalorder %s2005_s25, 1  ;;  %v1689_v10 = vld [vmem:[%s2446_s3 + $0xf4] ss:$8 sps:$4 sm:$0xff]   ;;  %v1957_v44 = vmov 0  }
  0x45   : > { %v1691_v11 = vld [vmem:[%s2446_s3 + $0x74] ss:$8 sps:$4 sm:$0xff]   ;;  %v1693_v12 = vld [vmem:[%s2446_s3 + $0xf0] ss:$8 sps:$4 sm:$0xff]   ;;  %505 = vmatprep.subr.bf16.mxu0 %v1689_v10  ;;  %v1695_v14 = vld [vmem:[%s2446_s3 + $0xe4] ss:$8 sps:$4 sm:$0xff]   ;;  %537 = vmatprep.mubr.bf16.mxu0 %v1957_v44 }
  0x46   : > { %s2461_s25 = smov (!%p320_p3, %s2005_s25), 1  ;;  %v1694_v13 = vld [vmem:[%s2446_s3 + $0x70] ss:$8 sps:$4 sm:$0xff]   ;;  %628 = vmatprep.subr.bf16.mxu1 %v1691_v11  ;;  %506 = vmatpush1.bf16.msra.mxu0 %v1693_v12  ;;  %v1697_v15 = vld [vmem:[%s2446_s3 + $0x64] ss:$8 sps:$4 sm:$0xff]   ;;  %vm400_vm0 = vcmask 1040384  }
  0x47   : > { %s1614_s28 = sshll.u32 %s2461_s25, 4  ;;  %629 = vmatpush1.bf16.msra.mxu1 %v1694_v13  ;;  %v1699_v16 = vld [vmem:[%s2446_s3 + $0xe0] ss:$8 sps:$4 sm:$0xff]   ;;  %507 = vmatprep.subr.bf16.mxu0 %v1695_v14  ;;  %v1701_v18 = vld [vmem:[%s2446_s3 + $0xd4] ss:$8 sps:$4 sm:$0xff]   ;;  %vm376_vm1 = vcmask 1041408   ;;  %vm1469_vm2 = vmneg %vm400_vm0 }
  0x48   : > { %s324_s10 = scalar_lea.vmem %s2443_s0, %s1614_s28  ;;  %v1700_v17 = vld [vmem:[%s2446_s3 + $0x60] ss:$8 sps:$4 sm:$0xff]   ;;  %630 = vmatprep.subr.bf16.mxu1 %v1697_v15  ;;  %v1703_v19 = vld [vmem:[%s2446_s3 + $0x54] ss:$8 sps:$4 sm:$0xff]   ;;  %v1705_v20 = vld [vmem:[%s2446_s3 + $0xd0] ss:$8 sps:$4 sm:$0xff]   ;;  %660 = vmatprep.mubr.bf16.mxu1 %v1957_v44  ;;  %s329_s27 = scalar_lea.vmem %s2450_s7, %s1614_s28 }
  0x49   : > { %v2095_v0 = vld [vmem:[%s324_s10] sm:$0xff]  ;;  %v2097_v1 = vld [vmem:[%s324_s10 + $0x8] sm:$0xff]  ;;  %v1706_v21 = vld [vmem:[%s2446_s3 + $0x50] ss:$8 sps:$4 sm:$0xff]   ;;  %vm968_vm4 = vcmask 1045504   ;;  %vm1958_vm5 = vmmov 1  }
  0x4a   : > { %335 = vadd.xlane.f32.xlu0 %v2095_v0  ;;  %508 = vmatpush1.bf16.msra.mxu0 %v1699_v16  ;;  %v1707_v22 = vld [vmem:[%s2446_s3 + $0xc4] ss:$8 sps:$4 sm:$0xff]   ;;  %v1711_v24 = vld [vmem:[%s2446_s3 + $0xc0] ss:$8 sps:$4 sm:$0xff]   ;;  %v1713_v26 = vld [vmem:[%s2446_s3 + $0xb4] ss:$8 sps:$4 sm:$0xff]  }
  0x4b   : > { %631 = vmatpush1.bf16.msra.mxu1 %v1700_v17  ;;  %509 = vmatprep.subr.bf16.mxu0 %v1701_v18  ;;  %v1709_v23 = vld [vmem:[%s2446_s3 + $0x44] ss:$8 sps:$4 sm:$0xff]   ;;  %v1712_v25 = vld [vmem:[%s2446_s3 + $0x40] ss:$8 sps:$4 sm:$0xff]   ;;  %v1715_v27 = vld [vmem:[%s2446_s3 + $0x34] ss:$8 sps:$4 sm:$0xff]  }
  0x4c   : > { %632 = vmatprep.subr.bf16.mxu1 %v1703_v19  ;;  %v1717_v28 = vld [vmem:[%s2446_s3 + $0xb0] ss:$8 sps:$4 sm:$0xff]   ;;  %v1719_v30 = vld [vmem:[%s2446_s3 + $0xa4] ss:$8 sps:$4 sm:$0xff]   ;;  %v1723_v32 = vld [vmem:[%s2446_s3 + $0xa0] ss:$8 sps:$4 sm:$0xff]  }
  0x4d   : > { %v1718_v29 = vld [vmem:[%s2446_s3 + $0x30] ss:$8 sps:$4 sm:$0xff]   ;;  %v1721_v31 = vld [vmem:[%s2446_s3 + $0x24] ss:$8 sps:$4 sm:$0xff]   ;;  %v1724_v33 = vld [vmem:[%s2446_s3 + $0x20] ss:$8 sps:$4 sm:$0xff]  }
  0x4e   : > { %337 = vadd.xlane.f32.xlu0 %v2097_v1  ;;  %510 = vmatpush1.bf16.msra.mxu0 %v1705_v20  ;;  %v1725_v34 = vld [vmem:[%s2446_s3 + $0x94] ss:$8 sps:$4 sm:$0xff]   ;;  %v1729_v36 = vld [vmem:[%s2446_s3 + $0x90] ss:$8 sps:$4 sm:$0xff]   ;;  %v1731_v38 = vld [vmem:[%s2446_s3 + $0x84] ss:$8 sps:$4 sm:$0xff]  }
  0x4f   : > { %633 = vmatpush1.bf16.msra.mxu1 %v1706_v21  ;;  %511 = vmatprep.subr.bf16.mxu0 %v1707_v22  ;;  %v1727_v35 = vld [vmem:[%s2446_s3 + $0x14] ss:$8 sps:$4 sm:$0xff]   ;;  %v1730_v37 = vld [vmem:[%s2446_s3 + $0x10] ss:$8 sps:$4 sm:$0xff]   ;;  %v1733_v39 = vld [vmem:[%s2446_s3 + $0x4] ss:$8 sps:$4 sm:$0xff]  }
  0x50   : > { %634 = vmatprep.subr.bf16.mxu1 %v1709_v23  ;;  %v1735_v40 = vld [vmem:[%s2446_s3 + $0x80] ss:$8 sps:$4 sm:$0xff]   ;;  %v1739_v42 = vld [vmem:[%s2446_s3 + $0x174] ss:$8 sps:$4 sm:$0xff]   ;;  %vm1489_vm3 = vmneg %vm376_vm1  ;;  %vm816_vm8 = vcmask 1046528  }
  0x51   : > { %v1736_v41 = vld [vmem:[%s2446_s3] ss:$8 sps:$4 sm:$0xff]   ;;  %v1742_v43 = vld [vmem:[%s2446_s3 + $0x1f4] ss:$8 sps:$4 sm:$0xff]   ;;  %vm1470_vm6 = vmpackc.low %vm1958_vm5, %vm1469_vm2 }
  0x52   : > { %512 = vmatpush1.bf16.msra.mxu0 %v1711_v24  ;;  %v1435_v52 = vld [vmem:[#allocation2] ss:$0 sm:$0xff]  ;;  %v1436_v56 = vld [vmem:[#allocation4] ss:$0 sm:$0xff]  ;;  %vm1490_vm7 = vmpackc.low %vm1958_vm5, %vm1489_vm3 }
  0x53   : > { %635 = vmatpush1.bf16.msra.mxu1 %v1712_v25  ;;  %513 = vmatprep.subr.bf16.mxu0 %v1713_v26  ;;  %v1745_v11 = vld [vmem:[%s2446_s3 + $0x164] ss:$8 sps:$4 sm:$0xff]   ;;  %v1743_v15 = vld [vmem:[%s2446_s3 + $0x160] ss:$8 sps:$4 sm:$0xff]   ;;  %v1751_v17 = vld [vmem:[%s2446_s3 + $0x154] ss:$8 sps:$4 sm:$0xff]  }
  0x54   : > { %636 = vmatprep.subr.bf16.mxu1 %v1715_v27  ;;  %v1748_v12 = vld [vmem:[%s2446_s3 + $0x1e4] ss:$8 sps:$4 sm:$0xff]   ;;  %v1746_v16 = vld [vmem:[%s2446_s3 + $0x1e0] ss:$8 sps:$4 sm:$0xff]   ;;  %v1754_v18 = vld [vmem:[%s2446_s3 + $0x1d4] ss:$8 sps:$4 sm:$0xff]  }
  0x55   : > { %v1749_v19 = vld [vmem:[%s2446_s3 + $0x150] ss:$8 sps:$4 sm:$0xff]   ;;  %v1757_v21 = vld [vmem:[%s2446_s3 + $0x144] ss:$8 sps:$4 sm:$0xff]   ;;  %v1755_v23 = vld [vmem:[%s2446_s3 + $0x140] ss:$8 sps:$4 sm:$0xff]  }
  0x56   : > { %514 = vmatpush1.bf16.msra.mxu0 %v1717_v28  ;;  %v1752_v20 = vld [vmem:[%s2446_s3 + $0x1d0] ss:$8 sps:$4 sm:$0xff]   ;;  %v1760_v22 = vld [vmem:[%s2446_s3 + $0x1c4] ss:$8 sps:$4 sm:$0xff]   ;;  %v1758_v24 = vld [vmem:[%s2446_s3 + $0x1c0] ss:$8 sps:$4 sm:$0xff]  }
  0x57   : > { %637 = vmatpush1.bf16.msra.mxu1 %v1718_v29  ;;  %515 = vmatprep.subr.bf16.mxu0 %v1719_v30  ;;  %v1763_v25 = vld [vmem:[%s2446_s3 + $0x134] ss:$8 sps:$4 sm:$0xff]   ;;  %v1761_v27 = vld [vmem:[%s2446_s3 + $0x130] ss:$8 sps:$4 sm:$0xff]   ;;  %v1769_v29 = vld [vmem:[%s2446_s3 + $0x124] ss:$8 sps:$4 sm:$0xff]  }
  0x58   : > { %638 = vmatprep.subr.bf16.mxu1 %v1721_v31  ;;  %v1766_v26 = vld [vmem:[%s2446_s3 + $0x1b4] ss:$8 sps:$4 sm:$0xff]   ;;  %v1764_v28 = vld [vmem:[%s2446_s3 + $0x1b0] ss:$8 sps:$4 sm:$0xff]   ;;  %v1772_v30 = vld [vmem:[%s2446_s3 + $0x1a4] ss:$8 sps:$4 sm:$0xff]  }
  0x59   : > { %v1767_v31 = vld [vmem:[%s2446_s3 + $0x120] ss:$8 sps:$4 sm:$0xff]   ;;  %vm1557_vm9 = vmpackc.low %vm816_vm8, %vm1958_vm5 }
  0x5a   : > { %516 = vmatpush1.bf16.msra.mxu0 %v1723_v32  ;;  %v1770_v32 = vld [vmem:[%s2446_s3 + $0x1a0] ss:$8 sps:$4 sm:$0xff]   ;;  %vm1592_vm10 = vmpackc.low %vm968_vm4, %vm1958_vm5 }
  0x5b   : > { %639 = vmatpush1.bf16.msra.mxu1 %v1724_v33  ;;  %517 = vmatprep.subr.bf16.mxu0 %v1725_v34  ;;  %v1775_v33 = vld [vmem:[%s2446_s3 + $0x114] ss:$8 sps:$4 sm:$0xff]  }
  0x5c   : > { %640 = vmatprep.subr.bf16.mxu1 %v1727_v35  ;;  %v1778_v34 = vld [vmem:[%s2446_s3 + $0x194] ss:$8 sps:$4 sm:$0xff]   ;;  %v1773_v35 = vld [vmem:[%s2446_s3 + $0x110] ss:$8 sps:$4 sm:$0xff]  }
  0x5e   : > { %518 = vmatpush1.bf16.msra.mxu0 %v1729_v36  ;;  %v1776_v36 = vld [vmem:[%s2446_s3 + $0x190] ss:$8 sps:$4 sm:$0xff]  }
  0x5f   : > { %641 = vmatpush1.bf16.msra.mxu1 %v1730_v37  ;;  %519 = vmatprep.subr.bf16.mxu0 %v1731_v38  ;;  %v1781_v37 = vld [vmem:[%s2446_s3 + $0x104] ss:$8 sps:$4 sm:$0xff]  }
  0x60   : > { %642 = vmatprep.subr.bf16.mxu1 %v1733_v39  ;;  %v1784_v38 = vld [vmem:[%s2446_s3 + $0x184] ss:$8 sps:$4 sm:$0xff]  }
  0x62   : > { %520 = vmatpush1.bf16.msra.mxu0 %v1735_v40  ;;  %v1779_v40 = vld [vmem:[%s2446_s3 + $0x100] ss:$8 sps:$4 sm:$0xff]  }
  0x63   : > { %643 = vmatpush1.bf16.msra.mxu1 %v1736_v41  ;;  %769 = vmatprep.subr.bf16.mxu0 %v1739_v42  ;;  %v1782_v41 = vld [vmem:[%s2446_s3 + $0x180] ss:$8 sps:$4 sm:$0xff]  }
  0x64   : > { %921 = vmatprep.subr.bf16.mxu1 %v1742_v43  ;;  %v1787_v43 = vld [vmem:[%s2446_s3 + $0x274] ss:$8 sps:$4 sm:$0xff]  }
  0xd3   : > { %v336_v2 = vpop.xlane.xlu0 %335 }
  0xd4   : > { %v340_v3 = vmul.f32 0.0078125, %v336_v2 }
  0xd6   : > { %v2102_v4 = vsub.f32 %v2095_v0, %v340_v3 }
  0xd7   : > { %v338_v5 = vpop.xlane.xlu0 %337 }
  0xd8   : > { %v341_v6 = vmul.f32 0.0078125, %v338_v5  ;;  %v344_v7 = vmul.f32 %v2102_v4, %v2102_v4  ;;  %v1737_v5 = vld [vmem:[%s2446_s3 + $0x170] ss:$8 sps:$4 sm:$0xff]  }
  0xda   : > { %v2107_v8 = vsub.f32 %v2097_v1, %v341_v6  ;;  %346 = vadd.xlane.f32.xlu1 %v344_v7  ;;  %v1740_v6 = vld [vmem:[%s2446_s3 + $0x1f0] ss:$8 sps:$4 sm:$0xff]  }
  0xdc   : > { %v345_v9 = vmul.f32 %v2107_v8, %v2107_v8 }
  0xde   : > { %348 = vadd.xlane.f32.xlu1 %v345_v9 }
 0x163   : > { %v347_v45 = vpop.xlane.xlu1 %346 }
 0x164   : > { %v350_v46 = vmul.f32 0.0078125, %v347_v45 }
 0x166   : > { %v352_v47 = vadd.f32 1e-05, %v350_v46  ;;  %v1785_v46 = vld [vmem:[%s2446_s3 + $0x270] ss:$8 sps:$4 sm:$0xff]  }
 0x167   : > { %v349_v48 = vpop.xlane.xlu1 %348 }
 0x168   : > { %1825 = vrsqrt.f32 %v352_v47  ;;  %v351_v49 = vmul.f32 0.0078125, %v349_v48 }
 0x16a   : > { %v353_v50 = vadd.f32 1e-05, %v351_v49  ;;  %v1790_v49 = vld [vmem:[%s2446_s3 + $0x264] ss:$8 sps:$4 sm:$0xff]  }
 0x16c   : > { %1827 = vrsqrt.f32 %v353_v50  ;;  %v1788_v50 = vld [vmem:[%s2446_s3 + $0x260] ss:$8 sps:$4 sm:$0xff]  }
 0x175   : > { %v1826_v51 = vpop.eup %1825 }
 0x176   : > { %v356_v53 = vmul.f32 %v1826_v51, %v2102_v4  ;;  %v1793_v51 = vld [vmem:[%s2446_s3 + $0x254] ss:$8 sps:$4 sm:$0xff]  }
 0x178   : > { %v364_v54 = vmul.f32 %v1435_v52, %v356_v53  ;;  %v1796_v53 = vld [vmem:[%s2446_s3 + $0x244] ss:$8 sps:$4 sm:$0xff]  }
 0x179   : > { %v1828_v55 = vpop.eup %1827 }
 0x17a   : > { %v357_v57 = vmul.f32 %v1828_v55, %v2107_v8  ;;  %v2217_v58 = vadd.f32 %v1436_v56, %v364_v54  ;;  %v1799_v54 = vld [vmem:[%s2446_s3 + $0x234] ss:$8 sps:$4 sm:$0xff]   ;;  %v1797_v55 = vld [vmem:[%s2446_s3 + $0x230] ss:$8 sps:$4 sm:$0xff]  }
 0x17c   : > { %v365_v59 = vmul.f32 %v1435_v52, %v357_v57  ;;  %v401_v61 = vrot.slane %v2217_v58, 7  ;;  %v377_v63 = vrot.slane %v2217_v58, 6  ;;  %v969_v3 = vrot.slane %v2217_v58, 2  ;;  %v1791_v52 = vld [vmem:[%s2446_s3 + $0x250] ss:$8 sps:$4 sm:$0xff]  }
 0x17d   : > { %v817_v42 = vrot.slane %v2217_v58, 1  ;;  %v1800_v57 = vld [vmem:[%s2446_s3 + $0x220] ss:$8 sps:$4 sm:$0xff]  }
 0x17e   : > { %v2219_v60 = vadd.f32 %v1436_v56, %v365_v59  ;;  %v1802_v56 = vld [vmem:[%s2446_s3 + $0x224] ss:$8 sps:$4 sm:$0xff]   ;;  %v1803_v59 = vld [vmem:[%s2446_s3 + $0x210] ss:$8 sps:$4 sm:$0xff]  }
 0x180   : > { %v402_v62 = vrot.slane %v2219_v60, 7  ;;  %v378_v2 = vrot.slane %v2219_v60, 6  ;;  %v970_v4 = vrot.slane %v2219_v60, 2  ;;  %v818_v39 = vrot.slane %v2219_v60, 1 }
 0x181   : > { %v671_v47 = vpack.c.bf16 %v2219_v60, %v2217_v58  ;;  %v1805_v58 = vld [vmem:[%s2446_s3 + $0x214] ss:$8 sps:$4 sm:$0xff]   ;;  %v1808_v60 = vld [vmem:[%s2446_s3 + $0x204] ss:$8 sps:$4 sm:$0xff]  }
 0x182   : > { %v403_v7 = vsel %vm400_vm0, %v401_v61, %v402_v62  ;;  %v379_v8 = vsel %vm376_vm1, %v377_v63, %v378_v2  ;;  %v971_v13 = vsel %vm968_vm4, %v969_v3, %v970_v4  ;;  %v819_v45 = vsel %vm816_vm8, %v817_v42, %v818_v39  ;;  %v1809_v62 = vld [vmem:[%s2448_s5 + $0x78] sm:$0xff]   ;;  %v1811_v2 = vld [vmem:[%s2448_s5 + $0x70] sm:$0xff]  }
 0x183   : > { %v1471_v9 = vpack.c.bf16 %v403_v7, %v401_v61  ;;  %v1491_v10 = vpack.c.bf16 %v379_v8, %v377_v63  ;;  %v2246_v14 = vpack.c.bf16 %v970_v4, %v971_v13  ;;  %v1558_v48 = vpack.c.bf16 %v818_v39, %v819_v45  ;;  %v1806_v61 = vld [vmem:[%s2446_s3 + $0x200] ss:$8 sps:$4 sm:$0xff]   ;;  %v1810_v63 = vld [vmem:[%s2448_s5 + $0x38] sm:$0xff]   ;;  %v1812_v3 = vld [vmem:[%s2448_s5 + $0x30] sm:$0xff]  }
 0x184   : > { %v1813_v4 = vld [vmem:[%s2448_s5 + $0x68] sm:$0xff]   ;;  %v1816_v7 = vld [vmem:[%s2448_s5 + $0x20] sm:$0xff]   ;;  %v1817_v8 = vld [vmem:[%s2448_s5 + $0x58] sm:$0xff]  }
 0x185   : > { %1472 = vmatmul.mubr.msk.bf16.vlgmr.msra.gmra.mxu0 %vm1470_vm6, %v1471_v9  ;;  %1492 = vmatmul.mubr.msk.bf16.vlgmr.msra.gmra.mxu1 %vm1490_vm7, %v1491_v10  ;;  %v1818_v9 = vld [vmem:[%s2448_s5 + $0x18] sm:$0xff]   ;;  %v1819_v10 = vld [vmem:[%s2448_s5 + $0x50] sm:$0xff]   ;;  %v1822_v13 = vld [vmem:[%s2448_s5 + $0x8] sm:$0xff]  }
 0x186   : > { %770 = vmatpush1.bf16.msra.mxu0 %v1737_v5  ;;  %922 = vmatpush1.bf16.msra.mxu1 %v1740_v6  ;;  %v1814_v5 = vld [vmem:[%s2448_s5 + $0x28] sm:$0xff]   ;;  %v1815_v6 = vld [vmem:[%s2448_s5 + $0x60] sm:$0xff]  }
 0x187   : > { %771 = vmatprep.subr.bf16.mxu0 %v1745_v11  ;;  %923 = vmatprep.subr.bf16.mxu1 %v1748_v12  ;;  %v1820_v11 = vld [vmem:[%s2448_s5 + $0x10] sm:$0xff]   ;;  %v1821_v12 = vld [vmem:[%s2448_s5 + $0x48] sm:$0xff]  }
 0x188   : > { %801 = vmatprep.mubr.bf16.mxu0 %v1957_v44  ;;  %953 = vmatprep.mubr.bf16.mxu1 %v1957_v44 }
 0x18a   : > { %772 = vmatpush1.bf16.msra.mxu0 %v1743_v15  ;;  %924 = vmatpush1.bf16.msra.mxu1 %v1746_v16  ;;  %v1824_v15 = vld [vmem:[%s2448_s5] sm:$0xff]  }
 0x18b   : > { %773 = vmatprep.subr.bf16.mxu0 %v1751_v17  ;;  %925 = vmatprep.subr.bf16.mxu1 %v1754_v18 }
 0x18e   : > { %774 = vmatpush1.bf16.msra.mxu0 %v1749_v19  ;;  %926 = vmatpush1.bf16.msra.mxu1 %v1752_v20 }
 0x18f   : > { %775 = vmatprep.subr.bf16.mxu0 %v1757_v21  ;;  %927 = vmatprep.subr.bf16.mxu1 %v1760_v22 }
 0x192   : > { %776 = vmatpush1.bf16.msra.mxu0 %v1755_v23  ;;  %928 = vmatpush1.bf16.msra.mxu1 %v1758_v24 }
 0x193   : > { %777 = vmatprep.subr.bf16.mxu0 %v1763_v25  ;;  %929 = vmatprep.subr.bf16.mxu1 %v1766_v26 }
 0x196   : > { %778 = vmatpush1.bf16.msra.mxu0 %v1761_v27  ;;  %930 = vmatpush1.bf16.msra.mxu1 %v1764_v28  ;;  %v1122_v27 = vlaneseq }
 0x197   : > { %779 = vmatprep.subr.bf16.mxu0 %v1769_v29  ;;  %931 = vmatprep.subr.bf16.mxu1 %v1772_v30 }
 0x19a   : > { %780 = vmatpush1.bf16.msra.mxu0 %v1767_v31  ;;  %932 = vmatpush1.bf16.msra.mxu1 %v1770_v32  ;;  %v1123_v32 = vshrl.u32 %v1122_v27, 7 }
 0x19b   : > { %781 = vmatprep.subr.bf16.mxu0 %v1775_v33  ;;  %933 = vmatprep.subr.bf16.mxu1 %v1778_v34 }
 0x19c   : > { %v1128_v39 = vsub.s32 1, %v1123_v32  ;;  %v1124_v42 = vsub.s32 0, %v1123_v32 }
 0x19e   : > { %782 = vmatpush1.bf16.msra.mxu0 %v1773_v35  ;;  %934 = vmatpush1.bf16.msra.mxu1 %v1776_v36 }
 0x19f   : > { %783 = vmatprep.subr.bf16.mxu0 %v1781_v37  ;;  %935 = vmatprep.subr.bf16.mxu1 %v1784_v38 }
 0x1a2   : > { %784 = vmatpush1.bf16.msra.mxu0 %v1779_v40  ;;  %936 = vmatpush1.bf16.msra.mxu1 %v1782_v41 }
 0x1a3   : > { %1073 = vmatprep.subr.bf16.mxu0 %v1787_v43  ;;  %1616 = vmatprep.subr.bf16.mxu1 %v1809_v62 }
 0x1a5   : > { %802 = vmatmul.mubr.bf16.vlgmr.msra.gmra.mxu0 %v671_v47  ;;  %1559 = vmatmul.mubr.msk.bf16.vlgmr.msra.gmra.mxu1 %vm1557_vm9, %v1558_v48 }
 0x1a6   : > { %1074 = vmatpush1.bf16.msra.mxu0 %v1785_v46  ;;  %1105 = vmatprep.mubr.bf16.mxu0 %v1957_v44  ;;  %v1794_v44 = vld [vmem:[%s2446_s3 + $0x240] ss:$8 sps:$4 sm:$0xff]   ;;  %v1120_v46 = vld [vmem:[#allocation6] sm:$0x3] }
 0x1a7   : > { %1075 = vmatprep.subr.bf16.mxu0 %v1790_v49  ;;  %1617 = vmatpush3.bf16.msra.mxu1 %v1810_v63 }
 0x1a8   : > { %1618 = vmatprep.subr.bf16.mxu1 %v1811_v2 }
 0x1aa   : > { %1076 = vmatpush1.bf16.msra.mxu0 %v1788_v50 }
 0x1ab   : > { %1077 = vmatprep.subr.bf16.mxu0 %v1793_v51  ;;  %1619 = vmatpush3.bf16.msra.mxu1 %v1812_v3  ;;  %v1129_v51 = vrot.slane %v1120_v46, %v1128_v39 }
 0x1ac   : > { %1620 = vmatprep.subr.bf16.mxu1 %v1813_v4 }
 0x1ae   : > { %1078 = vmatpush1.bf16.msra.mxu0 %v1791_v52 }
 0x1af   : > { %1079 = vmatprep.subr.bf16.mxu0 %v1796_v53  ;;  %1621 = vmatpush3.bf16.msra.mxu1 %v1814_v5 }
 0x1b0   : > { %1622 = vmatprep.subr.bf16.mxu1 %v1815_v6 }
 0x1b2   : > { %1080 = vmatpush1.bf16.msra.mxu0 %v1794_v44  ;;  %v1125_v44 = vrot.slane %v1120_v46, %v1124_v42 }
 0x1b3   : > { %1081 = vmatprep.subr.bf16.mxu0 %v1799_v54  ;;  %1623 = vmatpush3.bf16.msra.mxu1 %v1816_v7 }
 0x1b4   : > { %1624 = vmatprep.subr.bf16.mxu1 %v1817_v8  ;;  %v1595_v8 = vld [vmem:[#allocation7] ss:$0 sm:$0xff] }
 0x1b6   : > { %1082 = vmatpush1.bf16.msra.mxu0 %v1797_v55 }
 0x1b7   : > { %1083 = vmatprep.subr.bf16.mxu0 %v1802_v56  ;;  %1625 = vmatpush3.bf16.msra.mxu1 %v1818_v9 }
 0x1b8   : > { %1626 = vmatprep.subr.bf16.mxu1 %v1819_v10 }
 0x1ba   : > { %1084 = vmatpush1.bf16.msra.mxu0 %v1800_v57 }
 0x1bb   : > { %1085 = vmatprep.subr.bf16.mxu0 %v1805_v58  ;;  %1627 = vmatpush3.bf16.msra.mxu1 %v1820_v11 }
 0x1bc   : > { %1628 = vmatprep.subr.bf16.mxu1 %v1821_v12 }
 0x1be   : > { %1086 = vmatpush1.bf16.msra.mxu0 %v1803_v59 }
 0x1bf   : > { %1087 = vmatprep.subr.bf16.mxu0 %v1808_v60  ;;  %1629 = vmatpush3.bf16.msra.mxu1 %v1822_v13 }
 0x1c2   : > { %1088 = vmatpush1.bf16.msra.mxu0 %v1806_v61 }
 0x1c5   : > { %1594 = vmatmul.mubr.msk.bf16.vlgmr.msra.gmra.mxu0 %vm1592_vm10, %v2246_v14  ;;  %v1823_v14 = vld [vmem:[%s2448_s5 + $0x40] sm:$0xff]  }
 0x1c6   : > { %1630 = vmatprep.subr.bf16.mxu1 %v1823_v14 }
 0x1c7   : > { %1631 = vmatpush3.bf16.msra.mxu1 %v1824_v15 }
 0x245   : > { %v539_v16 = vpop.f32.mrf.mxu0  ;;  %v662_v18 = vpop.f32.mrf.mxu1 }
 0x246   : > { %v663_v30 = vadd.f32 %v662_v18, %v539_v16 }
 0x247   : > { %v541_v17 = vpop.f32.mrf.mxu0  ;;  %v664_v20 = vpop.f32.mrf.mxu1 }
 0x248   : > { %v665_v29 = vadd.f32 %v664_v20, %v541_v17 }
 0x249   : > { %v543_v19 = vpop.f32.mrf.mxu0  ;;  %v666_v22 = vpop.f32.mrf.mxu1 }
 0x24a   : > { %v667_v33 = vadd.f32 %v666_v22, %v543_v19 }
 0x24b   : > { %v545_v21 = vpop.f32.mrf.mxu0  ;;  %v668_v24 = vpop.f32.mrf.mxu1 }
 0x24c   : > { %v669_v37 = vadd.f32 %v668_v24, %v545_v21 }
 0x265   : > { %v803_v23 = vpop.f32.mrf.mxu0  ;;  %v955_v26 = vpop.f32.mrf.mxu1 }
 0x266   : > { %v812_v35 = vadd.f32 %v803_v23, %v663_v30 }
 0x267   : > { %v805_v25 = vpop.f32.mrf.mxu0  ;;  %v957_v31 = vpop.f32.mrf.mxu1 }
 0x268   : > { %v813_v34 = vadd.f32 %v805_v25, %v665_v29  ;;  %v964_v47 = vadd.f32 %v955_v26, %v812_v35 }
 0x269   : > { %v807_v28 = vpop.f32.mrf.mxu0  ;;  %v959_v40 = vpop.f32.mrf.mxu1 }
 0x26a   : > { %v814_v38 = vadd.f32 %v807_v28, %v667_v33  ;;  %v965_v43 = vadd.f32 %v957_v31, %v813_v34 }
 0x26b   : > { %v809_v36 = vpop.f32.mrf.mxu0  ;;  %v961_v52 = vpop.f32.mrf.mxu1 }
 0x26c   : > { %v815_v45 = vadd.f32 %v809_v36, %v669_v37  ;;  %v966_v49 = vadd.f32 %v959_v40, %v814_v38 }
 0x26e   : > { %v967_v55 = vadd.f32 %v961_v52, %v815_v45 }
 0x285   : > { %v1107_v41 = vpop.f32.mrf.mxu0 }
 0x286   : > { %v1116_v53 = vadd.f32 %v1107_v41, %v964_v47 }
 0x287   : > { %v1109_v48 = vpop.f32.mrf.mxu0 }
 0x288   : > { %v1117_v50 = vadd.f32 %v1109_v48, %v965_v43  ;;  %v1132_v61 = vadd.f32 %v1125_v44, %v1116_v53 }
 0x289   : > { %v1111_v54 = vpop.f32.mrf.mxu0 }
 0x28a   : > { %v1118_v56 = vadd.f32 %v1111_v54, %v966_v49  ;;  %v1133_v58 = vadd.f32 %v1129_v51, %v1117_v50  ;;  %v1136_v4 = vmax.f32 %v1132_v61, 0.0 }
 0x28b   : > { %v1113_v57 = vpop.f32.mrf.mxu0 }
 0x28c   : > { %v1134_v59 = vadd.f32 %v1125_v44, %v1118_v56  ;;  %v1119_v60 = vadd.f32 %v1113_v57, %v967_v55  ;;  %v1137_v2 = vmax.f32 %v1133_v58, 0.0 }
 0x28e   : > { %v1135_v62 = vadd.f32 %v1129_v51, %v1119_v60  ;;  %v1138_v63 = vmax.f32 %v1134_v59, 0.0 }
 0x290   : > { %v1139_v3 = vmax.f32 %v1135_v62, 0.0  ;;  %v1140_v6 = vpack.c.bf16 %v1138_v63, %v1136_v4 }
 0x292   : > { %v1141_v5 = vpack.c.bf16 %v1139_v3, %v1137_v2 }
 0x294   : > { %1309 = vmatprep.mubr.bf16.mxu1 %v1141_v5 }
 0x295   : > { %1310 = vmatmul.mubr.bf16.vlgmr.msra.gmra.mxu1 %v1140_v6 }
 0x355   : > { %v1632_v7 = vpop.f32.mrf.mxu1 }
 0x357   : > { %v1633_v9 = vpop.f32.mrf.mxu1 }
 0x358   : > { %v1634_v10 = vadd.f32 %v1633_v9, %v1632_v7 }
 0x359   : > { %v1635_v11 = vpop.f32.mrf.mxu1 }
 0x35a   : > { %v1312_v12 = vadd.f32 %v1634_v10, %v1595_v8 }
 0x35b   : > { %v1636_v13 = vpop.f32.mrf.mxu1 }
 0x35c   : > { %v1318_v14 = vadd.f32 %v1312_v12, %v2095_v0  ;;  %v1637_v15 = vadd.f32 %v1636_v13, %v1635_v11 }
 0x35e   : > { %1320 = vst [vmem:[%s329_s27] sm:$0xff] %v1318_v14  ;;  %v1315_v16 = vadd.f32 %v1637_v15, %v1595_v8 }
 0x360   : > { %v1319_v17 = vadd.f32 %v1315_v16, %v2097_v1 }
 0x362   : > { %1321 = vst [vmem:[%s329_s27 + $0x8] sm:$0xff] %v1319_v17 }
 0x363 PF: > { %s20_s24 = sadd.s32 1, %s1951_s24  }
 0x364   : > { %p17_p4 = scmp.ge.s32.totalorder %s20_s24, 4  }
 0x366   :  { %19 = sbr.rel (!%p17_p4) target bundleno = 3 (0x3), region = 99 }
 0x36b   :  { %1343 = vsyncpa [#allocation3], 1 }
 0x36c   :  { %1345 = vsyncpa [#allocation3 + $0x1], 1 }
 0x36d   :  { %1346 = vsyncpa [#allocation5], 1 }
 0x36e   :  { %1347 = vsyncpa [#allocation8], 1 }

// kernel: decoder_forward.9
= control target key start
LH: loop header
LB: loop body
LE: loop exit
PB: predicated region body
PF: predicated region fallthrough
CT: control target
= control target key end

     0   :  { %17 = vsyncpa [#allocation4], 0  ;;  %s3018_s0 = inlined_call_operand.vmem [shape: f32[2,16,128], index: 0, kind: input, shape index: {}, may-alias: {0,12}]   ;;  %s3019_s1 = inlined_call_operand.vmem [shape: f32[2,24,128], index: 1, kind: input, shape index: {}]   ;;  %s3020_s2 = inlined_call_operand.hbm [shape: f32[1,128], index: 2, kind: input, shape index: {}]   ;;  %s3021_s3 = inlined_call_operand.hbm [shape: f32[1,128], index: 3, kind: input, shape index: {}]   ;;  %s3022_s4 = inlined_call_operand.hbm [shape: bf16[128,128], index: 4, kind: input, shape index: {}]   ;;  %s3023_s5 = inlined_call_operand.hbm [shape: f32[1,128], index: 5, kind: input, shape index: {}]   ;;  %s3024_s6 = inlined_call_operand.hbm [shape: bf16[128,128], index: 6, kind: input, shape index: {}]   ;;  %s3025_s7 = inlined_call_operand.hbm [shape: f32[1,128], index: 7, kind: input, shape index: {}]   ;;  %s3026_s8 = inlined_call_operand.hbm [shape: bf16[128,128], index: 8, kind: input, shape index: {}]   ;;  %s3027_s9 = inlined_call_operand.hbm [shape: f32[1,128], index: 9, kind: input, shape index: {}]   ;;  %s3028_s10 = inlined_call_operand.hbm [shape: bf16[128,128], index: 10, kind: input, shape index: {}]   ;;  %s3029_s11 = inlined_call_operand.hbm [shape: f32[1,128], index: 11, kind: input, shape index: {}]   ;;  %s3030_s12 = inlined_call_operand.vmem [shape: f32[2,16,128], index: 12, kind: output, shape index: {}, may-alias: {0,12}]  }
   0x1   :  { %18 = vsyncpa [#allocation6], 0 }
   0x2   :  { %19 = vsyncpa [#allocation9], 0 }
   0x3   :  { %20 = vsyncpa [#allocation12], 0 }
   0x4   :  { %21 = vsyncpa [#allocation15], 0 }
   0x5   :  { %22 = vsyncpa [#allocation18], 0  ;;  %s2660_s21 = smov 0  }
   0x6 LB: > { %s2578_s22 = smov [#allocation5]   ;;  %s2666_s24 = sadd.s32 4294967295, %s2576_s21   ;;  %s2576_s21 = sphi %s2660_s21, %s28_s21  }
   0x7   : > { %s345_s23 = sshll.u32 %s2578_s22, 4  ;;  %p1817_p0 = scmp.ge.s32.totalorder %s2576_s21, 1  ;;  %s346_s23 = int_to_ptr.vmem [resolvable:$true] %s345_s23 }
   0x8   : > { %p321_p1 = scmp.lt.s32.totalorder %s2576_s21, 3  ;;  %p3031_p2 = scmp.eq.s32.totalorder %s2666_s24, 0 }
   0x9   : > { %s2579_s26 = smov [#allocation8]   ;;  %s2580_s28 = smov [#allocation11]  }
   0xa   : > { %p2671_p3 = pnand %p1817_p0, %p321_p1  ;;  %s369_s27 = sshll.u32 %s2579_s26, 4  ;;  %s2677_s27 = int_to_ptr.vmem [resolvable:$true] %s369_s27 }
   0xb   : > { %s393_s29 = sshll.u32 %s2580_s28, 4  ;;  %s2581_s13 = smov [#allocation14]   ;;  %s2685_s29 = int_to_ptr.vmem [resolvable:$true] %s393_s29 }
   0xc   : > { %s3033_s25 = scalar_select %p2671_p3, 1, 0 }
   0xd   : > { %p2142_p4 = pneg %p2671_p3  ;;  %s417_s14 = sshll.u32 %s2581_s13, 4  ;;  %s2687_s14 = int_to_ptr.vmem [resolvable:$true] %s417_s14 }
   0xe   : > { %s2297_s16 = scalar_lea.vmem %s346_s23, 16  ;;  %s2304_s17 = scalar_lea.vmem %s346_s23, 32 }
   0xf   : > { %p2681_p5 = pnand %p3031_p2, %p2142_p4  ;;  %p2298_p7 = scmp.ne.s32.totalorder %s346_s23, %s2297_s16 }
  0x10   : > { %p2305_p10 = scmp.lt.s32.totalorder %s346_s23, %s346_s23  ;;  %p2306_p11 = scmp.lt.s32.totalorder %s2304_s17, %s2297_s16 }
  0x11   : > { %p2691_p6 = pneg %p2681_p5 }
  0x12   : > { %p2307_p12 = por %p2306_p11, %p2305_p10 }
  0x13   : > { %p2300_p8 = pnand %p2298_p7, %p2691_p6 }
  0x15   : > { %p2301_p9 = pneg %p2300_p8 }
  0x17   : > { %p2308_p13 = pnand %p2307_p12, %p2301_p9 }
  0x19   : > { %2311 = shalt.err (!%p2308_p13)
}
  0x1a   : > { %2148 = dma.hbm_to_vmem [thread:$0]  (!%p2681_p5), %s3021_s3, 16, %s346_s23, [#allocation6]  }
  0x1b   : > { %s2323_s20 = scalar_lea.vmem %s2677_s27, 16  ;;  %s2330_s22 = scalar_lea.vmem %s2677_s27, 32 }
  0x1c   : > { %p2324_p0 = scmp.ne.s32.totalorder %s2677_s27, %s2323_s20  ;;  %p2331_p7 = scmp.lt.s32.totalorder %s2677_s27, %s2677_s27 }
  0x1d   : > { %p2332_p8 = scmp.lt.s32.totalorder %s2330_s22, %s2323_s20 }
  0x1e   : > { %p2326_p1 = pnand %p2324_p0, %p2691_p6 }
  0x1f   : > { %p2333_p9 = por %p2332_p8, %p2331_p7 }
  0x20   : > { %p2327_p4 = pneg %p2326_p1 }
  0x22   : > { %p2334_p10 = pnand %p2333_p9, %p2327_p4 }
  0x24   : > { %2337 = shalt.err (!%p2334_p10)
}
  0x25   : > { %2154 = dma.hbm_to_vmem [thread:$0]  (!%p2681_p5), %s3023_s5, 16, %s2677_s27, [#allocation9]  }
  0x26   : > { %s2349_s23 = scalar_lea.vmem %s2685_s29, 16  ;;  %s2356_s13 = scalar_lea.vmem %s2685_s29, 32 }
  0x27   : > { %p2350_p11 = scmp.ne.s32.totalorder %s2685_s29, %s2349_s23  ;;  %p2357_p0 = scmp.lt.s32.totalorder %s2685_s29, %s2685_s29 }
  0x28   : > { %p2358_p1 = scmp.lt.s32.totalorder %s2356_s13, %s2349_s23 }
  0x29   : > { %p2352_p12 = pnand %p2350_p11, %p2691_p6 }
  0x2a   : > { %p2359_p4 = por %p2358_p1, %p2357_p0 }
  0x2b   : > { %p2353_p13 = pneg %p2352_p12 }
  0x2d   : > { %p2360_p7 = pnand %p2359_p4, %p2353_p13 }
  0x2f   : > { %2363 = shalt.err (!%p2360_p7)
}
  0x30   : > { %2160 = dma.hbm_to_vmem [thread:$0]  (!%p2681_p5), %s3025_s7, 16, %s2685_s29, [#allocation12]  }
  0x31   : > { %s2375_s27 = scalar_lea.vmem %s2687_s14, 16  ;;  %s2382_s18 = scalar_lea.vmem %s2687_s14, 32 }
  0x32   : > { %p2376_p8 = scmp.ne.s32.totalorder %s2687_s14, %s2375_s27  ;;  %p2383_p11 = scmp.lt.s32.totalorder %s2687_s14, %s2687_s14 }
  0x33   : > { %p2384_p12 = scmp.lt.s32.totalorder %s2382_s18, %s2375_s27 }
  0x34   : > { %p2378_p9 = pnand %p2376_p8, %p2691_p6 }
  0x35   : > { %p2385_p13 = por %p2384_p12, %p2383_p11 }
  0x36   : > { %p2379_p10 = pneg %p2378_p9 }
  0x38   : > { %p2386_p0 = pnand %p2385_p13, %p2379_p10 }
  0x3a   : > { %2389 = shalt.err (!%p2386_p0)
}
  0x3b   : > { %2166 = dma.hbm_to_vmem [thread:$0]  (!%p2681_p5), %s3027_s9, 16, %s2687_s14, [#allocation15]  }
  0x3c   : > { %s2582_s29 = smov [#allocation3]   ;;  %s2583_s26 = smov [#allocation7]  }
  0x3d   : > { %s334_s22 = sshll.u32 %s2582_s29, 4  ;;  %s355_s28 = sshll.u32 %s2583_s26, 4  ;;  %s335_s22 = int_to_ptr.vmem [resolvable:$true] %s334_s22  ;;  %s356_s28 = int_to_ptr.vmem [resolvable:$true] %s355_s28 }
  0x3e   : > { %s2401_s23 = scalar_lea.vmem %s335_s22, 16  ;;  %s2408_s13 = scalar_lea.vmem %s335_s22, 32 }
  0x3f   : > { %p2402_p1 = scmp.ne.s32.totalorder %s335_s22, %s2401_s23  ;;  %p2409_p8 = scmp.lt.s32.totalorder %s335_s22, %s335_s22 }
  0x40   : > { %p2410_p9 = scmp.lt.s32.totalorder %s2408_s13, %s2401_s23 }
  0x41   : > { %p2404_p4 = pnand %p2402_p1, %p2691_p6 }
  0x42   : > { %p2411_p10 = por %p2410_p9, %p2409_p8 }
  0x43   : > { %p2405_p7 = pneg %p2404_p4 }
  0x45   : > { %p2412_p11 = pnand %p2411_p10, %p2405_p7 }
  0x47   : > { %2415 = shalt.err (!%p2412_p11)
}
  0x48   : > { %2145 = dma.hbm_to_vmem [thread:$0]  (!%p2681_p5), %s3020_s2, 16, %s335_s22, [#allocation4]  }
  0x49   : > { %s2427_s17 = scalar_lea.vmem %s356_s28, 1024  ;;  %p2435_p1 = scmp.lt.s32.totalorder %s356_s28, %s356_s28 }
  0x4a   : > { %p2428_p12 = scmp.ne.s32.totalorder %s356_s28, %s2427_s17  ;;  %p2436_p4 = scmp.lt.s32.totalorder %s2427_s17, %s2427_s17 }
  0x4c   : > { %p2430_p13 = pnand %p2428_p12, %p2691_p6  ;;  %p2437_p2 = por %p2436_p4, %p2435_p1 }
  0x4e   : > { %p2431_p0 = pneg %p2430_p13 }
  0x50   : > { %p2438_p3 = pnand %p2437_p2, %p2431_p0 }
  0x52   : > { %2441 = shalt.err (!%p2438_p3)
}
  0x53   : > { %s2584_s27 = smov 64   ;;  %s2585_s18 = smov 4  }
  0x54   : > { %2151 = dma.hbm_to_vmem [thread:$0]  (!%p2681_p5), %s3022_s4, 1024, %s356_s28, [#allocation6], %s2584_s27, %s2584_s27, %s2585_s18  }
  0x55   : > { %s2586_s29 = smov [#allocation10]   ;;  %s2587_s26 = smov [#allocation13]  }
  0x56   : > { %s379_s22 = sshll.u32 %s2586_s29, 4  ;;  %s403_s23 = sshll.u32 %s2587_s26, 4  ;;  %s380_s22 = int_to_ptr.vmem [resolvable:$true] %s379_s22  ;;  %s404_s23 = int_to_ptr.vmem [resolvable:$true] %s403_s23 }
  0x57   : > { %s2453_s13 = scalar_lea.vmem %s380_s22, 1024  ;;  %p2461_p8 = scmp.lt.s32.totalorder %s380_s22, %s380_s22 }
  0x58   : > { %p2454_p2 = scmp.ne.s32.totalorder %s380_s22, %s2453_s13  ;;  %p2462_p9 = scmp.lt.s32.totalorder %s2453_s13, %s2453_s13 }
  0x5a   : > { %p2456_p3 = pnand %p2454_p2, %p2691_p6  ;;  %p2463_p10 = por %p2462_p9, %p2461_p8 }
  0x5c   : > { %p2457_p7 = pneg %p2456_p3 }
  0x5e   : > { %p2464_p11 = pnand %p2463_p10, %p2457_p7 }
  0x60   : > { %2467 = shalt.err (!%p2464_p11)
}
  0x61   : > { %2157 = dma.hbm_to_vmem [thread:$0]  (!%p2681_p5), %s3024_s6, 1024, %s380_s22, [#allocation9], %s2584_s27, %s2584_s27, %s2585_s18  }
  0x62   : > { %s2479_s14 = scalar_lea.vmem %s404_s23, 1024  ;;  %p2487_p1 = scmp.lt.s32.totalorder %s404_s23, %s404_s23 }
  0x63   : > { %p2480_p12 = scmp.ne.s32.totalorder %s404_s23, %s2479_s14  ;;  %p2488_p4 = scmp.lt.s32.totalorder %s2479_s14, %s2479_s14 }
  0x65   : > { %p2482_p13 = pnand %p2480_p12, %p2691_p6  ;;  %p2489_p2 = por %p2488_p4, %p2487_p1 }
  0x67   : > { %p2483_p0 = pneg %p2482_p13 }
  0x69   : > { %p2490_p3 = pnand %p2489_p2, %p2483_p0 }
  0x6b   : > { %2493 = shalt.err (!%p2490_p3)
}
  0x6c   : > { %2163 = dma.hbm_to_vmem [thread:$0]  (!%p2681_p5), %s3026_s8, 1024, %s404_s23, [#allocation12], %s2584_s27, %s2584_s27, %s2585_s18  }
  0x6d   : > { %s2588_s20 = smov [#allocation16]   ;;  %s2589_s22 = smov [#allocation17]  }
  0x6e   : > { %s427_s29 = sshll.u32 %s2588_s20, 4  ;;  %s441_s26 = sshll.u32 %s2589_s22, 4  ;;  %s428_s29 = int_to_ptr.vmem [resolvable:$true] %s427_s29  ;;  %s442_s26 = int_to_ptr.vmem [resolvable:$true] %s441_s26 }
  0x6f   : > { %s2505_s13 = scalar_lea.vmem %s428_s29, 1024  ;;  %p2513_p10 = scmp.lt.s32.totalorder %s428_s29, %s428_s29 }
  0x70   : > { %p2506_p7 = scmp.ne.s32.totalorder %s428_s29, %s2505_s13  ;;  %p2514_p11 = scmp.lt.s32.totalorder %s2505_s13, %s2505_s13 }
  0x72   : > { %p2508_p8 = pnand %p2506_p7, %p2691_p6  ;;  %p2515_p12 = por %p2514_p11, %p2513_p10 }
  0x74   : > { %p2509_p9 = pneg %p2508_p8 }
  0x76   : > { %p2516_p13 = pnand %p2515_p12, %p2509_p9 }
  0x78   : > { %2519 = shalt.err (!%p2516_p13)
}
  0x79   : > { %2169 = dma.hbm_to_vmem [thread:$0]  (!%p2681_p5), %s3028_s10, 1024, %s428_s29, [#allocation15], %s2584_s27, %s2584_s27, %s2585_s18  }
  0x7a   : > { %s2531_s16 = scalar_lea.vmem %s442_s26, 16  ;;  %s2538_s14 = scalar_lea.vmem %s442_s26, 32 }
  0x7b   : > { %p2532_p0 = scmp.ne.s32.totalorder %s442_s26, %s2531_s16  ;;  %p2539_p2 = scmp.lt.s32.totalorder %s442_s26, %s442_s26 }
  0x7c   : > { %p2540_p3 = scmp.lt.s32.totalorder %s2538_s14, %s2531_s16 }
  0x7d   : > { %p2534_p1 = pnand %p2532_p0, %p2691_p6 }
  0x7e   : > { %p2541_p7 = por %p2540_p3, %p2539_p2 }
  0x7f   : > { %p2535_p4 = pneg %p2534_p1 }
  0x81   : > { %p2542_p8 = pnand %p2541_p7, %p2535_p4 }
  0x83   : > { %2545 = shalt.err (!%p2542_p8)
}
  0x84   : > { %2172 = dma.hbm_to_vmem [thread:$0]  (!%p2681_p5), %s3029_s11, 16, %s442_s26, [#allocation18]  }
  0x85   : > { %p3036_p9 = scmp.ne.s32.totalorder %s3033_s25, 0 }
  0x86   : > { %p3037_p10 = scmp.eq.s32.totalorder (!%p3036_p9), %s2666_s24, 0 }
  0x87   : > { %470 = sbr.rel (%p3036_p9) target bundleno = 2320 (0x910), region = 68 }
  0x8c   : > { %2551 = dma.done.wait (%p3037_p10), [#allocation4], 16   ;;  %p3038_p6 = pmov %p3037_p10 }
  0x8e   : > { %2553 = vsyncadd (%p3038_p6), [#allocation4], 4294967280  ;;  %p3039_p11 = pmov %p3038_p6 }
  0x8f   : > { %p3040_p12 = pmov %p3038_p6 }
  0x90   : > { %2555 = dma.done.wait (%p3039_p11), [#allocation6], 1040  }
  0x91   : > { %2557 = vsyncadd (%p3040_p12), [#allocation6], 4294966256  ;;  %p3041_p13 = pmov %p3038_p6 }
  0x92   : > { %p3042_p5 = pmov %p3038_p6 }
  0x93   : > { %2559 = dma.done.wait (%p3041_p13), [#allocation9], 1040  }
  0x94   : > { %2561 = vsyncadd (%p3042_p5), [#allocation9], 4294966256  ;;  %p3043_p0 = pmov %p3042_p5 }
  0x96   : > { %2563 = dma.done.wait (%p3043_p0), [#allocation12], 1040   ;;  %p3044_p1 = pmov %p3043_p0 }
  0x97   : > { %p3045_p4 = pmov %p3043_p0 }
  0x98   : > { %2565 = vsyncadd (%p3044_p1), [#allocation12], 4294966256 }
  0x99   : > { %2567 = dma.done.wait (%p3045_p4), [#allocation15], 1040   ;;  %p3046_p2 = pmov %p3043_p0 }
  0x9a   : > { %p3047_p3 = pmov %p3043_p0 }
  0x9b   : > { %2569 = vsyncadd (%p3046_p2), [#allocation15], 4294966256 }
  0x9c   : > { %2571 = dma.done.wait (%p3047_p3), [#allocation18], 16   ;;  %p3048_p7 = pmov %p3043_p0 }
  0x9d   : > { %p553_p8 = scmp.lt.s32.totalorder %s2666_s24, 1  ;;  %v2218_v2 = vld [vmem:[#allocation10 + $0x38] sm:$0xff]   ;;  %v2219_v3 = vld [vmem:[#allocation10 + $0x30] sm:$0xff]   ;;  %v2590_v4 = vmov 0.0   ;;  %v2220_v6 = vld [vmem:[#allocation10 + $0x28] sm:$0xff]   ;;  %vm2591_vm0 = vmmov 0  }
  0x9e   : > { %2573 = vsyncadd (%p3048_p7), [#allocation18], 4294967280  ;;  %1957 = vmatprep.subr.bf16.mxu0 %v2590_v4  ;;  %v2223_v5 = vld [vmem:[#allocation7 + $0x38] sm:$0xff]   ;;  %1977 = vmatprep.subr.bf16.mxu1 %v2218_v2  ;;  %v2221_v7 = vld [vmem:[#allocation10 + $0x20] sm:$0xff]   ;;  %vm975_vm1 = vcmask 261120   ;;  %vm1026_vm2 = vcmask 195584  }
  0x9f   : > { %s3050_s24 = smov (!%p553_p8, %s2666_s24), 1  ;;  %1978 = vmatpush3.bf16.msra.mxu1 %v2218_v2  ;;  %1958 = vmatpush3.bf16.msra.mxu0 %v2223_v5  ;;  %v2222_v8 = vld [vmem:[#allocation10 + $0x18] sm:$0xff]   ;;  %v2224_v17 = vld [vmem:[#allocation10 + $0x10] sm:$0xff]   ;;  %v2226_v19 = vld [vmem:[#allocation10 + $0x8] sm:$0xff]   ;;  %vm1049_vm3 = vcmask 1043456   ;;  %s2592_s26 = smov 96  }
  0xa0   : > { %s1893_s25 = sshll.u32 %s3050_s24, 4  ;;  %1979 = vmatprep.subr.bf16.mxu1 %v2219_v3  ;;  %1959 = vmatprep.subr.bf16.mxu0 %v2590_v4  ;;  %v2225_v18 = vld [vmem:[#allocation7 + $0x30] sm:$0xff]   ;;  %v2227_v20 = vld [vmem:[#allocation7 + $0x28] sm:$0xff]   ;;  %s2101_s18 = smul.u32 24, %s3050_s24  ;;  %v2229_v22 = vld [vmem:[#allocation7 + $0x20] sm:$0xff]   ;;  %vm1244_vm4 = vcmask 523520  }
  0xa1   : > { %s557_s27 = scalar_lea.vmem %s3018_s0, %s1893_s25  ;;  %v2228_v21 = vld [vmem:[#allocation10] sm:$0xff]   ;;  %1973 = vmatprep.mubr.msk.bf16.mxu0 %vm2591_vm0, %v2590_v4  ;;  %v2230_v28 = vld [vmem:[#allocation7 + $0x18] sm:$0xff]   ;;  %v2231_v29 = vld [vmem:[#allocation7 + $0x10] sm:$0xff]   ;;  %s2593_s13 = smov 64   ;;  %vm1386_vm5 = vcmask 785920   ;;  %vm1528_vm6 = vcmask 1048320  }
  0xa2   : > { %v2831_v0 = vld [vmem:[%s557_s27] sm:$0xff]  ;;  %v2833_v1 = vld [vmem:[%s557_s27 + $0x8] sm:$0xff]  ;;  %s562_s22 = scalar_lea.vmem %s3019_s1, %s2101_s18  ;;  %v2233_v31 = vld [vmem:[#allocation7] sm:$0xff]   ;;  %s2594_s23 = smov 32  }
  0xa3   : > { %573 = vadd.xlane.f32.xlu0 %v2831_v0  ;;  %1980 = vmatpush3.bf16.msra.mxu1 %v2219_v3  ;;  %v613_v23 = vld [vmem:[%s562_s22] sm:$0xff]  ;;  %v614_v24 = vld [vmem:[%s562_s22 + $0x8] sm:$0xff]  ;;  %v615_v26 = vld [vmem:[%s562_s22 + $0x10] sm:$0xff]  ;;  %s567_s14 = scalar_lea.vmem %s3030_s12, %s1893_s25 }
  0xa4   : > { %1981 = vmatprep.subr.bf16.mxu1 %v2220_v6  ;;  %1960 = vmatpush3.bf16.msra.mxu0 %v2225_v18  ;;  %v616_v25 = vpack.c.bf16 %v614_v24, %v613_v23  ;;  %v2849_v27 = vpack.c.bf16 %v615_v26, %v615_v26  ;;  %v2232_v30 = vld [vmem:[#allocation7 + $0x8] sm:$0xff]   ;;  %v1845_v40 = vld [vmem:[#allocation3] ss:$0 sm:$0xff]  ;;  %v1846_v44 = vld [vmem:[#allocation5] ss:$0 sm:$0xff] }
  0xa5   : > { %1961 = vmatprep.subr.bf16.mxu0 %v2590_v4  ;;  %v1856_v49 = vld [vmem:[#allocation11] ss:$0 sm:$0xff]  ;;  %v2235_v62 = vld [vmem:[#allocation13 + $0x30] sm:$0xff]   ;;  %v2236_v63 = vld [vmem:[#allocation13 + $0x28] sm:$0xff]  }
  0xa6   : > { %1993 = vmatprep.mubr.bf16.mxu1 %v616_v25  ;;  %v2234_v61 = vld [vmem:[#allocation13 + $0x38] sm:$0xff]   ;;  %v2237_v2 = vld [vmem:[#allocation13 + $0x20] sm:$0xff]   ;;  %v2239_v5 = vld [vmem:[#allocation13 + $0x10] sm:$0xff]  }
  0xa7   : > { %575 = vadd.xlane.f32.xlu0 %v2833_v1  ;;  %1982 = vmatpush3.bf16.msra.mxu1 %v2220_v6  ;;  %v2238_v3 = vld [vmem:[#allocation13 + $0x18] sm:$0xff]   ;;  %v2240_v6 = vld [vmem:[#allocation13 + $0x8] sm:$0xff]  }
  0xa8   : > { %1983 = vmatprep.subr.bf16.mxu1 %v2221_v7  ;;  %1962 = vmatpush3.bf16.msra.mxu0 %v2227_v20 }
  0xa9   : > { %1963 = vmatprep.subr.bf16.mxu0 %v2590_v4 }
  0xab   : > { %1984 = vmatpush3.bf16.msra.mxu1 %v2221_v7  ;;  %v2241_v7 = vld [vmem:[#allocation13] sm:$0xff]  }
  0xac   : > { %1985 = vmatprep.subr.bf16.mxu1 %v2222_v8  ;;  %1964 = vmatpush3.bf16.msra.mxu0 %v2229_v22 }
  0xad   : > { %1965 = vmatprep.subr.bf16.mxu0 %v2590_v4 }
  0xaf   : > { %1986 = vmatpush3.bf16.msra.mxu1 %v2222_v8  ;;  %v1847_v8 = vld [vmem:[#allocation8] ss:$0 sm:$0xff] }
  0xb0   : > { %1987 = vmatprep.subr.bf16.mxu1 %v2224_v17  ;;  %1966 = vmatpush3.bf16.msra.mxu0 %v2230_v28 }
  0xb1   : > { %1967 = vmatprep.subr.bf16.mxu0 %v2590_v4 }
  0xb3   : > { %1988 = vmatpush3.bf16.msra.mxu1 %v2224_v17 }
  0xb4   : > { %1989 = vmatprep.subr.bf16.mxu1 %v2226_v19  ;;  %1968 = vmatpush3.bf16.msra.mxu0 %v2231_v29 }
  0xb5   : > { %1969 = vmatprep.subr.bf16.mxu0 %v2590_v4 }
  0xb7   : > { %1990 = vmatpush3.bf16.msra.mxu1 %v2226_v19 }
  0xb8   : > { %1991 = vmatprep.subr.bf16.mxu1 %v2228_v21  ;;  %1970 = vmatpush3.bf16.msra.mxu0 %v2232_v30 }
  0xb9   : > { %1971 = vmatprep.subr.bf16.mxu0 %v2590_v4 }
  0xbb   : > { %1992 = vmatpush3.bf16.msra.mxu1 %v2228_v21 }
  0xbc   : > { %2017 = vmatprep.subr.bf16.mxu1 %v2590_v4  ;;  %1972 = vmatpush3.bf16.msra.mxu0 %v2233_v31 }
  0xbd   : > { %1997 = vmatprep.subr.bf16.mxu0 %v2234_v61 }
  0xbe   : > { %1994 = vmatmul.mubr.bf16.vlgmr.msra.gmra.mxu1 %v2849_v27 }
  0xbf   : > { %2021 = vmatprep.mubr.msk.bf16.mxu1 %vm2591_vm0, %v2590_v4 }
 0x12c   : > { %v574_v9 = vpop.xlane.xlu0 %573 }
 0x12d   : > { %v578_v10 = vmul.f32 0.0078125, %v574_v9 }
 0x12f   : > { %v580_v11 = vsub.f32 %v2831_v0, %v578_v10 }
 0x130   : > { %v576_v12 = vpop.xlane.xlu0 %575 }
 0x131   : > { %v579_v13 = vmul.f32 0.0078125, %v576_v12  ;;  %v582_v14 = vmul.f32 %v580_v11, %v580_v11 }
 0x133   : > { %v581_v15 = vsub.f32 %v2833_v1, %v579_v13  ;;  %584 = vadd.xlane.f32.xlu1 %v582_v14 }
 0x135   : > { %v583_v16 = vmul.f32 %v581_v15, %v581_v15 }
 0x137   : > { %586 = vadd.xlane.f32.xlu1 %v583_v16 }
 0x17e   : > { %v1995_v50 = vpop.f32.mrf.mxu1 }
 0x17f   : > { %v846_v51 = vadd.f32 %v1995_v50, %v1856_v49 }
 0x180   : > { %v837_v52 = vpop.f32.mrf.mxu1 }
 0x181   : > { %v2859_v53 = vpack.c.bf16 %v846_v51, %v846_v51  ;;  %v838_v55 = vadd.f32 %v1856_v49, %v837_v52 }
 0x182   : > { %v1996_v54 = vpop.f32.mrf.mxu1 }
 0x183   : > { %v983_v56 = vsel %vm975_vm1, %v2859_v53, 0 }
 0x184   : > { %2018 = vmatpush3.bf16.xpose.msra.mxu1 %v983_v56  ;;  %v840_v57 = vpop.f32.mrf.mxu1 }
 0x185   : > { %v841_v58 = vadd.f32 %v1856_v49, %v840_v57  ;;  %2019 = vmatprep.subr.bf16.mxu1 %v2590_v4 }
 0x187   : > { %v2864_v59 = vpack.c.bf16 %v841_v58, %v838_v55 }
 0x189   : > { %v980_v60 = vsel %vm975_vm1, %v2864_v59, 0 }
 0x18c   : > { %2020 = vmatpush3.bf16.xpose.msra.mxu1 %v980_v60 }
 0x18d   : > { %2025 = vmatprep.subr.bf16.mxu1 %v2590_v4 }
 0x1bc   : > { %v585_v32 = vpop.xlane.xlu1 %584 }
 0x1bd   : > { %v588_v33 = vmul.f32 0.0078125, %v585_v32 }
 0x1bf   : > { %v590_v34 = vadd.f32 1e-05, %v588_v33 }
 0x1c0   : > { %v587_v35 = vpop.xlane.xlu1 %586 }
 0x1c1   : > { %2250 = vrsqrt.f32 %v590_v34  ;;  %v589_v36 = vmul.f32 0.0078125, %v587_v35 }
 0x1c3   : > { %v591_v37 = vadd.f32 1e-05, %v589_v36 }
 0x1c5   : > { %2252 = vrsqrt.f32 %v591_v37 }
 0x1ce   : > { %v2251_v38 = vpop.eup %2250 }
 0x1cf   : > { %v594_v39 = vmul.f32 %v2251_v38, %v580_v11 }
 0x1d1   : > { %v602_v43 = vmul.f32 %v1845_v40, %v594_v39 }
 0x1d2   : > { %v2253_v41 = vpop.eup %2252 }
 0x1d3   : > { %v595_v42 = vmul.f32 %v2253_v41, %v581_v15  ;;  %v610_v46 = vadd.f32 %v1846_v44, %v602_v43 }
 0x1d5   : > { %v603_v45 = vmul.f32 %v1845_v40, %v595_v42 }
 0x1d7   : > { %v611_v47 = vadd.f32 %v1846_v44, %v603_v45 }
 0x1d9   : > { %v612_v48 = vpack.c.bf16 %v611_v47, %v610_v46 }
 0x1db   : > { %1974 = vmatmul.mubr.bf16.vlgmr.msra.gmra.mxu0 %v612_v48 }
 0x1dc   : > { %2013 = vmatprep.mubr.bf16.mxu0 %v616_v25  ;;  %1998 = vmatpush3.bf16.msra.mxu0 %v2234_v61  ;;  %v1865_v25 = vld [vmem:[#allocation14] ss:$0 sm:$0xff] }
 0x1dd   : > { %1999 = vmatprep.subr.bf16.mxu0 %v2235_v62 }
 0x1e0   : > { %2000 = vmatpush3.bf16.msra.mxu0 %v2235_v62 }
 0x1e1   : > { %2001 = vmatprep.subr.bf16.mxu0 %v2236_v63 }
 0x1e4   : > { %2002 = vmatpush3.bf16.msra.mxu0 %v2236_v63 }
 0x1e5   : > { %2003 = vmatprep.subr.bf16.mxu0 %v2237_v2 }
 0x1e8   : > { %2004 = vmatpush3.bf16.msra.mxu0 %v2237_v2 }
 0x1e9   : > { %2005 = vmatprep.subr.bf16.mxu0 %v2238_v3 }
 0x1ec   : > { %2006 = vmatpush3.bf16.msra.mxu0 %v2238_v3 }
 0x1ed   : > { %2007 = vmatprep.subr.bf16.mxu0 %v2239_v5 }
 0x1f0   : > { %2008 = vmatpush3.bf16.msra.mxu0 %v2239_v5 }
 0x1f1   : > { %2009 = vmatprep.subr.bf16.mxu0 %v2240_v6 }
 0x1f4   : > { %2010 = vmatpush3.bf16.msra.mxu0 %v2240_v6 }
 0x1f5   : > { %2011 = vmatprep.subr.bf16.mxu0 %v2241_v7 }
 0x1f8   : > { %2012 = vmatpush3.bf16.msra.mxu0 %v2241_v7 }
 0x1f9   : > { %2041 = vmatprep.subr.bf16.mxu0 %v2590_v4 }
 0x1fb   : > { %2014 = vmatmul.mubr.bf16.vlgmr.msra.gmra.mxu0 %v2849_v27 }
 0x1fc   : > { %2045 = vmatprep.mubr.msk.bf16.mxu0 %vm2591_vm0, %v2590_v4 }
 0x29b   : > { %v723_v9 = vpop.f32.mrf.mxu0 }
 0x29c   : > { %v724_v11 = vadd.f32 %v1847_v8, %v723_v9 }
 0x29d   : > { %v1975_v10 = vpop.f32.mrf.mxu0 }
 0x29e   : > { %v730_v15 = vmul.f32 0.17677669, %v724_v11 }
 0x29f   : > { %v726_v12 = vpop.f32.mrf.mxu0 }
 0x2a0   : > { %v727_v13 = vadd.f32 %v1847_v8, %v726_v12 }
 0x2a1   : > { %v1976_v14 = vpop.f32.mrf.mxu0 }
 0x2a2   : > { %v731_v16 = vmul.f32 0.17677669, %v727_v13 }
 0x2a4   : > { %v2873_v17 = vpack.c.bf16 %v731_v16, %v730_v15 }
 0x2a6   : > { %2022 = vmatmul.mubr.msk.bf16.vlgmr.msra.gmra.mxu1 %vm975_vm1, %v2873_v17 }
 0x2a7   : > { %2029 = vmatprep.mubr.msk.bf16.mxu1 %vm2591_vm0, %v2590_v4 }
 0x2bb   : > { %v2015_v24 = vpop.f32.mrf.mxu0 }
 0x2bc   : > { %v965_v26 = vadd.f32 %v2015_v24, %v1865_v25 }
 0x2bd   : > { %v956_v27 = vpop.f32.mrf.mxu0 }
 0x2be   : > { %v2881_v28 = vpack.c.bf16 %v965_v26, %v965_v26  ;;  %v957_v30 = vadd.f32 %v1865_v25, %v956_v27 }
 0x2bf   : > { %v2016_v29 = vpop.f32.mrf.mxu0 }
 0x2c0   : > { %v1051_v32 = vsel %vm1049_vm3, %v2881_v28, 0 }
 0x2c1   : > { %v959_v31 = vpop.f32.mrf.mxu0  ;;  %2026 = vmatpush3.bf16.msra.mxu1 %v1051_v32 }
 0x2c2   : > { %v960_v33 = vadd.f32 %v1865_v25, %v959_v31  ;;  %2027 = vmatprep.subr.bf16.mxu1 %v2590_v4 }
 0x2c4   : > { %v2890_v34 = vpack.c.bf16 %v960_v33, %v957_v30 }
 0x2c6   : > { %2028 = vmatpush3.bf16.msra.mxu1 %v2890_v34 }
 0x2c7   : > { %2033 = vmatprep.subr.bf16.mxu1 %v2590_v4 }
 0x366   : > { %v1019_v18 = vpop.f32.mrf.mxu1 }
 0x367   : > { %v1027_v19 = vsel %vm1026_vm2, %v1019_v18, -inf }
 0x368   : > { %1028 = vmax.xlane.f32.xlu0 %v1027_v19  ;;  %v2023_v20 = vpop.f32.mrf.mxu1 }
 0x36a   : > { %v1022_v21 = vpop.f32.mrf.mxu1 }
 0x36b   : > { %v1030_v22 = vsel %vm1026_vm2, %v1022_v21, -inf }
 0x36c   : > { %1031 = vmax.xlane.f32.xlu1 %v1030_v22  ;;  %v2024_v23 = vpop.f32.mrf.mxu1 }
 0x37d   : > { %1105 = vrot.lane.b32.xlu1 %v2864_v59, %s2592_s26 }
 0x37e   : > { %1107 = vrot.lane.b32.xlu0 %v2859_v53, %s2592_s26 }
 0x381   : > { %1251 = vrot.lane.b32.xlu1 %v2859_v53, %s2593_s13 }
 0x382   : > { %1249 = vrot.lane.b32.xlu0 %v2864_v59, %s2593_s13 }
 0x385   : > { %1101 = vrot.lane.b32.xlu1 %v2873_v17, %s2592_s26 }
 0x386   : > { %1324 = vrot.lane.b32.xlu0 %v2881_v28, %s2593_s13 }
 0x389   : > { %1247 = vrot.lane.b32.xlu1 %v2873_v17, %s2593_s13 }
 0x3f1   : > { %v1029_v35 = vpop.xlane.xlu0 %1028 }
 0x3f2   : > { %v1033_v36 = vsub.f32 %v1019_v18, %v1029_v35 }
 0x3f4   : > { %v1035_v37 = vmul.f32 1.442695, %v1033_v36 }
 0x3f5   : > { %v1032_v38 = vpop.xlane.xlu1 %1031  ;;  %v1108_v43 = vpop.permute.xlu0 %1107 }
 0x3f6   : > { %v1034_v39 = vsub.f32 %v1022_v21, %v1032_v38  ;;  %2254 = vpow2.f32 %v1035_v37  ;;  %v1116_v45 = vsel %vm975_vm1, %v1108_v43, 0 }
 0x3f8   : > { %v1037_v40 = vmul.f32 1.442695, %v1034_v39 }
 0x3f9   : > { %v1106_v46 = vpop.permute.xlu1 %1105  ;;  %v1250_v51 = vpop.permute.xlu0 %1249 }
 0x3fa   : > { %2256 = vpow2.f32 %v1037_v40  ;;  %v1113_v47 = vsel %vm975_vm1, %v1106_v46, 0  ;;  %v1257_v52 = vsel %vm975_vm1, %v1250_v51, 0 }
 0x3fd   : > { %v1252_v48 = vpop.permute.xlu1 %1251  ;;  %v1325_v54 = vpop.permute.xlu0 %1324 }
 0x3fe   : > { %v1260_v50 = vsel %vm975_vm1, %v1252_v48, 0  ;;  %v1331_v55 = vsel %vm1049_vm3, %v1325_v54, 0 }
 0x401   : > { %v1102_v49 = vpop.permute.xlu1 %1101 }
 0x403   : > { %v2904_v41 = vpop.eup %2254 }
 0x405   : > { %v1248_v56 = vpop.permute.xlu1 %1247 }
 0x407   : > { %v2906_v42 = vpop.eup %2256 }
 0x408   : > { %v1045_v44 = vpack.c.bf16 %v2906_v42, %v2904_v41 }
 0x40a   : > { %2030 = vmatmul.mubr.msk.bf16.vlgmr.msra.gmra.mxu1 %vm1026_vm2, %v1045_v44 }
 0x40b   : > { %2034 = vmatpush3.bf16.xpose.msra.mxu1 %v1116_v45  ;;  %2037 = vmatprep.mubr.msk.bf16.mxu1 %vm2591_vm0, %v2590_v4 }
 0x40c   : > { %2035 = vmatprep.subr.bf16.mxu1 %v2590_v4 }
 0x413   : > { %2036 = vmatpush3.bf16.xpose.msra.mxu1 %v1113_v47 }
 0x414   : > { %2049 = vmatprep.subr.bf16.mxu1 %v2590_v4 }
 0x41a   : > { %2038 = vmatmul.mubr.msk.bf16.vlgmr.msra.gmra.mxu1 %vm975_vm1, %v1102_v49 }
 0x41b   : > { %2050 = vmatpush3.bf16.xpose.msra.mxu1 %v1260_v50  ;;  %2053 = vmatprep.mubr.msk.bf16.mxu1 %vm2591_vm0, %v2590_v4 }
 0x41c   : > { %2051 = vmatprep.subr.bf16.mxu1 %v2590_v4 }
 0x423   : > { %2052 = vmatpush3.bf16.xpose.msra.mxu1 %v1257_v52 }
 0x424   : > { %2057 = vmatprep.subr.bf16.mxu1 %v2590_v4 }
 0x42a   : > { %2054 = vmatmul.mubr.msk.bf16.vlgmr.msra.gmra.mxu1 %vm975_vm1, %v1248_v56 }
 0x42b   : > { %2058 = vmatpush3.bf16.msra.mxu1 %v1331_v55  ;;  %2061 = vmatprep.mubr.msk.bf16.mxu1 %vm2591_vm0, %v2590_v4 }
 0x42c   : > { %2059 = vmatprep.subr.bf16.mxu1 %v2590_v4 }
 0x4ca   : > { %v2929_v57 = vpop.f32.mrf.mxu1 }
 0x4cc   : > { %v2031_v58 = vpop.f32.mrf.mxu1 }
 0x4ce   : > { %v2931_v60 = vpop.f32.mrf.mxu1 }
 0x4d0   : > { %v2032_v61 = vpop.f32.mrf.mxu1 }
 0x4da   : > { %v1152_v62 = vpop.f32.mrf.mxu1 }
 0x4db   : > { %v1159_v12 = vsel %vm1026_vm2, %v1152_v62, -inf }
 0x4dc   : > { %v2039_v63 = vpop.f32.mrf.mxu1 }
 0x4de   : > { %v1155_v2 = vpop.f32.mrf.mxu1 }
 0x4df   : > { %v1162_v11 = vsel %vm1026_vm2, %v1155_v2, -inf }
 0x4e0   : > { %v2040_v3 = vpop.f32.mrf.mxu1 }
 0x4ea   : > { %v1296_v5 = vpop.f32.mrf.mxu1 }
 0x4eb   : > { %v1303_v6 = vsel %vm1026_vm2, %v1296_v5, -inf }
 0x4ec   : > { %1304 = vmax.xlane.f32.xlu0 %v1303_v6  ;;  %v2055_v7 = vpop.f32.mrf.mxu1 }
 0x4ee   : > { %v1299_v8 = vpop.f32.mrf.mxu1 }
 0x4ef   : > { %v1306_v9 = vsel %vm1026_vm2, %v1299_v8, -inf }
 0x4f0   : > { %1307 = vmax.xlane.f32.xlu1 %v1306_v9  ;;  %v2056_v10 = vpop.f32.mrf.mxu1  ;;  %v1039_v9 = vsel %vm1026_vm2, %v2904_v41, 0.0 }
 0x501   : > { %1322 = vrot.lane.b32.xlu1 %v2890_v34, %s2593_s13 }
 0x502   : > { %1393 = vrot.lane.b32.xlu0 %v2859_v53, %s2594_s23 }
 0x505   : > { %1391 = vrot.lane.b32.xlu1 %v2864_v59, %s2594_s23 }
 0x506   : > { %1389 = vrot.lane.b32.xlu0 %v2873_v17, %s2594_s23 }
 0x525   : > { %1163 = vmax.xlane.f32.xlu0 %v1162_v11 }
 0x529   : > { %1160 = vmax.xlane.f32.xlu1 %v1159_v12  ;;  %v1042_v12 = vsel %vm1026_vm2, %v2906_v42, 0.0 }
 0x53a   : > { %1182 = vrot.lane.b32.xlu1 %v2881_v28, %s2592_s26 }
 0x53e   : > { %1466 = vrot.lane.b32.xlu1 %v2881_v28, %s2594_s23 }
 0x542   : > { %1464 = vrot.lane.b32.xlu1 %v2890_v34, %s2594_s23 }
 0x575   : > { %v1305_v53 = vpop.xlane.xlu0 %1304 }
 0x576   : > { %v1309_v59 = vsub.f32 %v1296_v5, %v1305_v53  ;;  %v2242_v53 = vld [vmem:[#allocation16 + $0x38] sm:$0xff]  }
 0x578   : > { %v1311_v13 = vmul.f32 1.442695, %v1309_v59 }
 0x579   : > { %v1308_v14 = vpop.xlane.xlu1 %1307  ;;  %v1394_v20 = vpop.permute.xlu0 %1393 }
 0x57a   : > { %v1310_v15 = vsub.f32 %v1299_v8, %v1308_v14  ;;  %2258 = vpow2.f32 %v1311_v13  ;;  %v1402_v22 = vsel %vm975_vm1, %v1394_v20, 0 }
 0x57c   : > { %v1313_v16 = vmul.f32 1.442695, %v1310_v15 }
 0x57d   : > { %v1323_v17 = vpop.permute.xlu1 %1322  ;;  %v1390_v25 = vpop.permute.xlu0 %1389 }
 0x57e   : > { %2260 = vpow2.f32 %v1313_v16  ;;  %2060 = vmatpush3.bf16.msra.mxu1 %v1323_v17 }
 0x57f   : > { %2065 = vmatprep.subr.bf16.mxu1 %v2590_v4 }
 0x581   : > { %v1392_v23 = vpop.permute.xlu1 %1391 }
 0x582   : > { %v1399_v24 = vsel %vm975_vm1, %v1392_v23, 0  ;;  %v2244_v23 = vld [vmem:[#allocation16 + $0x28] sm:$0xff]  }
 0x587   : > { %v2259_v18 = vpop.eup %2258 }
 0x588   : > { %v1315_v52 = vsel %vm1026_vm2, %v2259_v18, 0.0 }
 0x58b   : > { %v2261_v19 = vpop.eup %2260 }
 0x58c   : > { %v1321_v21 = vpack.c.bf16 %v2261_v19, %v2259_v18  ;;  %v1318_v54 = vsel %vm1026_vm2, %v2261_v19, 0.0 }
 0x58e   : > { %2062 = vmatmul.mubr.msk.bf16.vlgmr.msra.gmra.mxu1 %vm1026_vm2, %v1321_v21 }
 0x58f   : > { %2066 = vmatpush3.bf16.xpose.msra.mxu1 %v1402_v22  ;;  %2069 = vmatprep.mubr.msk.bf16.mxu1 %vm2591_vm0, %v2590_v4  ;;  %v2243_v22 = vld [vmem:[#allocation16 + $0x30] sm:$0xff]  }
 0x590   : > { %2067 = vmatprep.subr.bf16.mxu1 %v2590_v4 }
 0x597   : > { %2068 = vmatpush3.bf16.xpose.msra.mxu1 %v1399_v24  ;;  %v2246_v24 = vld [vmem:[#allocation16 + $0x18] sm:$0xff]  }
 0x59e   : > { %2070 = vmatmul.mubr.msk.bf16.vlgmr.msra.gmra.mxu1 %vm975_vm1, %v1390_v25 }
 0x5ae   : > { %v1164_v26 = vpop.xlane.xlu0 %1163 }
 0x5af   : > { %v1166_v27 = vsub.f32 %v1155_v2, %v1164_v26 }
 0x5b1   : > { %v1169_v28 = vmul.f32 1.442695, %v1166_v27 }
 0x5b2   : > { %v1161_v29 = vpop.xlane.xlu1 %1160 }
 0x5b3   : > { %v1165_v30 = vsub.f32 %v1152_v62, %v1161_v29  ;;  %2262 = vpow2.f32 %v1169_v28 }
 0x5b5   : > { %v1167_v31 = vmul.f32 1.442695, %v1165_v30 }
 0x5b6   : > { %v1183_v32 = vpop.permute.xlu1 %1182 }
 0x5b7   : > { %2264 = vpow2.f32 %v1167_v31  ;;  %v1189_v33 = vsel %vm1049_vm3, %v1183_v32, 0  ;;  %v2247_v31 = vld [vmem:[#allocation16 + $0x10] sm:$0xff]  }
 0x5b8   : > { %2042 = vmatpush3.bf16.msra.mxu0 %v1189_v33 }
 0x5b9   : > { %2043 = vmatprep.subr.bf16.mxu0 %v2590_v4 }
 0x5ba   : > { %v1467_v3 = vpop.permute.xlu1 %1466 }
 0x5be   : > { %v1465_v5 = vpop.permute.xlu1 %1464 }
 0x5c0   : > { %v2263_v35 = vpop.eup %2262 }
 0x5c1   : > { %v1174_v51 = vsel %vm1026_vm2, %v2263_v35, 0.0 }
 0x5c4   : > { %v2265_v36 = vpop.eup %2264 }
 0x5c5   : > { %v1171_v37 = vsel %vm1026_vm2, %v2265_v36, 0.0  ;;  %v1177_v38 = vpack.c.bf16 %v2263_v35, %v2265_v36 }
 0x5c6   : > { %1172 = vadd.xlane.f32.xlu1 %v1171_v37  ;;  %v2248_v37 = vld [vmem:[#allocation16 + $0x8] sm:$0xff]  }
 0x64e   : > { %v2962_v39 = vpop.f32.mrf.mxu1 }
 0x64f   : > { %v1173_v13 = vpop.xlane.xlu1 %1172 }
 0x650   : > { %v2063_v40 = vpop.f32.mrf.mxu1 }
 0x651   : > { %v2249_v40 = vld [vmem:[#allocation16] sm:$0xff]  }
 0x652   : > { %v2964_v43 = vpop.f32.mrf.mxu1 }
 0x654   : > { %v2064_v44 = vpop.f32.mrf.mxu1 }
 0x65e   : > { %v1438_v45 = vpop.f32.mrf.mxu1 }
 0x65f   : > { %v1445_v46 = vsel %vm1026_vm2, %v1438_v45, -inf }
 0x660   : > { %1446 = vmax.xlane.f32.xlu0 %v1445_v46  ;;  %v2071_v47 = vpop.f32.mrf.mxu1 }
 0x662   : > { %v1441_v48 = vpop.f32.mrf.mxu1 }
 0x663   : > { %v1448_v49 = vsel %vm1026_vm2, %v1441_v48, -inf }
 0x664   : > { %1449 = vmax.xlane.f32.xlu0 %v1448_v49  ;;  %v2072_v50 = vpop.f32.mrf.mxu1 }
 0x67a   : > { %1180 = vrot.lane.b32.xlu0 %v2890_v34, %s2592_s26  ;;  %v1473_v34 = vsel %vm1049_vm3, %v1467_v3, 0 }
 0x699   : > { %1175 = vadd.xlane.f32.xlu0 %v1174_v51 }
 0x69d   : > { %1316 = vadd.xlane.f32.xlu0 %v1315_v52 }
 0x6a1   : > { %1319 = vadd.xlane.f32.xlu0 %v1318_v54 }
 0x6e9   : > { %v1447_v55 = vpop.xlane.xlu0 %1446 }
 0x6ea   : > { %v1451_v56 = vsub.f32 %v1438_v45, %v1447_v55 }
 0x6ec   : > { %v1453_v58 = vmul.f32 1.442695, %v1451_v56 }
 0x6ed   : > { %v1450_v61 = vpop.xlane.xlu0 %1449 }
 0x6ee   : > { %2266 = vpow2.f32 %v1453_v58  ;;  %v1452_v62 = vsub.f32 %v1441_v48, %v1450_v61 }
 0x6f0   : > { %v1455_v63 = vmul.f32 1.442695, %v1452_v62  ;;  %v1882_v62 = vld [vmem:[#allocation17] ss:$0 sm:$0xff] }
 0x6f1   : > { %v1181_v2 = vpop.permute.xlu0 %1180 }
 0x6f2   : > { %2268 = vpow2.f32 %v1455_v63  ;;  %2044 = vmatpush3.bf16.msra.mxu0 %v1181_v2 }
 0x6f3   : > { %2073 = vmatprep.subr.bf16.mxu0 %v2590_v4 }
 0x6f5   : > { %2046 = vmatmul.mubr.msk.bf16.vlgmr.msra.gmra.mxu0 %vm1026_vm2, %v1177_v38 }
 0x6f6   : > { %2074 = vmatpush3.bf16.msra.mxu0 %v1473_v34  ;;  %2077 = vmatprep.mubr.msk.bf16.mxu0 %vm2591_vm0, %v2590_v4 }
 0x6f7   : > { %2075 = vmatprep.subr.bf16.mxu0 %v2590_v4 }
 0x6fa   : > { %2076 = vmatpush3.bf16.msra.mxu0 %v1465_v5 }
 0x6fb   : > { %v2267_v6 = vpop.eup %2266  ;;  %2081 = vmatprep.subr.bf16.mxu0 %v2590_v4 }
 0x6fc   : > { %v1457_v7 = vsel %vm1026_vm2, %v2267_v6, 0.0 }
 0x6fd   : > { %1458 = vadd.xlane.f32.xlu1 %v1457_v7 }
 0x6ff   : > { %v2269_v8 = vpop.eup %2268 }
 0x700   : > { %v1460_v10 = vsel %vm1026_vm2, %v2269_v8, 0.0  ;;  %v1463_v11 = vpack.c.bf16 %v2269_v8, %v2267_v6 }
 0x701   : > { %1040 = vadd.xlane.f32.xlu1 %v1039_v9  ;;  %1461 = vadd.xlane.f32.xlu0 %v1460_v10 }
 0x702   : > { %2078 = vmatmul.mubr.msk.bf16.vlgmr.msra.gmra.mxu0 %vm1026_vm2, %v1463_v11 }
 0x703   : > { %2097 = vmatprep.mubr.msk.bf16.mxu0 %vm2591_vm0, %v2590_v4  ;;  %2082 = vmatpush3.bf16.msra.mxu0 %v2242_v53 }
 0x704   : > { %2083 = vmatprep.subr.bf16.mxu0 %v2590_v4 }
 0x705   : > { %1043 = vadd.xlane.f32.xlu0 %v1042_v12 }
 0x707   : > { %2084 = vmatpush3.bf16.msra.mxu0 %v2243_v22 }
 0x708   : > { %2085 = vmatprep.subr.bf16.mxu0 %v2590_v4 }
 0x70b   : > { %2086 = vmatpush3.bf16.msra.mxu0 %v2244_v23 }
 0x70c   : > { %2087 = vmatprep.subr.bf16.mxu0 %v2590_v4 }
 0x722   : > { %v1176_v59 = vpop.xlane.xlu0 %1175 }
 0x726   : > { %v1317_v41 = vpop.xlane.xlu0 %1316 }
 0x72a   : > { %v1320_v14 = vpop.xlane.xlu0 %1319 }
 0x786   : > { %v1459_v15 = vpop.xlane.xlu1 %1458 }
 0x78a   : > { %v1041_v16 = vpop.xlane.xlu1 %1040  ;;  %v1462_v17 = vpop.xlane.xlu0 %1461 }
 0x78b   : > { %2270 = vrcp.f32 %v1041_v16 }
 0x78e   : > { %v1044_v18 = vpop.xlane.xlu0 %1043 }
 0x78f   : > { %2272 = vrcp.f32 %v1044_v18 }
 0x790   : > { %2274 = vrcp.f32 %v1173_v13 }
 0x791   : > { %2276 = vrcp.f32 %v1317_v41 }
 0x792   : > { %2278 = vrcp.f32 %v1176_v59 }
 0x793   : > { %2280 = vrcp.f32 %v1320_v14 }
 0x794   : > { %2282 = vrcp.f32 %v1459_v15 }
 0x795   : > { %2284 = vrcp.f32 %v1462_v17 }
 0x798   : > { %v2271_v19 = vpop.eup %2270 }
 0x799   : > { %v1096_v20 = vmul.f32 %v2271_v19, %v2929_v57  ;;  %v2245_v57 = vld [vmem:[#allocation16 + $0x20] sm:$0xff]  }
 0x79a   : > { %2088 = vmatpush3.bf16.msra.mxu0 %v2245_v57 }
 0x79b   : > { %1098 = vst.msk [vmem:[#allocation2] sm:$0xff] %vm975_vm1, %v1096_v20  ;;  %2089 = vmatprep.subr.bf16.mxu0 %v2590_v4 }
 0x79c   : > { %v2273_v42 = vpop.eup %2272 }
 0x79d   : > { %v1097_v21 = vmul.f32 %v2273_v42, %v2931_v60  ;;  %v2275_v25 = vpop.eup %2274 }
 0x79e   : > { %v2277_v27 = vpop.eup %2276  ;;  %2090 = vmatpush3.bf16.msra.mxu0 %v2246_v24 }
 0x79f   : > { %1099 = vst.msk [vmem:[#allocation2 + $0x8] sm:$0xff] %vm975_vm1, %v1097_v21  ;;  %v2279_v29 = vpop.eup %2278  ;;  %2091 = vmatprep.subr.bf16.mxu0 %v2590_v4  ;;  %v1376_v33 = vmul.f32 %v2277_v27, %v2962_v39 }
 0x7a0   : > { %v2281_v35 = vpop.eup %2280 }
 0x7a1   : > { %v1377_v38 = vmul.f32 %v2281_v35, %v2964_v43  ;;  %v2283_v44 = vpop.eup %2282 }
 0x7a2   : > { %2092 = vmatpush3.bf16.msra.mxu0 %v2247_v31  ;;  %v2285_v47 = vpop.eup %2284 }
 0x7a3   : > { %2093 = vmatprep.subr.bf16.mxu0 %v2590_v4 }
 0x7a6   : > { %2094 = vmatpush3.bf16.msra.mxu0 %v2248_v37 }
 0x7a7   : > { %2095 = vmatprep.subr.bf16.mxu0 %v2590_v4 }
 0x7aa   : > { %2096 = vmatpush3.bf16.msra.mxu0 %v2249_v40 }
 0x7b5   : > { %v1225_v60 = vpop.f32.mrf.mxu0 }
 0x7b6   : > { %v1234_v26 = vmul.f32 %v2275_v25, %v1225_v60 }
 0x7b7   : > { %v2047_v28 = vpop.f32.mrf.mxu0 }
 0x7b8   : > { %1238 = vrot.lane.b32.xlu1 %v1234_v26, %s2594_s23 }
 0x7b9   : > { %v1228_v30 = vpop.f32.mrf.mxu0 }
 0x7ba   : > { %v1235_v32 = vmul.f32 %v2279_v29, %v1228_v30 }
 0x7bb   : > { %v2048_v36 = vpop.f32.mrf.mxu0 }
 0x7bc   : > { %1240 = vrot.lane.b32.xlu0 %v1235_v32, %s2594_s23  ;;  %1380 = vrot.lane.b32.xlu1 %v1376_v33, %s2593_s13 }
 0x7c0   : > { %1382 = vrot.lane.b32.xlu1 %v1377_v38, %s2593_s13 }
 0x7c2   : > { %v1509_v45 = vpop.f32.mrf.mxu0 }
 0x7c3   : > { %v1518_v39 = vmul.f32 %v2283_v44, %v1509_v45 }
 0x7c4   : > { %v2079_v46 = vpop.f32.mrf.mxu0 }
 0x7c5   : > { %1522 = vrot.lane.b32.xlu1 %v1518_v39, %s2592_s26 }
 0x7c6   : > { %v1512_v48 = vpop.f32.mrf.mxu0 }
 0x7c7   : > { %v1519_v49 = vmul.f32 %v2285_v47, %v1512_v48 }
 0x7c8   : > { %v2080_v50 = vpop.f32.mrf.mxu0 }
 0x7c9   : > { %1524 = vrot.lane.b32.xlu0 %v1519_v49, %s2592_s26 }
 0x82a   : > { %v1239_v43 = vpop.permute.xlu1 %1238 }
 0x82b   : > { %1245 = vst.msk [vmem:[#allocation2] sm:$0xff] %vm1244_vm4, %v1239_v43 }
 0x82e   : > { %v1381_v51 = vpop.permute.xlu1 %1380  ;;  %v1241_v52 = vpop.permute.xlu0 %1240 }
 0x82f   : > { %1387 = vst.msk [vmem:[#allocation2] sm:$0xff] %vm1386_vm5, %v1381_v51 }
 0x830   : > { %1246 = vst.msk [vmem:[#allocation2 + $0x8] sm:$0xff] %vm1244_vm4, %v1241_v52 }
 0x832   : > { %v1383_v4 = vpop.permute.xlu1 %1382 }
 0x833   : > { %1388 = vst.msk [vmem:[#allocation2 + $0x8] sm:$0xff] %vm1386_vm5, %v1383_v4 }
 0x837   : > { %v1523_v54 = vpop.permute.xlu1 %1522 }
 0x838   : > { %1529 = vst.msk [vmem:[#allocation2] sm:$0xff] %vm1528_vm6, %v1523_v54 }
 0x83b   : > { %v1525_v55 = vpop.permute.xlu0 %1524 }
 0x83c   : > { %1530 = vst.msk [vmem:[#allocation2 + $0x8] sm:$0xff] %vm1528_vm6, %v1525_v55 }
 0x83f   : > { %v1531_v56 = vld [vmem:[#allocation2] sm:$0xff] }
 0x843   : > { %v1532_v58 = vld [vmem:[#allocation2 + $0x8] sm:$0xff] }
 0x844   : > { %v1533_v61 = vpack.c.bf16 %v1532_v58, %v1531_v56 }
 0x846   : > { %2098 = vmatmul.mubr.bf16.vlgmr.msra.gmra.mxu0 %v1533_v61 }
 0x906   : > { %v1639_v63 = vpop.f32.mrf.mxu0 }
 0x907   : > { %v1640_v2 = vadd.f32 %v1882_v62, %v1639_v63 }
 0x908   : > { %v2099_v3 = vpop.f32.mrf.mxu0 }
 0x909   : > { %v1646_v34 = vadd.f32 %v1640_v2, %v2831_v0 }
 0x90a   : > { %v1642_v5 = vpop.f32.mrf.mxu0 }
 0x90b   : > { %1648 = vst [vmem:[%s567_s14] sm:$0xff] %v1646_v34  ;;  %v1643_v6 = vadd.f32 %v1882_v62, %v1642_v5 }
 0x90c   : > { %v2100_v7 = vpop.f32.mrf.mxu0 }
 0x90d   : > { %v1647_v8 = vadd.f32 %v1643_v6, %v2833_v1 }
 0x90f   : > { %1649 = vst [vmem:[%s567_s14 + $0x8] sm:$0xff] %v1647_v8 }
 0x910 PF: > { %s28_s21 = sadd.s32 1, %s2576_s21  }
 0x911   : > { %p25_p9 = scmp.ge.s32.totalorder %s28_s21, 4  }
 0x913   :  { %27 = sbr.rel (!%p25_p9) target bundleno = 6 (0x6), region = 142 }
 0x918   :  { %1671 = vsyncpa [#allocation4], 1 }
 0x919   :  { %1673 = vsyncpa [#allocation4 + $0x1], 1 }
 0x91a   :  { %1674 = vsyncpa [#allocation6], 1 }
 0x91b   :  { %1675 = vsyncpa [#allocation9], 1 }
 0x91c   :  { %1676 = vsyncpa [#allocation12], 1 }
 0x91d   :  { %1677 = vsyncpa [#allocation15], 1 }
 0x91e   :  { %1678 = vsyncpa [#allocation18], 1 }

// kernel: decoder_forward.8
= control target key start
LH: loop header
LB: loop body
LE: loop exit
PB: predicated region body
PF: predicated region fallthrough
CT: control target
= control target key end

     0   :  { %16 = vsyncpa [#allocation4], 0  ;;  %s2852_s0 = inlined_call_operand.vmem [shape: f32[2,16,128], index: 0, kind: input, shape index: {}, may-alias: {0,11}]   ;;  %s2853_s1 = inlined_call_operand.hbm [shape: f32[1,128], index: 1, kind: input, shape index: {}]   ;;  %s2854_s2 = inlined_call_operand.hbm [shape: f32[1,128], index: 2, kind: input, shape index: {}]   ;;  %s2855_s3 = inlined_call_operand.hbm [shape: bf16[128,128], index: 3, kind: input, shape index: {}]   ;;  %s2856_s4 = inlined_call_operand.hbm [shape: f32[1,128], index: 4, kind: input, shape index: {}]   ;;  %s2857_s5 = inlined_call_operand.hbm [shape: bf16[128,128], index: 5, kind: input, shape index: {}]   ;;  %s2858_s6 = inlined_call_operand.hbm [shape: f32[1,128], index: 6, kind: input, shape index: {}]   ;;  %s2859_s7 = inlined_call_operand.hbm [shape: bf16[128,128], index: 7, kind: input, shape index: {}]   ;;  %s2860_s8 = inlined_call_operand.hbm [shape: f32[1,128], index: 8, kind: input, shape index: {}]   ;;  %s2861_s9 = inlined_call_operand.hbm [shape: bf16[128,128], index: 9, kind: input, shape index: {}]   ;;  %s2862_s10 = inlined_call_operand.hbm [shape: f32[1,128], index: 10, kind: input, shape index: {}]   ;;  %s2863_s11 = inlined_call_operand.vmem [shape: f32[2,16,128], index: 11, kind: output, shape index: {}, may-alias: {0,11}]  }
   0x1   :  { %17 = vsyncpa [#allocation6], 0 }
   0x2   :  { %18 = vsyncpa [#allocation9], 0 }
   0x3   :  { %19 = vsyncpa [#allocation12], 0 }
   0x4   :  { %20 = vsyncpa [#allocation15], 0 }
   0x5   :  { %21 = vsyncpa [#allocation18], 0  ;;  %s2508_s17 = smov 0  }
   0x6 LB: > { %s2431_s18 = smov [#allocation5]   ;;  %s2514_s20 = sadd.s32 4294967295, %s2429_s17   ;;  %s2429_s17 = sphi %s2508_s17, %s27_s17  }
   0x7   : > { %s318_s19 = sshll.u32 %s2431_s18, 4  ;;  %p1698_p0 = scmp.ge.s32.totalorder %s2429_s17, 1  ;;  %s319_s19 = int_to_ptr.vmem [resolvable:$true] %s318_s19 }
   0x8   : > { %p294_p1 = scmp.lt.s32.totalorder %s2429_s17, 3  ;;  %p2864_p2 = scmp.eq.s32.totalorder %s2514_s20, 0 }
   0x9   : > { %s2432_s22 = smov [#allocation8]   ;;  %s2433_s24 = smov [#allocation11]  }
   0xa   : > { %p2519_p3 = pnand %p1698_p0, %p294_p1  ;;  %s342_s23 = sshll.u32 %s2432_s22, 4  ;;  %s2525_s23 = int_to_ptr.vmem [resolvable:$true] %s342_s23 }
   0xb   : > { %s366_s25 = sshll.u32 %s2433_s24, 4  ;;  %s2434_s27 = smov [#allocation14]   ;;  %s2533_s25 = int_to_ptr.vmem [resolvable:$true] %s366_s25 }
   0xc   : > { %s2866_s21 = scalar_select %p2519_p3, 1, 0 }
   0xd   : > { %p1995_p4 = pneg %p2519_p3  ;;  %s390_s28 = sshll.u32 %s2434_s27, 4  ;;  %s2535_s28 = int_to_ptr.vmem [resolvable:$true] %s390_s28 }
   0xe   : > { %s2150_s30 = scalar_lea.vmem %s319_s19, 16  ;;  %s2157_s12 = scalar_lea.vmem %s319_s19, 32 }
   0xf   : > { %p2529_p5 = pnand %p2864_p2, %p1995_p4  ;;  %p2151_p7 = scmp.ne.s32.totalorder %s319_s19, %s2150_s30 }
  0x10   : > { %p2158_p10 = scmp.lt.s32.totalorder %s319_s19, %s319_s19  ;;  %p2159_p11 = scmp.lt.s32.totalorder %s2157_s12, %s2150_s30 }
  0x11   : > { %p2539_p6 = pneg %p2529_p5 }
  0x12   : > { %p2160_p12 = por %p2159_p11, %p2158_p10 }
  0x13   : > { %p2153_p8 = pnand %p2151_p7, %p2539_p6 }
  0x15   : > { %p2154_p9 = pneg %p2153_p8 }
  0x17   : > { %p2161_p13 = pnand %p2160_p12, %p2154_p9 }
  0x19   : > { %2164 = shalt.err (!%p2161_p13)
}
  0x1a   : > { %2001 = dma.hbm_to_vmem [thread:$0]  (!%p2529_p5), %s2854_s2, 16, %s319_s19, [#allocation6]  }
  0x1b   : > { %s2176_s15 = scalar_lea.vmem %s2525_s23, 16  ;;  %s2183_s16 = scalar_lea.vmem %s2525_s23, 32 }
  0x1c   : > { %p2177_p0 = scmp.ne.s32.totalorder %s2525_s23, %s2176_s15  ;;  %p2184_p7 = scmp.lt.s32.totalorder %s2525_s23, %s2525_s23 }
  0x1d   : > { %p2185_p8 = scmp.lt.s32.totalorder %s2183_s16, %s2176_s15 }
  0x1e   : > { %p2179_p1 = pnand %p2177_p0, %p2539_p6 }
  0x1f   : > { %p2186_p9 = por %p2185_p8, %p2184_p7 }
  0x20   : > { %p2180_p4 = pneg %p2179_p1 }
  0x22   : > { %p2187_p10 = pnand %p2186_p9, %p2180_p4 }
  0x24   : > { %2190 = shalt.err (!%p2187_p10)
}
  0x25   : > { %2007 = dma.hbm_to_vmem [thread:$0]  (!%p2529_p5), %s2856_s4, 16, %s2525_s23, [#allocation9]  }
  0x26   : > { %s2202_s19 = scalar_lea.vmem %s2533_s25, 16  ;;  %s2209_s24 = scalar_lea.vmem %s2533_s25, 32 }
  0x27   : > { %p2203_p11 = scmp.ne.s32.totalorder %s2533_s25, %s2202_s19  ;;  %p2210_p0 = scmp.lt.s32.totalorder %s2533_s25, %s2533_s25 }
  0x28   : > { %p2211_p1 = scmp.lt.s32.totalorder %s2209_s24, %s2202_s19 }
  0x29   : > { %p2205_p12 = pnand %p2203_p11, %p2539_p6 }
  0x2a   : > { %p2212_p4 = por %p2211_p1, %p2210_p0 }
  0x2b   : > { %p2206_p13 = pneg %p2205_p12 }
  0x2d   : > { %p2213_p7 = pnand %p2212_p4, %p2206_p13 }
  0x2f   : > { %2216 = shalt.err (!%p2213_p7)
}
  0x30   : > { %2013 = dma.hbm_to_vmem [thread:$0]  (!%p2529_p5), %s2858_s6, 16, %s2533_s25, [#allocation12]  }
  0x31   : > { %s2228_s23 = scalar_lea.vmem %s2535_s28, 16  ;;  %s2235_s12 = scalar_lea.vmem %s2535_s28, 32 }
  0x32   : > { %p2229_p8 = scmp.ne.s32.totalorder %s2535_s28, %s2228_s23  ;;  %p2236_p11 = scmp.lt.s32.totalorder %s2535_s28, %s2535_s28 }
  0x33   : > { %p2237_p12 = scmp.lt.s32.totalorder %s2235_s12, %s2228_s23 }
  0x34   : > { %p2231_p9 = pnand %p2229_p8, %p2539_p6 }
  0x35   : > { %p2238_p13 = por %p2237_p12, %p2236_p11 }
  0x36   : > { %p2232_p10 = pneg %p2231_p9 }
  0x38   : > { %p2239_p0 = pnand %p2238_p13, %p2232_p10 }
  0x3a   : > { %2242 = shalt.err (!%p2239_p0)
}
  0x3b   : > { %2019 = dma.hbm_to_vmem [thread:$0]  (!%p2529_p5), %s2860_s8, 16, %s2535_s28, [#allocation15]  }
  0x3c   : > { %s2435_s25 = smov [#allocation3]   ;;  %s2436_s16 = smov [#allocation7]  }
  0x3d   : > { %s307_s15 = sshll.u32 %s2435_s25, 4  ;;  %s328_s18 = sshll.u32 %s2436_s16, 4  ;;  %s308_s15 = int_to_ptr.vmem [resolvable:$true] %s307_s15  ;;  %s329_s18 = int_to_ptr.vmem [resolvable:$true] %s328_s18 }
  0x3e   : > { %s2254_s22 = scalar_lea.vmem %s308_s15, 16  ;;  %s2261_s19 = scalar_lea.vmem %s308_s15, 32 }
  0x3f   : > { %p2255_p1 = scmp.ne.s32.totalorder %s308_s15, %s2254_s22  ;;  %p2262_p8 = scmp.lt.s32.totalorder %s308_s15, %s308_s15 }
  0x40   : > { %p2263_p9 = scmp.lt.s32.totalorder %s2261_s19, %s2254_s22 }
  0x41   : > { %p2257_p4 = pnand %p2255_p1, %p2539_p6 }
  0x42   : > { %p2264_p10 = por %p2263_p9, %p2262_p8 }
  0x43   : > { %p2258_p7 = pneg %p2257_p4 }
  0x45   : > { %p2265_p11 = pnand %p2264_p10, %p2258_p7 }
  0x47   : > { %2268 = shalt.err (!%p2265_p11)
}
  0x48   : > { %1998 = dma.hbm_to_vmem [thread:$0]  (!%p2529_p5), %s2853_s1, 16, %s308_s15, [#allocation4]  }
  0x49   : > { %s2280_s27 = scalar_lea.vmem %s329_s18, 1024  ;;  %p2288_p1 = scmp.lt.s32.totalorder %s329_s18, %s329_s18 }
  0x4a   : > { %p2281_p12 = scmp.ne.s32.totalorder %s329_s18, %s2280_s27  ;;  %p2289_p4 = scmp.lt.s32.totalorder %s2280_s27, %s2280_s27 }
  0x4c   : > { %p2283_p13 = pnand %p2281_p12, %p2539_p6  ;;  %p2290_p2 = por %p2289_p4, %p2288_p1 }
  0x4e   : > { %p2284_p0 = pneg %p2283_p13 }
  0x50   : > { %p2291_p3 = pnand %p2290_p2, %p2284_p0 }
  0x52   : > { %2294 = shalt.err (!%p2291_p3)
}
  0x53   : > { %s2437_s30 = smov 64   ;;  %s2438_s23 = smov 4  }
  0x54   : > { %2004 = dma.hbm_to_vmem [thread:$0]  (!%p2529_p5), %s2855_s3, 1024, %s329_s18, [#allocation6], %s2437_s30, %s2437_s30, %s2438_s23  }
  0x55   : > { %s2439_s14 = smov [#allocation10]   ;;  %s2440_s15 = smov [#allocation13]  }
  0x56   : > { %s352_s25 = sshll.u32 %s2439_s14, 4  ;;  %s376_s16 = sshll.u32 %s2440_s15, 4  ;;  %s353_s25 = int_to_ptr.vmem [resolvable:$true] %s352_s25  ;;  %s377_s16 = int_to_ptr.vmem [resolvable:$true] %s376_s16 }
  0x57   : > { %s2306_s22 = scalar_lea.vmem %s353_s25, 1024  ;;  %p2314_p8 = scmp.lt.s32.totalorder %s353_s25, %s353_s25 }
  0x58   : > { %p2307_p2 = scmp.ne.s32.totalorder %s353_s25, %s2306_s22  ;;  %p2315_p9 = scmp.lt.s32.totalorder %s2306_s22, %s2306_s22 }
  0x5a   : > { %p2309_p3 = pnand %p2307_p2, %p2539_p6  ;;  %p2316_p10 = por %p2315_p9, %p2314_p8 }
  0x5c   : > { %p2310_p7 = pneg %p2309_p3 }
  0x5e   : > { %p2317_p11 = pnand %p2316_p10, %p2310_p7 }
  0x60   : > { %2320 = shalt.err (!%p2317_p11)
}
  0x61   : > { %2010 = dma.hbm_to_vmem [thread:$0]  (!%p2529_p5), %s2857_s5, 1024, %s353_s25, [#allocation9], %s2437_s30, %s2437_s30, %s2438_s23  }
  0x62   : > { %s2332_s24 = scalar_lea.vmem %s377_s16, 1024  ;;  %p2340_p1 = scmp.lt.s32.totalorder %s377_s16, %s377_s16 }
  0x63   : > { %p2333_p12 = scmp.ne.s32.totalorder %s377_s16, %s2332_s24  ;;  %p2341_p4 = scmp.lt.s32.totalorder %s2332_s24, %s2332_s24 }
  0x65   : > { %p2335_p13 = pnand %p2333_p12, %p2539_p6  ;;  %p2342_p2 = por %p2341_p4, %p2340_p1 }
  0x67   : > { %p2336_p0 = pneg %p2335_p13 }
  0x69   : > { %p2343_p3 = pnand %p2342_p2, %p2336_p0 }
  0x6b   : > { %2346 = shalt.err (!%p2343_p3)
}
  0x6c   : > { %2016 = dma.hbm_to_vmem [thread:$0]  (!%p2529_p5), %s2859_s7, 1024, %s377_s16, [#allocation12], %s2437_s30, %s2437_s30, %s2438_s23  }
  0x6d   : > { %s2441_s12 = smov [#allocation16]   ;;  %s2442_s14 = smov [#allocation17]  }
  0x6e   : > { %s400_s13 = sshll.u32 %s2441_s12, 4  ;;  %s414_s25 = sshll.u32 %s2442_s14, 4  ;;  %s401_s13 = int_to_ptr.vmem [resolvable:$true] %s400_s13  ;;  %s415_s25 = int_to_ptr.vmem [resolvable:$true] %s414_s25 }
  0x6f   : > { %s2358_s15 = scalar_lea.vmem %s401_s13, 1024  ;;  %p2366_p10 = scmp.lt.s32.totalorder %s401_s13, %s401_s13 }
  0x70   : > { %p2359_p7 = scmp.ne.s32.totalorder %s401_s13, %s2358_s15  ;;  %p2367_p11 = scmp.lt.s32.totalorder %s2358_s15, %s2358_s15 }
  0x72   : > { %p2361_p8 = pnand %p2359_p7, %p2539_p6  ;;  %p2368_p12 = por %p2367_p11, %p2366_p10 }
  0x74   : > { %p2362_p9 = pneg %p2361_p8 }
  0x76   : > { %p2369_p13 = pnand %p2368_p12, %p2362_p9 }
  0x78   : > { %2372 = shalt.err (!%p2369_p13)
}
  0x79   : > { %2022 = dma.hbm_to_vmem [thread:$0]  (!%p2529_p5), %s2861_s9, 1024, %s401_s13, [#allocation15], %s2437_s30, %s2437_s30, %s2438_s23  }
  0x7a   : > { %s2384_s18 = scalar_lea.vmem %s415_s25, 16  ;;  %s2391_s19 = scalar_lea.vmem %s415_s25, 32 }
  0x7b   : > { %p2385_p0 = scmp.ne.s32.totalorder %s415_s25, %s2384_s18  ;;  %p2392_p2 = scmp.lt.s32.totalorder %s415_s25, %s415_s25 }
  0x7c   : > { %p2393_p3 = scmp.lt.s32.totalorder %s2391_s19, %s2384_s18 }
  0x7d   : > { %p2387_p1 = pnand %p2385_p0, %p2539_p6 }
  0x7e   : > { %p2394_p7 = por %p2393_p3, %p2392_p2 }
  0x7f   : > { %p2388_p4 = pneg %p2387_p1 }
  0x81   : > { %p2395_p8 = pnand %p2394_p7, %p2388_p4 }
  0x83   : > { %2398 = shalt.err (!%p2395_p8)
}
  0x84   : > { %2025 = dma.hbm_to_vmem [thread:$0]  (!%p2529_p5), %s2862_s10, 16, %s415_s25, [#allocation18]  }
  0x85   : > { %p2869_p9 = scmp.ne.s32.totalorder %s2866_s21, 0 }
  0x86   : > { %p2870_p10 = scmp.eq.s32.totalorder (!%p2869_p9), %s2514_s20, 0 }
  0x87   : > { %435 = sbr.rel (%p2869_p9) target bundleno = 2658 (0xa62), region = 64 }
  0x8c   : > { %2404 = dma.done.wait (%p2870_p10), [#allocation4], 16   ;;  %p2871_p6 = pmov %p2870_p10 }
  0x8e   : > { %2406 = vsyncadd (%p2871_p6), [#allocation4], 4294967280  ;;  %p2872_p11 = pmov %p2871_p6 }
  0x8f   : > { %p2873_p12 = pmov %p2871_p6 }
  0x90   : > { %2408 = dma.done.wait (%p2872_p11), [#allocation6], 1040  }
  0x91   : > { %2410 = vsyncadd (%p2873_p12), [#allocation6], 4294966256  ;;  %p2874_p13 = pmov %p2871_p6 }
  0x92   : > { %p2875_p5 = pmov %p2871_p6 }
  0x93   : > { %2412 = dma.done.wait (%p2874_p13), [#allocation9], 1040  }
  0x94   : > { %2414 = vsyncadd (%p2875_p5), [#allocation9], 4294966256  ;;  %p2876_p0 = pmov %p2875_p5 }
  0x96   : > { %2416 = dma.done.wait (%p2876_p0), [#allocation12], 1040   ;;  %p2877_p1 = pmov %p2876_p0 }
  0x97   : > { %p2878_p4 = pmov %p2876_p0 }
  0x98   : > { %2418 = vsyncadd (%p2877_p1), [#allocation12], 4294966256 }
  0x99   : > { %2420 = dma.done.wait (%p2878_p4), [#allocation15], 1040   ;;  %p2879_p2 = pmov %p2876_p0 }
  0x9a   : > { %p2880_p3 = pmov %p2876_p0 }
  0x9b   : > { %2422 = vsyncadd (%p2879_p2), [#allocation15], 4294966256 }
  0x9c   : > { %2424 = dma.done.wait (%p2880_p3), [#allocation18], 16   ;;  %p2881_p7 = pmov %p2876_p0 }
  0x9d   : > { %p511_p8 = scmp.lt.s32.totalorder %s2514_s20, 1  ;;  %v2071_v2 = vld [vmem:[#allocation7 + $0x38] sm:$0xff]   ;;  %v2443_v4 = vmov 0.0   ;;  %v2073_v13 = vld [vmem:[#allocation7 + $0x30] sm:$0xff]   ;;  %v2075_v15 = vld [vmem:[#allocation7 + $0x28] sm:$0xff]   ;;  %vm2444_vm0 = vmmov 0  }
  0x9e   : > { %2426 = vsyncadd (%p2881_p7), [#allocation18], 4294967280  ;;  %v2072_v3 = vld [vmem:[#allocation10 + $0x38] sm:$0xff]   ;;  %1827 = vmatprep.subr.bf16.mxu0 %v2443_v4  ;;  %1847 = vmatprep.subr.bf16.mxu1 %v2443_v4  ;;  %v2074_v14 = vld [vmem:[#allocation10 + $0x30] sm:$0xff]   ;;  %vm907_vm1 = vcmask 261120   ;;  %vm955_vm2 = vcmask 130048  }
  0x9f   : > { %s2883_s20 = smov (!%p511_p8, %s2514_s20), 1  ;;  %1828 = vmatpush3.bf16.msra.mxu0 %v2071_v2  ;;  %1848 = vmatpush3.bf16.msra.mxu1 %v2072_v3  ;;  %v2076_v16 = vld [vmem:[#allocation10 + $0x28] sm:$0xff]   ;;  %v2077_v17 = vld [vmem:[#allocation7 + $0x20] sm:$0xff]   ;;  %v2079_v19 = vld [vmem:[#allocation7 + $0x18] sm:$0xff]   ;;  %s2445_s23 = smov 96   ;;  %vm1157_vm3 = vcmask 523520  }
  0xa0   : > { %s1773_s21 = sshll.u32 %s2883_s20, 4  ;;  %1829 = vmatprep.subr.bf16.mxu0 %v2443_v4  ;;  %1849 = vmatprep.subr.bf16.mxu1 %v2443_v4  ;;  %v2078_v18 = vld [vmem:[#allocation10 + $0x20] sm:$0xff]   ;;  %v2080_v20 = vld [vmem:[#allocation10 + $0x18] sm:$0xff]   ;;  %v2081_v21 = vld [vmem:[#allocation7 + $0x10] sm:$0xff]   ;;  %s2446_s27 = smov 64   ;;  %vm1289_vm4 = vcmask 785920  }
  0xa1   : > { %s515_s30 = scalar_lea.vmem %s2852_s0, %s1773_s21  ;;  %1843 = vmatprep.mubr.msk.bf16.mxu0 %vm2444_vm0, %v2443_v4  ;;  %1863 = vmatprep.mubr.msk.bf16.mxu1 %vm2444_vm0, %v2443_v4  ;;  %v2082_v22 = vld [vmem:[#allocation10 + $0x10] sm:$0xff]   ;;  %v2083_v23 = vld [vmem:[#allocation7 + $0x8] sm:$0xff]   ;;  %v2085_v25 = vld [vmem:[#allocation7] sm:$0xff]   ;;  %s2447_s12 = smov 32   ;;  %vm1421_vm5 = vcmask 1048320  }
  0xa2   : > { %v2679_v0 = vld [vmem:[%s515_s30] sm:$0xff]  ;;  %v2681_v1 = vld [vmem:[%s515_s30 + $0x8] sm:$0xff]  ;;  %v2086_v26 = vld [vmem:[#allocation10] sm:$0xff]   ;;  %s520_s25 = scalar_lea.vmem %s2863_s11, %s1773_s21 }
  0xa3   : > { %526 = vadd.xlane.f32.xlu0 %v2679_v0  ;;  %1830 = vmatpush3.bf16.msra.mxu0 %v2073_v13  ;;  %v2084_v24 = vld [vmem:[#allocation10 + $0x8] sm:$0xff]   ;;  %v1725_v35 = vld [vmem:[#allocation3] ss:$0 sm:$0xff]  ;;  %v1726_v39 = vld [vmem:[#allocation5] ss:$0 sm:$0xff] }
  0xa4   : > { %1850 = vmatpush3.bf16.msra.mxu1 %v2074_v14  ;;  %1831 = vmatprep.subr.bf16.mxu0 %v2443_v4  ;;  %v2087_v43 = vld [vmem:[#allocation13 + $0x38] sm:$0xff]   ;;  %v2088_v45 = vld [vmem:[#allocation13 + $0x30] sm:$0xff]   ;;  %v2089_v46 = vld [vmem:[#allocation13 + $0x28] sm:$0xff]  }
  0xa5   : > { %1851 = vmatprep.subr.bf16.mxu1 %v2443_v4  ;;  %v2090_v47 = vld [vmem:[#allocation13 + $0x20] sm:$0xff]   ;;  %v2091_v48 = vld [vmem:[#allocation13 + $0x18] sm:$0xff]   ;;  %v2092_v49 = vld [vmem:[#allocation13 + $0x10] sm:$0xff]  }
  0xa6   : > { %v2093_v50 = vld [vmem:[#allocation13 + $0x8] sm:$0xff]   ;;  %v2094_v51 = vld [vmem:[#allocation13] sm:$0xff]   ;;  %v1736_v54 = vld [vmem:[#allocation11] ss:$0 sm:$0xff] }
  0xa7   : > { %528 = vadd.xlane.f32.xlu0 %v2681_v1  ;;  %1832 = vmatpush3.bf16.msra.mxu0 %v2075_v15  ;;  %v1727_v61 = vld [vmem:[#allocation8] ss:$0 sm:$0xff] }
  0xa8   : > { %1852 = vmatpush3.bf16.msra.mxu1 %v2076_v16  ;;  %1833 = vmatprep.subr.bf16.mxu0 %v2443_v4 }
  0xa9   : > { %1853 = vmatprep.subr.bf16.mxu1 %v2443_v4 }
  0xab   : > { %1834 = vmatpush3.bf16.msra.mxu0 %v2077_v17 }
  0xac   : > { %1854 = vmatpush3.bf16.msra.mxu1 %v2078_v18  ;;  %1835 = vmatprep.subr.bf16.mxu0 %v2443_v4 }
  0xad   : > { %1855 = vmatprep.subr.bf16.mxu1 %v2443_v4 }
  0xaf   : > { %1836 = vmatpush3.bf16.msra.mxu0 %v2079_v19 }
  0xb0   : > { %1856 = vmatpush3.bf16.msra.mxu1 %v2080_v20  ;;  %1837 = vmatprep.subr.bf16.mxu0 %v2443_v4 }
  0xb1   : > { %1857 = vmatprep.subr.bf16.mxu1 %v2443_v4 }
  0xb3   : > { %1838 = vmatpush3.bf16.msra.mxu0 %v2081_v21 }
  0xb4   : > { %1858 = vmatpush3.bf16.msra.mxu1 %v2082_v22  ;;  %1839 = vmatprep.subr.bf16.mxu0 %v2443_v4 }
  0xb5   : > { %1859 = vmatprep.subr.bf16.mxu1 %v2443_v4 }
  0xb7   : > { %1840 = vmatpush3.bf16.msra.mxu0 %v2083_v23 }
  0xb8   : > { %1860 = vmatpush3.bf16.msra.mxu1 %v2084_v24  ;;  %1841 = vmatprep.subr.bf16.mxu0 %v2443_v4 }
  0xb9   : > { %1861 = vmatprep.subr.bf16.mxu1 %v2443_v4 }
  0xbb   : > { %1842 = vmatpush3.bf16.msra.mxu0 %v2085_v25 }
  0xbc   : > { %1862 = vmatpush3.bf16.msra.mxu1 %v2086_v26  ;;  %1867 = vmatprep.subr.bf16.mxu0 %v2443_v4 }
  0xbd   : > { %1887 = vmatprep.subr.bf16.mxu1 %v2443_v4 }
 0x12c   : > { %v527_v5 = vpop.xlane.xlu0 %526 }
 0x12d   : > { %v531_v6 = vmul.f32 0.0078125, %v527_v5 }
 0x12f   : > { %v533_v7 = vsub.f32 %v2679_v0, %v531_v6 }
 0x130   : > { %v529_v8 = vpop.xlane.xlu0 %528 }
 0x131   : > { %v532_v9 = vmul.f32 0.0078125, %v529_v8  ;;  %v535_v10 = vmul.f32 %v533_v7, %v533_v7 }
 0x133   : > { %v534_v11 = vsub.f32 %v2681_v1, %v532_v9  ;;  %537 = vadd.xlane.f32.xlu1 %v535_v10 }
 0x135   : > { %v536_v12 = vmul.f32 %v534_v11, %v534_v11 }
 0x137   : > { %539 = vadd.xlane.f32.xlu1 %v536_v12 }
 0x1bc   : > { %v538_v27 = vpop.xlane.xlu1 %537 }
 0x1bd   : > { %v541_v28 = vmul.f32 0.0078125, %v538_v27 }
 0x1bf   : > { %v543_v29 = vadd.f32 1e-05, %v541_v28 }
 0x1c0   : > { %v540_v30 = vpop.xlane.xlu1 %539 }
 0x1c1   : > { %2103 = vrsqrt.f32 %v543_v29  ;;  %v542_v31 = vmul.f32 0.0078125, %v540_v30 }
 0x1c3   : > { %v544_v32 = vadd.f32 1e-05, %v542_v31 }
 0x1c5   : > { %2105 = vrsqrt.f32 %v544_v32 }
 0x1ce   : > { %v2104_v33 = vpop.eup %2103 }
 0x1cf   : > { %v547_v34 = vmul.f32 %v2104_v33, %v533_v7 }
 0x1d1   : > { %v555_v38 = vmul.f32 %v1725_v35, %v547_v34 }
 0x1d2   : > { %v2106_v36 = vpop.eup %2105 }
 0x1d3   : > { %v548_v37 = vmul.f32 %v2106_v36, %v534_v11  ;;  %v563_v41 = vadd.f32 %v1726_v39, %v555_v38  ;;  %v1745_v11 = vld [vmem:[#allocation14] ss:$0 sm:$0xff] }
 0x1d5   : > { %v556_v40 = vmul.f32 %v1725_v35, %v548_v37 }
 0x1d7   : > { %v564_v42 = vadd.f32 %v1726_v39, %v556_v40 }
 0x1d9   : > { %v565_v44 = vpack.c.bf16 %v564_v42, %v563_v41 }
 0x1db   : > { %1844 = vmatmul.mubr.bf16.vlgmr.msra.gmra.mxu0 %v565_v44  ;;  %1864 = vmatmul.mubr.bf16.vlgmr.msra.gmra.mxu1 %v565_v44 }
 0x1dc   : > { %1868 = vmatpush3.bf16.msra.mxu0 %v2087_v43  ;;  %1883 = vmatprep.mubr.msk.bf16.mxu0 %vm2444_vm0, %v2443_v4 }
 0x1dd   : > { %1869 = vmatprep.subr.bf16.mxu0 %v2443_v4  ;;  %1889 = vmatprep.mubr.msk.bf16.mxu1 %vm2444_vm0, %v2443_v4 }
 0x1e0   : > { %1870 = vmatpush3.bf16.msra.mxu0 %v2088_v45 }
 0x1e1   : > { %1871 = vmatprep.subr.bf16.mxu0 %v2443_v4 }
 0x1e4   : > { %1872 = vmatpush3.bf16.msra.mxu0 %v2089_v46 }
 0x1e5   : > { %1873 = vmatprep.subr.bf16.mxu0 %v2443_v4 }
 0x1e8   : > { %1874 = vmatpush3.bf16.msra.mxu0 %v2090_v47 }
 0x1e9   : > { %1875 = vmatprep.subr.bf16.mxu0 %v2443_v4 }
 0x1ec   : > { %1876 = vmatpush3.bf16.msra.mxu0 %v2091_v48 }
 0x1ed   : > { %1877 = vmatprep.subr.bf16.mxu0 %v2443_v4 }
 0x1f0   : > { %1878 = vmatpush3.bf16.msra.mxu0 %v2092_v49 }
 0x1f1   : > { %1879 = vmatprep.subr.bf16.mxu0 %v2443_v4 }
 0x1f4   : > { %1880 = vmatpush3.bf16.msra.mxu0 %v2093_v50 }
 0x1f5   : > { %1881 = vmatprep.subr.bf16.mxu0 %v2443_v4 }
 0x1f8   : > { %1882 = vmatpush3.bf16.msra.mxu0 %v2094_v51 }
 0x1f9   : > { %1935 = vmatprep.subr.bf16.mxu0 %v2443_v4 }
 0x1fb   : > { %1884 = vmatmul.mubr.bf16.vlgmr.msra.gmra.mxu0 %v565_v44 }
 0x1fc   : > { %1951 = vmatprep.mubr.msk.bf16.mxu0 %vm2444_vm0, %v2443_v4 }
 0x29b   : > { %v671_v52 = vpop.f32.mrf.mxu0  ;;  %v785_v53 = vpop.f32.mrf.mxu1 }
 0x29c   : > { %v786_v59 = vadd.f32 %v1736_v54, %v785_v53  ;;  %v672_v5 = vadd.f32 %v1727_v61, %v671_v52 }
 0x29d   : > { %v1845_v55 = vpop.f32.mrf.mxu0  ;;  %v1865_v56 = vpop.f32.mrf.mxu1 }
 0x29e   : > { %v678_v8 = vmul.f32 0.17677669, %v672_v5 }
 0x29f   : > { %v674_v57 = vpop.f32.mrf.mxu0  ;;  %v788_v58 = vpop.f32.mrf.mxu1 }
 0x2a0   : > { %v789_v60 = vadd.f32 %v1736_v54, %v788_v58  ;;  %v675_v2 = vadd.f32 %v1727_v61, %v674_v57 }
 0x2a1   : > { %v1846_v62 = vpop.f32.mrf.mxu0  ;;  %v1866_v63 = vpop.f32.mrf.mxu1 }
 0x2a2   : > { %v2723_v3 = vpack.c.bf16 %v789_v60, %v786_v59  ;;  %v679_v7 = vmul.f32 0.17677669, %v675_v2 }
 0x2a4   : > { %v912_v6 = vsel %vm907_vm1, %v2723_v3, 0  ;;  %v2728_v9 = vpack.c.bf16 %v679_v7, %v678_v8 }
 0x2a5   : > { %1888 = vmatpush3.bf16.xpose.msra.mxu1 %v912_v6 }
 0x2a6   : > { %1893 = vmatprep.subr.bf16.mxu1 %v2443_v4 }
 0x2ac   : > { %1890 = vmatmul.mubr.msk.bf16.vlgmr.msra.gmra.mxu1 %vm907_vm1, %v2728_v9 }
 0x2ad   : > { %1895 = vmatprep.mubr.msk.bf16.mxu1 %vm2444_vm0, %v2443_v4 }
 0x2bb   : > { %v897_v10 = vpop.f32.mrf.mxu0 }
 0x2bc   : > { %v898_v14 = vadd.f32 %v1745_v11, %v897_v10 }
 0x2bd   : > { %v1885_v12 = vpop.f32.mrf.mxu0 }
 0x2bf   : > { %v900_v13 = vpop.f32.mrf.mxu0 }
 0x2c0   : > { %v901_v15 = vadd.f32 %v1745_v11, %v900_v13 }
 0x2c1   : > { %v1886_v16 = vpop.f32.mrf.mxu0 }
 0x2c2   : > { %v2734_v17 = vpack.c.bf16 %v901_v15, %v898_v14 }
 0x2c4   : > { %1894 = vmatpush3.bf16.msra.mxu1 %v2734_v17 }
 0x2c5   : > { %1899 = vmatprep.subr.bf16.mxu1 %v2443_v4 }
 0x36c   : > { %v948_v18 = vpop.f32.mrf.mxu1 }
 0x36d   : > { %v956_v19 = vsel %vm955_vm2, %v948_v18, -inf }
 0x36e   : > { %957 = vmax.xlane.f32.xlu0 %v956_v19  ;;  %v1891_v20 = vpop.f32.mrf.mxu1 }
 0x370   : > { %v951_v21 = vpop.f32.mrf.mxu1 }
 0x371   : > { %v959_v22 = vsel %vm955_vm2, %v951_v21, -inf }
 0x372   : > { %960 = vmax.xlane.f32.xlu1 %v959_v22  ;;  %v1892_v23 = vpop.f32.mrf.mxu1 }
 0x383   : > { %1026 = vrot.lane.b32.xlu1 %v2728_v9, %s2445_s23 }
 0x384   : > { %1029 = vrot.lane.b32.xlu0 %v2723_v3, %s2445_s23 }
 0x3f7   : > { %v958_v24 = vpop.xlane.xlu0 %957 }
 0x3f8   : > { %v962_v25 = vsub.f32 %v948_v18, %v958_v24 }
 0x3fa   : > { %v964_v26 = vmul.f32 1.442695, %v962_v25 }
 0x3fb   : > { %v961_v27 = vpop.xlane.xlu1 %960  ;;  %v1030_v32 = vpop.permute.xlu0 %1029 }
 0x3fc   : > { %v963_v28 = vsub.f32 %v951_v21, %v961_v27  ;;  %2107 = vpow2.f32 %v964_v26  ;;  %v1035_v34 = vsel %vm907_vm1, %v1030_v32, 0 }
 0x3fe   : > { %v966_v29 = vmul.f32 1.442695, %v963_v28 }
 0x3ff   : > { %v1027_v35 = vpop.permute.xlu1 %1026 }
 0x400   : > { %2109 = vpow2.f32 %v966_v29 }
 0x409   : > { %v2744_v30 = vpop.eup %2107 }
 0x40d   : > { %v2746_v31 = vpop.eup %2109 }
 0x40e   : > { %v974_v33 = vpack.c.bf16 %v2746_v31, %v2744_v30 }
 0x410   : > { %1896 = vmatmul.mubr.msk.bf16.vlgmr.msra.gmra.mxu1 %vm955_vm2, %v974_v33 }
 0x411   : > { %1900 = vmatpush3.bf16.xpose.msra.mxu1 %v1035_v34  ;;  %1901 = vmatprep.mubr.msk.bf16.mxu1 %vm2444_vm0, %v2443_v4 }
 0x412   : > { %1905 = vmatprep.subr.bf16.mxu1 %v2443_v4 }
 0x418   : > { %1902 = vmatmul.mubr.msk.bf16.vlgmr.msra.gmra.mxu1 %vm907_vm1, %v1027_v35 }
 0x419   : > { %1907 = vmatprep.mubr.msk.bf16.mxu1 %vm2444_vm0, %v2443_v4 }
 0x4d0   : > { %v2758_v36 = vpop.f32.mrf.mxu1 }
 0x4d2   : > { %v1897_v37 = vpop.f32.mrf.mxu1 }
 0x4d4   : > { %v2760_v38 = vpop.f32.mrf.mxu1 }
 0x4d6   : > { %v1898_v39 = vpop.f32.mrf.mxu1 }
 0x4d8   : > { %v1071_v40 = vpop.f32.mrf.mxu1 }
 0x4d9   : > { %v1078_v41 = vsel %vm955_vm2, %v1071_v40, -inf }
 0x4da   : > { %1079 = vmax.xlane.f32.xlu1 %v1078_v41  ;;  %v1903_v42 = vpop.f32.mrf.mxu1 }
 0x4dc   : > { %v1074_v43 = vpop.f32.mrf.mxu1 }
 0x4dd   : > { %v1081_v44 = vsel %vm955_vm2, %v1074_v43, -inf }
 0x4de   : > { %1082 = vmax.xlane.f32.xlu0 %v1081_v44  ;;  %v1904_v45 = vpop.f32.mrf.mxu1 }
 0x4eb   : > { %1162 = vrot.lane.b32.xlu1 %v2723_v3, %s2446_s27 }
 0x4ef   : > { %1160 = vrot.lane.b32.xlu1 %v2728_v9, %s2446_s27 }
 0x4f4   : > { %1098 = vrot.lane.b32.xlu0 %v2734_v17, %s2445_s23 }
 0x563   : > { %v1080_v46 = vpop.xlane.xlu1 %1079 }
 0x564   : > { %v1084_v47 = vsub.f32 %v1071_v40, %v1080_v46 }
 0x566   : > { %v1086_v48 = vmul.f32 1.442695, %v1084_v47 }
 0x567   : > { %v1083_v49 = vpop.xlane.xlu0 %1082  ;;  %v1163_v55 = vpop.permute.xlu1 %1162 }
 0x568   : > { %v1085_v50 = vsub.f32 %v1074_v43, %v1083_v49  ;;  %2111 = vpow2.f32 %v1086_v48  ;;  %v1168_v57 = vsel %vm907_vm1, %v1163_v55, 0  ;;  %v971_v55 = vsel %vm955_vm2, %v2746_v31, 0.0 }
 0x56a   : > { %v1088_v51 = vmul.f32 1.442695, %v1085_v50 }
 0x56b   : > { %v1099_v52 = vpop.permute.xlu0 %1098  ;;  %v1161_v58 = vpop.permute.xlu1 %1160 }
 0x56c   : > { %2113 = vpow2.f32 %v1088_v51  ;;  %1906 = vmatpush3.bf16.msra.mxu1 %v1099_v52 }
 0x56d   : > { %1911 = vmatprep.subr.bf16.mxu1 %v2443_v4 }
 0x575   : > { %v2771_v53 = vpop.eup %2111 }
 0x576   : > { %v1090_v34 = vsel %vm955_vm2, %v2771_v53, 0.0 }
 0x579   : > { %v2773_v54 = vpop.eup %2113 }
 0x57a   : > { %v1096_v56 = vpack.c.bf16 %v2773_v54, %v2771_v53  ;;  %v1093_v35 = vsel %vm955_vm2, %v2773_v54, 0.0  ;;  %v968_v53 = vsel %vm955_vm2, %v2744_v30, 0.0 }
 0x57c   : > { %1908 = vmatmul.mubr.msk.bf16.vlgmr.msra.gmra.mxu1 %vm955_vm2, %v1096_v56 }
 0x57d   : > { %1912 = vmatpush3.bf16.xpose.msra.mxu1 %v1168_v57  ;;  %1913 = vmatprep.mubr.msk.bf16.mxu1 %vm2444_vm0, %v2443_v4 }
 0x57e   : > { %1917 = vmatprep.subr.bf16.mxu1 %v2443_v4 }
 0x584   : > { %1914 = vmatmul.mubr.msk.bf16.vlgmr.msra.gmra.mxu1 %vm907_vm1, %v1161_v58 }
 0x585   : > { %1919 = vmatprep.mubr.msk.bf16.mxu1 %vm2444_vm0, %v2443_v4 }
 0x63c   : > { %v2785_v59 = vpop.f32.mrf.mxu1 }
 0x63e   : > { %v1909_v60 = vpop.f32.mrf.mxu1 }
 0x640   : > { %v2787_v61 = vpop.f32.mrf.mxu1 }
 0x642   : > { %v1910_v62 = vpop.f32.mrf.mxu1 }
 0x644   : > { %v1204_v63 = vpop.f32.mrf.mxu1 }
 0x645   : > { %v1211_v2 = vsel %vm955_vm2, %v1204_v63, -inf }
 0x646   : > { %1212 = vmax.xlane.f32.xlu1 %v1211_v2  ;;  %v1915_v5 = vpop.f32.mrf.mxu1 }
 0x647   : > { %v2095_v5 = vld [vmem:[#allocation16 + $0x38] sm:$0xff]  }
 0x648   : > { %v1207_v6 = vpop.f32.mrf.mxu1  ;;  %1936 = vmatpush3.bf16.msra.mxu0 %v2095_v5 }
 0x649   : > { %v1214_v7 = vsel %vm955_vm2, %v1207_v6, -inf  ;;  %1937 = vmatprep.subr.bf16.mxu0 %v2443_v4 }
 0x64a   : > { %1215 = vmax.xlane.f32.xlu0 %v1214_v7  ;;  %v1916_v8 = vpop.f32.mrf.mxu1  ;;  %v2099_v7 = vld [vmem:[#allocation16 + $0x18] sm:$0xff]  }
 0x657   : > { %1294 = vrot.lane.b32.xlu1 %v2723_v3, %s2447_s12 }
 0x65b   : > { %1292 = vrot.lane.b32.xlu1 %v2728_v9, %s2447_s12 }
 0x660   : > { %1230 = vrot.lane.b32.xlu0 %v2734_v17, %s2446_s27 }
 0x6cf   : > { %v1213_v10 = vpop.xlane.xlu1 %1212 }
 0x6d0   : > { %v1217_v11 = vsub.f32 %v1204_v63, %v1213_v10 }
 0x6d2   : > { %v1219_v12 = vmul.f32 1.442695, %v1217_v11 }
 0x6d3   : > { %v1216_v13 = vpop.xlane.xlu0 %1215  ;;  %v1295_v19 = vpop.permute.xlu1 %1294 }
 0x6d4   : > { %v1218_v14 = vsub.f32 %v1207_v6, %v1216_v13  ;;  %2115 = vpow2.f32 %v1219_v12  ;;  %v1300_v9 = vsel %vm907_vm1, %v1295_v19, 0  ;;  %v2096_v6 = vld [vmem:[#allocation16 + $0x30] sm:$0xff]  }
 0x6d5   : > { %1938 = vmatpush3.bf16.msra.mxu0 %v2096_v6 }
 0x6d6   : > { %v1221_v15 = vmul.f32 1.442695, %v1218_v14  ;;  %1939 = vmatprep.subr.bf16.mxu0 %v2443_v4 }
 0x6d7   : > { %v1231_v16 = vpop.permute.xlu0 %1230  ;;  %v1293_v21 = vpop.permute.xlu1 %1292 }
 0x6d8   : > { %2117 = vpow2.f32 %v1221_v15  ;;  %1918 = vmatpush3.bf16.msra.mxu1 %v1231_v16 }
 0x6d9   : > { %1923 = vmatprep.subr.bf16.mxu1 %v2443_v4 }
 0x6e1   : > { %v2116_v18 = vpop.eup %2115 }
 0x6e2   : > { %v1223_v37 = vsel %vm955_vm2, %v2116_v18, 0.0 }
 0x6e5   : > { %v2118_v3 = vpop.eup %2117 }
 0x6e6   : > { %v1229_v20 = vpack.c.bf16 %v2118_v3, %v2116_v18  ;;  %v1226_v39 = vsel %vm955_vm2, %v2118_v3, 0.0 }
 0x6e8   : > { %1920 = vmatmul.mubr.msk.bf16.vlgmr.msra.gmra.mxu1 %vm955_vm2, %v1229_v20 }
 0x6e9   : > { %1924 = vmatpush3.bf16.xpose.msra.mxu1 %v1300_v9  ;;  %1925 = vmatprep.mubr.msk.bf16.mxu1 %vm2444_vm0, %v2443_v4  ;;  %v2100_v9 = vld [vmem:[#allocation16 + $0x10] sm:$0xff]  }
 0x6ea   : > { %1929 = vmatprep.subr.bf16.mxu1 %v2443_v4 }
 0x6f0   : > { %1926 = vmatmul.mubr.msk.bf16.vlgmr.msra.gmra.mxu1 %vm907_vm1, %v1293_v21  ;;  %v2102_v21 = vld [vmem:[#allocation16] sm:$0xff]  }
 0x6f1   : > { %1931 = vmatprep.mubr.msk.bf16.mxu1 %vm2444_vm0, %v2443_v4 }
 0x7a8   : > { %v1270_v22 = vpop.f32.mrf.mxu1 }
 0x7aa   : > { %v1921_v23 = vpop.f32.mrf.mxu1 }
 0x7ac   : > { %v1273_v24 = vpop.f32.mrf.mxu1 }
 0x7ae   : > { %v1922_v25 = vpop.f32.mrf.mxu1 }
 0x7b0   : > { %v1336_v26 = vpop.f32.mrf.mxu1 }
 0x7b1   : > { %v1343_v27 = vsel %vm955_vm2, %v1336_v26, -inf }
 0x7b2   : > { %1344 = vmax.xlane.f32.xlu0 %v1343_v27  ;;  %v1927_v28 = vpop.f32.mrf.mxu1 }
 0x7b4   : > { %v1339_v29 = vpop.f32.mrf.mxu1 }
 0x7b5   : > { %v1346_v32 = vsel %vm955_vm2, %v1339_v29, -inf }
 0x7b6   : > { %1347 = vmax.xlane.f32.xlu1 %v1346_v32  ;;  %v1928_v33 = vpop.f32.mrf.mxu1 }
 0x7ba   : > { %1091 = vadd.xlane.f32.xlu1 %v1090_v34 }
 0x7be   : > { %1094 = vadd.xlane.f32.xlu1 %v1093_v35  ;;  %v1762_v35 = vld [vmem:[#allocation17] ss:$0 sm:$0xff] }
 0x7c2   : > { %1224 = vadd.xlane.f32.xlu1 %v1223_v37 }
 0x7c6   : > { %1227 = vadd.xlane.f32.xlu1 %v1226_v39 }
 0x7c8   : > { %1362 = vrot.lane.b32.xlu0 %v2734_v17, %s2447_s12 }
 0x83b   : > { %v1345_v40 = vpop.xlane.xlu0 %1344 }
 0x83c   : > { %v1349_v41 = vsub.f32 %v1336_v26, %v1345_v40 }
 0x83e   : > { %v1351_v42 = vmul.f32 1.442695, %v1349_v41 }
 0x83f   : > { %v1363_v43 = vpop.permute.xlu0 %1362  ;;  %v1348_v44 = vpop.xlane.xlu1 %1347 }
 0x840   : > { %2119 = vpow2.f32 %v1351_v42  ;;  %v1350_v45 = vsub.f32 %v1339_v29, %v1348_v44  ;;  %1930 = vmatpush3.bf16.msra.mxu1 %v1363_v43 }
 0x842   : > { %v1353_v46 = vmul.f32 1.442695, %v1350_v45 }
 0x843   : > { %v1092_v47 = vpop.xlane.xlu1 %1091 }
 0x844   : > { %2121 = vpow2.f32 %v1353_v46 }
 0x847   : > { %v1095_v50 = vpop.xlane.xlu1 %1094 }
 0x848   : > { %2123 = vrcp.f32 %v1095_v50 }
 0x849   : > { %2125 = vrcp.f32 %v1092_v47 }
 0x84b   : > { %v1225_v54 = vpop.xlane.xlu1 %1224 }
 0x84c   : > { %2127 = vrcp.f32 %v1225_v54 }
 0x84d   : > { %v2120_v48 = vpop.eup %2119 }
 0x84e   : > { %v1355_v49 = vsel %vm955_vm2, %v2120_v48, 0.0 }
 0x84f   : > { %1356 = vadd.xlane.f32.xlu0 %v1355_v49  ;;  %v1228_v56 = vpop.xlane.xlu1 %1227 }
 0x850   : > { %2129 = vrcp.f32 %v1228_v56 }
 0x851   : > { %v2122_v51 = vpop.eup %2121 }
 0x852   : > { %v1358_v52 = vsel %vm955_vm2, %v2122_v51, 0.0  ;;  %v1361_v17 = vpack.c.bf16 %v2122_v51, %v2120_v48 }
 0x853   : > { %1359 = vadd.xlane.f32.xlu1 %v1358_v52 }
 0x854   : > { %1932 = vmatmul.mubr.msk.bf16.vlgmr.msra.gmra.mxu1 %vm955_vm2, %v1361_v17 }
 0x855   : > { %v2124_v57 = vpop.eup %2123 }
 0x856   : > { %v1148_v58 = vmul.f32 %v2124_v57, %v2787_v61  ;;  %v2126_v60 = vpop.eup %2125  ;;  %v2097_v61 = vld [vmem:[#allocation16 + $0x28] sm:$0xff]  }
 0x857   : > { %969 = vadd.xlane.f32.xlu1 %v968_v53  ;;  %v1147_v62 = vmul.f32 %v2126_v60, %v2785_v59  ;;  %1940 = vmatpush3.bf16.msra.mxu0 %v2097_v61  ;;  %v2098_v59 = vld [vmem:[#allocation16 + $0x20] sm:$0xff]  }
 0x858   : > { %1941 = vmatprep.subr.bf16.mxu0 %v2443_v4 }
 0x859   : > { %v2128_v63 = vpop.eup %2127 }
 0x85a   : > { %v1279_v30 = vmul.f32 %v2128_v63, %v1270_v22 }
 0x85b   : > { %972 = vadd.xlane.f32.xlu1 %v971_v55  ;;  %1942 = vmatpush3.bf16.msra.mxu0 %v2098_v59 }
 0x85c   : > { %1943 = vmatprep.subr.bf16.mxu0 %v2443_v4 }
 0x85d   : > { %v2130_v2 = vpop.eup %2129 }
 0x85e   : > { %v1280_v31 = vmul.f32 %v2130_v2, %v1273_v24 }
 0x85f   : > { %1944 = vmatpush3.bf16.msra.mxu0 %v2099_v7 }
 0x860   : > { %1945 = vmatprep.subr.bf16.mxu0 %v2443_v4 }
 0x863   : > { %1946 = vmatpush3.bf16.msra.mxu0 %v2100_v9 }
 0x864   : > { %1947 = vmatprep.subr.bf16.mxu0 %v2443_v4 }
 0x865   : > { %1153 = vrot.lane.b32.xlu0 %v1148_v58, %s2447_s12 }
 0x86c   : > { %1151 = vrot.lane.b32.xlu1 %v1147_v62, %s2447_s12 }
 0x870   : > { %1283 = vrot.lane.b32.xlu1 %v1279_v30, %s2446_s27 }
 0x874   : > { %1285 = vrot.lane.b32.xlu1 %v1280_v31, %s2446_s27 }
 0x8d8   : > { %v1357_v14 = vpop.xlane.xlu0 %1356 }
 0x8dc   : > { %v1360_v8 = vpop.xlane.xlu1 %1359  ;;  %v1154_v19 = vpop.permute.xlu0 %1153 }
 0x8e0   : > { %v970_v10 = vpop.xlane.xlu1 %969 }
 0x8e1   : > { %2131 = vrcp.f32 %v970_v10 }
 0x8e4   : > { %v973_v11 = vpop.xlane.xlu1 %972 }
 0x8e5   : > { %2133 = vrcp.f32 %v973_v11 }
 0x8e6   : > { %2135 = vrcp.f32 %v1357_v14 }
 0x8e7   : > { %2137 = vrcp.f32 %v1360_v8 }
 0x8e8   : > { %v1152_v12 = vpop.permute.xlu1 %1151 }
 0x8ec   : > { %v1284_v16 = vpop.permute.xlu1 %1283 }
 0x8ee   : > { %v2132_v13 = vpop.eup %2131 }
 0x8ef   : > { %v1021_v15 = vmul.f32 %v2132_v13, %v2758_v36  ;;  %v2101_v36 = vld [vmem:[#allocation16 + $0x8] sm:$0xff]  }
 0x8f0   : > { %v1286_v20 = vpop.permute.xlu1 %1285  ;;  %1948 = vmatpush3.bf16.msra.mxu0 %v2101_v36 }
 0x8f1   : > { %1023 = vst.msk [vmem:[#allocation2] sm:$0xff] %vm907_vm1, %v1021_v15  ;;  %1949 = vmatprep.subr.bf16.mxu0 %v2443_v4 }
 0x8f2   : > { %v2134_v18 = vpop.eup %2133  ;;  %1158 = vst.msk [vmem:[#allocation2] sm:$0xff] %vm1157_vm3, %v1152_v12 }
 0x8f3   : > { %v1022_v3 = vmul.f32 %v2134_v18, %v2760_v38  ;;  %1290 = vst.msk [vmem:[#allocation2] sm:$0xff] %vm1289_vm4, %v1284_v16  ;;  %v2136_v22 = vpop.eup %2135 }
 0x8f4   : > { %1950 = vmatpush3.bf16.msra.mxu0 %v2102_v21  ;;  %v2138_v25 = vpop.eup %2137 }
 0x8f5   : > { %1024 = vst.msk [vmem:[#allocation2 + $0x8] sm:$0xff] %vm907_vm1, %v1022_v3 }
 0x8f6   : > { %1159 = vst.msk [vmem:[#allocation2 + $0x8] sm:$0xff] %vm1157_vm3, %v1154_v19 }
 0x8f7   : > { %1291 = vst.msk [vmem:[#allocation2 + $0x8] sm:$0xff] %vm1289_vm4, %v1286_v20 }
 0x914   : > { %v1402_v38 = vpop.f32.mrf.mxu1 }
 0x915   : > { %v1411_v23 = vmul.f32 %v2136_v22, %v1402_v38 }
 0x916   : > { %v1933_v24 = vpop.f32.mrf.mxu1 }
 0x917   : > { %1415 = vrot.lane.b32.xlu1 %v1411_v23, %s2445_s23 }
 0x918   : > { %v1405_v26 = vpop.f32.mrf.mxu1 }
 0x919   : > { %v1412_v27 = vmul.f32 %v2138_v25, %v1405_v26 }
 0x91a   : > { %v1934_v28 = vpop.f32.mrf.mxu1 }
 0x91b   : > { %1417 = vrot.lane.b32.xlu1 %v1412_v27, %s2445_s23 }
 0x989   : > { %v1416_v29 = vpop.permute.xlu1 %1415 }
 0x98a   : > { %1422 = vst.msk [vmem:[#allocation2] sm:$0xff] %vm1421_vm5, %v1416_v29 }
 0x98d   : > { %v1418_v32 = vpop.permute.xlu1 %1417 }
 0x98e   : > { %1423 = vst.msk [vmem:[#allocation2 + $0x8] sm:$0xff] %vm1421_vm5, %v1418_v32 }
 0x991   : > { %v1424_v4 = vld [vmem:[#allocation2] sm:$0xff] }
 0x995   : > { %v1425_v33 = vld [vmem:[#allocation2 + $0x8] sm:$0xff] }
 0x996   : > { %v1426_v34 = vpack.c.bf16 %v1425_v33, %v1424_v4 }
 0x998   : > { %1952 = vmatmul.mubr.bf16.vlgmr.msra.gmra.mxu0 %v1426_v34 }
 0xa58   : > { %v1532_v37 = vpop.f32.mrf.mxu0 }
 0xa59   : > { %v1533_v39 = vadd.f32 %v1762_v35, %v1532_v37 }
 0xa5a   : > { %v1953_v40 = vpop.f32.mrf.mxu0 }
 0xa5b   : > { %v1539_v41 = vadd.f32 %v1533_v39, %v2679_v0 }
 0xa5c   : > { %v1535_v42 = vpop.f32.mrf.mxu0 }
 0xa5d   : > { %1541 = vst [vmem:[%s520_s25] sm:$0xff] %v1539_v41  ;;  %v1536_v43 = vadd.f32 %v1762_v35, %v1535_v42 }
 0xa5e   : > { %v1954_v44 = vpop.f32.mrf.mxu0 }
 0xa5f   : > { %v1540_v45 = vadd.f32 %v1536_v43, %v2681_v1 }
 0xa61   : > { %1542 = vst [vmem:[%s520_s25 + $0x8] sm:$0xff] %v1540_v45 }
 0xa62 PF: > { %s27_s17 = sadd.s32 1, %s2429_s17  }
 0xa63   : > { %p24_p9 = scmp.ge.s32.totalorder %s27_s17, 4  }
 0xa65   :  { %26 = sbr.rel (!%p24_p9) target bundleno = 6 (0x6), region = 135 }
 0xa6a   :  { %1564 = vsyncpa [#allocation4], 1 }
 0xa6b   :  { %1566 = vsyncpa [#allocation4 + $0x1], 1 }
 0xa6c   :  { %1567 = vsyncpa [#allocation6], 1 }
 0xa6d   :  { %1568 = vsyncpa [#allocation9], 1 }
 0xa6e   :  { %1569 = vsyncpa [#allocation12], 1 }
 0xa6f   :  { %1570 = vsyncpa [#allocation15], 1 }
 0xa70   :  { %1571 = vsyncpa [#allocation18], 1 }

// kernel: decoder_forward.11
= control target key start
LH: loop header
LB: loop body
LE: loop exit
PB: predicated region body
PF: predicated region fallthrough
CT: control target
= control target key end

     0   :  { %16 = vsyncpa [#allocation4], 0  ;;  %s1926_s17 = smov 0   ;;  %s2240_s0 = inlined_call_operand.vmem [shape: f32[2,16,128], index: 0, kind: input, shape index: {}, may-alias: {0,11}]   ;;  %s2241_s1 = inlined_call_operand.vmem [shape: f32[1,128], index: 1, kind: input, shape index: {}]   ;;  %s2242_s2 = inlined_call_operand.vmem [shape: f32[1,128], index: 2, kind: input, shape index: {}]   ;;  %s2243_s3 = inlined_call_operand.vmem [shape: bf16[128,128], index: 3, kind: input, shape index: {}]   ;;  %s2244_s4 = inlined_call_operand.vmem [shape: f32[1,128], index: 4, kind: input, shape index: {}]   ;;  %s2245_s5 = inlined_call_operand.vmem [shape: bf16[128,128], index: 5, kind: input, shape index: {}]   ;;  %s2246_s6 = inlined_call_operand.vmem [shape: f32[1,128], index: 6, kind: input, shape index: {}]   ;;  %s2247_s7 = inlined_call_operand.vmem [shape: bf16[128,128], index: 7, kind: input, shape index: {}]   ;;  %s2248_s8 = inlined_call_operand.vmem [shape: f32[1,128], index: 8, kind: input, shape index: {}]   ;;  %s2249_s9 = inlined_call_operand.vmem [shape: bf16[128,128], index: 9, kind: input, shape index: {}]   ;;  %s2250_s10 = inlined_call_operand.hbm [shape: f32[1,128], index: 10, kind: input, shape index: {}]   ;;  %s2251_s11 = inlined_call_operand.vmem [shape: f32[2,16,128], index: 11, kind: output, shape index: {}, may-alias: {0,11}]  }
   0x1 LB: > { %s1489_s18 = sadd.s32 4294967295, %s1858_s17   ;;  %p1491_p0 = scmp.ge.s32.totalorder %s1858_s17, 1  ;;  %s1858_s17 = sphi %s1926_s17, %s22_s17  }
   0x2   : > { %p289_p1 = scmp.lt.s32.totalorder %s1858_s17, 3  ;;  %p1738_p3 = scmp.eq.s32.totalorder %s1489_s18, 0 }
   0x3   : > { %s1860_s20 = smov [#allocation3]  }
   0x4   : > { %p1934_p2 = pnand %p1491_p0, %p289_p1  ;;  %s329_s21 = sshll.u32 %s1860_s20, 4  ;;  %s330_s21 = int_to_ptr.vmem [resolvable:$true] %s329_s21 }
   0x5   : > { %s1833_s22 = scalar_lea.vmem %s330_s21, 16  ;;  %s1840_s23 = scalar_lea.vmem %s330_s21, 32 }
   0x6   : > { %p1734_p4 = pneg %p1934_p2  ;;  %p1834_p7 = scmp.ne.s32.totalorder %s330_s21, %s1833_s22 }
   0x7   : > { %p1841_p10 = scmp.lt.s32.totalorder %s330_s21, %s330_s21  ;;  %p1842_p11 = scmp.lt.s32.totalorder %s1840_s23, %s1833_s22 }
   0x8   : > { %p1735_p5 = pnand %p1738_p3, %p1734_p4 }
   0x9   : > { %p1843_p12 = por %p1842_p11, %p1841_p10 }
   0xa   : > { %p1824_p6 = pneg %p1735_p5 }
   0xc   : > { %p1836_p8 = pnand %p1834_p7, %p1824_p6 }
   0xe   : > { %p1837_p9 = pneg %p1836_p8 }
  0x10   : > { %p1844_p13 = pnand %p1843_p12, %p1837_p9 }
  0x12   : > { %1847 = shalt.err (!%p1844_p13)
}
  0x13   : > { %1737 = dma.hbm_to_vmem [thread:$0]  (!%p1735_p5), %s2250_s10, 16, %s330_s21, [#allocation4]  }
  0x14   : > { %350 = sbr.rel (%p1934_p2) target bundleno = 2527 (0x9df), region = 64 }
  0x19   : > { %1853 = dma.done.wait (%p1738_p3), [#allocation4], 16  }
  0x1a   : > { %1855 = vsyncadd (%p1738_p3), [#allocation4], 4294967280  ;;  %p390_p0 = scmp.lt.s32.totalorder %s1489_s18, 1  ;;  %v1754_v2 = vld [vmem:[%s2243_s3 + $0x38] sm:$0xff]   ;;  %v1861_v4 = vmov 0.0   ;;  %v1756_v13 = vld [vmem:[%s2243_s3 + $0x30] sm:$0xff]  }
  0x1b   : > { %v1755_v3 = vld [vmem:[%s2245_s5 + $0x38] sm:$0xff]   ;;  %1602 = vmatprep.subr.bf16.mxu0 %v1861_v4  ;;  %1622 = vmatprep.subr.bf16.mxu1 %v1861_v4  ;;  %v1757_v14 = vld [vmem:[%s2245_s5 + $0x30] sm:$0xff]   ;;  %v1758_v15 = vld [vmem:[%s2243_s3 + $0x28] sm:$0xff]   ;;  %vm1862_vm0 = vmmov 0   ;;  %vm786_vm1 = vcmask 261120   ;;  %vm834_vm2 = vcmask 130048  }
  0x1c   : > { %s2254_s18 = smov (!%p390_p0, %s1489_s18), 1  ;;  %1603 = vmatpush3.bf16.msra.mxu0 %v1754_v2  ;;  %1623 = vmatpush3.bf16.msra.mxu1 %v1755_v3  ;;  %v1759_v16 = vld [vmem:[%s2245_s5 + $0x28] sm:$0xff]   ;;  %v1760_v17 = vld [vmem:[%s2243_s3 + $0x20] sm:$0xff]   ;;  %v1762_v19 = vld [vmem:[%s2243_s3 + $0x18] sm:$0xff]   ;;  %s1863_s23 = smov 96   ;;  %vm1036_vm3 = vcmask 523520  }
  0x1d   : > { %s1548_s26 = sshll.u32 %s2254_s18, 4  ;;  %1604 = vmatprep.subr.bf16.mxu0 %v1861_v4  ;;  %1624 = vmatprep.subr.bf16.mxu1 %v1861_v4  ;;  %v1761_v18 = vld [vmem:[%s2245_s5 + $0x20] sm:$0xff]   ;;  %v1763_v20 = vld [vmem:[%s2245_s5 + $0x18] sm:$0xff]   ;;  %v1764_v21 = vld [vmem:[%s2243_s3 + $0x10] sm:$0xff]   ;;  %s1864_s24 = smov 64   ;;  %vm1168_vm4 = vcmask 785920  }
  0x1e   : > { %s394_s29 = scalar_lea.vmem %s2240_s0, %s1548_s26  ;;  %1618 = vmatprep.mubr.msk.bf16.mxu0 %vm1862_vm0, %v1861_v4  ;;  %1638 = vmatprep.mubr.msk.bf16.mxu1 %vm1862_vm0, %v1861_v4  ;;  %v1765_v22 = vld [vmem:[%s2245_s5 + $0x10] sm:$0xff]   ;;  %v1766_v23 = vld [vmem:[%s2243_s3 + $0x8] sm:$0xff]   ;;  %v1768_v25 = vld [vmem:[%s2243_s3] sm:$0xff]   ;;  %s1865_s25 = smov 32   ;;  %vm1300_vm5 = vcmask 1048320  }
  0x1f   : > { %v1956_v0 = vld [vmem:[%s394_s29] sm:$0xff]  ;;  %v1958_v1 = vld [vmem:[%s394_s29 + $0x8] sm:$0xff]  ;;  %v1770_v43 = vld [vmem:[%s2247_s7 + $0x38] sm:$0xff]   ;;  %s399_s30 = scalar_lea.vmem %s2251_s11, %s1548_s26 }
  0x20   : > { %405 = vadd.xlane.f32.xlu0 %v1956_v0  ;;  %1605 = vmatpush3.bf16.msra.mxu0 %v1756_v13  ;;  %v1767_v24 = vld [vmem:[%s2245_s5 + $0x8] sm:$0xff]   ;;  %v1769_v26 = vld [vmem:[%s2245_s5] sm:$0xff]   ;;  %v1771_v45 = vld [vmem:[%s2247_s7 + $0x30] sm:$0xff]  }
  0x21   : > { %1625 = vmatpush3.bf16.msra.mxu1 %v1757_v14  ;;  %1606 = vmatprep.subr.bf16.mxu0 %v1861_v4  ;;  %v1500_v35 = vld [vmem:[%s2241_s1] ss:$0 sm:$0xff]  ;;  %v1772_v46 = vld [vmem:[%s2247_s7 + $0x28] sm:$0xff]   ;;  %v1774_v48 = vld [vmem:[%s2247_s7 + $0x18] sm:$0xff]  }
  0x22   : > { %1626 = vmatprep.subr.bf16.mxu1 %v1861_v4  ;;  %v1501_v39 = vld [vmem:[%s2242_s2] ss:$0 sm:$0xff]  ;;  %v1775_v49 = vld [vmem:[%s2247_s7 + $0x10] sm:$0xff]   ;;  %v1776_v50 = vld [vmem:[%s2247_s7 + $0x8] sm:$0xff]  }
  0x23   : > { %v1773_v47 = vld [vmem:[%s2247_s7 + $0x20] sm:$0xff]  }
  0x24   : > { %407 = vadd.xlane.f32.xlu0 %v1958_v1  ;;  %1607 = vmatpush3.bf16.msra.mxu0 %v1758_v15  ;;  %v1777_v51 = vld [vmem:[%s2247_s7] sm:$0xff]  }
  0x25   : > { %1627 = vmatpush3.bf16.msra.mxu1 %v1759_v16  ;;  %1608 = vmatprep.subr.bf16.mxu0 %v1861_v4  ;;  %v1511_v54 = vld [vmem:[%s2246_s6] ss:$0 sm:$0xff] }
  0x26   : > { %1628 = vmatprep.subr.bf16.mxu1 %v1861_v4  ;;  %v1502_v61 = vld [vmem:[%s2244_s4] ss:$0 sm:$0xff] }
  0x28   : > { %1609 = vmatpush3.bf16.msra.mxu0 %v1760_v17 }
  0x29   : > { %1629 = vmatpush3.bf16.msra.mxu1 %v1761_v18  ;;  %1610 = vmatprep.subr.bf16.mxu0 %v1861_v4 }
  0x2a   : > { %1630 = vmatprep.subr.bf16.mxu1 %v1861_v4 }
  0x2c   : > { %1611 = vmatpush3.bf16.msra.mxu0 %v1762_v19 }
  0x2d   : > { %1631 = vmatpush3.bf16.msra.mxu1 %v1763_v20  ;;  %1612 = vmatprep.subr.bf16.mxu0 %v1861_v4 }
  0x2e   : > { %1632 = vmatprep.subr.bf16.mxu1 %v1861_v4 }
  0x30   : > { %1613 = vmatpush3.bf16.msra.mxu0 %v1764_v21 }
  0x31   : > { %1633 = vmatpush3.bf16.msra.mxu1 %v1765_v22  ;;  %1614 = vmatprep.subr.bf16.mxu0 %v1861_v4 }
  0x32   : > { %1634 = vmatprep.subr.bf16.mxu1 %v1861_v4 }
  0x34   : > { %1615 = vmatpush3.bf16.msra.mxu0 %v1766_v23 }
  0x35   : > { %1635 = vmatpush3.bf16.msra.mxu1 %v1767_v24  ;;  %1616 = vmatprep.subr.bf16.mxu0 %v1861_v4 }
  0x36   : > { %1636 = vmatprep.subr.bf16.mxu1 %v1861_v4 }
  0x38   : > { %1617 = vmatpush3.bf16.msra.mxu0 %v1768_v25 }
  0x39   : > { %1637 = vmatpush3.bf16.msra.mxu1 %v1769_v26  ;;  %1642 = vmatprep.subr.bf16.mxu0 %v1861_v4 }
  0x3a   : > { %1662 = vmatprep.subr.bf16.mxu1 %v1861_v4 }
  0xa9   : > { %v406_v5 = vpop.xlane.xlu0 %405 }
  0xaa   : > { %v410_v6 = vmul.f32 0.0078125, %v406_v5 }
  0xac   : > { %v412_v7 = vsub.f32 %v1956_v0, %v410_v6 }
  0xad   : > { %v408_v8 = vpop.xlane.xlu0 %407 }
  0xae   : > { %v411_v9 = vmul.f32 0.0078125, %v408_v8  ;;  %v414_v10 = vmul.f32 %v412_v7, %v412_v7 }
  0xb0   : > { %v413_v11 = vsub.f32 %v1958_v1, %v411_v9  ;;  %416 = vadd.xlane.f32.xlu1 %v414_v10 }
  0xb2   : > { %v415_v12 = vmul.f32 %v413_v11, %v413_v11 }
  0xb4   : > { %418 = vadd.xlane.f32.xlu1 %v415_v12 }
 0x139   : > { %v417_v27 = vpop.xlane.xlu1 %416 }
 0x13a   : > { %v420_v28 = vmul.f32 0.0078125, %v417_v27 }
 0x13c   : > { %v422_v29 = vadd.f32 1e-05, %v420_v28 }
 0x13d   : > { %v419_v30 = vpop.xlane.xlu1 %418 }
 0x13e   : > { %1786 = vrsqrt.f32 %v422_v29  ;;  %v421_v31 = vmul.f32 0.0078125, %v419_v30 }
 0x140   : > { %v423_v32 = vadd.f32 1e-05, %v421_v31 }
 0x142   : > { %1788 = vrsqrt.f32 %v423_v32 }
 0x14b   : > { %v1787_v33 = vpop.eup %1786 }
 0x14c   : > { %v426_v34 = vmul.f32 %v1787_v33, %v412_v7 }
 0x14e   : > { %v434_v38 = vmul.f32 %v1500_v35, %v426_v34 }
 0x14f   : > { %v1789_v36 = vpop.eup %1788 }
 0x150   : > { %v427_v37 = vmul.f32 %v1789_v36, %v413_v11  ;;  %v442_v41 = vadd.f32 %v1501_v39, %v434_v38  ;;  %v1520_v11 = vld [vmem:[%s2248_s8] ss:$0 sm:$0xff] }
 0x152   : > { %v435_v40 = vmul.f32 %v1500_v35, %v427_v37 }
 0x154   : > { %v443_v42 = vadd.f32 %v1501_v39, %v435_v40 }
 0x156   : > { %v444_v44 = vpack.c.bf16 %v443_v42, %v442_v41 }
 0x158   : > { %1619 = vmatmul.mubr.bf16.vlgmr.msra.gmra.mxu0 %v444_v44  ;;  %1639 = vmatmul.mubr.bf16.vlgmr.msra.gmra.mxu1 %v444_v44 }
 0x159   : > { %1643 = vmatpush3.bf16.msra.mxu0 %v1770_v43  ;;  %1658 = vmatprep.mubr.msk.bf16.mxu0 %vm1862_vm0, %v1861_v4 }
 0x15a   : > { %1644 = vmatprep.subr.bf16.mxu0 %v1861_v4  ;;  %1664 = vmatprep.mubr.msk.bf16.mxu1 %vm1862_vm0, %v1861_v4 }
 0x15d   : > { %1645 = vmatpush3.bf16.msra.mxu0 %v1771_v45 }
 0x15e   : > { %1646 = vmatprep.subr.bf16.mxu0 %v1861_v4 }
 0x161   : > { %1647 = vmatpush3.bf16.msra.mxu0 %v1772_v46 }
 0x162   : > { %1648 = vmatprep.subr.bf16.mxu0 %v1861_v4 }
 0x165   : > { %1649 = vmatpush3.bf16.msra.mxu0 %v1773_v47 }
 0x166   : > { %1650 = vmatprep.subr.bf16.mxu0 %v1861_v4 }
 0x169   : > { %1651 = vmatpush3.bf16.msra.mxu0 %v1774_v48 }
 0x16a   : > { %1652 = vmatprep.subr.bf16.mxu0 %v1861_v4 }
 0x16d   : > { %1653 = vmatpush3.bf16.msra.mxu0 %v1775_v49 }
 0x16e   : > { %1654 = vmatprep.subr.bf16.mxu0 %v1861_v4 }
 0x171   : > { %1655 = vmatpush3.bf16.msra.mxu0 %v1776_v50 }
 0x172   : > { %1656 = vmatprep.subr.bf16.mxu0 %v1861_v4 }
 0x175   : > { %1657 = vmatpush3.bf16.msra.mxu0 %v1777_v51 }
 0x176   : > { %1710 = vmatprep.subr.bf16.mxu0 %v1861_v4 }
 0x178   : > { %1659 = vmatmul.mubr.bf16.vlgmr.msra.gmra.mxu0 %v444_v44 }
 0x179   : > { %1726 = vmatprep.mubr.msk.bf16.mxu0 %vm1862_vm0, %v1861_v4 }
 0x218   : > { %v550_v52 = vpop.f32.mrf.mxu0  ;;  %v664_v53 = vpop.f32.mrf.mxu1 }
 0x219   : > { %v665_v59 = vadd.f32 %v1511_v54, %v664_v53  ;;  %v551_v5 = vadd.f32 %v1502_v61, %v550_v52 }
 0x21a   : > { %v1620_v55 = vpop.f32.mrf.mxu0  ;;  %v1640_v56 = vpop.f32.mrf.mxu1 }
 0x21b   : > { %v557_v8 = vmul.f32 0.17677669, %v551_v5 }
 0x21c   : > { %v553_v57 = vpop.f32.mrf.mxu0  ;;  %v667_v58 = vpop.f32.mrf.mxu1 }
 0x21d   : > { %v668_v60 = vadd.f32 %v1511_v54, %v667_v58  ;;  %v554_v2 = vadd.f32 %v1502_v61, %v553_v57 }
 0x21e   : > { %v1621_v62 = vpop.f32.mrf.mxu0  ;;  %v1641_v63 = vpop.f32.mrf.mxu1 }
 0x21f   : > { %v2084_v3 = vpack.c.bf16 %v668_v60, %v665_v59  ;;  %v558_v7 = vmul.f32 0.17677669, %v554_v2 }
 0x221   : > { %v791_v6 = vsel %vm786_vm1, %v2084_v3, 0  ;;  %v2089_v9 = vpack.c.bf16 %v558_v7, %v557_v8 }
 0x222   : > { %1663 = vmatpush3.bf16.xpose.msra.mxu1 %v791_v6 }
 0x223   : > { %1668 = vmatprep.subr.bf16.mxu1 %v1861_v4 }
 0x229   : > { %1665 = vmatmul.mubr.msk.bf16.vlgmr.msra.gmra.mxu1 %vm786_vm1, %v2089_v9 }
 0x22a   : > { %1670 = vmatprep.mubr.msk.bf16.mxu1 %vm1862_vm0, %v1861_v4 }
 0x238   : > { %v776_v10 = vpop.f32.mrf.mxu0 }
 0x239   : > { %v777_v14 = vadd.f32 %v1520_v11, %v776_v10 }
 0x23a   : > { %v1660_v12 = vpop.f32.mrf.mxu0 }
 0x23c   : > { %v779_v13 = vpop.f32.mrf.mxu0 }
 0x23d   : > { %v780_v15 = vadd.f32 %v1520_v11, %v779_v13 }
 0x23e   : > { %v1661_v16 = vpop.f32.mrf.mxu0 }
 0x23f   : > { %v2098_v17 = vpack.c.bf16 %v780_v15, %v777_v14 }
 0x241   : > { %1669 = vmatpush3.bf16.msra.mxu1 %v2098_v17 }
 0x242   : > { %1674 = vmatprep.subr.bf16.mxu1 %v1861_v4 }
 0x2e9   : > { %v827_v18 = vpop.f32.mrf.mxu1 }
 0x2ea   : > { %v835_v19 = vsel %vm834_vm2, %v827_v18, -inf }
 0x2eb   : > { %836 = vmax.xlane.f32.xlu0 %v835_v19  ;;  %v1666_v20 = vpop.f32.mrf.mxu1 }
 0x2ed   : > { %v830_v21 = vpop.f32.mrf.mxu1 }
 0x2ee   : > { %v838_v22 = vsel %vm834_vm2, %v830_v21, -inf }
 0x2ef   : > { %839 = vmax.xlane.f32.xlu1 %v838_v22  ;;  %v1667_v23 = vpop.f32.mrf.mxu1 }
 0x300   : > { %905 = vrot.lane.b32.xlu1 %v2089_v9, %s1863_s23 }
 0x301   : > { %908 = vrot.lane.b32.xlu0 %v2084_v3, %s1863_s23 }
 0x374   : > { %v837_v24 = vpop.xlane.xlu0 %836 }
 0x375   : > { %v841_v25 = vsub.f32 %v827_v18, %v837_v24 }
 0x377   : > { %v843_v26 = vmul.f32 1.442695, %v841_v25 }
 0x378   : > { %v840_v27 = vpop.xlane.xlu1 %839  ;;  %v909_v32 = vpop.permute.xlu0 %908 }
 0x379   : > { %v842_v28 = vsub.f32 %v830_v21, %v840_v27  ;;  %1790 = vpow2.f32 %v843_v26  ;;  %v914_v34 = vsel %vm786_vm1, %v909_v32, 0 }
 0x37b   : > { %v845_v29 = vmul.f32 1.442695, %v842_v28 }
 0x37c   : > { %v906_v35 = vpop.permute.xlu1 %905 }
 0x37d   : > { %1792 = vpow2.f32 %v845_v29 }
 0x386   : > { %v2108_v30 = vpop.eup %1790 }
 0x38a   : > { %v2110_v31 = vpop.eup %1792 }
 0x38b   : > { %v853_v33 = vpack.c.bf16 %v2110_v31, %v2108_v30 }
 0x38d   : > { %1671 = vmatmul.mubr.msk.bf16.vlgmr.msra.gmra.mxu1 %vm834_vm2, %v853_v33 }
 0x38e   : > { %1675 = vmatpush3.bf16.xpose.msra.mxu1 %v914_v34  ;;  %1676 = vmatprep.mubr.msk.bf16.mxu1 %vm1862_vm0, %v1861_v4 }
 0x38f   : > { %1680 = vmatprep.subr.bf16.mxu1 %v1861_v4 }
 0x395   : > { %1677 = vmatmul.mubr.msk.bf16.vlgmr.msra.gmra.mxu1 %vm786_vm1, %v906_v35 }
 0x396   : > { %1682 = vmatprep.mubr.msk.bf16.mxu1 %vm1862_vm0, %v1861_v4 }
 0x44d   : > { %v2122_v36 = vpop.f32.mrf.mxu1 }
 0x44f   : > { %v1672_v37 = vpop.f32.mrf.mxu1 }
 0x451   : > { %v2124_v38 = vpop.f32.mrf.mxu1 }
 0x453   : > { %v1673_v39 = vpop.f32.mrf.mxu1 }
 0x455   : > { %v950_v40 = vpop.f32.mrf.mxu1 }
 0x456   : > { %v957_v41 = vsel %vm834_vm2, %v950_v40, -inf }
 0x457   : > { %958 = vmax.xlane.f32.xlu1 %v957_v41  ;;  %v1678_v42 = vpop.f32.mrf.mxu1 }
 0x459   : > { %v953_v43 = vpop.f32.mrf.mxu1 }
 0x45a   : > { %v960_v44 = vsel %vm834_vm2, %v953_v43, -inf }
 0x45b   : > { %961 = vmax.xlane.f32.xlu0 %v960_v44  ;;  %v1679_v45 = vpop.f32.mrf.mxu1 }
 0x468   : > { %1041 = vrot.lane.b32.xlu1 %v2084_v3, %s1864_s24 }
 0x46c   : > { %1039 = vrot.lane.b32.xlu1 %v2089_v9, %s1864_s24 }
 0x471   : > { %977 = vrot.lane.b32.xlu0 %v2098_v17, %s1863_s23 }
 0x4e0   : > { %v959_v46 = vpop.xlane.xlu1 %958 }
 0x4e1   : > { %v963_v47 = vsub.f32 %v950_v40, %v959_v46 }
 0x4e3   : > { %v965_v48 = vmul.f32 1.442695, %v963_v47 }
 0x4e4   : > { %v962_v49 = vpop.xlane.xlu0 %961  ;;  %v1042_v55 = vpop.permute.xlu1 %1041 }
 0x4e5   : > { %v964_v50 = vsub.f32 %v953_v43, %v962_v49  ;;  %1794 = vpow2.f32 %v965_v48  ;;  %v1047_v57 = vsel %vm786_vm1, %v1042_v55, 0  ;;  %v850_v55 = vsel %vm834_vm2, %v2110_v31, 0.0 }
 0x4e7   : > { %v967_v51 = vmul.f32 1.442695, %v964_v50 }
 0x4e8   : > { %v978_v52 = vpop.permute.xlu0 %977  ;;  %v1040_v58 = vpop.permute.xlu1 %1039 }
 0x4e9   : > { %1796 = vpow2.f32 %v967_v51  ;;  %1681 = vmatpush3.bf16.msra.mxu1 %v978_v52 }
 0x4ea   : > { %1686 = vmatprep.subr.bf16.mxu1 %v1861_v4 }
 0x4f2   : > { %v2135_v53 = vpop.eup %1794 }
 0x4f3   : > { %v969_v34 = vsel %vm834_vm2, %v2135_v53, 0.0 }
 0x4f6   : > { %v2137_v54 = vpop.eup %1796 }
 0x4f7   : > { %v975_v56 = vpack.c.bf16 %v2137_v54, %v2135_v53  ;;  %v972_v35 = vsel %vm834_vm2, %v2137_v54, 0.0  ;;  %v847_v53 = vsel %vm834_vm2, %v2108_v30, 0.0 }
 0x4f9   : > { %1683 = vmatmul.mubr.msk.bf16.vlgmr.msra.gmra.mxu1 %vm834_vm2, %v975_v56 }
 0x4fa   : > { %1687 = vmatpush3.bf16.xpose.msra.mxu1 %v1047_v57  ;;  %1688 = vmatprep.mubr.msk.bf16.mxu1 %vm1862_vm0, %v1861_v4 }
 0x4fb   : > { %1692 = vmatprep.subr.bf16.mxu1 %v1861_v4 }
 0x501   : > { %1689 = vmatmul.mubr.msk.bf16.vlgmr.msra.gmra.mxu1 %vm786_vm1, %v1040_v58 }
 0x502   : > { %1694 = vmatprep.mubr.msk.bf16.mxu1 %vm1862_vm0, %v1861_v4 }
 0x5b9   : > { %v2149_v59 = vpop.f32.mrf.mxu1 }
 0x5bb   : > { %v1684_v60 = vpop.f32.mrf.mxu1 }
 0x5bd   : > { %v2151_v61 = vpop.f32.mrf.mxu1 }
 0x5bf   : > { %v1685_v62 = vpop.f32.mrf.mxu1 }
 0x5c1   : > { %v1083_v63 = vpop.f32.mrf.mxu1 }
 0x5c2   : > { %v1090_v2 = vsel %vm834_vm2, %v1083_v63, -inf }
 0x5c3   : > { %1091 = vmax.xlane.f32.xlu1 %v1090_v2  ;;  %v1690_v5 = vpop.f32.mrf.mxu1 }
 0x5c4   : > { %v1778_v5 = vld [vmem:[%s2249_s9 + $0x38] sm:$0xff]  }
 0x5c5   : > { %v1086_v6 = vpop.f32.mrf.mxu1  ;;  %1711 = vmatpush3.bf16.msra.mxu0 %v1778_v5 }
 0x5c6   : > { %v1093_v7 = vsel %vm834_vm2, %v1086_v6, -inf  ;;  %1712 = vmatprep.subr.bf16.mxu0 %v1861_v4 }
 0x5c7   : > { %1094 = vmax.xlane.f32.xlu0 %v1093_v7  ;;  %v1691_v8 = vpop.f32.mrf.mxu1  ;;  %v1782_v7 = vld [vmem:[%s2249_s9 + $0x18] sm:$0xff]  }
 0x5d4   : > { %1173 = vrot.lane.b32.xlu1 %v2084_v3, %s1865_s25 }
 0x5d8   : > { %1171 = vrot.lane.b32.xlu1 %v2089_v9, %s1865_s25 }
 0x5dd   : > { %1109 = vrot.lane.b32.xlu0 %v2098_v17, %s1864_s24 }
 0x64c   : > { %v1092_v10 = vpop.xlane.xlu1 %1091 }
 0x64d   : > { %v1096_v11 = vsub.f32 %v1083_v63, %v1092_v10 }
 0x64f   : > { %v1098_v12 = vmul.f32 1.442695, %v1096_v11 }
 0x650   : > { %v1095_v13 = vpop.xlane.xlu0 %1094  ;;  %v1174_v19 = vpop.permute.xlu1 %1173 }
 0x651   : > { %v1097_v14 = vsub.f32 %v1086_v6, %v1095_v13  ;;  %1798 = vpow2.f32 %v1098_v12  ;;  %v1179_v9 = vsel %vm786_vm1, %v1174_v19, 0  ;;  %v1781_v6 = vld [vmem:[%s2249_s9 + $0x20] sm:$0xff]  }
 0x653   : > { %v1100_v15 = vmul.f32 1.442695, %v1097_v14 }
 0x654   : > { %v1110_v16 = vpop.permute.xlu0 %1109  ;;  %v1172_v21 = vpop.permute.xlu1 %1171 }
 0x655   : > { %1800 = vpow2.f32 %v1100_v15  ;;  %1693 = vmatpush3.bf16.msra.mxu1 %v1110_v16 }
 0x656   : > { %1698 = vmatprep.subr.bf16.mxu1 %v1861_v4 }
 0x65e   : > { %v1799_v18 = vpop.eup %1798 }
 0x65f   : > { %v1102_v37 = vsel %vm834_vm2, %v1799_v18, 0.0 }
 0x662   : > { %v1801_v3 = vpop.eup %1800 }
 0x663   : > { %v1108_v20 = vpack.c.bf16 %v1801_v3, %v1799_v18  ;;  %v1105_v39 = vsel %vm834_vm2, %v1801_v3, 0.0 }
 0x665   : > { %1695 = vmatmul.mubr.msk.bf16.vlgmr.msra.gmra.mxu1 %vm834_vm2, %v1108_v20 }
 0x666   : > { %1699 = vmatpush3.bf16.xpose.msra.mxu1 %v1179_v9  ;;  %1700 = vmatprep.mubr.msk.bf16.mxu1 %vm1862_vm0, %v1861_v4  ;;  %v1785_v9 = vld [vmem:[%s2249_s9] sm:$0xff]  }
 0x667   : > { %1704 = vmatprep.subr.bf16.mxu1 %v1861_v4 }
 0x66d   : > { %1701 = vmatmul.mubr.msk.bf16.vlgmr.msra.gmra.mxu1 %vm786_vm1, %v1172_v21 }
 0x66e   : > { %1706 = vmatprep.mubr.msk.bf16.mxu1 %vm1862_vm0, %v1861_v4 }
 0x725   : > { %v1149_v22 = vpop.f32.mrf.mxu1 }
 0x727   : > { %v1696_v23 = vpop.f32.mrf.mxu1 }
 0x729   : > { %v1152_v24 = vpop.f32.mrf.mxu1 }
 0x72b   : > { %v1697_v25 = vpop.f32.mrf.mxu1 }
 0x72d   : > { %v1215_v26 = vpop.f32.mrf.mxu1 }
 0x72e   : > { %v1222_v27 = vsel %vm834_vm2, %v1215_v26, -inf }
 0x72f   : > { %1223 = vmax.xlane.f32.xlu0 %v1222_v27  ;;  %v1702_v28 = vpop.f32.mrf.mxu1 }
 0x731   : > { %v1218_v29 = vpop.f32.mrf.mxu1 }
 0x732   : > { %v1225_v32 = vsel %vm834_vm2, %v1218_v29, -inf }
 0x733   : > { %1226 = vmax.xlane.f32.xlu1 %v1225_v32  ;;  %v1703_v33 = vpop.f32.mrf.mxu1 }
 0x737   : > { %970 = vadd.xlane.f32.xlu1 %v969_v34 }
 0x73b   : > { %973 = vadd.xlane.f32.xlu1 %v972_v35  ;;  %v1537_v35 = vld [vmem:[#allocation3] ss:$0 sm:$0xff] }
 0x73f   : > { %1103 = vadd.xlane.f32.xlu1 %v1102_v37 }
 0x743   : > { %1106 = vadd.xlane.f32.xlu1 %v1105_v39 }
 0x745   : > { %1241 = vrot.lane.b32.xlu0 %v2098_v17, %s1865_s25 }
 0x7b8   : > { %v1224_v40 = vpop.xlane.xlu0 %1223 }
 0x7b9   : > { %v1228_v41 = vsub.f32 %v1215_v26, %v1224_v40 }
 0x7bb   : > { %v1230_v42 = vmul.f32 1.442695, %v1228_v41 }
 0x7bc   : > { %v1242_v43 = vpop.permute.xlu0 %1241  ;;  %v1227_v44 = vpop.xlane.xlu1 %1226 }
 0x7bd   : > { %1802 = vpow2.f32 %v1230_v42  ;;  %v1229_v45 = vsub.f32 %v1218_v29, %v1227_v44  ;;  %1705 = vmatpush3.bf16.msra.mxu1 %v1242_v43 }
 0x7bf   : > { %v1232_v46 = vmul.f32 1.442695, %v1229_v45 }
 0x7c0   : > { %v971_v47 = vpop.xlane.xlu1 %970 }
 0x7c1   : > { %1804 = vpow2.f32 %v1232_v46 }
 0x7c4   : > { %v974_v50 = vpop.xlane.xlu1 %973 }
 0x7c5   : > { %1806 = vrcp.f32 %v974_v50 }
 0x7c6   : > { %1808 = vrcp.f32 %v971_v47 }
 0x7c8   : > { %v1104_v54 = vpop.xlane.xlu1 %1103 }
 0x7c9   : > { %1810 = vrcp.f32 %v1104_v54 }
 0x7ca   : > { %v1803_v48 = vpop.eup %1802 }
 0x7cb   : > { %v1234_v49 = vsel %vm834_vm2, %v1803_v48, 0.0 }
 0x7cc   : > { %1235 = vadd.xlane.f32.xlu0 %v1234_v49  ;;  %v1107_v56 = vpop.xlane.xlu1 %1106 }
 0x7cd   : > { %1812 = vrcp.f32 %v1107_v56 }
 0x7ce   : > { %v1805_v51 = vpop.eup %1804 }
 0x7cf   : > { %v1237_v52 = vsel %vm834_vm2, %v1805_v51, 0.0  ;;  %v1240_v17 = vpack.c.bf16 %v1805_v51, %v1803_v48 }
 0x7d0   : > { %1238 = vadd.xlane.f32.xlu1 %v1237_v52 }
 0x7d1   : > { %1707 = vmatmul.mubr.msk.bf16.vlgmr.msra.gmra.mxu1 %vm834_vm2, %v1240_v17 }
 0x7d2   : > { %v1807_v57 = vpop.eup %1806 }
 0x7d3   : > { %v1027_v58 = vmul.f32 %v1807_v57, %v2151_v61  ;;  %v1809_v60 = vpop.eup %1808  ;;  %v1779_v61 = vld [vmem:[%s2249_s9 + $0x30] sm:$0xff]  }
 0x7d4   : > { %848 = vadd.xlane.f32.xlu1 %v847_v53  ;;  %v1026_v62 = vmul.f32 %v1809_v60, %v2149_v59  ;;  %1713 = vmatpush3.bf16.msra.mxu0 %v1779_v61  ;;  %v1780_v59 = vld [vmem:[%s2249_s9 + $0x28] sm:$0xff]  }
 0x7d5   : > { %1714 = vmatprep.subr.bf16.mxu0 %v1861_v4 }
 0x7d6   : > { %v1811_v63 = vpop.eup %1810 }
 0x7d7   : > { %v1158_v30 = vmul.f32 %v1811_v63, %v1149_v22 }
 0x7d8   : > { %851 = vadd.xlane.f32.xlu1 %v850_v55  ;;  %1715 = vmatpush3.bf16.msra.mxu0 %v1780_v59 }
 0x7d9   : > { %1716 = vmatprep.subr.bf16.mxu0 %v1861_v4 }
 0x7da   : > { %v1813_v2 = vpop.eup %1812 }
 0x7db   : > { %v1159_v31 = vmul.f32 %v1813_v2, %v1152_v24 }
 0x7dc   : > { %1717 = vmatpush3.bf16.msra.mxu0 %v1781_v6 }
 0x7dd   : > { %1718 = vmatprep.subr.bf16.mxu0 %v1861_v4 }
 0x7e0   : > { %1719 = vmatpush3.bf16.msra.mxu0 %v1782_v7 }
 0x7e1   : > { %1720 = vmatprep.subr.bf16.mxu0 %v1861_v4 }
 0x7e2   : > { %1032 = vrot.lane.b32.xlu0 %v1027_v58, %s1865_s25 }
 0x7e9   : > { %1030 = vrot.lane.b32.xlu1 %v1026_v62, %s1865_s25 }
 0x7ed   : > { %1162 = vrot.lane.b32.xlu1 %v1158_v30, %s1864_s24 }
 0x7f1   : > { %1164 = vrot.lane.b32.xlu1 %v1159_v31, %s1864_s24 }
 0x855   : > { %v1236_v14 = vpop.xlane.xlu0 %1235 }
 0x859   : > { %v1239_v8 = vpop.xlane.xlu1 %1238  ;;  %v1033_v19 = vpop.permute.xlu0 %1032 }
 0x85d   : > { %v849_v10 = vpop.xlane.xlu1 %848 }
 0x85e   : > { %1814 = vrcp.f32 %v849_v10 }
 0x861   : > { %v852_v11 = vpop.xlane.xlu1 %851 }
 0x862   : > { %1816 = vrcp.f32 %v852_v11 }
 0x863   : > { %1818 = vrcp.f32 %v1236_v14 }
 0x864   : > { %1820 = vrcp.f32 %v1239_v8 }
 0x865   : > { %v1031_v12 = vpop.permute.xlu1 %1030 }
 0x869   : > { %v1163_v16 = vpop.permute.xlu1 %1162 }
 0x86b   : > { %v1815_v13 = vpop.eup %1814 }
 0x86c   : > { %v900_v15 = vmul.f32 %v1815_v13, %v2122_v36  ;;  %v1783_v36 = vld [vmem:[%s2249_s9 + $0x10] sm:$0xff]  }
 0x86d   : > { %v1165_v20 = vpop.permute.xlu1 %1164  ;;  %1721 = vmatpush3.bf16.msra.mxu0 %v1783_v36 }
 0x86e   : > { %902 = vst.msk [vmem:[#allocation2] sm:$0xff] %vm786_vm1, %v900_v15  ;;  %1722 = vmatprep.subr.bf16.mxu0 %v1861_v4 }
 0x86f   : > { %v1817_v18 = vpop.eup %1816  ;;  %1037 = vst.msk [vmem:[#allocation2] sm:$0xff] %vm1036_vm3, %v1031_v12 }
 0x870   : > { %v901_v3 = vmul.f32 %v1817_v18, %v2124_v38  ;;  %1169 = vst.msk [vmem:[#allocation2] sm:$0xff] %vm1168_vm4, %v1163_v16  ;;  %v1784_v38 = vld [vmem:[%s2249_s9 + $0x8] sm:$0xff]   ;;  %v1819_v21 = vpop.eup %1818 }
 0x871   : > { %1723 = vmatpush3.bf16.msra.mxu0 %v1784_v38  ;;  %v1821_v25 = vpop.eup %1820 }
 0x872   : > { %903 = vst.msk [vmem:[#allocation2 + $0x8] sm:$0xff] %vm786_vm1, %v901_v3  ;;  %1724 = vmatprep.subr.bf16.mxu0 %v1861_v4 }
 0x873   : > { %1038 = vst.msk [vmem:[#allocation2 + $0x8] sm:$0xff] %vm1036_vm3, %v1033_v19 }
 0x874   : > { %1170 = vst.msk [vmem:[#allocation2 + $0x8] sm:$0xff] %vm1168_vm4, %v1165_v20 }
 0x875   : > { %1725 = vmatpush3.bf16.msra.mxu0 %v1785_v9 }
 0x891   : > { %v1281_v22 = vpop.f32.mrf.mxu1 }
 0x892   : > { %v1290_v23 = vmul.f32 %v1819_v21, %v1281_v22 }
 0x893   : > { %v1708_v24 = vpop.f32.mrf.mxu1 }
 0x894   : > { %1294 = vrot.lane.b32.xlu1 %v1290_v23, %s1863_s23 }
 0x895   : > { %v1284_v26 = vpop.f32.mrf.mxu1 }
 0x896   : > { %v1291_v27 = vmul.f32 %v1821_v25, %v1284_v26 }
 0x897   : > { %v1709_v28 = vpop.f32.mrf.mxu1 }
 0x898   : > { %1296 = vrot.lane.b32.xlu1 %v1291_v27, %s1863_s23 }
 0x906   : > { %v1295_v29 = vpop.permute.xlu1 %1294 }
 0x907   : > { %1301 = vst.msk [vmem:[#allocation2] sm:$0xff] %vm1300_vm5, %v1295_v29 }
 0x90a   : > { %v1297_v32 = vpop.permute.xlu1 %1296 }
 0x90b   : > { %1302 = vst.msk [vmem:[#allocation2 + $0x8] sm:$0xff] %vm1300_vm5, %v1297_v32 }
 0x90e   : > { %v1303_v4 = vld [vmem:[#allocation2] sm:$0xff] }
 0x912   : > { %v1304_v33 = vld [vmem:[#allocation2 + $0x8] sm:$0xff] }
 0x913   : > { %v1305_v34 = vpack.c.bf16 %v1304_v33, %v1303_v4 }
 0x915   : > { %1727 = vmatmul.mubr.bf16.vlgmr.msra.gmra.mxu0 %v1305_v34 }
 0x9d5   : > { %v1411_v37 = vpop.f32.mrf.mxu0 }
 0x9d6   : > { %v1412_v39 = vadd.f32 %v1537_v35, %v1411_v37 }
 0x9d7   : > { %v1728_v40 = vpop.f32.mrf.mxu0 }
 0x9d8   : > { %v1418_v41 = vadd.f32 %v1412_v39, %v1956_v0 }
 0x9d9   : > { %v1414_v42 = vpop.f32.mrf.mxu0 }
 0x9da   : > { %1420 = vst [vmem:[%s399_s30] sm:$0xff] %v1418_v41  ;;  %v1415_v43 = vadd.f32 %v1537_v35, %v1414_v42 }
 0x9db   : > { %v1729_v44 = vpop.f32.mrf.mxu0 }
 0x9dc   : > { %v1419_v45 = vadd.f32 %v1415_v43, %v1958_v1 }
 0x9de   : > { %1421 = vst [vmem:[%s399_s30 + $0x8] sm:$0xff] %v1419_v45 }
 0x9df PF: > { %s22_s17 = sadd.s32 1, %s1858_s17  }
 0x9e0   : > { %p19_p1 = scmp.ge.s32.totalorder %s22_s17, 4  }
 0x9e2   :  { %21 = sbr.rel (!%p19_p1) target bundleno = 1 (0x1), region = 99 }
 0x9e7   :  { %1443 = vsyncpa [#allocation4], 1 }
 0x9e8   :  { %1445 = vsyncpa [#allocation4 + $0x1], 1 }

// kernel: decoder_forward.12
= control target key start
LH: loop header
LB: loop body
LE: loop exit
PB: predicated region body
PF: predicated region fallthrough
CT: control target
= control target key end

     0   :  { %s2009_s21 = smov 0   ;;  %s2326_s0 = inlined_call_operand.vmem [shape: f32[2,16,128], index: 0, kind: input, shape index: {}, may-alias: {0,12}]   ;;  %s2327_s1 = inlined_call_operand.vmem [shape: f32[2,24,128], index: 1, kind: input, shape index: {}]   ;;  %s2328_s2 = inlined_call_operand.vmem [shape: f32[1,128], index: 2, kind: input, shape index: {}]   ;;  %s2329_s3 = inlined_call_operand.vmem [shape: f32[1,128], index: 3, kind: input, shape index: {}]   ;;  %s2330_s4 = inlined_call_operand.vmem [shape: bf16[128,128], index: 4, kind: input, shape index: {}]   ;;  %s2331_s5 = inlined_call_operand.vmem [shape: f32[1,128], index: 5, kind: input, shape index: {}]   ;;  %s2332_s6 = inlined_call_operand.vmem [shape: bf16[128,128], index: 6, kind: input, shape index: {}]   ;;  %s2333_s7 = inlined_call_operand.vmem [shape: f32[1,128], index: 7, kind: input, shape index: {}]   ;;  %s2334_s8 = inlined_call_operand.vmem [shape: bf16[128,128], index: 8, kind: input, shape index: {}]   ;;  %s2335_s9 = inlined_call_operand.vmem [shape: f32[1,128], index: 9, kind: input, shape index: {}]   ;;  %s2336_s10 = inlined_call_operand.vmem [shape: bf16[128,128], index: 10, kind: input, shape index: {}]   ;;  %s2337_s11 = inlined_call_operand.vmem [shape: f32[1,128], index: 11, kind: input, shape index: {}]   ;;  %s2338_s12 = inlined_call_operand.vmem [shape: f32[2,16,128], index: 12, kind: output, shape index: {}, may-alias: {0,12}]  }
   0x1 LB: > { %s1583_s22 = sadd.s32 4294967295, %s1937_s21   ;;  %p1587_p0 = scmp.ge.s32.totalorder %s1937_s21, 1  ;;  %s1937_s21 = sphi %s2009_s21, %s22_s21  }
   0x2   : > { %p372_p1 = scmp.lt.s32.totalorder %s1937_s21, 3 }
   0x4   : > { %p373_p2 = pnand %p1587_p0, %p372_p1 }
   0x5   : > { %p419_p3 = scmp.lt.s32.totalorder (!%p373_p2), %s1583_s22, 1  ;;  %s1941_s29 = smov (!%p373_p2), 96  }
   0x6   : > { %376 = sbr.rel (%p373_p2) target bundleno = 2172 (0x87c), region = 68  ;;  %s1942_s30 = smov (!%p373_p2), 64  }
   0x7   : > { %s1943_s13 = smov (!%p373_p2), 32  }
   0xb   : > { %s2340_s22 = smov (!%p419_p3, %s1583_s22), 1  ;;  %v1863_v2 = vld [vmem:[%s2332_s6 + $0x38] sm:$0xff]   ;;  %v1864_v3 = vld [vmem:[%s2332_s6 + $0x30] sm:$0xff]   ;;  %v1939_v4 = vmov 0.0   ;;  %v1865_v6 = vld [vmem:[%s2332_s6 + $0x28] sm:$0xff]   ;;  %vm1940_vm0 = vmmov 0  }
   0xc   : > { %s1641_s23 = sshll.u32 %s2340_s22, 4  ;;  %1705 = vmatprep.subr.bf16.mxu0 %v1939_v4  ;;  %v1868_v5 = vld [vmem:[%s2330_s4 + $0x38] sm:$0xff]   ;;  %1725 = vmatprep.subr.bf16.mxu1 %v1863_v2  ;;  %v1866_v7 = vld [vmem:[%s2332_s6 + $0x20] sm:$0xff]   ;;  %v1869_v17 = vld [vmem:[%s2332_s6 + $0x10] sm:$0xff]   ;;  %s1849_s14 = smul.u32 24, %s2340_s22  ;;  %vm841_vm1 = vcmask 261120  }
   0xd   : > { %s423_s26 = scalar_lea.vmem %s2326_s0, %s1641_s23  ;;  %1726 = vmatpush3.bf16.msra.mxu1 %v1863_v2  ;;  %1706 = vmatpush3.bf16.msra.mxu0 %v1868_v5  ;;  %v1867_v8 = vld [vmem:[%s2332_s6 + $0x18] sm:$0xff]   ;;  %v1870_v18 = vld [vmem:[%s2330_s4 + $0x30] sm:$0xff]   ;;  %v1871_v19 = vld [vmem:[%s2332_s6 + $0x8] sm:$0xff]   ;;  %vm892_vm2 = vcmask 195584   ;;  %vm915_vm3 = vcmask 1043456   ;;  %vm1110_vm4 = vcmask 523520  }
   0xe   : > { %v2025_v0 = vld [vmem:[%s423_s26] sm:$0xff]  ;;  %v2027_v1 = vld [vmem:[%s423_s26 + $0x8] sm:$0xff]  ;;  %1727 = vmatprep.subr.bf16.mxu1 %v1864_v3  ;;  %1707 = vmatprep.subr.bf16.mxu0 %v1939_v4  ;;  %s428_s19 = scalar_lea.vmem %s2327_s1, %s1849_s14  ;;  %v1875_v28 = vld [vmem:[%s2330_s4 + $0x18] sm:$0xff]   ;;  %vm1252_vm5 = vcmask 785920   ;;  %vm1394_vm6 = vcmask 1048320  }
   0xf   : > { %439 = vadd.xlane.f32.xlu0 %v2025_v0  ;;  %v1872_v20 = vld [vmem:[%s2330_s4 + $0x28] sm:$0xff]   ;;  %v1873_v21 = vld [vmem:[%s2332_s6] sm:$0xff]   ;;  %v481_v26 = vld [vmem:[%s428_s19 + $0x10] sm:$0xff]  ;;  %1721 = vmatprep.mubr.msk.bf16.mxu0 %vm1940_vm0, %v1939_v4 }
  0x10   : > { %v1874_v22 = vld [vmem:[%s2330_s4 + $0x20] sm:$0xff]   ;;  %v480_v24 = vld [vmem:[%s428_s19 + $0x8] sm:$0xff]  ;;  %v2079_v27 = vpack.c.bf16 %v481_v26, %v481_v26  ;;  %v1876_v29 = vld [vmem:[%s2330_s4 + $0x10] sm:$0xff]  }
  0x11   : > { %1728 = vmatpush3.bf16.msra.mxu1 %v1864_v3  ;;  %1708 = vmatpush3.bf16.msra.mxu0 %v1870_v18  ;;  %v479_v23 = vld [vmem:[%s428_s19] sm:$0xff]  ;;  %v1877_v30 = vld [vmem:[%s2330_s4 + $0x8] sm:$0xff]   ;;  %v1879_v61 = vld [vmem:[%s2334_s8 + $0x38] sm:$0xff]   ;;  %s433_s19 = scalar_lea.vmem %s2338_s12, %s1641_s23 }
  0x12   : > { %1729 = vmatprep.subr.bf16.mxu1 %v1865_v6  ;;  %1709 = vmatprep.subr.bf16.mxu0 %v1939_v4  ;;  %v482_v25 = vpack.c.bf16 %v480_v24, %v479_v23  ;;  %v1878_v31 = vld [vmem:[%s2330_s4] sm:$0xff]   ;;  %v1880_v62 = vld [vmem:[%s2334_s8 + $0x30] sm:$0xff]   ;;  %v1881_v63 = vld [vmem:[%s2334_s8 + $0x28] sm:$0xff]  }
  0x13   : > { %441 = vadd.xlane.f32.xlu0 %v2027_v1  ;;  %v1593_v40 = vld [vmem:[%s2328_s2] ss:$0 sm:$0xff]  ;;  %v1883_v3 = vld [vmem:[%s2334_s8 + $0x18] sm:$0xff]   ;;  %v1884_v5 = vld [vmem:[%s2334_s8 + $0x10] sm:$0xff]  }
  0x14   : > { %1741 = vmatprep.mubr.bf16.mxu1 %v482_v25  ;;  %v1594_v44 = vld [vmem:[%s2329_s3] ss:$0 sm:$0xff] }
  0x15   : > { %1730 = vmatpush3.bf16.msra.mxu1 %v1865_v6  ;;  %1710 = vmatpush3.bf16.msra.mxu0 %v1872_v20  ;;  %v1604_v49 = vld [vmem:[%s2333_s7] ss:$0 sm:$0xff]  ;;  %v1885_v6 = vld [vmem:[%s2334_s8 + $0x8] sm:$0xff]  }
  0x16   : > { %1731 = vmatprep.subr.bf16.mxu1 %v1866_v7  ;;  %1711 = vmatprep.subr.bf16.mxu0 %v1939_v4  ;;  %v1882_v2 = vld [vmem:[%s2334_s8 + $0x20] sm:$0xff]  }
  0x19   : > { %1732 = vmatpush3.bf16.msra.mxu1 %v1866_v7  ;;  %1712 = vmatpush3.bf16.msra.mxu0 %v1874_v22  ;;  %v1886_v7 = vld [vmem:[%s2334_s8] sm:$0xff]  }
  0x1a   : > { %1733 = vmatprep.subr.bf16.mxu1 %v1867_v8  ;;  %1713 = vmatprep.subr.bf16.mxu0 %v1939_v4 }
  0x1d   : > { %1734 = vmatpush3.bf16.msra.mxu1 %v1867_v8  ;;  %1714 = vmatpush3.bf16.msra.mxu0 %v1875_v28  ;;  %v1595_v8 = vld [vmem:[%s2331_s5] ss:$0 sm:$0xff] }
  0x1e   : > { %1735 = vmatprep.subr.bf16.mxu1 %v1869_v17  ;;  %1715 = vmatprep.subr.bf16.mxu0 %v1939_v4 }
  0x21   : > { %1736 = vmatpush3.bf16.msra.mxu1 %v1869_v17  ;;  %1716 = vmatpush3.bf16.msra.mxu0 %v1876_v29 }
  0x22   : > { %1737 = vmatprep.subr.bf16.mxu1 %v1871_v19  ;;  %1717 = vmatprep.subr.bf16.mxu0 %v1939_v4 }
  0x25   : > { %1738 = vmatpush3.bf16.msra.mxu1 %v1871_v19  ;;  %1718 = vmatpush3.bf16.msra.mxu0 %v1877_v30 }
  0x26   : > { %1739 = vmatprep.subr.bf16.mxu1 %v1873_v21  ;;  %1719 = vmatprep.subr.bf16.mxu0 %v1939_v4 }
  0x29   : > { %1740 = vmatpush3.bf16.msra.mxu1 %v1873_v21  ;;  %1720 = vmatpush3.bf16.msra.mxu0 %v1878_v31 }
  0x2a   : > { %1765 = vmatprep.subr.bf16.mxu1 %v1939_v4  ;;  %1745 = vmatprep.subr.bf16.mxu0 %v1879_v61 }
  0x2c   : > { %1742 = vmatmul.mubr.bf16.vlgmr.msra.gmra.mxu1 %v2079_v27 }
  0x2d   : > { %1769 = vmatprep.mubr.msk.bf16.mxu1 %vm1940_vm0, %v1939_v4 }
  0x98   : > { %v440_v9 = vpop.xlane.xlu0 %439 }
  0x99   : > { %v444_v10 = vmul.f32 0.0078125, %v440_v9 }
  0x9b   : > { %v446_v11 = vsub.f32 %v2025_v0, %v444_v10 }
  0x9c   : > { %v442_v12 = vpop.xlane.xlu0 %441 }
  0x9d   : > { %v445_v13 = vmul.f32 0.0078125, %v442_v12  ;;  %v448_v14 = vmul.f32 %v446_v11, %v446_v11 }
  0x9f   : > { %v447_v15 = vsub.f32 %v2027_v1, %v445_v13  ;;  %450 = vadd.xlane.f32.xlu1 %v448_v14 }
  0xa1   : > { %v449_v16 = vmul.f32 %v447_v15, %v447_v15 }
  0xa3   : > { %452 = vadd.xlane.f32.xlu1 %v449_v16 }
  0xec   : > { %v1743_v50 = vpop.f32.mrf.mxu1 }
  0xed   : > { %v712_v51 = vadd.f32 %v1743_v50, %v1604_v49 }
  0xee   : > { %v703_v52 = vpop.f32.mrf.mxu1 }
  0xef   : > { %v2110_v53 = vpack.c.bf16 %v712_v51, %v712_v51  ;;  %v704_v55 = vadd.f32 %v1604_v49, %v703_v52 }
  0xf0   : > { %v1744_v54 = vpop.f32.mrf.mxu1 }
  0xf1   : > { %v849_v56 = vsel %vm841_vm1, %v2110_v53, 0 }
  0xf2   : > { %1766 = vmatpush3.bf16.xpose.msra.mxu1 %v849_v56  ;;  %v706_v57 = vpop.f32.mrf.mxu1 }
  0xf3   : > { %v707_v58 = vadd.f32 %v1604_v49, %v706_v57  ;;  %1767 = vmatprep.subr.bf16.mxu1 %v1939_v4 }
  0xf5   : > { %v2115_v59 = vpack.c.bf16 %v707_v58, %v704_v55 }
  0xf7   : > { %v846_v60 = vsel %vm841_vm1, %v2115_v59, 0 }
  0xfa   : > { %1768 = vmatpush3.bf16.xpose.msra.mxu1 %v846_v60 }
  0xfb   : > { %1773 = vmatprep.subr.bf16.mxu1 %v1939_v4 }
 0x128   : > { %v451_v32 = vpop.xlane.xlu1 %450 }
 0x129   : > { %v454_v33 = vmul.f32 0.0078125, %v451_v32 }
 0x12b   : > { %v456_v34 = vadd.f32 1e-05, %v454_v33 }
 0x12c   : > { %v453_v35 = vpop.xlane.xlu1 %452 }
 0x12d   : > { %1895 = vrsqrt.f32 %v456_v34  ;;  %v455_v36 = vmul.f32 0.0078125, %v453_v35 }
 0x12f   : > { %v457_v37 = vadd.f32 1e-05, %v455_v36 }
 0x131   : > { %1897 = vrsqrt.f32 %v457_v37 }
 0x13a   : > { %v1896_v38 = vpop.eup %1895 }
 0x13b   : > { %v460_v39 = vmul.f32 %v1896_v38, %v446_v11 }
 0x13d   : > { %v468_v43 = vmul.f32 %v1593_v40, %v460_v39 }
 0x13e   : > { %v1898_v41 = vpop.eup %1897 }
 0x13f   : > { %v461_v42 = vmul.f32 %v1898_v41, %v447_v15  ;;  %v476_v46 = vadd.f32 %v1594_v44, %v468_v43 }
 0x141   : > { %v469_v45 = vmul.f32 %v1593_v40, %v461_v42 }
 0x143   : > { %v477_v47 = vadd.f32 %v1594_v44, %v469_v45 }
 0x145   : > { %v478_v48 = vpack.c.bf16 %v477_v47, %v476_v46 }
 0x147   : > { %1722 = vmatmul.mubr.bf16.vlgmr.msra.gmra.mxu0 %v478_v48 }
 0x148   : > { %1761 = vmatprep.mubr.bf16.mxu0 %v482_v25  ;;  %1746 = vmatpush3.bf16.msra.mxu0 %v1879_v61  ;;  %v1613_v25 = vld [vmem:[%s2335_s9] ss:$0 sm:$0xff] }
 0x149   : > { %1747 = vmatprep.subr.bf16.mxu0 %v1880_v62 }
 0x14c   : > { %1748 = vmatpush3.bf16.msra.mxu0 %v1880_v62 }
 0x14d   : > { %1749 = vmatprep.subr.bf16.mxu0 %v1881_v63 }
 0x150   : > { %1750 = vmatpush3.bf16.msra.mxu0 %v1881_v63 }
 0x151   : > { %1751 = vmatprep.subr.bf16.mxu0 %v1882_v2 }
 0x154   : > { %1752 = vmatpush3.bf16.msra.mxu0 %v1882_v2 }
 0x155   : > { %1753 = vmatprep.subr.bf16.mxu0 %v1883_v3 }
 0x158   : > { %1754 = vmatpush3.bf16.msra.mxu0 %v1883_v3 }
 0x159   : > { %1755 = vmatprep.subr.bf16.mxu0 %v1884_v5 }
 0x15c   : > { %1756 = vmatpush3.bf16.msra.mxu0 %v1884_v5 }
 0x15d   : > { %1757 = vmatprep.subr.bf16.mxu0 %v1885_v6 }
 0x160   : > { %1758 = vmatpush3.bf16.msra.mxu0 %v1885_v6 }
 0x161   : > { %1759 = vmatprep.subr.bf16.mxu0 %v1886_v7 }
 0x164   : > { %1760 = vmatpush3.bf16.msra.mxu0 %v1886_v7 }
 0x165   : > { %1789 = vmatprep.subr.bf16.mxu0 %v1939_v4 }
 0x167   : > { %1762 = vmatmul.mubr.bf16.vlgmr.msra.gmra.mxu0 %v2079_v27 }
 0x168   : > { %1793 = vmatprep.mubr.msk.bf16.mxu0 %vm1940_vm0, %v1939_v4 }
 0x207   : > { %v589_v9 = vpop.f32.mrf.mxu0 }
 0x208   : > { %v590_v11 = vadd.f32 %v1595_v8, %v589_v9 }
 0x209   : > { %v1723_v10 = vpop.f32.mrf.mxu0 }
 0x20a   : > { %v596_v15 = vmul.f32 0.17677669, %v590_v11 }
 0x20b   : > { %v592_v12 = vpop.f32.mrf.mxu0 }
 0x20c   : > { %v593_v13 = vadd.f32 %v1595_v8, %v592_v12 }
 0x20d   : > { %v1724_v14 = vpop.f32.mrf.mxu0 }
 0x20e   : > { %v597_v16 = vmul.f32 0.17677669, %v593_v13 }
 0x210   : > { %v2151_v17 = vpack.c.bf16 %v597_v16, %v596_v15 }
 0x212   : > { %1770 = vmatmul.mubr.msk.bf16.vlgmr.msra.gmra.mxu1 %vm841_vm1, %v2151_v17 }
 0x213   : > { %1777 = vmatprep.mubr.msk.bf16.mxu1 %vm1940_vm0, %v1939_v4 }
 0x227   : > { %v1763_v24 = vpop.f32.mrf.mxu0 }
 0x228   : > { %v831_v26 = vadd.f32 %v1763_v24, %v1613_v25 }
 0x229   : > { %v822_v27 = vpop.f32.mrf.mxu0 }
 0x22a   : > { %v2162_v28 = vpack.c.bf16 %v831_v26, %v831_v26  ;;  %v823_v30 = vadd.f32 %v1613_v25, %v822_v27 }
 0x22b   : > { %v1764_v29 = vpop.f32.mrf.mxu0 }
 0x22c   : > { %v917_v32 = vsel %vm915_vm3, %v2162_v28, 0 }
 0x22d   : > { %v825_v31 = vpop.f32.mrf.mxu0  ;;  %1774 = vmatpush3.bf16.msra.mxu1 %v917_v32 }
 0x22e   : > { %v826_v33 = vadd.f32 %v1613_v25, %v825_v31  ;;  %1775 = vmatprep.subr.bf16.mxu1 %v1939_v4 }
 0x230   : > { %v2171_v34 = vpack.c.bf16 %v826_v33, %v823_v30 }
 0x232   : > { %1776 = vmatpush3.bf16.msra.mxu1 %v2171_v34 }
 0x233   : > { %1781 = vmatprep.subr.bf16.mxu1 %v1939_v4 }
 0x2d2   : > { %v885_v18 = vpop.f32.mrf.mxu1 }
 0x2d3   : > { %v893_v19 = vsel %vm892_vm2, %v885_v18, -inf }
 0x2d4   : > { %894 = vmax.xlane.f32.xlu0 %v893_v19  ;;  %v1771_v20 = vpop.f32.mrf.mxu1 }
 0x2d6   : > { %v888_v21 = vpop.f32.mrf.mxu1 }
 0x2d7   : > { %v896_v22 = vsel %vm892_vm2, %v888_v21, -inf }
 0x2d8   : > { %897 = vmax.xlane.f32.xlu1 %v896_v22  ;;  %v1772_v23 = vpop.f32.mrf.mxu1 }
 0x2e9   : > { %971 = vrot.lane.b32.xlu1 %v2115_v59, %s1941_s29 }
 0x2ea   : > { %973 = vrot.lane.b32.xlu0 %v2110_v53, %s1941_s29 }
 0x2ed   : > { %1117 = vrot.lane.b32.xlu1 %v2110_v53, %s1942_s30 }
 0x2ee   : > { %1115 = vrot.lane.b32.xlu0 %v2115_v59, %s1942_s30 }
 0x2f1   : > { %967 = vrot.lane.b32.xlu1 %v2151_v17, %s1941_s29 }
 0x2f2   : > { %1190 = vrot.lane.b32.xlu0 %v2162_v28, %s1942_s30 }
 0x2f5   : > { %1113 = vrot.lane.b32.xlu1 %v2151_v17, %s1942_s30 }
 0x35d   : > { %v895_v35 = vpop.xlane.xlu0 %894 }
 0x35e   : > { %v899_v36 = vsub.f32 %v885_v18, %v895_v35 }
 0x360   : > { %v901_v37 = vmul.f32 1.442695, %v899_v36 }
 0x361   : > { %v898_v38 = vpop.xlane.xlu1 %897  ;;  %v974_v43 = vpop.permute.xlu0 %973 }
 0x362   : > { %v900_v39 = vsub.f32 %v888_v21, %v898_v38  ;;  %1899 = vpow2.f32 %v901_v37  ;;  %v982_v45 = vsel %vm841_vm1, %v974_v43, 0 }
 0x364   : > { %v903_v40 = vmul.f32 1.442695, %v900_v39 }
 0x365   : > { %v972_v46 = vpop.permute.xlu1 %971  ;;  %v1116_v51 = vpop.permute.xlu0 %1115 }
 0x366   : > { %1901 = vpow2.f32 %v903_v40  ;;  %v979_v47 = vsel %vm841_vm1, %v972_v46, 0  ;;  %v1123_v52 = vsel %vm841_vm1, %v1116_v51, 0 }
 0x369   : > { %v1118_v48 = vpop.permute.xlu1 %1117  ;;  %v1191_v54 = vpop.permute.xlu0 %1190 }
 0x36a   : > { %v1126_v50 = vsel %vm841_vm1, %v1118_v48, 0  ;;  %v1197_v55 = vsel %vm915_vm3, %v1191_v54, 0 }
 0x36d   : > { %v968_v49 = vpop.permute.xlu1 %967 }
 0x36f   : > { %v2185_v41 = vpop.eup %1899 }
 0x371   : > { %v1114_v56 = vpop.permute.xlu1 %1113 }
 0x373   : > { %v2187_v42 = vpop.eup %1901 }
 0x374   : > { %v911_v44 = vpack.c.bf16 %v2187_v42, %v2185_v41 }
 0x376   : > { %1778 = vmatmul.mubr.msk.bf16.vlgmr.msra.gmra.mxu1 %vm892_vm2, %v911_v44 }
 0x377   : > { %1782 = vmatpush3.bf16.xpose.msra.mxu1 %v982_v45  ;;  %1785 = vmatprep.mubr.msk.bf16.mxu1 %vm1940_vm0, %v1939_v4 }
 0x378   : > { %1783 = vmatprep.subr.bf16.mxu1 %v1939_v4 }
 0x37f   : > { %1784 = vmatpush3.bf16.xpose.msra.mxu1 %v979_v47 }
 0x380   : > { %1797 = vmatprep.subr.bf16.mxu1 %v1939_v4 }
 0x386   : > { %1786 = vmatmul.mubr.msk.bf16.vlgmr.msra.gmra.mxu1 %vm841_vm1, %v968_v49 }
 0x387   : > { %1798 = vmatpush3.bf16.xpose.msra.mxu1 %v1126_v50  ;;  %1801 = vmatprep.mubr.msk.bf16.mxu1 %vm1940_vm0, %v1939_v4 }
 0x388   : > { %1799 = vmatprep.subr.bf16.mxu1 %v1939_v4 }
 0x38f   : > { %1800 = vmatpush3.bf16.xpose.msra.mxu1 %v1123_v52 }
 0x390   : > { %1805 = vmatprep.subr.bf16.mxu1 %v1939_v4 }
 0x396   : > { %1802 = vmatmul.mubr.msk.bf16.vlgmr.msra.gmra.mxu1 %vm841_vm1, %v1114_v56 }
 0x397   : > { %1806 = vmatpush3.bf16.msra.mxu1 %v1197_v55  ;;  %1809 = vmatprep.mubr.msk.bf16.mxu1 %vm1940_vm0, %v1939_v4 }
 0x398   : > { %1807 = vmatprep.subr.bf16.mxu1 %v1939_v4 }
 0x436   : > { %v2210_v57 = vpop.f32.mrf.mxu1 }
 0x438   : > { %v1779_v58 = vpop.f32.mrf.mxu1 }
 0x43a   : > { %v2212_v60 = vpop.f32.mrf.mxu1 }
 0x43c   : > { %v1780_v61 = vpop.f32.mrf.mxu1 }
 0x446   : > { %v1018_v62 = vpop.f32.mrf.mxu1 }
 0x447   : > { %v1025_v12 = vsel %vm892_vm2, %v1018_v62, -inf }
 0x448   : > { %v1787_v63 = vpop.f32.mrf.mxu1 }
 0x44a   : > { %v1021_v2 = vpop.f32.mrf.mxu1 }
 0x44b   : > { %v1028_v11 = vsel %vm892_vm2, %v1021_v2, -inf }
 0x44c   : > { %v1788_v3 = vpop.f32.mrf.mxu1 }
 0x456   : > { %v1162_v5 = vpop.f32.mrf.mxu1 }
 0x457   : > { %v1169_v6 = vsel %vm892_vm2, %v1162_v5, -inf }
 0x458   : > { %1170 = vmax.xlane.f32.xlu0 %v1169_v6  ;;  %v1803_v7 = vpop.f32.mrf.mxu1 }
 0x45a   : > { %v1165_v8 = vpop.f32.mrf.mxu1 }
 0x45b   : > { %v1172_v9 = vsel %vm892_vm2, %v1165_v8, -inf }
 0x45c   : > { %1173 = vmax.xlane.f32.xlu1 %v1172_v9  ;;  %v1804_v10 = vpop.f32.mrf.mxu1  ;;  %v905_v9 = vsel %vm892_vm2, %v2185_v41, 0.0 }
 0x46d   : > { %1188 = vrot.lane.b32.xlu1 %v2171_v34, %s1942_s30 }
 0x46e   : > { %1259 = vrot.lane.b32.xlu0 %v2110_v53, %s1943_s13 }
 0x471   : > { %1257 = vrot.lane.b32.xlu1 %v2115_v59, %s1943_s13 }
 0x472   : > { %1255 = vrot.lane.b32.xlu0 %v2151_v17, %s1943_s13 }
 0x491   : > { %1029 = vmax.xlane.f32.xlu0 %v1028_v11 }
 0x495   : > { %1026 = vmax.xlane.f32.xlu1 %v1025_v12  ;;  %v908_v12 = vsel %vm892_vm2, %v2187_v42, 0.0 }
 0x4a6   : > { %1048 = vrot.lane.b32.xlu1 %v2162_v28, %s1941_s29 }
 0x4aa   : > { %1332 = vrot.lane.b32.xlu1 %v2162_v28, %s1943_s13 }
 0x4ae   : > { %1330 = vrot.lane.b32.xlu1 %v2171_v34, %s1943_s13 }
 0x4e1   : > { %v1171_v53 = vpop.xlane.xlu0 %1170 }
 0x4e2   : > { %v1175_v59 = vsub.f32 %v1162_v5, %v1171_v53  ;;  %v1887_v53 = vld [vmem:[%s2336_s10 + $0x38] sm:$0xff]  }
 0x4e4   : > { %v1177_v13 = vmul.f32 1.442695, %v1175_v59 }
 0x4e5   : > { %v1174_v14 = vpop.xlane.xlu1 %1173  ;;  %v1260_v20 = vpop.permute.xlu0 %1259 }
 0x4e6   : > { %v1176_v15 = vsub.f32 %v1165_v8, %v1174_v14  ;;  %1903 = vpow2.f32 %v1177_v13  ;;  %v1268_v22 = vsel %vm841_vm1, %v1260_v20, 0 }
 0x4e8   : > { %v1179_v16 = vmul.f32 1.442695, %v1176_v15 }
 0x4e9   : > { %v1189_v17 = vpop.permute.xlu1 %1188  ;;  %v1256_v25 = vpop.permute.xlu0 %1255 }
 0x4ea   : > { %1905 = vpow2.f32 %v1179_v16  ;;  %1808 = vmatpush3.bf16.msra.mxu1 %v1189_v17 }
 0x4eb   : > { %1813 = vmatprep.subr.bf16.mxu1 %v1939_v4 }
 0x4ed   : > { %v1258_v23 = vpop.permute.xlu1 %1257 }
 0x4ee   : > { %v1265_v24 = vsel %vm841_vm1, %v1258_v23, 0  ;;  %v1891_v23 = vld [vmem:[%s2336_s10 + $0x18] sm:$0xff]  }
 0x4f3   : > { %v1904_v18 = vpop.eup %1903 }
 0x4f4   : > { %v1181_v52 = vsel %vm892_vm2, %v1904_v18, 0.0 }
 0x4f7   : > { %v1906_v19 = vpop.eup %1905 }
 0x4f8   : > { %v1187_v21 = vpack.c.bf16 %v1906_v19, %v1904_v18  ;;  %v1184_v54 = vsel %vm892_vm2, %v1906_v19, 0.0 }
 0x4fa   : > { %1810 = vmatmul.mubr.msk.bf16.vlgmr.msra.gmra.mxu1 %vm892_vm2, %v1187_v21 }
 0x4fb   : > { %1814 = vmatpush3.bf16.xpose.msra.mxu1 %v1268_v22  ;;  %1817 = vmatprep.mubr.msk.bf16.mxu1 %vm1940_vm0, %v1939_v4  ;;  %v1888_v22 = vld [vmem:[%s2336_s10 + $0x30] sm:$0xff]  }
 0x4fc   : > { %1815 = vmatprep.subr.bf16.mxu1 %v1939_v4 }
 0x503   : > { %1816 = vmatpush3.bf16.xpose.msra.mxu1 %v1265_v24 }
 0x50a   : > { %1818 = vmatmul.mubr.msk.bf16.vlgmr.msra.gmra.mxu1 %vm841_vm1, %v1256_v25 }
 0x51a   : > { %v1030_v26 = vpop.xlane.xlu0 %1029 }
 0x51b   : > { %v1032_v27 = vsub.f32 %v1021_v2, %v1030_v26 }
 0x51d   : > { %v1035_v28 = vmul.f32 1.442695, %v1032_v27 }
 0x51e   : > { %v1027_v29 = vpop.xlane.xlu1 %1026 }
 0x51f   : > { %v1031_v30 = vsub.f32 %v1018_v62, %v1027_v29  ;;  %1907 = vpow2.f32 %v1035_v28 }
 0x521   : > { %v1033_v31 = vmul.f32 1.442695, %v1031_v30 }
 0x522   : > { %v1049_v32 = vpop.permute.xlu1 %1048 }
 0x523   : > { %1909 = vpow2.f32 %v1033_v31  ;;  %v1055_v33 = vsel %vm915_vm3, %v1049_v32, 0  ;;  %v1892_v31 = vld [vmem:[%s2336_s10 + $0x10] sm:$0xff]  }
 0x524   : > { %1790 = vmatpush3.bf16.msra.mxu0 %v1055_v33 }
 0x525   : > { %1791 = vmatprep.subr.bf16.mxu0 %v1939_v4 }
 0x526   : > { %v1333_v3 = vpop.permute.xlu1 %1332 }
 0x52a   : > { %v1331_v5 = vpop.permute.xlu1 %1330 }
 0x52c   : > { %v1908_v35 = vpop.eup %1907 }
 0x52d   : > { %v1040_v51 = vsel %vm892_vm2, %v1908_v35, 0.0 }
 0x530   : > { %v1910_v36 = vpop.eup %1909 }
 0x531   : > { %v1037_v37 = vsel %vm892_vm2, %v1910_v36, 0.0  ;;  %v1043_v38 = vpack.c.bf16 %v1908_v35, %v1910_v36 }
 0x532   : > { %1038 = vadd.xlane.f32.xlu1 %v1037_v37  ;;  %v1893_v37 = vld [vmem:[%s2336_s10 + $0x8] sm:$0xff]  }
 0x5ba   : > { %v2243_v39 = vpop.f32.mrf.mxu1 }
 0x5bb   : > { %v1039_v13 = vpop.xlane.xlu1 %1038 }
 0x5bc   : > { %v1811_v40 = vpop.f32.mrf.mxu1 }
 0x5be   : > { %v2245_v43 = vpop.f32.mrf.mxu1 }
 0x5c0   : > { %v1812_v44 = vpop.f32.mrf.mxu1 }
 0x5ca   : > { %v1304_v45 = vpop.f32.mrf.mxu1 }
 0x5cb   : > { %v1311_v46 = vsel %vm892_vm2, %v1304_v45, -inf }
 0x5cc   : > { %1312 = vmax.xlane.f32.xlu0 %v1311_v46  ;;  %v1819_v47 = vpop.f32.mrf.mxu1 }
 0x5ce   : > { %v1307_v48 = vpop.f32.mrf.mxu1 }
 0x5cf   : > { %v1314_v49 = vsel %vm892_vm2, %v1307_v48, -inf }
 0x5d0   : > { %1315 = vmax.xlane.f32.xlu0 %v1314_v49  ;;  %v1820_v50 = vpop.f32.mrf.mxu1 }
 0x5e6   : > { %1046 = vrot.lane.b32.xlu0 %v2171_v34, %s1941_s29  ;;  %v1339_v34 = vsel %vm915_vm3, %v1333_v3, 0 }
 0x605   : > { %1041 = vadd.xlane.f32.xlu0 %v1040_v51 }
 0x609   : > { %1182 = vadd.xlane.f32.xlu0 %v1181_v52 }
 0x60d   : > { %1185 = vadd.xlane.f32.xlu0 %v1184_v54 }
 0x655   : > { %v1313_v55 = vpop.xlane.xlu0 %1312 }
 0x656   : > { %v1317_v56 = vsub.f32 %v1304_v45, %v1313_v55 }
 0x658   : > { %v1319_v58 = vmul.f32 1.442695, %v1317_v56 }
 0x659   : > { %v1316_v61 = vpop.xlane.xlu0 %1315 }
 0x65a   : > { %1911 = vpow2.f32 %v1319_v58  ;;  %v1318_v62 = vsub.f32 %v1307_v48, %v1316_v61 }
 0x65c   : > { %v1321_v63 = vmul.f32 1.442695, %v1318_v62  ;;  %v1630_v62 = vld [vmem:[%s2337_s11] ss:$0 sm:$0xff] }
 0x65d   : > { %v1047_v2 = vpop.permute.xlu0 %1046 }
 0x65e   : > { %1913 = vpow2.f32 %v1321_v63  ;;  %1792 = vmatpush3.bf16.msra.mxu0 %v1047_v2 }
 0x65f   : > { %1821 = vmatprep.subr.bf16.mxu0 %v1939_v4 }
 0x661   : > { %1794 = vmatmul.mubr.msk.bf16.vlgmr.msra.gmra.mxu0 %vm892_vm2, %v1043_v38 }
 0x662   : > { %1822 = vmatpush3.bf16.msra.mxu0 %v1339_v34  ;;  %1825 = vmatprep.mubr.msk.bf16.mxu0 %vm1940_vm0, %v1939_v4 }
 0x663   : > { %1823 = vmatprep.subr.bf16.mxu0 %v1939_v4 }
 0x666   : > { %1824 = vmatpush3.bf16.msra.mxu0 %v1331_v5 }
 0x667   : > { %v1912_v6 = vpop.eup %1911  ;;  %1829 = vmatprep.subr.bf16.mxu0 %v1939_v4 }
 0x668   : > { %v1323_v7 = vsel %vm892_vm2, %v1912_v6, 0.0 }
 0x669   : > { %1324 = vadd.xlane.f32.xlu1 %v1323_v7 }
 0x66b   : > { %v1914_v8 = vpop.eup %1913 }
 0x66c   : > { %v1326_v10 = vsel %vm892_vm2, %v1914_v8, 0.0  ;;  %v1329_v11 = vpack.c.bf16 %v1914_v8, %v1912_v6 }
 0x66d   : > { %906 = vadd.xlane.f32.xlu1 %v905_v9  ;;  %1327 = vadd.xlane.f32.xlu0 %v1326_v10 }
 0x66e   : > { %1826 = vmatmul.mubr.msk.bf16.vlgmr.msra.gmra.mxu0 %vm892_vm2, %v1329_v11 }
 0x66f   : > { %1845 = vmatprep.mubr.msk.bf16.mxu0 %vm1940_vm0, %v1939_v4  ;;  %1830 = vmatpush3.bf16.msra.mxu0 %v1887_v53 }
 0x670   : > { %1831 = vmatprep.subr.bf16.mxu0 %v1939_v4 }
 0x671   : > { %909 = vadd.xlane.f32.xlu0 %v908_v12 }
 0x673   : > { %1832 = vmatpush3.bf16.msra.mxu0 %v1888_v22 }
 0x674   : > { %1833 = vmatprep.subr.bf16.mxu0 %v1939_v4 }
 0x68e   : > { %v1042_v41 = vpop.xlane.xlu0 %1041 }
 0x692   : > { %v1183_v59 = vpop.xlane.xlu0 %1182 }
 0x696   : > { %v1186_v14 = vpop.xlane.xlu0 %1185 }
 0x6f2   : > { %v1325_v15 = vpop.xlane.xlu1 %1324 }
 0x6f6   : > { %v907_v16 = vpop.xlane.xlu1 %906  ;;  %v1328_v17 = vpop.xlane.xlu0 %1327 }
 0x6f7   : > { %1915 = vrcp.f32 %v907_v16 }
 0x6fa   : > { %v910_v18 = vpop.xlane.xlu0 %909 }
 0x6fb   : > { %1917 = vrcp.f32 %v910_v18 }
 0x6fc   : > { %1919 = vrcp.f32 %v1039_v13 }
 0x6fd   : > { %1921 = vrcp.f32 %v1183_v59 }
 0x6fe   : > { %1923 = vrcp.f32 %v1042_v41 }
 0x6ff   : > { %1925 = vrcp.f32 %v1186_v14 }
 0x700   : > { %1927 = vrcp.f32 %v1325_v15 }
 0x701   : > { %1929 = vrcp.f32 %v1328_v17 }
 0x704   : > { %v1916_v19 = vpop.eup %1915 }
 0x705   : > { %v962_v42 = vmul.f32 %v1916_v19, %v2210_v57  ;;  %v1889_v57 = vld [vmem:[%s2336_s10 + $0x28] sm:$0xff]  }
 0x706   : > { %1834 = vmatpush3.bf16.msra.mxu0 %v1889_v57 }
 0x707   : > { %964 = vst.msk [vmem:[#allocation2] sm:$0xff] %vm841_vm1, %v962_v42  ;;  %1835 = vmatprep.subr.bf16.mxu0 %v1939_v4 }
 0x708   : > { %v1918_v20 = vpop.eup %1917 }
 0x709   : > { %v963_v21 = vmul.f32 %v1918_v20, %v2212_v60  ;;  %v1890_v60 = vld [vmem:[%s2336_s10 + $0x20] sm:$0xff]   ;;  %v1920_v24 = vpop.eup %1919 }
 0x70a   : > { %1836 = vmatpush3.bf16.msra.mxu0 %v1890_v60  ;;  %v1922_v27 = vpop.eup %1921 }
 0x70b   : > { %965 = vst.msk [vmem:[#allocation2 + $0x8] sm:$0xff] %vm841_vm1, %v963_v21  ;;  %1837 = vmatprep.subr.bf16.mxu0 %v1939_v4  ;;  %v1924_v29 = vpop.eup %1923  ;;  %v1242_v33 = vmul.f32 %v1922_v27, %v2243_v39  ;;  %v1894_v39 = vld [vmem:[%s2336_s10] sm:$0xff]  }
 0x70c   : > { %v1926_v35 = vpop.eup %1925 }
 0x70d   : > { %v1243_v38 = vmul.f32 %v1926_v35, %v2245_v43  ;;  %v1928_v40 = vpop.eup %1927 }
 0x70e   : > { %1838 = vmatpush3.bf16.msra.mxu0 %v1891_v23  ;;  %v1930_v47 = vpop.eup %1929 }
 0x70f   : > { %1839 = vmatprep.subr.bf16.mxu0 %v1939_v4 }
 0x712   : > { %1840 = vmatpush3.bf16.msra.mxu0 %v1892_v31 }
 0x713   : > { %1841 = vmatprep.subr.bf16.mxu0 %v1939_v4 }
 0x716   : > { %1842 = vmatpush3.bf16.msra.mxu0 %v1893_v37 }
 0x717   : > { %1843 = vmatprep.subr.bf16.mxu0 %v1939_v4 }
 0x71a   : > { %1844 = vmatpush3.bf16.msra.mxu0 %v1894_v39 }
 0x721   : > { %v1091_v25 = vpop.f32.mrf.mxu0 }
 0x722   : > { %v1100_v26 = vmul.f32 %v1920_v24, %v1091_v25 }
 0x723   : > { %v1795_v28 = vpop.f32.mrf.mxu0 }
 0x724   : > { %1104 = vrot.lane.b32.xlu1 %v1100_v26, %s1943_s13 }
 0x725   : > { %v1094_v30 = vpop.f32.mrf.mxu0 }
 0x726   : > { %v1101_v32 = vmul.f32 %v1924_v29, %v1094_v30 }
 0x727   : > { %v1796_v36 = vpop.f32.mrf.mxu0 }
 0x728   : > { %1106 = vrot.lane.b32.xlu0 %v1101_v32, %s1943_s13  ;;  %1246 = vrot.lane.b32.xlu1 %v1242_v33, %s1942_s30 }
 0x72c   : > { %1248 = vrot.lane.b32.xlu1 %v1243_v38, %s1942_s30 }
 0x72e   : > { %v1375_v44 = vpop.f32.mrf.mxu0 }
 0x72f   : > { %v1384_v45 = vmul.f32 %v1928_v40, %v1375_v44 }
 0x730   : > { %v1827_v46 = vpop.f32.mrf.mxu0 }
 0x731   : > { %1388 = vrot.lane.b32.xlu1 %v1384_v45, %s1941_s29 }
 0x732   : > { %v1378_v43 = vpop.f32.mrf.mxu0 }
 0x733   : > { %v1385_v48 = vmul.f32 %v1930_v47, %v1378_v43 }
 0x734   : > { %v1828_v49 = vpop.f32.mrf.mxu0 }
 0x735   : > { %1390 = vrot.lane.b32.xlu0 %v1385_v48, %s1941_s29 }
 0x796   : > { %v1105_v50 = vpop.permute.xlu1 %1104 }
 0x797   : > { %1111 = vst.msk [vmem:[#allocation2] sm:$0xff] %vm1110_vm4, %v1105_v50 }
 0x79a   : > { %v1247_v51 = vpop.permute.xlu1 %1246  ;;  %v1107_v52 = vpop.permute.xlu0 %1106 }
 0x79b   : > { %1253 = vst.msk [vmem:[#allocation2] sm:$0xff] %vm1252_vm5, %v1247_v51 }
 0x79c   : > { %1112 = vst.msk [vmem:[#allocation2 + $0x8] sm:$0xff] %vm1110_vm4, %v1107_v52 }
 0x79e   : > { %v1249_v4 = vpop.permute.xlu1 %1248 }
 0x79f   : > { %1254 = vst.msk [vmem:[#allocation2 + $0x8] sm:$0xff] %vm1252_vm5, %v1249_v4 }
 0x7a3   : > { %v1389_v54 = vpop.permute.xlu1 %1388 }
 0x7a4   : > { %1395 = vst.msk [vmem:[#allocation2] sm:$0xff] %vm1394_vm6, %v1389_v54 }
 0x7a7   : > { %v1391_v55 = vpop.permute.xlu0 %1390 }
 0x7a8   : > { %1396 = vst.msk [vmem:[#allocation2 + $0x8] sm:$0xff] %vm1394_vm6, %v1391_v55 }
 0x7ab   : > { %v1397_v56 = vld [vmem:[#allocation2] sm:$0xff] }
 0x7af   : > { %v1398_v58 = vld [vmem:[#allocation2 + $0x8] sm:$0xff] }
 0x7b0   : > { %v1399_v61 = vpack.c.bf16 %v1398_v58, %v1397_v56 }
 0x7b2   : > { %1846 = vmatmul.mubr.bf16.vlgmr.msra.gmra.mxu0 %v1399_v61 }
 0x872   : > { %v1505_v63 = vpop.f32.mrf.mxu0 }
 0x873   : > { %v1506_v2 = vadd.f32 %v1630_v62, %v1505_v63 }
 0x874   : > { %v1847_v3 = vpop.f32.mrf.mxu0 }
 0x875   : > { %v1512_v34 = vadd.f32 %v1506_v2, %v2025_v0 }
 0x876   : > { %v1508_v5 = vpop.f32.mrf.mxu0 }
 0x877   : > { %1514 = vst [vmem:[%s433_s19] sm:$0xff] %v1512_v34  ;;  %v1509_v6 = vadd.f32 %v1630_v62, %v1508_v5 }
 0x878   : > { %v1848_v7 = vpop.f32.mrf.mxu0 }
 0x879   : > { %v1513_v8 = vadd.f32 %v1509_v6, %v2027_v1 }
 0x87b   : > { %1515 = vst [vmem:[%s433_s19 + $0x8] sm:$0xff] %v1513_v8 }
 0x87c PF: > { %s22_s21 = sadd.s32 1, %s1937_s21  }
 0x87d   : > { %p19_p4 = scmp.ge.s32.totalorder %s22_s21, 4  }
 0x87f   :  { %21 = sbr.rel (!%p19_p4) target bundleno = 1 (0x1), region = 101 }

// kernel: decoder_forward.13
= control target key start
LH: loop header
LB: loop body
LE: loop exit
PB: predicated region body
PF: predicated region fallthrough
CT: control target
= control target key end

     0   :  { %12 = vsyncpa [#allocation3], 0  ;;  %s2435_s0 = inlined_call_operand.hbm [shape: f32[2,16,128], index: 0, kind: input, shape index: {}, may-alias: {0,7}]   ;;  %s2436_s1 = inlined_call_operand.vmem [shape: f32[1,128], index: 1, kind: input, shape index: {}]   ;;  %s2437_s2 = inlined_call_operand.vmem [shape: f32[1,128], index: 2, kind: input, shape index: {}]   ;;  %s2438_s3 = inlined_call_operand.vmem [shape: bf16[5,128,256], index: 3, kind: input, shape index: {}]   ;;  %s2439_s4 = inlined_call_operand.vmem [shape: f32[1,256], index: 4, kind: input, shape index: {}]   ;;  %s2440_s5 = inlined_call_operand.vmem [shape: bf16[256,128], index: 5, kind: input, shape index: {}]   ;;  %s2441_s6 = inlined_call_operand.vmem [shape: f32[1,128], index: 6, kind: input, shape index: {}]   ;;  %s2442_s7 = inlined_call_operand.hbm [shape: f32[2,16,128], index: 7, kind: output, shape index: {}, may-alias: {0,7}]  }
   0x1   :  { %14 = vsyncpa [#allocation3 + $0x1], 0 }
   0x2   :  { %15 = vsyncpa [#allocation4], 0 }
   0x3   :  { %17 = vsyncpa [#allocation4 + $0x1], 0  ;;  %s1925_s24 = smov 0   ;;  %s1927_s25 = smov 0  }
   0x4   :  { %s1929_s26 = smov 0   ;;  %s1931_s27 = smov 0  }
   0x5 LB: > { %s1946_s28 = sadd.s32 4294967295, %s1875_s27   ;;  %s1376_s29 = sadd.s32 4294967294, %s1875_s27   ;;  %s1875_s27 = sphi %s1931_s27, %s2457_s27   ;;  %s1871_s26 = sphi %s1929_s26, %s2456_s26   ;;  %s1867_s25 = sphi %s1927_s25, %s2455_s25   ;;  %s1863_s24 = sphi %s1925_s24, %s2454_s24  }
   0x6   : > { %s1950_s30 = sadd.s32 1, %s1875_s27   ;;  %s30_s8 = sadd.s32 1, %s1871_s26 }
   0x7   : > { %s27_s9 = ssub.s32 %s1875_s27, %s1950_s30  ;;  %p37_p0 = scmp.ne.s32.totalorder %s1871_s26, %s1867_s25 }
   0x8   : > { %p28_p1 = scmp.eq.s32.totalorder %s27_s9, 0  ;;  %p38_p2 = scmp.eq.s32.totalorder %s1875_s27, 0 }
   0x9   : > { %p43_p3 = scmp.ne.s32.totalorder %s1867_s25, %s1863_s24  ;;  %p44_p4 = scmp.eq.s32.totalorder %s1946_s28, 0 }
   0xa   : > { %s1962_s10 = scalar_select %p28_p1, %s1871_s26, %s30_s8  }
   0xb   : > { %p1964_p5 = por %p38_p2, %p37_p0  ;;  %p1968_p6 = por %p44_p4, %p43_p3 }
   0xc   : > { %p193_p7 = scmp.eq.s32.totalorder %s1946_s28, 1  ;;  %p199_p8 = scmp.eq.s32.totalorder %s1376_s29, 1 }
   0xd   : > { %s2446_s12 = scalar_select %p1968_p6, 1, 0 }
   0xe   : > { %p1603_p10 = scmp.lt.s32.totalorder %s1875_s27, 2  ;;  %p1975_p11 = por %p193_p7, %p37_p0 }
   0xf   : > { %p1979_p12 = por %p199_p8, %p43_p3  ;;  %s237_s15 = sand.u32 1, %s1871_s26  }
  0x10   : > { %s2447_s13 = scalar_select %p1975_p11, 1, 0 }
  0x11   : > { %s2448_s14 = scalar_select %p1979_p12, 1, 0 }
  0x12   : > { %s1567_s16 = sshll.u32 %s1875_s27, 8  ;;  %s1379_s17 = sshll.u32 %s237_s15, 4 }
  0x13   : > { %s1988_s20 = scalar_lea.hbm %s2435_s0, %s1567_s16  ;;  %s241_s21 = scalar_lea.vmem [#allocation2], %s1379_s17 }
  0x14   : > { %s248_s22 = sshll.u32 %s241_s21, 4  ;;  %p1992_p13 = pnand %p1603_p10, %p1964_p5  ;;  %s1996_s22 = int_to_ptr.vmem [resolvable:$true] %s248_s22 }
  0x15   : > { %s1998_s29 = scalar_lea.sflag [#allocation3], %s237_s15  ;;  %s1783_s8 = scalar_lea.hbm %s1988_s20, 256 }
  0x16   : > { %p1784_p0 = scmp.ne.s32.totalorder %s1988_s20, %s1783_s8  ;;  %p1785_p1 = pneg %p1992_p13 }
  0x17   : > { %s1788_s17 = scalar_lea.hbm %s2435_s0, 512  ;;  %p1789_p4 = scmp.lt.s32.totalorder %s1988_s20, %s2435_s0 }
  0x18   : > { %p1786_p2 = pnand %p1785_p1, %p1784_p0  ;;  %p1790_p5 = scmp.lt.s32.totalorder %s1788_s17, %s1783_s8 }
  0x1a   : > { %p1787_p3 = pneg %p1786_p2  ;;  %p1791_p7 = por %p1790_p5, %p1789_p4 }
  0x1c   : > { %p1792_p8 = pnand %p1791_p7, %p1787_p3 }
  0x1e   : > { %1795 = shalt.err (!%p1792_p8)
}
  0x1f   : > { %s1796_s15 = scalar_lea.vmem %s1996_s22, 256  ;;  %s1877_s19 = smov [#allocation2]  }
  0x20   : > { %p1797_p10 = scmp.ne.s32.totalorder %s1996_s22, %s1796_s15  ;;  %s1801_s21 = sshll.u32 %s1877_s19, 4  ;;  %s1802_s21 = int_to_ptr.vmem [resolvable:$false] %s1801_s21 }
  0x21   : > { %s1803_s9 = scalar_lea.vmem %s1802_s21, 512  ;;  %p1804_p2 = scmp.lt.s32.totalorder %s1996_s22, %s1802_s21 }
  0x22   : > { %p1799_p9 = pnand %p1797_p10, %p1785_p1  ;;  %p1805_p12 = scmp.lt.s32.totalorder %s1803_s9, %s1796_s15 }
  0x24   : > { %p1800_p0 = pneg %p1799_p9  ;;  %p1806_p11 = por %p1805_p12, %p1804_p2 }
  0x26   : > { %p1807_p6 = pnand %p1806_p11, %p1800_p0 }
  0x28   : > { %1810 = shalt.err (!%p1807_p6)
}
  0x29   : > { %s1878_s8 = smov 128   ;;  %s1879_s16 = smov 8  }
  0x2a   : > { %1598 = dma.hbm_to_vmem [thread:$0]  (!%p1992_p13), %s1988_s20, 256, %s1996_s22, %s1998_s29, %s1878_s8, %s1878_s8, %s1879_s16  }
  0x2b   : > { %p1382_p9 = scmp.ge.s32.totalorder %s1875_s27, 1  ;;  %p256_p1 = scmp.lt.s32.totalorder %s1875_s27, 3 }
  0x2d   : > { %p257_p3 = pnand %p1382_p9, %p256_p1 }
  0x2e   : > { %s2022_s17 = sand.u32 (!%p257_p3), 1, %s1867_s25   ;;  %p2450_p6 = scmp.ne.s32.totalorder (!%p257_p3), %s2446_s12, 0 }
  0x2f   : > { %260 = sbr.rel (%p257_p3) target bundleno = 860 (0x35c), region = 48  ;;  %s1383_s11 = sshll.u32 (!%p257_p3), %s2022_s17, 4 }
  0x30   : > { %s263_s18 = scalar_lea.sflag (!%p257_p3), [#allocation3], %s2022_s17  ;;  %s266_s15 = scalar_lea.vmem (!%p257_p3), [#allocation2], %s1383_s11 }
  0x34   : > { %1854 = dma.done.wait (%p2450_p6), %s263_s18, 256  }
  0x35   : > { %1856 = vsyncadd (%p2450_p6), %s263_s18, 4294967040  ;;  %v2032_v0 = vld [vmem:[%s266_s15] sm:$0xff]  ;;  %v2034_v1 = vld [vmem:[%s266_s15 + $0x8] sm:$0xff]  ;;  %v1880_v44 = vmov 0   ;;  %vm367_vm0 = vcmask 1040384   ;;  %vm343_vm1 = vcmask 1041408  }
  0x36   : > { %302 = vadd.xlane.f32.xlu0 %v2032_v0  ;;  %v1643_v10 = vld [vmem:[%s2438_s3 + $0xf4] ss:$8 sps:$4 sm:$0xff]   ;;  %v1647_v12 = vld [vmem:[%s2438_s3 + $0xf0] ss:$8 sps:$4 sm:$0xff]   ;;  %v1649_v14 = vld [vmem:[%s2438_s3 + $0xe4] ss:$8 sps:$4 sm:$0xff]   ;;  %504 = vmatprep.mubr.bf16.mxu0 %v1880_v44 }
  0x37   : > { %v1645_v11 = vld [vmem:[%s2438_s3 + $0x74] ss:$8 sps:$4 sm:$0xff]   ;;  %v1648_v13 = vld [vmem:[%s2438_s3 + $0x70] ss:$8 sps:$4 sm:$0xff]   ;;  %472 = vmatprep.subr.bf16.mxu0 %v1643_v10  ;;  %v1651_v15 = vld [vmem:[%s2438_s3 + $0x64] ss:$8 sps:$4 sm:$0xff]   ;;  %627 = vmatprep.mubr.bf16.mxu1 %v1880_v44 }
  0x38   : > { %595 = vmatprep.subr.bf16.mxu1 %v1645_v11  ;;  %473 = vmatpush1.bf16.msra.mxu0 %v1647_v12  ;;  %v1653_v16 = vld [vmem:[%s2438_s3 + $0xe0] ss:$8 sps:$4 sm:$0xff]   ;;  %v1655_v18 = vld [vmem:[%s2438_s3 + $0xd4] ss:$8 sps:$4 sm:$0xff]   ;;  %v1659_v20 = vld [vmem:[%s2438_s3 + $0xd0] ss:$8 sps:$4 sm:$0xff]  }
  0x39   : > { %596 = vmatpush1.bf16.msra.mxu1 %v1648_v13  ;;  %v1654_v17 = vld [vmem:[%s2438_s3 + $0x60] ss:$8 sps:$4 sm:$0xff]   ;;  %474 = vmatprep.subr.bf16.mxu0 %v1649_v14  ;;  %v1657_v19 = vld [vmem:[%s2438_s3 + $0x54] ss:$8 sps:$4 sm:$0xff]   ;;  %v1660_v21 = vld [vmem:[%s2438_s3 + $0x50] ss:$8 sps:$4 sm:$0xff]  }
  0x3a   : > { %304 = vadd.xlane.f32.xlu0 %v2034_v1  ;;  %597 = vmatprep.subr.bf16.mxu1 %v1651_v15  ;;  %v1661_v22 = vld [vmem:[%s2438_s3 + $0xc4] ss:$8 sps:$4 sm:$0xff]   ;;  %v1665_v24 = vld [vmem:[%s2438_s3 + $0xc0] ss:$8 sps:$4 sm:$0xff]   ;;  %v1667_v26 = vld [vmem:[%s2438_s3 + $0xb4] ss:$8 sps:$4 sm:$0xff]  }
  0x3b   : > { %v1663_v23 = vld [vmem:[%s2438_s3 + $0x44] ss:$8 sps:$4 sm:$0xff]   ;;  %v1666_v25 = vld [vmem:[%s2438_s3 + $0x40] ss:$8 sps:$4 sm:$0xff]   ;;  %v1669_v27 = vld [vmem:[%s2438_s3 + $0x34] ss:$8 sps:$4 sm:$0xff]  }
  0x3c   : > { %475 = vmatpush1.bf16.msra.mxu0 %v1653_v16  ;;  %v1671_v28 = vld [vmem:[%s2438_s3 + $0xb0] ss:$8 sps:$4 sm:$0xff]   ;;  %v1673_v30 = vld [vmem:[%s2438_s3 + $0xa4] ss:$8 sps:$4 sm:$0xff]   ;;  %v1677_v32 = vld [vmem:[%s2438_s3 + $0xa0] ss:$8 sps:$4 sm:$0xff]  }
  0x3d   : > { %598 = vmatpush1.bf16.msra.mxu1 %v1654_v17  ;;  %476 = vmatprep.subr.bf16.mxu0 %v1655_v18  ;;  %v1672_v29 = vld [vmem:[%s2438_s3 + $0x30] ss:$8 sps:$4 sm:$0xff]   ;;  %v1675_v31 = vld [vmem:[%s2438_s3 + $0x24] ss:$8 sps:$4 sm:$0xff]   ;;  %v1678_v33 = vld [vmem:[%s2438_s3 + $0x20] ss:$8 sps:$4 sm:$0xff]  }
  0x3e   : > { %599 = vmatprep.subr.bf16.mxu1 %v1657_v19  ;;  %v1679_v34 = vld [vmem:[%s2438_s3 + $0x94] ss:$8 sps:$4 sm:$0xff]   ;;  %v1683_v36 = vld [vmem:[%s2438_s3 + $0x90] ss:$8 sps:$4 sm:$0xff]   ;;  %v1685_v38 = vld [vmem:[%s2438_s3 + $0x84] ss:$8 sps:$4 sm:$0xff]  }
  0x3f   : > { %v1681_v35 = vld [vmem:[%s2438_s3 + $0x14] ss:$8 sps:$4 sm:$0xff]   ;;  %v1684_v37 = vld [vmem:[%s2438_s3 + $0x10] ss:$8 sps:$4 sm:$0xff]   ;;  %v1687_v39 = vld [vmem:[%s2438_s3 + $0x4] ss:$8 sps:$4 sm:$0xff]  }
  0x40   : > { %477 = vmatpush1.bf16.msra.mxu0 %v1659_v20  ;;  %v1689_v40 = vld [vmem:[%s2438_s3 + $0x80] ss:$8 sps:$4 sm:$0xff]   ;;  %v1693_v42 = vld [vmem:[%s2438_s3 + $0x174] ss:$8 sps:$4 sm:$0xff]   ;;  %vm1419_vm2 = vmneg %vm367_vm0  ;;  %vm935_vm4 = vcmask 1045504   ;;  %vm1881_vm5 = vmmov 1  }
  0x41   : > { %600 = vmatpush1.bf16.msra.mxu1 %v1660_v21  ;;  %478 = vmatprep.subr.bf16.mxu0 %v1661_v22  ;;  %v1690_v41 = vld [vmem:[%s2438_s3] ss:$8 sps:$4 sm:$0xff]   ;;  %v1696_v43 = vld [vmem:[%s2438_s3 + $0x1f4] ss:$8 sps:$4 sm:$0xff]   ;;  %vm1439_vm3 = vmneg %vm343_vm1  ;;  %vm783_vm8 = vcmask 1046528   ;;  %s296_s8 = scalar_lea.vmem [#allocation5], %s1383_s11 }
  0x42   : > { %601 = vmatprep.subr.bf16.mxu1 %v1663_v23  ;;  %v1385_v52 = vld [vmem:[%s2436_s1] ss:$0 sm:$0xff]  ;;  %vm1420_vm6 = vmpackc.low %vm1881_vm5, %vm1419_vm2  ;;  %v1699_v11 = vld [vmem:[%s2438_s3 + $0x164] ss:$8 sps:$4 sm:$0xff]   ;;  %s1303_s16 = sshll.u32 %s296_s8, 4  ;;  %s1568_s18 = sshll.u32 %s1946_s28, 8  ;;  %s2386_s16 = int_to_ptr.vmem [resolvable:$true] %s1303_s16 }
  0x43   : > { %v1386_v56 = vld [vmem:[%s2437_s2] ss:$0 sm:$0xff]  ;;  %vm1440_vm7 = vmpackc.low %vm1881_vm5, %vm1439_vm3  ;;  %v1702_v12 = vld [vmem:[%s2438_s3 + $0x1e4] ss:$8 sps:$4 sm:$0xff]   ;;  %s2391_s20 = scalar_lea.hbm %s2442_s7, %s1568_s18  ;;  %s1290_s11 = scalar_lea.sflag [#allocation4], %s2022_s17 }
  0x44   : > { %479 = vmatpush1.bf16.msra.mxu0 %v1665_v24  ;;  %v1697_v15 = vld [vmem:[%s2438_s3 + $0x160] ss:$8 sps:$4 sm:$0xff]   ;;  %v1705_v17 = vld [vmem:[%s2438_s3 + $0x154] ss:$8 sps:$4 sm:$0xff]   ;;  %v1703_v19 = vld [vmem:[%s2438_s3 + $0x150] ss:$8 sps:$4 sm:$0xff]  }
  0x45   : > { %602 = vmatpush1.bf16.msra.mxu1 %v1666_v25  ;;  %480 = vmatprep.subr.bf16.mxu0 %v1667_v26  ;;  %v1700_v16 = vld [vmem:[%s2438_s3 + $0x1e0] ss:$8 sps:$4 sm:$0xff]   ;;  %v1708_v18 = vld [vmem:[%s2438_s3 + $0x1d4] ss:$8 sps:$4 sm:$0xff]   ;;  %v1706_v20 = vld [vmem:[%s2438_s3 + $0x1d0] ss:$8 sps:$4 sm:$0xff]  }
  0x46   : > { %603 = vmatprep.subr.bf16.mxu1 %v1669_v27  ;;  %v1711_v21 = vld [vmem:[%s2438_s3 + $0x144] ss:$8 sps:$4 sm:$0xff]   ;;  %v1709_v23 = vld [vmem:[%s2438_s3 + $0x140] ss:$8 sps:$4 sm:$0xff]   ;;  %v1717_v25 = vld [vmem:[%s2438_s3 + $0x134] ss:$8 sps:$4 sm:$0xff]  }
  0x47   : > { %v1714_v22 = vld [vmem:[%s2438_s3 + $0x1c4] ss:$8 sps:$4 sm:$0xff]   ;;  %v1712_v24 = vld [vmem:[%s2438_s3 + $0x1c0] ss:$8 sps:$4 sm:$0xff]   ;;  %v1720_v26 = vld [vmem:[%s2438_s3 + $0x1b4] ss:$8 sps:$4 sm:$0xff]  }
  0x48   : > { %481 = vmatpush1.bf16.msra.mxu0 %v1671_v28  ;;  %v1715_v27 = vld [vmem:[%s2438_s3 + $0x130] ss:$8 sps:$4 sm:$0xff]   ;;  %vm1507_vm9 = vmpackc.low %vm783_vm8, %vm1881_vm5  ;;  %s1811_s22 = scalar_lea.vmem %s2386_s16, 256  ;;  %p2451_p12 = scmp.ne.s32.totalorder %s2447_s13, 0 }
  0x49   : > { %604 = vmatpush1.bf16.msra.mxu1 %v1672_v29  ;;  %482 = vmatprep.subr.bf16.mxu0 %v1673_v30  ;;  %v1718_v28 = vld [vmem:[%s2438_s3 + $0x1b0] ss:$8 sps:$4 sm:$0xff]   ;;  %v1723_v29 = vld [vmem:[%s2438_s3 + $0x124] ss:$8 sps:$4 sm:$0xff]   ;;  %vm1542_vm10 = vmpackc.low %vm935_vm4, %vm1881_vm5  ;;  %p1812_p11 = scmp.ne.s32.totalorder %s2386_s16, %s1811_s22  ;;  %s1882_s28 = smov [#allocation5]  }
  0x4a   : > { %605 = vmatprep.subr.bf16.mxu1 %v1675_v31  ;;  %v1726_v30 = vld [vmem:[%s2438_s3 + $0x1a4] ss:$8 sps:$4 sm:$0xff]   ;;  %v1721_v31 = vld [vmem:[%s2438_s3 + $0x120] ss:$8 sps:$4 sm:$0xff]   ;;  %s1815_s23 = sshll.u32 %s1882_s28, 4  ;;  %s1816_s23 = int_to_ptr.vmem [resolvable:$false] %s1815_s23 }
  0x4b   : > { %p1813_p13 = pnand %p1812_p11, %p2451_p12  ;;  %s1817_s29 = scalar_lea.vmem %s1816_s23, 512 }
  0x4c   : > { %483 = vmatpush1.bf16.msra.mxu0 %v1677_v32  ;;  %v1724_v32 = vld [vmem:[%s2438_s3 + $0x1a0] ss:$8 sps:$4 sm:$0xff]   ;;  %p1818_p5 = scmp.lt.s32.totalorder %s2386_s16, %s1816_s23  ;;  %p1819_p7 = scmp.lt.s32.totalorder %s1817_s29, %s1811_s22 }
  0x4d   : > { %606 = vmatpush1.bf16.msra.mxu1 %v1678_v33  ;;  %484 = vmatprep.subr.bf16.mxu0 %v1679_v34  ;;  %v1729_v33 = vld [vmem:[%s2438_s3 + $0x114] ss:$8 sps:$4 sm:$0xff]   ;;  %p1814_p4 = pneg %p1813_p13 }
  0x4e   : > { %607 = vmatprep.subr.bf16.mxu1 %v1681_v35  ;;  %v1732_v34 = vld [vmem:[%s2438_s3 + $0x194] ss:$8 sps:$4 sm:$0xff]   ;;  %v1727_v35 = vld [vmem:[%s2438_s3 + $0x110] ss:$8 sps:$4 sm:$0xff]   ;;  %p1820_p8 = por %p1819_p7, %p1818_p5 }
  0x50   : > { %485 = vmatpush1.bf16.msra.mxu0 %v1683_v36  ;;  %v1730_v36 = vld [vmem:[%s2438_s3 + $0x190] ss:$8 sps:$4 sm:$0xff]   ;;  %p1821_p10 = pnand %p1820_p8, %p1814_p4 }
  0x51   : > { %608 = vmatpush1.bf16.msra.mxu1 %v1684_v37  ;;  %486 = vmatprep.subr.bf16.mxu0 %v1685_v38  ;;  %v1735_v37 = vld [vmem:[%s2438_s3 + $0x104] ss:$8 sps:$4 sm:$0xff]  }
  0x52   : > { %609 = vmatprep.subr.bf16.mxu1 %v1687_v39  ;;  %v1738_v38 = vld [vmem:[%s2438_s3 + $0x184] ss:$8 sps:$4 sm:$0xff]  }
  0x54   : > { %487 = vmatpush1.bf16.msra.mxu0 %v1689_v40  ;;  %v1733_v40 = vld [vmem:[%s2438_s3 + $0x100] ss:$8 sps:$4 sm:$0xff]  }
  0x55   : > { %610 = vmatpush1.bf16.msra.mxu1 %v1690_v41  ;;  %736 = vmatprep.subr.bf16.mxu0 %v1693_v42  ;;  %v1736_v41 = vld [vmem:[%s2438_s3 + $0x180] ss:$8 sps:$4 sm:$0xff]  }
  0x56   : > { %888 = vmatprep.subr.bf16.mxu1 %v1696_v43  ;;  %v1741_v43 = vld [vmem:[%s2438_s3 + $0x274] ss:$8 sps:$4 sm:$0xff]  }
  0xbf   : > { %v303_v2 = vpop.xlane.xlu0 %302 }
  0xc0   : > { %v307_v3 = vmul.f32 0.0078125, %v303_v2 }
  0xc2   : > { %v2039_v4 = vsub.f32 %v2032_v0, %v307_v3 }
  0xc3   : > { %v305_v5 = vpop.xlane.xlu0 %304 }
  0xc4   : > { %v308_v6 = vmul.f32 0.0078125, %v305_v5  ;;  %v311_v7 = vmul.f32 %v2039_v4, %v2039_v4  ;;  %v1691_v5 = vld [vmem:[%s2438_s3 + $0x170] ss:$8 sps:$4 sm:$0xff]  }
  0xc6   : > { %v2044_v8 = vsub.f32 %v2034_v1, %v308_v6  ;;  %313 = vadd.xlane.f32.xlu1 %v311_v7  ;;  %v1694_v6 = vld [vmem:[%s2438_s3 + $0x1f0] ss:$8 sps:$4 sm:$0xff]  }
  0xc8   : > { %v312_v9 = vmul.f32 %v2044_v8, %v2044_v8 }
  0xca   : > { %315 = vadd.xlane.f32.xlu1 %v312_v9 }
 0x14f   : > { %v314_v45 = vpop.xlane.xlu1 %313 }
 0x150   : > { %v317_v46 = vmul.f32 0.0078125, %v314_v45 }
 0x152   : > { %v319_v47 = vadd.f32 1e-05, %v317_v46  ;;  %v1739_v46 = vld [vmem:[%s2438_s3 + $0x270] ss:$8 sps:$4 sm:$0xff]  }
 0x153   : > { %v316_v48 = vpop.xlane.xlu1 %315 }
 0x154   : > { %1779 = vrsqrt.f32 %v319_v47  ;;  %v318_v49 = vmul.f32 0.0078125, %v316_v48 }
 0x156   : > { %v320_v50 = vadd.f32 1e-05, %v318_v49  ;;  %v1744_v49 = vld [vmem:[%s2438_s3 + $0x264] ss:$8 sps:$4 sm:$0xff]  }
 0x158   : > { %1781 = vrsqrt.f32 %v320_v50  ;;  %v1742_v50 = vld [vmem:[%s2438_s3 + $0x260] ss:$8 sps:$4 sm:$0xff]  }
 0x161   : > { %v1780_v51 = vpop.eup %1779 }
 0x162   : > { %v323_v53 = vmul.f32 %v1780_v51, %v2039_v4  ;;  %v1747_v51 = vld [vmem:[%s2438_s3 + $0x254] ss:$8 sps:$4 sm:$0xff]  }
 0x164   : > { %v331_v54 = vmul.f32 %v1385_v52, %v323_v53  ;;  %v1750_v53 = vld [vmem:[%s2438_s3 + $0x244] ss:$8 sps:$4 sm:$0xff]  }
 0x165   : > { %v1782_v55 = vpop.eup %1781 }
 0x166   : > { %v324_v57 = vmul.f32 %v1782_v55, %v2044_v8  ;;  %v2160_v58 = vadd.f32 %v1386_v56, %v331_v54  ;;  %v1753_v54 = vld [vmem:[%s2438_s3 + $0x234] ss:$8 sps:$4 sm:$0xff]   ;;  %v1751_v55 = vld [vmem:[%s2438_s3 + $0x230] ss:$8 sps:$4 sm:$0xff]  }
 0x168   : > { %v332_v59 = vmul.f32 %v1385_v52, %v324_v57  ;;  %v368_v61 = vrot.slane %v2160_v58, 7  ;;  %v344_v63 = vrot.slane %v2160_v58, 6  ;;  %v936_v3 = vrot.slane %v2160_v58, 2  ;;  %v1745_v52 = vld [vmem:[%s2438_s3 + $0x250] ss:$8 sps:$4 sm:$0xff]  }
 0x169   : > { %v784_v42 = vrot.slane %v2160_v58, 1  ;;  %v1754_v57 = vld [vmem:[%s2438_s3 + $0x220] ss:$8 sps:$4 sm:$0xff]  }
 0x16a   : > { %v2162_v60 = vadd.f32 %v1386_v56, %v332_v59  ;;  %v1756_v56 = vld [vmem:[%s2438_s3 + $0x224] ss:$8 sps:$4 sm:$0xff]   ;;  %v1757_v59 = vld [vmem:[%s2438_s3 + $0x210] ss:$8 sps:$4 sm:$0xff]  }
 0x16c   : > { %v369_v62 = vrot.slane %v2162_v60, 7  ;;  %v345_v2 = vrot.slane %v2162_v60, 6  ;;  %v937_v4 = vrot.slane %v2162_v60, 2  ;;  %v785_v39 = vrot.slane %v2162_v60, 1 }
 0x16d   : > { %v638_v47 = vpack.c.bf16 %v2162_v60, %v2160_v58  ;;  %v1759_v58 = vld [vmem:[%s2438_s3 + $0x214] ss:$8 sps:$4 sm:$0xff]   ;;  %v1762_v60 = vld [vmem:[%s2438_s3 + $0x204] ss:$8 sps:$4 sm:$0xff]  }
 0x16e   : > { %v370_v7 = vsel %vm367_vm0, %v368_v61, %v369_v62  ;;  %v346_v8 = vsel %vm343_vm1, %v344_v63, %v345_v2  ;;  %v938_v13 = vsel %vm935_vm4, %v936_v3, %v937_v4  ;;  %v786_v45 = vsel %vm783_vm8, %v784_v42, %v785_v39  ;;  %v1763_v62 = vld [vmem:[%s2440_s5 + $0x78] sm:$0xff]   ;;  %v1765_v2 = vld [vmem:[%s2440_s5 + $0x70] sm:$0xff]  }
 0x16f   : > { %v1421_v9 = vpack.c.bf16 %v370_v7, %v368_v61  ;;  %v1441_v10 = vpack.c.bf16 %v346_v8, %v344_v63  ;;  %v2189_v14 = vpack.c.bf16 %v937_v4, %v938_v13  ;;  %v1508_v48 = vpack.c.bf16 %v785_v39, %v786_v45  ;;  %v1760_v61 = vld [vmem:[%s2438_s3 + $0x200] ss:$8 sps:$4 sm:$0xff]   ;;  %v1764_v63 = vld [vmem:[%s2440_s5 + $0x38] sm:$0xff]   ;;  %v1766_v3 = vld [vmem:[%s2440_s5 + $0x30] sm:$0xff]  }
 0x170   : > { %v1767_v4 = vld [vmem:[%s2440_s5 + $0x68] sm:$0xff]   ;;  %v1770_v7 = vld [vmem:[%s2440_s5 + $0x20] sm:$0xff]   ;;  %v1771_v8 = vld [vmem:[%s2440_s5 + $0x58] sm:$0xff]  }
 0x171   : > { %1422 = vmatmul.mubr.msk.bf16.vlgmr.msra.gmra.mxu0 %vm1420_vm6, %v1421_v9  ;;  %1442 = vmatmul.mubr.msk.bf16.vlgmr.msra.gmra.mxu1 %vm1440_vm7, %v1441_v10  ;;  %v1772_v9 = vld [vmem:[%s2440_s5 + $0x18] sm:$0xff]   ;;  %v1773_v10 = vld [vmem:[%s2440_s5 + $0x50] sm:$0xff]   ;;  %v1776_v13 = vld [vmem:[%s2440_s5 + $0x8] sm:$0xff]  }
 0x172   : > { %737 = vmatpush1.bf16.msra.mxu0 %v1691_v5  ;;  %889 = vmatpush1.bf16.msra.mxu1 %v1694_v6  ;;  %v1768_v5 = vld [vmem:[%s2440_s5 + $0x28] sm:$0xff]   ;;  %v1769_v6 = vld [vmem:[%s2440_s5 + $0x60] sm:$0xff]  }
 0x173   : > { %738 = vmatprep.subr.bf16.mxu0 %v1699_v11  ;;  %890 = vmatprep.subr.bf16.mxu1 %v1702_v12  ;;  %v1774_v11 = vld [vmem:[%s2440_s5 + $0x10] sm:$0xff]   ;;  %v1775_v12 = vld [vmem:[%s2440_s5 + $0x48] sm:$0xff]  }
 0x174   : > { %768 = vmatprep.mubr.bf16.mxu0 %v1880_v44  ;;  %920 = vmatprep.mubr.bf16.mxu1 %v1880_v44 }
 0x176   : > { %739 = vmatpush1.bf16.msra.mxu0 %v1697_v15  ;;  %891 = vmatpush1.bf16.msra.mxu1 %v1700_v16  ;;  %v1778_v15 = vld [vmem:[%s2440_s5] sm:$0xff]  }
 0x177   : > { %740 = vmatprep.subr.bf16.mxu0 %v1705_v17  ;;  %892 = vmatprep.subr.bf16.mxu1 %v1708_v18 }
 0x17a   : > { %741 = vmatpush1.bf16.msra.mxu0 %v1703_v19  ;;  %893 = vmatpush1.bf16.msra.mxu1 %v1706_v20 }
 0x17b   : > { %742 = vmatprep.subr.bf16.mxu0 %v1711_v21  ;;  %894 = vmatprep.subr.bf16.mxu1 %v1714_v22 }
 0x17e   : > { %743 = vmatpush1.bf16.msra.mxu0 %v1709_v23  ;;  %895 = vmatpush1.bf16.msra.mxu1 %v1712_v24 }
 0x17f   : > { %744 = vmatprep.subr.bf16.mxu0 %v1717_v25  ;;  %896 = vmatprep.subr.bf16.mxu1 %v1720_v26 }
 0x182   : > { %745 = vmatpush1.bf16.msra.mxu0 %v1715_v27  ;;  %897 = vmatpush1.bf16.msra.mxu1 %v1718_v28  ;;  %v1089_v27 = vlaneseq }
 0x183   : > { %746 = vmatprep.subr.bf16.mxu0 %v1723_v29  ;;  %898 = vmatprep.subr.bf16.mxu1 %v1726_v30 }
 0x186   : > { %747 = vmatpush1.bf16.msra.mxu0 %v1721_v31  ;;  %899 = vmatpush1.bf16.msra.mxu1 %v1724_v32  ;;  %v1090_v32 = vshrl.u32 %v1089_v27, 7 }
 0x187   : > { %748 = vmatprep.subr.bf16.mxu0 %v1729_v33  ;;  %900 = vmatprep.subr.bf16.mxu1 %v1732_v34 }
 0x188   : > { %v1095_v39 = vsub.s32 1, %v1090_v32  ;;  %v1091_v42 = vsub.s32 0, %v1090_v32 }
 0x18a   : > { %749 = vmatpush1.bf16.msra.mxu0 %v1727_v35  ;;  %901 = vmatpush1.bf16.msra.mxu1 %v1730_v36 }
 0x18b   : > { %750 = vmatprep.subr.bf16.mxu0 %v1735_v37  ;;  %902 = vmatprep.subr.bf16.mxu1 %v1738_v38 }
 0x18e   : > { %751 = vmatpush1.bf16.msra.mxu0 %v1733_v40  ;;  %903 = vmatpush1.bf16.msra.mxu1 %v1736_v41 }
 0x18f   : > { %1040 = vmatprep.subr.bf16.mxu0 %v1741_v43  ;;  %1569 = vmatprep.subr.bf16.mxu1 %v1763_v62 }
 0x191   : > { %769 = vmatmul.mubr.bf16.vlgmr.msra.gmra.mxu0 %v638_v47  ;;  %1509 = vmatmul.mubr.msk.bf16.vlgmr.msra.gmra.mxu1 %vm1507_vm9, %v1508_v48 }
 0x192   : > { %1041 = vmatpush1.bf16.msra.mxu0 %v1739_v46  ;;  %1072 = vmatprep.mubr.bf16.mxu0 %v1880_v44  ;;  %v1748_v44 = vld [vmem:[%s2438_s3 + $0x240] ss:$8 sps:$4 sm:$0xff]  }
 0x193   : > { %1042 = vmatprep.subr.bf16.mxu0 %v1744_v49  ;;  %1570 = vmatpush3.bf16.msra.mxu1 %v1764_v63  ;;  %v1087_v46 = vld [vmem:[%s2439_s4] sm:$0x3] }
 0x194   : > { %1571 = vmatprep.subr.bf16.mxu1 %v1765_v2 }
 0x196   : > { %1043 = vmatpush1.bf16.msra.mxu0 %v1742_v50 }
 0x197   : > { %1044 = vmatprep.subr.bf16.mxu0 %v1747_v51  ;;  %1572 = vmatpush3.bf16.msra.mxu1 %v1766_v3  ;;  %v1096_v51 = vrot.slane %v1087_v46, %v1095_v39 }
 0x198   : > { %1573 = vmatprep.subr.bf16.mxu1 %v1767_v4 }
 0x19a   : > { %1045 = vmatpush1.bf16.msra.mxu0 %v1745_v52 }
 0x19b   : > { %1046 = vmatprep.subr.bf16.mxu0 %v1750_v53  ;;  %1574 = vmatpush3.bf16.msra.mxu1 %v1768_v5 }
 0x19c   : > { %1575 = vmatprep.subr.bf16.mxu1 %v1769_v6 }
 0x19e   : > { %1047 = vmatpush1.bf16.msra.mxu0 %v1748_v44  ;;  %v1092_v44 = vrot.slane %v1087_v46, %v1091_v42 }
 0x19f   : > { %1048 = vmatprep.subr.bf16.mxu0 %v1753_v54  ;;  %1576 = vmatpush3.bf16.msra.mxu1 %v1770_v7 }
 0x1a0   : > { %1577 = vmatprep.subr.bf16.mxu1 %v1771_v8  ;;  %v1545_v8 = vld [vmem:[%s2441_s6] ss:$0 sm:$0xff] }
 0x1a2   : > { %1049 = vmatpush1.bf16.msra.mxu0 %v1751_v55 }
 0x1a3   : > { %1050 = vmatprep.subr.bf16.mxu0 %v1756_v56  ;;  %1578 = vmatpush3.bf16.msra.mxu1 %v1772_v9 }
 0x1a4   : > { %1579 = vmatprep.subr.bf16.mxu1 %v1773_v10 }
 0x1a6   : > { %1051 = vmatpush1.bf16.msra.mxu0 %v1754_v57 }
 0x1a7   : > { %1052 = vmatprep.subr.bf16.mxu0 %v1759_v58  ;;  %1580 = vmatpush3.bf16.msra.mxu1 %v1774_v11 }
 0x1a8   : > { %1581 = vmatprep.subr.bf16.mxu1 %v1775_v12 }
 0x1aa   : > { %1053 = vmatpush1.bf16.msra.mxu0 %v1757_v59 }
 0x1ab   : > { %1054 = vmatprep.subr.bf16.mxu0 %v1762_v60  ;;  %1582 = vmatpush3.bf16.msra.mxu1 %v1776_v13 }
 0x1ae   : > { %1055 = vmatpush1.bf16.msra.mxu0 %v1760_v61 }
 0x1b1   : > { %1544 = vmatmul.mubr.msk.bf16.vlgmr.msra.gmra.mxu0 %vm1542_vm10, %v2189_v14  ;;  %v1777_v14 = vld [vmem:[%s2440_s5 + $0x40] sm:$0xff]  }
 0x1b2   : > { %1583 = vmatprep.subr.bf16.mxu1 %v1777_v14 }
 0x1b3   : > { %1584 = vmatpush3.bf16.msra.mxu1 %v1778_v15 }
 0x231   : > { %v506_v16 = vpop.f32.mrf.mxu0  ;;  %v629_v18 = vpop.f32.mrf.mxu1 }
 0x232   : > { %v630_v30 = vadd.f32 %v629_v18, %v506_v16 }
 0x233   : > { %v508_v17 = vpop.f32.mrf.mxu0  ;;  %v631_v20 = vpop.f32.mrf.mxu1 }
 0x234   : > { %v632_v29 = vadd.f32 %v631_v20, %v508_v17 }
 0x235   : > { %v510_v19 = vpop.f32.mrf.mxu0  ;;  %v633_v22 = vpop.f32.mrf.mxu1 }
 0x236   : > { %v634_v33 = vadd.f32 %v633_v22, %v510_v19 }
 0x237   : > { %v512_v21 = vpop.f32.mrf.mxu0  ;;  %v635_v24 = vpop.f32.mrf.mxu1 }
 0x238   : > { %v636_v37 = vadd.f32 %v635_v24, %v512_v21 }
 0x251   : > { %v770_v23 = vpop.f32.mrf.mxu0  ;;  %v922_v26 = vpop.f32.mrf.mxu1 }
 0x252   : > { %v779_v35 = vadd.f32 %v770_v23, %v630_v30 }
 0x253   : > { %v772_v25 = vpop.f32.mrf.mxu0  ;;  %v924_v31 = vpop.f32.mrf.mxu1 }
 0x254   : > { %v780_v34 = vadd.f32 %v772_v25, %v632_v29  ;;  %v931_v47 = vadd.f32 %v922_v26, %v779_v35 }
 0x255   : > { %v774_v28 = vpop.f32.mrf.mxu0  ;;  %v926_v40 = vpop.f32.mrf.mxu1 }
 0x256   : > { %v781_v38 = vadd.f32 %v774_v28, %v634_v33  ;;  %v932_v43 = vadd.f32 %v924_v31, %v780_v34 }
 0x257   : > { %v776_v36 = vpop.f32.mrf.mxu0  ;;  %v928_v52 = vpop.f32.mrf.mxu1 }
 0x258   : > { %v782_v45 = vadd.f32 %v776_v36, %v636_v37  ;;  %v933_v49 = vadd.f32 %v926_v40, %v781_v38 }
 0x25a   : > { %v934_v55 = vadd.f32 %v928_v52, %v782_v45 }
 0x271   : > { %v1074_v41 = vpop.f32.mrf.mxu0 }
 0x272   : > { %v1083_v53 = vadd.f32 %v1074_v41, %v931_v47 }
 0x273   : > { %v1076_v48 = vpop.f32.mrf.mxu0 }
 0x274   : > { %v1084_v50 = vadd.f32 %v1076_v48, %v932_v43  ;;  %v1099_v61 = vadd.f32 %v1092_v44, %v1083_v53 }
 0x275   : > { %v1078_v54 = vpop.f32.mrf.mxu0 }
 0x276   : > { %v1085_v56 = vadd.f32 %v1078_v54, %v933_v49  ;;  %v1100_v58 = vadd.f32 %v1096_v51, %v1084_v50  ;;  %v1103_v4 = vmax.f32 %v1099_v61, 0.0 }
 0x277   : > { %v1080_v57 = vpop.f32.mrf.mxu0 }
 0x278   : > { %v1101_v59 = vadd.f32 %v1092_v44, %v1085_v56  ;;  %v1086_v60 = vadd.f32 %v1080_v57, %v934_v55  ;;  %v1104_v2 = vmax.f32 %v1100_v58, 0.0 }
 0x27a   : > { %v1102_v62 = vadd.f32 %v1096_v51, %v1086_v60  ;;  %v1105_v63 = vmax.f32 %v1101_v59, 0.0 }
 0x27c   : > { %v1106_v3 = vmax.f32 %v1102_v62, 0.0  ;;  %v1107_v6 = vpack.c.bf16 %v1105_v63, %v1103_v4 }
 0x27e   : > { %v1108_v5 = vpack.c.bf16 %v1106_v3, %v1104_v2 }
 0x280   : > { %1276 = vmatprep.mubr.bf16.mxu1 %v1108_v5 }
 0x281   : > { %1277 = vmatmul.mubr.bf16.vlgmr.msra.gmra.mxu1 %v1107_v6 }
 0x341   : > { %v1585_v7 = vpop.f32.mrf.mxu1 }
 0x343   : > { %v1586_v9 = vpop.f32.mrf.mxu1 }
 0x344   : > { %v1587_v10 = vadd.f32 %v1586_v9, %v1585_v7 }
 0x345   : > { %v1588_v11 = vpop.f32.mrf.mxu1 }
 0x346   : > { %v1279_v12 = vadd.f32 %v1587_v10, %v1545_v8 }
 0x347   : > { %v1589_v13 = vpop.f32.mrf.mxu1 }
 0x348   : > { %v1285_v14 = vadd.f32 %v1279_v12, %v2032_v0  ;;  %v1590_v15 = vadd.f32 %v1589_v13, %v1588_v11 }
 0x34a   : > { %1287 = vst [vmem:[%s296_s8] sm:$0xff] %v1285_v14  ;;  %v1282_v16 = vadd.f32 %v1590_v15, %v1545_v8 }
 0x34c   : > { %v1286_v17 = vadd.f32 %v1282_v16, %v2034_v1 }
 0x34e   : > { %1288 = vst [vmem:[%s296_s8 + $0x8] sm:$0xff] %v1286_v17 }
 0x34f   : > { %1824 = shalt.err (!%p1821_p10)
}
 0x350   : > { %s1825_s19 = scalar_lea.hbm %s2391_s20, 256  ;;  %s1829_s8 = scalar_lea.hbm %s2442_s7, 512 }
 0x351   : > { %p1826_p0 = scmp.ne.s32.totalorder %s2391_s20, %s1825_s19  ;;  %p1830_p1 = scmp.lt.s32.totalorder %s2391_s20, %s2442_s7 }
 0x352   : > { %p1831_p3 = scmp.lt.s32.totalorder %s1829_s8, %s1825_s19 }
 0x353   : > { %p1827_p2 = pnand %p1826_p0, %p2451_p12 }
 0x354   : > { %p1832_p6 = por %p1831_p3, %p1830_p1 }
 0x355   : > { %p1828_p9 = pneg %p1827_p2 }
 0x357   : > { %p1833_p11 = pnand %p1832_p6, %p1828_p9 }
 0x359   : > { %1836 = shalt.err (!%p1833_p11)
}
 0x35a   : > { %s1883_s12 = smov 128   ;;  %s1884_s22 = smov 8  }
 0x35b   : > { %1593 = dma.vmem_to_hbm [thread:$0]  (%p2451_p12), %s2386_s16, 256, %s2391_s20, %s1290_s11, %s1883_s12, %s1883_s12, %s1884_s22  }
 0x35c PF: > { %s1318_s28 = sand.u32 1, %s1863_s24   ;;  %p2452_p13 = scmp.ne.s32.totalorder %s2448_s14, 0 }
 0x35d   : > { %p2453_p4 = scmp.ge.s32.totalorder %s1875_s27, 2  ;;  %s1319_s23 = scalar_lea.sflag [#allocation4], %s1318_s28 }
 0x35f   : > { %p1600_p5 = pnand %p2453_p4, %p2452_p13 }
 0x361   : > { %p1601_p7 = pneg %p1600_p5 }
 0x363   : > { %1858 = dma.done.wait (%p1601_p7), %s1319_s23, 256  }
 0x364   : > { %1860 = vsyncadd (%p1601_p7), %s1319_s23, 4294967040  ;;  %p20_p8 = scmp.ge.s32.totalorder %s1950_s30, 4   ;;  %s2454_s24 = smov %s1867_s25 }
 0x365   : > { %s2455_s25 = smov %s1871_s26  ;;  %s2456_s26 = smov %s1962_s10 }
 0x366   : > { %s2457_s27 = smov %s1950_s30  ;;  %22 = sbr.rel (!%p20_p8) target bundleno = 5 (0x5), region = 97 }
 0x36b   :  { %1324 = vsyncpa [#allocation3], 1 }
 0x36c   :  { %1326 = vsyncpa [#allocation3 + $0x1], 1 }
 0x36d   :  { %1327 = vsyncpa [#allocation4], 1 }
 0x36e   :  { %1329 = vsyncpa [#allocation4 + $0x1], 1 }

</bundles_post_ra>
